<compile_context>
chip_gen: v6e
topology: v6e:2x2x1
jax: 0.10.0
libtpu: 0.0.40
codegen_flags: <defaults>
</compile_context>

<pallas_src>
import jax
import jax.numpy as jnp
from jax.experimental import pallas as pl
from jax.experimental.pallas import tpu as pltpu

D_IN, D_HID, D_OUT = 2048, 1024, 300   # fc: 2048->1024, fc1: 1024->300
D_OUT_PAD = 384                        # 3 * 128 -> lane-dense output stores


def _round_up(x, m):
    return ((x + m - 1) // m) * m


def _vmem_limit_bytes(tm, n_out_pad):
    x_tile = tm * D_IN * 2 * 2            # bf16 row tile, double-buffered
    w1 = D_IN * D_HID * 2 * 2             # bf16 fc weight, double-buffered
    b1 = 2 * 8 * D_HID * 4                # f32, sublane-padded worst case
    w2 = D_HID * n_out_pad * 2 * 2        # bf16 fc1 weight, double-buffered
    b2 = 2 * 8 * n_out_pad * 4
    o_tile = tm * n_out_pad * 4 * 2       # f32 out tile, double-buffered
    h_tmp = tm * D_HID * 4 * 2            # intermediate activation headroom
    total = x_tile + w1 + b1 + w2 + b2 + o_tile + h_tmp
    # generous headroom for compiler scratch, but stay well under v7x's
    # 64 MiB physical VMEM per TensorCore.
    return int(min(max(2 * total, 32 << 20), 48 << 20))


def encoder_head_kernel(x_ref, w1_ref, b1_ref, w2_ref, b2_ref, o_ref):
    # x_ref: (tm, 2048) bf16, w1_ref: (2048, 1024) bf16, b1_ref: (1, 1024) f32
    # w2_ref: (1024, 384) bf16, b2_ref: (1, 384) f32, o_ref: (tm, 384) f32
    h = jnp.dot(x_ref[...], w1_ref[...], preferred_element_type=jnp.float32)
    h = h + b1_ref[...]
    y = jnp.dot(h.astype(jnp.bfloat16), w2_ref[...],
                preferred_element_type=jnp.float32)
    o_ref[...] = y + b2_ref[...]


def encoder_head(x2d, w1, b1, w2p, b2p, *, tm=256):
    """x2d: (M, 2048) bf16 -> (M, 300) f32, fused Linear->Linear."""
    M = x2d.shape[0]
    n_out_pad = w2p.shape[1]

    # tm must be a multiple of 128 (MXU rows); don't exceed the row extent.
    tm = _round_up(tm, 128)
    tm = min(tm, _round_up(M, 128))
    m_pad = _round_up(M, tm)
    if m_pad != M:
        x2d = jnp.pad(x2d, ((0, m_pad - M), (0, 0)))
    num_tiles = m_pad // tm

    out = pl.pallas_call(
        encoder_head_kernel,
        out_shape=jax.ShapeDtypeStruct((m_pad, n_out_pad), jnp.float32),
        grid_spec=pltpu.PrefetchScalarGridSpec(
            num_scalar_prefetch=0,
            grid=(num_tiles,),
            in_specs=[
                pl.BlockSpec((tm, D_IN), lambda i: (i, 0)),          # row tile
                pl.BlockSpec((D_IN, D_HID), lambda i: (0, 0)),       # fc weight
                pl.BlockSpec((1, D_HID), lambda i: (0, 0)),          # fc bias
                pl.BlockSpec((D_HID, n_out_pad), lambda i: (0, 0)),  # fc1 weight
                pl.BlockSpec((1, n_out_pad), lambda i: (0, 0)),      # fc1 bias
            ],
            out_specs=pl.BlockSpec((tm, n_out_pad), lambda i: (i, 0)),
        ),
        compiler_params=pltpu.CompilerParams(
            # Tiny grids: keep the (weight-DMA-bound) work on one core so the
            # resident weights are fetched once; share rows across cores only
            # when there are enough tiles to amortize the duplicated fetch.
            dimension_semantics=(
                ("parallel",) if num_tiles >= 4 else ("arbitrary",)),
            vmem_limit_bytes=_vmem_limit_bytes(tm, n_out_pad),
        ),
    )(x2d, w1, b1, w2p, b2p)
    return out[:M, :D_OUT]


def init_params(key):
    """Deterministic PyTorch-style Linear init (uniform +/- 1/sqrt(fan_in))."""
    k1, k2, k3, k4 = jax.random.split(key, 4)
    lim_fc = 1.0 / jnp.sqrt(jnp.float32(D_IN))
    lim_fc1 = 1.0 / jnp.sqrt(jnp.float32(D_HID))
    # PyTorch stores weights as (out, in); kernel uses (in, out) -> transpose.
    fc_w = jax.random.uniform(k1, (D_HID, D_IN), jnp.float32, -lim_fc, lim_fc).T
    fc_b = jax.random.uniform(k2, (1, D_HID), jnp.float32, -lim_fc, lim_fc)
    fc1_w = jax.random.uniform(k3, (D_OUT, D_HID), jnp.float32, -lim_fc1, lim_fc1).T
    fc1_b = jax.random.uniform(k4, (1, D_OUT), jnp.float32, -lim_fc1, lim_fc1)
    return dict(fc_w=fc_w, fc_b=fc_b, fc1_w=fc1_w, fc1_b=fc1_b)


@jax.jit
def encoder_forward(feats, fc_w, fc_b, fc1_w, fc1_b):
    # feats: NCHW backbone features (B, 2048, 8, 8)
    # x = x.view(-1, 64, 2048)  -- exact contiguous (row-major) reshape
    x = jnp.reshape(feats, (-1, 64, D_IN))
    B = x.shape[0]
    x2d = jnp.reshape(x, (B * 64, D_IN)).astype(jnp.bfloat16)

    w1 = fc_w.astype(jnp.bfloat16)
    # Zero-pad the 300-wide output projection to 384 lanes (3x128).
    w2p = jnp.pad(fc1_w, ((0, 0), (0, D_OUT_PAD - D_OUT))).astype(jnp.bfloat16)
    b2p = jnp.pad(fc1_b, ((0, 0), (0, D_OUT_PAD - D_OUT)))

    y = encoder_head(x2d, w1, fc_b, w2p, b2p)            # fc then fc1
    return jnp.reshape(y, (B, 64, D_OUT))                # (B, 64, 300) f32


if __name__ == "__main__":
    key = jax.random.PRNGKey(0)
    k_params, k_x = jax.random.split(key)
    params = init_params(k_params)

    # Stand-in inception backbone output: (B=2, C=2048, H=8, W=8), NCHW.
    feats = jax.random.normal(k_x, (2, 2048, 8, 8), dtype=jnp.float32)

    out = encoder_forward(feats, params["fc_w"], params["fc_b"],
                          params["fc1_w"], params["fc1_b"])
    out = jax.block_until_ready(out)

    # Sanity: shape must be (B, 64, 300) and finite.
    assert out.shape == (2, 64, D_OUT), out.shape
    assert bool(jnp.all(jnp.isfinite(out)))

    # Cross-check against a plain-JAX reference of the same (bf16 in, f32
    # accumulate) head math.
    xb = jnp.reshape(feats, (-1, D_IN)).astype(jnp.bfloat16)
    h = jnp.dot(xb, params["fc_w"].astype(jnp.bfloat16),
                preferred_element_type=jnp.float32) + params["fc_b"]
    y = jnp.dot(h.astype(jnp.bfloat16), params["fc1_w"].astype(jnp.bfloat16),
                preferred_element_type=jnp.float32) + params["fc1_b"]
    ref = jnp.reshape(y, (2, 64, D_OUT))
    assert bool(jnp.allclose(out, ref, atol=1e-2, rtol=1e-2))

    print("KERNEL_OK")
</pallas_src>

<mosaic_0001>
module attributes {stable_mosaic.version = 11 : i64} {
  func.func @encoder_head_kernel(%arg0: i32, %arg1: memref<128x2048xbf16, #tpu.memory_space<vmem>>, %arg2: memref<2048x1024xbf16, #tpu.memory_space<vmem>>, %arg3: memref<1x1024xf32, #tpu.memory_space<vmem>>, %arg4: memref<1024x384xbf16, #tpu.memory_space<vmem>>, %arg5: memref<1x384xf32, #tpu.memory_space<vmem>>, %arg6: memref<128x384xf32, #tpu.memory_space<vmem>>) attributes {dimension_semantics = [#tpu.dimension_semantics<arbitrary>], iteration_bounds = array<i64: 1>, scalar_prefetch = 0 : i64, scratch_operands = 0 : i64, tpu.core_type = #tpu.core_type<tc>, window_params = [{transform_indices = @transform_0, window_bounds = array<i64: 128, 2048>}, {pipeline_mode = #tpu.pipeline_mode<synchronous>, transform_indices = @transform_1, window_bounds = array<i64: 2048, 1024>}, {pipeline_mode = #tpu.pipeline_mode<synchronous>, transform_indices = @transform_2, window_bounds = array<i64: 1, 1024>}, {pipeline_mode = #tpu.pipeline_mode<synchronous>, transform_indices = @transform_3, window_bounds = array<i64: 1024, 384>}, {pipeline_mode = #tpu.pipeline_mode<synchronous>, transform_indices = @transform_4, window_bounds = array<i64: 1, 384>}, {transform_indices = @transform_5, window_bounds = array<i64: 128, 384>}]} {
    %c0 = arith.constant 0 : index
    %c0_0 = arith.constant 0 : index
    %0 = vector.load %arg1[%c0, %c0_0] : memref<128x2048xbf16, #tpu.memory_space<vmem>>, vector<128x2048xbf16>
    %c0_1 = arith.constant 0 : index
    %c0_2 = arith.constant 0 : index
    %1 = vector.load %arg2[%c0_1, %c0_2] : memref<2048x1024xbf16, #tpu.memory_space<vmem>>, vector<2048x1024xbf16>
    %cst = arith.constant dense<0.000000e+00> : vector<128x1024xf32>
    %2 = tpu.matmul %0, %1, %cst {dimension_numbers = #tpu.dot_dimension_numbers<[1], [0], [0], [1], [0, 0, 1, 1], [], []>} : vector<128x2048xbf16>, vector<2048x1024xbf16>, vector<128x1024xf32> -> vector<128x1024xf32>
    %c0_3 = arith.constant 0 : index
    %c0_4 = arith.constant 0 : index
    %3 = vector.load %arg3[%c0_3, %c0_4] : memref<1x1024xf32, #tpu.memory_space<vmem>>, vector<1x1024xf32>
    %4 = vector.broadcast %3 : vector<1x1024xf32> to vector<128x1024xf32>
    %5 = arith.addf %2, %4 : vector<128x1024xf32>
    %6 = arith.truncf %5 : vector<128x1024xf32> to vector<128x1024xbf16>
    %c0_5 = arith.constant 0 : index
    %c0_6 = arith.constant 0 : index
    %7 = vector.load %arg4[%c0_5, %c0_6] : memref<1024x384xbf16, #tpu.memory_space<vmem>>, vector<1024x384xbf16>
    %cst_7 = arith.constant dense<0.000000e+00> : vector<128x384xf32>
    %8 = tpu.matmul %6, %7, %cst_7 {dimension_numbers = #tpu.dot_dimension_numbers<[1], [0], [0], [1], [0, 0, 1, 1], [], []>} : vector<128x1024xbf16>, vector<1024x384xbf16>, vector<128x384xf32> -> vector<128x384xf32>
    %c0_8 = arith.constant 0 : index
    %c0_9 = arith.constant 0 : index
    %9 = vector.load %arg5[%c0_8, %c0_9] : memref<1x384xf32, #tpu.memory_space<vmem>>, vector<1x384xf32>
    %10 = vector.broadcast %9 : vector<1x384xf32> to vector<128x384xf32>
    %11 = arith.addf %8, %10 : vector<128x384xf32>
    %c0_10 = arith.constant 0 : index
    %c0_11 = arith.constant 0 : index
    %12 = vector.load %arg6[%c0_10, %c0_11] : memref<128x384xf32, #tpu.memory_space<vmem>>, vector<128x384xf32>
    tpu.vector_store %arg6[%c0_10, %c0_11], %11 {strides = array<i32>} : memref<128x384xf32, #tpu.memory_space<vmem>>, vector<128x384xf32>,
    return
  }
  func.func @transform_0(%arg0: i32) -> (i32, i32) {
    %c0_i32 = arith.constant 0 : i32
    %c0_i32_0 = arith.constant 0 : i32
    return %arg0, %c0_i32 : i32, i32
  }
  func.func @transform_1(%arg0: i32) -> (i32, i32) {
    %c0_i32 = arith.constant 0 : i32
    %c0_i32_0 = arith.constant 0 : i32
    %c0_i32_1 = arith.constant 0 : i32
    return %c0_i32, %c0_i32_0 : i32, i32
  }
  func.func @transform_2(%arg0: i32) -> (i32, i32) {
    %c0_i32 = arith.constant 0 : i32
    %c0_i32_0 = arith.constant 0 : i32
    %c0_i32_1 = arith.constant 0 : i32
    return %c0_i32, %c0_i32_0 : i32, i32
  }
  func.func @transform_3(%arg0: i32) -> (i32, i32) {
    %c0_i32 = arith.constant 0 : i32
    %c0_i32_0 = arith.constant 0 : i32
    %c0_i32_1 = arith.constant 0 : i32
    return %c0_i32, %c0_i32_0 : i32, i32
  }
  func.func @transform_4(%arg0: i32) -> (i32, i32) {
    %c0_i32 = arith.constant 0 : i32
    %c0_i32_0 = arith.constant 0 : i32
    %c0_i32_1 = arith.constant 0 : i32
    return %c0_i32, %c0_i32_0 : i32, i32
  }
  func.func @transform_5(%arg0: i32) -> (i32, i32) {
    %c0_i32 = arith.constant 0 : i32
    %c0_i32_0 = arith.constant 0 : i32
    return %arg0, %c0_i32 : i32, i32
  }
}

</mosaic_0001>

<bundles_post_ra>
// kernel: encoder_forward.1
= control target key start
LH: loop header
LB: loop body
LE: loop exit
PB: predicated region body
PF: predicated region fallthrough
CT: control target
= control target key end

     0   :  { %s22019_s0 = inlined_call_operand.vmem [shape: bf16[128,2048], index: 0, kind: input, shape index: {}]   ;;  %s22020_s1 = inlined_call_operand.vmem [shape: bf16[2048,1024], index: 1, kind: input, shape index: {}]   ;;  %s22021_s2 = inlined_call_operand.vmem [shape: f32[1,1024], index: 2, kind: input, shape index: {}]   ;;  %s22022_s3 = inlined_call_operand.vmem [shape: bf16[1024,384], index: 3, kind: input, shape index: {}]   ;;  %s22023_s4 = inlined_call_operand.vmem [shape: f32[1,384], index: 4, kind: input, shape index: {}]   ;;  %s22024_s5 = inlined_call_operand.hbm [shape: f32[128,384], index: 5, kind: output, shape index: {}]  }
   0x1   :  { %v206_v0 = vld [vmem:[%s22020_s1 + $0x1c0] sm:$0xff]  ;;  %v14881_v59 = vld [vmem:[%s22019_s0 + $0x8] sm:$0xff] }
   0x2   :  { %v210_v1 = vld [vmem:[%s22020_s1 + $0x1e0] sm:$0xff]  ;;  %v14886_v60 = vld [vmem:[%s22019_s0 + $0x48] sm:$0xff] }
   0x3   :  { %v334_v2 = vld [vmem:[%s22020_s1 + $0x5c0] sm:$0xff]  ;;  %v13042_v3 = vcombine.high %v206_v0, %v210_v1  ;;  %v13041_v5 = vcombine.low %v206_v0, %v210_v1  ;;  %v14896_v63 = vcombine.high %v14881_v59, %v14886_v60 }
   0x4   :  { %v338_v4 = vld [vmem:[%s22020_s1 + $0x5e0] sm:$0xff] }
   0x5   :  { %v198_v6 = vld [vmem:[%s22020_s1 + $0x180] sm:$0xff]  ;;  %v13170_v8 = vcombine.high %v334_v2, %v338_v4  ;;  %v13169_v9 = vcombine.low %v334_v2, %v338_v4  ;;  %6976 = vmatprep.subr.bf16.mxu0 %v13042_v3  ;;  %22331 = vst [vmem:[#allocation6_spill] sm:$0xff] %v14896_v63  ;;  %7121 = vmatprep.mubr.bf16.mxu1 %v14896_v63 }
   0x6   :  { %v202_v7 = vld [vmem:[%s22020_s1 + $0x1a0] sm:$0xff]  ;;  %6977 = vmatpush1.bf16.msra.mxu0 %v13041_v5 }
   0x7   :  { %v13034_v10 = vcombine.high %v198_v6, %v202_v7  ;;  %v326_v11 = vld [vmem:[%s22020_s1 + $0x580] sm:$0xff]  ;;  %7089 = vmatprep.subr.bf16.mxu1 %v13170_v8  ;;  %v13033_v18 = vcombine.low %v198_v6, %v202_v7 }
   0x8   :  { %v330_v12 = vld [vmem:[%s22020_s1 + $0x5a0] sm:$0xff]  ;;  %7090 = vmatpush1.bf16.msra.mxu1 %v13169_v9 }
   0x9   :  { %v190_v13 = vld [vmem:[%s22020_s1 + $0x140] sm:$0xff]  ;;  %v13162_v14 = vcombine.high %v326_v11, %v330_v12  ;;  %6978 = vmatprep.subr.bf16.mxu0 %v13034_v10  ;;  %v13161_v19 = vcombine.low %v326_v11, %v330_v12 }
   0xa   :  { %v194_v15 = vld [vmem:[%s22020_s1 + $0x160] sm:$0xff]  ;;  %6979 = vmatpush1.bf16.msra.mxu0 %v13033_v18 }
   0xb   :  { %v318_v16 = vld [vmem:[%s22020_s1 + $0x540] sm:$0xff]  ;;  %v13026_v20 = vcombine.high %v190_v13, %v194_v15  ;;  %7091 = vmatprep.subr.bf16.mxu1 %v13162_v14  ;;  %v13025_v26 = vcombine.low %v190_v13, %v194_v15 }
   0xc   :  { %v322_v17 = vld [vmem:[%s22020_s1 + $0x560] sm:$0xff]  ;;  %7092 = vmatpush1.bf16.msra.mxu1 %v13161_v19 }
   0xd   :  { %v13154_v21 = vcombine.high %v318_v16, %v322_v17  ;;  %v182_v22 = vld [vmem:[%s22020_s1 + $0x100] sm:$0xff]  ;;  %6980 = vmatprep.subr.bf16.mxu0 %v13026_v20  ;;  %v13153_v27 = vcombine.low %v318_v16, %v322_v17 }
   0xe   :  { %v186_v23 = vld [vmem:[%s22020_s1 + $0x120] sm:$0xff]  ;;  %6981 = vmatpush1.bf16.msra.mxu0 %v13025_v26 }
   0xf   :  { %v310_v24 = vld [vmem:[%s22020_s1 + $0x500] sm:$0xff]  ;;  %v13018_v28 = vcombine.high %v182_v22, %v186_v23  ;;  %7093 = vmatprep.subr.bf16.mxu1 %v13154_v21  ;;  %v13017_v34 = vcombine.low %v182_v22, %v186_v23 }
  0x10   :  { %v314_v25 = vld [vmem:[%s22020_s1 + $0x520] sm:$0xff]  ;;  %7094 = vmatpush1.bf16.msra.mxu1 %v13153_v27 }
  0x11   :  { %v13146_v29 = vcombine.high %v310_v24, %v314_v25  ;;  %v174_v30 = vld [vmem:[%s22020_s1 + $0xc0] sm:$0xff]  ;;  %6982 = vmatprep.subr.bf16.mxu0 %v13018_v28  ;;  %v13145_v35 = vcombine.low %v310_v24, %v314_v25 }
  0x12   :  { %v178_v31 = vld [vmem:[%s22020_s1 + $0xe0] sm:$0xff]  ;;  %6983 = vmatpush1.bf16.msra.mxu0 %v13017_v34 }
  0x13   :  { %v302_v32 = vld [vmem:[%s22020_s1 + $0x4c0] sm:$0xff]  ;;  %v13010_v36 = vcombine.high %v174_v30, %v178_v31  ;;  %7095 = vmatprep.subr.bf16.mxu1 %v13146_v29  ;;  %v13009_v42 = vcombine.low %v174_v30, %v178_v31 }
  0x14   :  { %v306_v33 = vld [vmem:[%s22020_s1 + $0x4e0] sm:$0xff]  ;;  %7096 = vmatpush1.bf16.msra.mxu1 %v13145_v35 }
  0x15   :  { %v13138_v37 = vcombine.high %v302_v32, %v306_v33  ;;  %v166_v38 = vld [vmem:[%s22020_s1 + $0x80] sm:$0xff]  ;;  %6984 = vmatprep.subr.bf16.mxu0 %v13010_v36  ;;  %v13137_v43 = vcombine.low %v302_v32, %v306_v33 }
  0x16   :  { %v170_v39 = vld [vmem:[%s22020_s1 + $0xa0] sm:$0xff]  ;;  %6985 = vmatpush1.bf16.msra.mxu0 %v13009_v42 }
  0x17   :  { %v294_v40 = vld [vmem:[%s22020_s1 + $0x480] sm:$0xff]  ;;  %v13002_v44 = vcombine.high %v166_v38, %v170_v39  ;;  %7097 = vmatprep.subr.bf16.mxu1 %v13138_v37  ;;  %v13001_v50 = vcombine.low %v166_v38, %v170_v39 }
  0x18   :  { %v298_v41 = vld [vmem:[%s22020_s1 + $0x4a0] sm:$0xff]  ;;  %7098 = vmatpush1.bf16.msra.mxu1 %v13137_v43 }
  0x19   :  { %v13130_v45 = vcombine.high %v294_v40, %v298_v41  ;;  %v158_v46 = vld [vmem:[%s22020_s1 + $0x40] sm:$0xff]  ;;  %6986 = vmatprep.subr.bf16.mxu0 %v13002_v44  ;;  %v13129_v51 = vcombine.low %v294_v40, %v298_v41 }
  0x1a   :  { %v162_v47 = vld [vmem:[%s22020_s1 + $0x60] sm:$0xff]  ;;  %6987 = vmatpush1.bf16.msra.mxu0 %v13001_v50 }
  0x1b   :  { %v286_v48 = vld [vmem:[%s22020_s1 + $0x440] sm:$0xff]  ;;  %v12994_v52 = vcombine.high %v158_v46, %v162_v47  ;;  %7099 = vmatprep.subr.bf16.mxu1 %v13130_v45  ;;  %v12993_v0 = vcombine.low %v158_v46, %v162_v47 }
  0x1c   :  { %v290_v49 = vld [vmem:[%s22020_s1 + $0x460] sm:$0xff]  ;;  %7100 = vmatpush1.bf16.msra.mxu1 %v13129_v51 }
  0x1d   :  { %v150_v53 = vld [vmem:[%s22020_s1] sm:$0xff]  ;;  %v13122_v56 = vcombine.high %v286_v48, %v290_v49  ;;  %6988 = vmatprep.subr.bf16.mxu0 %v12994_v52  ;;  %v13121_v1 = vcombine.low %v286_v48, %v290_v49 }
  0x1e   :  { %v14864_v54 = vld [vmem:[%s22019_s0] sm:$0xff]  ;;  %6989 = vmatpush1.bf16.msra.mxu0 %v12993_v0 }
  0x1f   :  { %v14869_v55 = vld [vmem:[%s22019_s0 + $0x40] sm:$0xff]  ;;  %7101 = vmatprep.subr.bf16.mxu1 %v13122_v56 }
  0x20   :  { %v154_v57 = vld [vmem:[%s22020_s1 + $0x20] sm:$0xff]  ;;  %v14876_v58 = vcombine.high %v14864_v54, %v14869_v55  ;;  %7102 = vmatpush1.bf16.msra.mxu1 %v13121_v1 }
  0x21   :  { %v278_v61 = vld [vmem:[%s22020_s1 + $0x400] sm:$0xff]  ;;  %v12986_v2 = vcombine.high %v150_v53, %v154_v57  ;;  %v12985_v8 = vcombine.low %v150_v53, %v154_v57 }
  0x22   :  { %22330 = vst [vmem:[#allocation5_spill] sm:$0xff] %v14876_v58  ;;  %v282_v62 = vld [vmem:[%s22020_s1 + $0x420] sm:$0xff]  ;;  %7008 = vmatprep.mubr.bf16.mxu0 %v14876_v58 }
  0x23   :  { %v13114_v3 = vcombine.high %v278_v61, %v282_v62  ;;  %v270_v4 = vld [vmem:[%s22020_s1 + $0x3c0] sm:$0xff]  ;;  %6990 = vmatprep.subr.bf16.mxu0 %v12986_v2  ;;  %v13113_v9 = vcombine.low %v278_v61, %v282_v62 }
  0x24   :  { %v274_v5 = vld [vmem:[%s22020_s1 + $0x3e0] sm:$0xff]  ;;  %6991 = vmatpush1.bf16.msra.mxu0 %v12985_v8 }
  0x25   :  { %v398_v6 = vld [vmem:[%s22020_s1 + $0x7c0] sm:$0xff]  ;;  %v13106_v10 = vcombine.high %v270_v4, %v274_v5  ;;  %7103 = vmatprep.subr.bf16.mxu1 %v13114_v3  ;;  %v13105_v16 = vcombine.low %v270_v4, %v274_v5 }
  0x26   :  { %v402_v7 = vld [vmem:[%s22020_s1 + $0x7e0] sm:$0xff]  ;;  %7104 = vmatpush1.bf16.msra.mxu1 %v13113_v9 }
  0x27   :  { %v13234_v11 = vcombine.high %v398_v6, %v402_v7  ;;  %v262_v12 = vld [vmem:[%s22020_s1 + $0x380] sm:$0xff]  ;;  %6992 = vmatprep.subr.bf16.mxu0 %v13106_v10  ;;  %v13233_v17 = vcombine.low %v398_v6, %v402_v7 }
  0x28   :  { %v266_v13 = vld [vmem:[%s22020_s1 + $0x3a0] sm:$0xff]  ;;  %6993 = vmatpush2.bf16.msra.mxu0 %v13105_v16 }
  0x29   :  { %v390_v14 = vld [vmem:[%s22020_s1 + $0x780] sm:$0xff]  ;;  %v13098_v18 = vcombine.high %v262_v12, %v266_v13  ;;  %7105 = vmatprep.subr.bf16.mxu1 %v13234_v11  ;;  %v13097_v24 = vcombine.low %v262_v12, %v266_v13 }
  0x2a   :  { %v394_v15 = vld [vmem:[%s22020_s1 + $0x7a0] sm:$0xff]  ;;  %7106 = vmatpush2.bf16.msra.mxu1 %v13233_v17 }
  0x2b   :  { %v13226_v19 = vcombine.high %v390_v14, %v394_v15  ;;  %v254_v20 = vld [vmem:[%s22020_s1 + $0x340] sm:$0xff]  ;;  %6994 = vmatprep.subr.bf16.mxu0 %v13098_v18  ;;  %v13225_v25 = vcombine.low %v390_v14, %v394_v15 }
  0x2c   :  { %v258_v21 = vld [vmem:[%s22020_s1 + $0x360] sm:$0xff]  ;;  %6995 = vmatpush2.bf16.msra.mxu0 %v13097_v24 }
  0x2d   :  { %v382_v22 = vld [vmem:[%s22020_s1 + $0x740] sm:$0xff]  ;;  %v13090_v26 = vcombine.high %v254_v20, %v258_v21  ;;  %7107 = vmatprep.subr.bf16.mxu1 %v13226_v19  ;;  %v13089_v32 = vcombine.low %v254_v20, %v258_v21  ;;  %v15019_v21 = vcombine.low %v14864_v54, %v14869_v55  ;;  %v39_v54 = vld [vmem:[%s22019_s0 + $0x88] sm:$0xff] }
  0x2e   :  { %v386_v23 = vld [vmem:[%s22020_s1 + $0x760] sm:$0xff]  ;;  %7108 = vmatpush2.bf16.msra.mxu1 %v13225_v25  ;;  %v15032_v25 = vcombine.low %v14881_v59, %v14886_v60  ;;  %v47_v55 = vld [vmem:[%s22019_s0 + $0xc8] sm:$0xff] }
  0x2f   :  { %v13218_v27 = vcombine.high %v382_v22, %v386_v23  ;;  %v246_v28 = vld [vmem:[%s22020_s1 + $0x300] sm:$0xff]  ;;  %6996 = vmatprep.subr.bf16.mxu0 %v13090_v26  ;;  %v13217_v33 = vcombine.low %v382_v22, %v386_v23 }
  0x30   :  { %v250_v29 = vld [vmem:[%s22020_s1 + $0x320] sm:$0xff]  ;;  %6997 = vmatpush2.bf16.msra.mxu0 %v13089_v32 }
  0x31   :  { %v374_v30 = vld [vmem:[%s22020_s1 + $0x700] sm:$0xff]  ;;  %v13082_v34 = vcombine.high %v246_v28, %v250_v29  ;;  %7109 = vmatprep.subr.bf16.mxu1 %v13218_v27  ;;  %v13081_v40 = vcombine.low %v246_v28, %v250_v29 }
  0x32   :  { %v378_v31 = vld [vmem:[%s22020_s1 + $0x720] sm:$0xff]  ;;  %7110 = vmatpush2.bf16.msra.mxu1 %v13217_v33 }
  0x33   :  { %v13210_v35 = vcombine.high %v374_v30, %v378_v31  ;;  %v238_v36 = vld [vmem:[%s22020_s1 + $0x2c0] sm:$0xff]  ;;  %6998 = vmatprep.subr.bf16.mxu0 %v13082_v34  ;;  %v13209_v41 = vcombine.low %v374_v30, %v378_v31  ;;  %v15049_v31 = vcombine.high %v39_v54, %v47_v55 }
  0x34   :  { %v242_v37 = vld [vmem:[%s22020_s1 + $0x2e0] sm:$0xff]  ;;  %6999 = vmatpush2.bf16.msra.mxu0 %v13081_v40 }
  0x35   :  { %v366_v38 = vld [vmem:[%s22020_s1 + $0x6c0] sm:$0xff]  ;;  %v13074_v42 = vcombine.high %v238_v36, %v242_v37  ;;  %7111 = vmatprep.subr.bf16.mxu1 %v13210_v35  ;;  %v13073_v48 = vcombine.low %v238_v36, %v242_v37  ;;  %22332 = vst [vmem:[#allocation7_spill] sm:$0xff] %v15049_v31 }
  0x36   :  { %v370_v39 = vld [vmem:[%s22020_s1 + $0x6e0] sm:$0xff]  ;;  %7112 = vmatpush2.bf16.msra.mxu1 %v13209_v41 }
  0x37   :  { %v13202_v43 = vcombine.high %v366_v38, %v370_v39  ;;  %v230_v44 = vld [vmem:[%s22020_s1 + $0x280] sm:$0xff]  ;;  %7000 = vmatprep.subr.bf16.mxu0 %v13074_v42  ;;  %v13201_v49 = vcombine.low %v366_v38, %v370_v39 }
  0x38   :  { %v234_v45 = vld [vmem:[%s22020_s1 + $0x2a0] sm:$0xff]  ;;  %7001 = vmatpush2.bf16.msra.mxu0 %v13073_v48  ;;  %v63_v48 = vld [vmem:[%s22019_s0 + $0x148] sm:$0xff] }
  0x39   :  { %v358_v46 = vld [vmem:[%s22020_s1 + $0x680] sm:$0xff]  ;;  %v13066_v50 = vcombine.high %v230_v44, %v234_v45  ;;  %7113 = vmatprep.subr.bf16.mxu1 %v13202_v43  ;;  %v13065_v61 = vcombine.low %v230_v44, %v234_v45  ;;  %v15080_v45 = vcombine.low %v39_v54, %v47_v55 }
  0x3a   :  { %v362_v47 = vld [vmem:[%s22020_s1 + $0x6a0] sm:$0xff]  ;;  %7114 = vmatpush2.bf16.msra.mxu1 %v13201_v49 }
  0x3b   :  { %v13194_v51 = vcombine.high %v358_v46, %v362_v47  ;;  %v222_v52 = vld [vmem:[%s22020_s1 + $0x240] sm:$0xff]  ;;  %7002 = vmatprep.subr.bf16.mxu0 %v13066_v50  ;;  %v13193_v62 = vcombine.low %v358_v46, %v362_v47  ;;  %22334 = vst [vmem:[#allocation9_spill] sm:$0xff] %v15080_v45  ;;  %v55_v47 = vld [vmem:[%s22019_s0 + $0x108] sm:$0xff] }
  0x3c   :  { %v226_v53 = vld [vmem:[%s22020_s1 + $0x260] sm:$0xff]  ;;  %7003 = vmatpush2.bf16.msra.mxu0 %v13065_v61 }
  0x3d   :  { %v350_v56 = vld [vmem:[%s22020_s1 + $0x640] sm:$0xff]  ;;  %v13058_v0 = vcombine.high %v222_v52, %v226_v53  ;;  %7115 = vmatprep.subr.bf16.mxu1 %v13194_v51  ;;  %v13057_v6 = vcombine.low %v222_v52, %v226_v53 }
  0x3e   :  { %v354_v57 = vld [vmem:[%s22020_s1 + $0x660] sm:$0xff]  ;;  %7116 = vmatpush2.bf16.msra.mxu1 %v13193_v62 }
  0x3f   :  { %v13186_v1 = vcombine.high %v350_v56, %v354_v57  ;;  %v214_v2 = vld [vmem:[%s22020_s1 + $0x200] sm:$0xff]  ;;  %7004 = vmatprep.subr.bf16.mxu0 %v13058_v0  ;;  %v13185_v7 = vcombine.low %v350_v56, %v354_v57  ;;  %v15097_v57 = vcombine.high %v55_v47, %v63_v48 }
  0x40   :  { %v218_v3 = vld [vmem:[%s22020_s1 + $0x220] sm:$0xff]  ;;  %7005 = vmatpush2.bf16.msra.mxu0 %v13057_v6 }
  0x41   :  { %v342_v4 = vld [vmem:[%s22020_s1 + $0x600] sm:$0xff]  ;;  %v13050_v8 = vcombine.high %v214_v2, %v218_v3  ;;  %7117 = vmatprep.subr.bf16.mxu1 %v13186_v1  ;;  %v13049_v14 = vcombine.low %v214_v2, %v218_v3  ;;  %22336 = vst [vmem:[#allocation11_spill] sm:$0xff] %v15097_v57 }
  0x42   :  { %v346_v5 = vld [vmem:[%s22020_s1 + $0x620] sm:$0xff]  ;;  %7118 = vmatpush2.bf16.msra.mxu1 %v13185_v7 }
  0x43   :  { %v13178_v9 = vcombine.high %v342_v4, %v346_v5  ;;  %v462_v10 = vld [vmem:[%s22020_s1 + $0x9c0] sm:$0xff]  ;;  %7006 = vmatprep.subr.bf16.mxu0 %v13050_v8  ;;  %v13177_v15 = vcombine.low %v342_v4, %v346_v5 }
  0x44   :  { %v466_v11 = vld [vmem:[%s22020_s1 + $0x9e0] sm:$0xff]  ;;  %7007 = vmatpush2.bf16.msra.mxu0 %v13049_v14  ;;  %v79_v14 = vld [vmem:[%s22019_s0 + $0x1c8] sm:$0xff] }
  0x45   :  { %v590_v12 = vld [vmem:[%s22020_s1 + $0xdc0] sm:$0xff]  ;;  %v13298_v16 = vcombine.high %v462_v10, %v466_v11  ;;  %7119 = vmatprep.subr.bf16.mxu1 %v13178_v9  ;;  %v13297_v26 = vcombine.low %v462_v10, %v466_v11  ;;  %v15128_v11 = vcombine.low %v55_v47, %v63_v48 }
  0x46   :  { %v594_v13 = vld [vmem:[%s22020_s1 + $0xde0] sm:$0xff]  ;;  %7120 = vmatpush2.bf16.msra.mxu1 %v13177_v15 }
  0x47   :  { %v13426_v17 = vcombine.high %v590_v12, %v594_v13  ;;  %v454_v18 = vld [vmem:[%s22020_s1 + $0x980] sm:$0xff]  ;;  %7202 = vmatprep.subr.bf16.mxu0 %v13298_v16  ;;  %v13425_v27 = vcombine.low %v590_v12, %v594_v13  ;;  %7009 = vmatmul.mubr.bf16.vlgmr.msra.gmra.mxu0 %v15019_v21  ;;  %22338 = vst [vmem:[#allocation13_spill] sm:$0xff] %v15128_v11  ;;  %v71_v13 = vld [vmem:[%s22019_s0 + $0x188] sm:$0xff] }
  0x48   :  { %v458_v19 = vld [vmem:[%s22020_s1 + $0x9a0] sm:$0xff]  ;;  %7203 = vmatpush1.bf16.msra.mxu0 %v13297_v26 }
  0x49   :  { %v582_v20 = vld [vmem:[%s22020_s1 + $0xd80] sm:$0xff]  ;;  %v13290_v28 = vcombine.high %v454_v18, %v458_v19  ;;  %7315 = vmatprep.subr.bf16.mxu1 %v13426_v17  ;;  %7122 = vmatmul.mubr.bf16.vlgmr.msra.gmra.mxu1 %v15032_v25  ;;  %v13289_v34 = vcombine.low %v454_v18, %v458_v19 }
  0x4a   :  { %v586_v22 = vld [vmem:[%s22020_s1 + $0xda0] sm:$0xff]  ;;  %7316 = vmatpush1.bf16.msra.mxu1 %v13425_v27  ;;  %7131 = vmatprep.mubr.bf16.mxu1 %v15049_v31 }
  0x4b   :  { %v38_v23 = vld [vmem:[%s22019_s0 + $0x80] sm:$0xff]  ;;  %v13418_v29 = vcombine.high %v582_v20, %v586_v22  ;;  %7204 = vmatprep.subr.bf16.mxu0 %v13290_v28  ;;  %v13417_v35 = vcombine.low %v582_v20, %v586_v22  ;;  %v15145_v22 = vcombine.high %v71_v13, %v79_v14 }
  0x4c   :  { %v46_v24 = vld [vmem:[%s22019_s0 + $0xc0] sm:$0xff]  ;;  %7205 = vmatpush1.bf16.msra.mxu0 %v13289_v34 }
  0x4d   :  { %v15040_v30 = vcombine.high %v38_v23, %v46_v24  ;;  %v446_v59 = vld [vmem:[%s22020_s1 + $0x940] sm:$0xff]  ;;  %7317 = vmatprep.subr.bf16.mxu1 %v13418_v29  ;;  %v15069_v41 = vcombine.low %v38_v23, %v46_v24  ;;  %22340 = vst [vmem:[#allocation15_spill] sm:$0xff] %v15145_v22 }
  0x4e   :  { %v450_v60 = vld [vmem:[%s22020_s1 + $0x960] sm:$0xff]  ;;  %7318 = vmatpush1.bf16.msra.mxu1 %v13417_v35  ;;  %v15176_v35 = vcombine.low %v71_v13, %v79_v14 }
  0x4f   :  { %v574_v32 = vld [vmem:[%s22020_s1 + $0xd40] sm:$0xff]  ;;  %v13282_v36 = vcombine.high %v446_v59, %v450_v60  ;;  %7018 = vmatprep.mubr.bf16.mxu0 %v15040_v30  ;;  %22333 = vst [vmem:[#allocation8_spill] sm:$0xff] %v15069_v41  ;;  %v13281_v46 = vcombine.low %v446_v59, %v450_v60 }
  0x50   :  { %v578_v33 = vld [vmem:[%s22020_s1 + $0xd60] sm:$0xff]  ;;  %7019 = vmatmul.mubr.bf16.gmra.mxu0 %v15069_v41  ;;  %22342 = vst [vmem:[#allocation17_spill] sm:$0xff] %v15176_v35 }
  0x51   :  { %v13410_v37 = vcombine.high %v574_v32, %v578_v33  ;;  %v438_v38 = vld [vmem:[%s22020_s1 + $0x900] sm:$0xff]  ;;  %7206 = vmatprep.subr.bf16.mxu0 %v13282_v36  ;;  %v13409_v49 = vcombine.low %v574_v32, %v578_v33  ;;  %7132 = vmatmul.mubr.bf16.gmra.mxu1 %v15080_v45 }
  0x52   :  { %v442_v39 = vld [vmem:[%s22020_s1 + $0x920] sm:$0xff]  ;;  %7207 = vmatpush1.bf16.msra.mxu0 %v13281_v46  ;;  %7141 = vmatprep.mubr.bf16.mxu1 %v15097_v57 }
  0x53   :  { %v566_v40 = vld [vmem:[%s22020_s1 + $0xd00] sm:$0xff]  ;;  %v13274_v50 = vcombine.high %v438_v38, %v442_v39  ;;  %7319 = vmatprep.subr.bf16.mxu1 %v13410_v37  ;;  %v13273_v0 = vcombine.low %v438_v38, %v442_v39  ;;  %v87_v37 = vld [vmem:[%s22019_s0 + $0x208] sm:$0xff] }
  0x54   :  { %v570_v42 = vld [vmem:[%s22020_s1 + $0xd20] sm:$0xff]  ;;  %7320 = vmatpush1.bf16.msra.mxu1 %v13409_v49  ;;  %v95_v38 = vld [vmem:[%s22019_s0 + $0x248] sm:$0xff] }
  0x55   :  { %v54_v43 = vld [vmem:[%s22019_s0 + $0x100] sm:$0xff]  ;;  %v13402_v51 = vcombine.high %v566_v40, %v570_v42  ;;  %7208 = vmatprep.subr.bf16.mxu0 %v13274_v50  ;;  %v13401_v1 = vcombine.low %v566_v40, %v570_v42  ;;  %v15193_v47 = vcombine.high %v87_v37, %v95_v38 }
  0x56   :  { %v62_v44 = vld [vmem:[%s22019_s0 + $0x140] sm:$0xff]  ;;  %7209 = vmatpush1.bf16.msra.mxu0 %v13273_v0 }
  0x57   :  { %v15088_v52 = vcombine.high %v54_v43, %v62_v44  ;;  %v430_v53 = vld [vmem:[%s22020_s1 + $0x8c0] sm:$0xff]  ;;  %7321 = vmatprep.subr.bf16.mxu1 %v13402_v51  ;;  %v15117_v7 = vcombine.low %v54_v43, %v62_v44  ;;  %22344 = vst [vmem:[#allocation19_spill] sm:$0xff] %v15193_v47 }
  0x58   :  { %v434_v56 = vld [vmem:[%s22020_s1 + $0x8e0] sm:$0xff]  ;;  %7322 = vmatpush1.bf16.msra.mxu1 %v13401_v1 }
  0x59   :  { %22335 = vst [vmem:[#allocation10_spill] sm:$0xff] %v15088_v52  ;;  %v558_v61 = vld [vmem:[%s22020_s1 + $0xcc0] sm:$0xff]  ;;  %v13266_v2 = vcombine.high %v430_v53, %v434_v56  ;;  %7028 = vmatprep.mubr.bf16.mxu0 %v15088_v52  ;;  %22337 = vst [vmem:[#allocation12_spill] sm:$0xff] %v15117_v7  ;;  %v13265_v12 = vcombine.low %v430_v53, %v434_v56  ;;  %7142 = vmatmul.mubr.bf16.gmra.mxu1 %v15128_v11 }
  0x5a   :  { %v562_v62 = vld [vmem:[%s22020_s1 + $0xce0] sm:$0xff]  ;;  %7029 = vmatmul.mubr.bf16.gmra.mxu0 %v15117_v7  ;;  %7151 = vmatprep.mubr.bf16.mxu1 %v15145_v22 }
  0x5b   :  { %v13394_v3 = vcombine.high %v558_v61, %v562_v62  ;;  %v422_v4 = vld [vmem:[%s22020_s1 + $0x880] sm:$0xff]  ;;  %7210 = vmatprep.subr.bf16.mxu0 %v13266_v2  ;;  %v13393_v15 = vcombine.low %v558_v61, %v562_v62 }
  0x5c   :  { %v426_v5 = vld [vmem:[%s22020_s1 + $0x8a0] sm:$0xff]  ;;  %7211 = vmatpush1.bf16.msra.mxu0 %v13265_v12 }
  0x5d   :  { %v550_v6 = vld [vmem:[%s22020_s1 + $0xc80] sm:$0xff]  ;;  %v13258_v16 = vcombine.high %v422_v4, %v426_v5  ;;  %7323 = vmatprep.subr.bf16.mxu1 %v13394_v3  ;;  %v13257_v26 = vcombine.low %v422_v4, %v426_v5  ;;  %v15224_v5 = vcombine.low %v87_v37, %v95_v38  ;;  %v119_v37 = vld [vmem:[%s22019_s0 + $0x308] sm:$0xff] }
  0x5e   :  { %v554_v8 = vld [vmem:[%s22020_s1 + $0xca0] sm:$0xff]  ;;  %7324 = vmatpush1.bf16.msra.mxu1 %v13393_v15  ;;  %v127_v38 = vld [vmem:[%s22019_s0 + $0x348] sm:$0xff] }
  0x5f   :  { %v70_v9 = vld [vmem:[%s22019_s0 + $0x180] sm:$0xff]  ;;  %v13386_v17 = vcombine.high %v550_v6, %v554_v8  ;;  %7212 = vmatprep.subr.bf16.mxu0 %v13258_v16  ;;  %v13385_v54 = vcombine.low %v550_v6, %v554_v8  ;;  %22346 = vst [vmem:[#allocation21_spill] sm:$0xff] %v15224_v5  ;;  %v103_v8 = vld [vmem:[%s22019_s0 + $0x288] sm:$0xff] }
  0x60   :  { %v78_v10 = vld [vmem:[%s22019_s0 + $0x1c0] sm:$0xff]  ;;  %7213 = vmatpush1.bf16.msra.mxu0 %v13257_v26 }
  0x61   :  { %v15136_v18 = vcombine.high %v70_v9, %v78_v10  ;;  %v414_v19 = vld [vmem:[%s22020_s1 + $0x840] sm:$0xff]  ;;  %7325 = vmatprep.subr.bf16.mxu1 %v13386_v17  ;;  %v15165_v60 = vcombine.low %v70_v9, %v78_v10  ;;  %7152 = vmatmul.mubr.bf16.gmra.mxu1 %v15176_v35  ;;  %v111_v9 = vld [vmem:[%s22019_s0 + $0x2c8] sm:$0xff] }
  0x62   :  { %v418_v20 = vld [vmem:[%s22020_s1 + $0x860] sm:$0xff]  ;;  %7326 = vmatpush1.bf16.msra.mxu1 %v13385_v54  ;;  %7161 = vmatprep.mubr.bf16.mxu1 %v15193_v47  ;;  %v15241_v17 = vcombine.high %v103_v8, %v111_v9 }
  0x63   :  { %22339 = vst [vmem:[#allocation14_spill] sm:$0xff] %v15136_v18  ;;  %v542_v23 = vld [vmem:[%s22020_s1 + $0xc40] sm:$0xff]  ;;  %v13250_v55 = vcombine.high %v414_v19, %v418_v20  ;;  %7038 = vmatprep.mubr.bf16.mxu0 %v15136_v18  ;;  %22341 = vst [vmem:[#allocation16_spill] sm:$0xff] %v15165_v60  ;;  %v13249_v36 = vcombine.low %v414_v19, %v418_v20 }
  0x64   :  { %v546_v24 = vld [vmem:[%s22020_s1 + $0xc60] sm:$0xff]  ;;  %7039 = vmatmul.mubr.bf16.gmra.mxu0 %v15165_v60  ;;  %22348 = vst [vmem:[#allocation23_spill] sm:$0xff] %v15241_v17 }
  0x65   :  { %v13378_v27 = vcombine.high %v542_v23, %v546_v24  ;;  %v406_v28 = vld [vmem:[%s22020_s1 + $0x800] sm:$0xff]  ;;  %7214 = vmatprep.subr.bf16.mxu0 %v13250_v55  ;;  %v13377_v39 = vcombine.low %v542_v23, %v546_v24 }
  0x66   :  { %v410_v29 = vld [vmem:[%s22020_s1 + $0x820] sm:$0xff]  ;;  %7215 = vmatpush1.bf16.msra.mxu0 %v13249_v36 }
  0x67   :  { %v534_v59 = vld [vmem:[%s22020_s1 + $0xc00] sm:$0xff]  ;;  %v13242_v40 = vcombine.high %v406_v28, %v410_v29  ;;  %7327 = vmatprep.subr.bf16.mxu1 %v13378_v27  ;;  %v13241_v50 = vcombine.low %v406_v28, %v410_v29 }
  0x68   :  { %v538_v32 = vld [vmem:[%s22020_s1 + $0xc20] sm:$0xff]  ;;  %7328 = vmatpush1.bf16.msra.mxu1 %v13377_v39 }
  0x69   :  { %v86_v33 = vld [vmem:[%s22019_s0 + $0x200] sm:$0xff]  ;;  %v13370_v42 = vcombine.high %v534_v59, %v538_v32  ;;  %7216 = vmatprep.subr.bf16.mxu0 %v13242_v40  ;;  %v13369_v51 = vcombine.low %v534_v59, %v538_v32  ;;  %7162 = vmatmul.mubr.bf16.gmra.mxu1 %v15224_v5 }
  0x6a   :  { %v94_v34 = vld [vmem:[%s22019_s0 + $0x240] sm:$0xff]  ;;  %7217 = vmatpush1.bf16.msra.mxu0 %v13241_v50  ;;  %7171 = vmatprep.mubr.bf16.mxu1 %v15241_v17 }
  0x6b   :  { %v15184_v43 = vcombine.high %v86_v33, %v94_v34  ;;  %v526_v44 = vld [vmem:[%s22020_s1 + $0xbc0] sm:$0xff]  ;;  %7329 = vmatprep.subr.bf16.mxu1 %v13370_v42  ;;  %v15213_v1 = vcombine.low %v86_v33, %v94_v34  ;;  %v15272_v34 = vcombine.low %v103_v8, %v111_v9 }
  0x6c   :  { %v530_v46 = vld [vmem:[%s22020_s1 + $0xbe0] sm:$0xff]  ;;  %7330 = vmatpush1.bf16.msra.mxu1 %v13369_v51 }
  0x6d   :  { %22343 = vst [vmem:[#allocation18_spill] sm:$0xff] %v15184_v43  ;;  %v654_v48 = vld [vmem:[%s22020_s1 + $0xfc0] sm:$0xff]  ;;  %v13362_v53 = vcombine.high %v526_v44, %v530_v46  ;;  %7048 = vmatprep.mubr.bf16.mxu0 %v15184_v43  ;;  %22345 = vst [vmem:[#allocation20_spill] sm:$0xff] %v15213_v1  ;;  %v13361_v6 = vcombine.low %v526_v44, %v530_v46 }
  0x6e   :  { %v658_v49 = vld [vmem:[%s22020_s1 + $0xfe0] sm:$0xff]  ;;  %7049 = vmatmul.mubr.bf16.gmra.mxu0 %v15213_v1  ;;  %22350 = vst [vmem:[#allocation25_spill] sm:$0xff] %v15272_v34 }
  0x6f   :  { %v13490_v56 = vcombine.high %v654_v48, %v658_v49  ;;  %v518_v61 = vld [vmem:[%s22020_s1 + $0xb80] sm:$0xff]  ;;  %7218 = vmatprep.subr.bf16.mxu0 %v13362_v53  ;;  %v13489_v10 = vcombine.low %v654_v48, %v658_v49  ;;  %v15289_v49 = vcombine.high %v119_v37, %v127_v38 }
  0x70   :  { %v522_v62 = vld [vmem:[%s22020_s1 + $0xba0] sm:$0xff]  ;;  %7219 = vmatpush2.bf16.msra.mxu0 %v13361_v6 }
  0x71   :  { %v646_v0 = vld [vmem:[%s22020_s1 + $0xf80] sm:$0xff]  ;;  %v13354_v12 = vcombine.high %v518_v61, %v522_v62  ;;  %7331 = vmatprep.subr.bf16.mxu1 %v13490_v56  ;;  %v13353_v23 = vcombine.low %v518_v61, %v522_v62  ;;  %22352 = vst [vmem:[#allocation27_spill] sm:$0xff] %v15289_v49  ;;  %7172 = vmatmul.mubr.bf16.gmra.mxu1 %v15272_v34 }
  0x72   :  { %v650_v2 = vld [vmem:[%s22020_s1 + $0xfa0] sm:$0xff]  ;;  %7332 = vmatpush2.bf16.msra.mxu1 %v13489_v10  ;;  %7181 = vmatprep.mubr.bf16.mxu1 %v15289_v49  ;;  %v15320_v10 = vcombine.low %v119_v37, %v127_v38 }
  0x73   :  { %v102_v3 = vld [vmem:[%s22019_s0 + $0x280] sm:$0xff]  ;;  %v13482_v13 = vcombine.high %v646_v0, %v650_v2  ;;  %7220 = vmatprep.subr.bf16.mxu0 %v13354_v12  ;;  %v13481_v24 = vcombine.low %v646_v0, %v650_v2 }
  0x74   :  { %v110_v4 = vld [vmem:[%s22019_s0 + $0x2c0] sm:$0xff]  ;;  %7221 = vmatpush2.bf16.msra.mxu0 %v13353_v23  ;;  %22354 = vst [vmem:[#allocation29_spill] sm:$0xff] %v15320_v10 }
  0x75   :  { %v15232_v14 = vcombine.high %v102_v3, %v110_v4  ;;  %v510_v15 = vld [vmem:[%s22020_s1 + $0xb40] sm:$0xff]  ;;  %7333 = vmatprep.subr.bf16.mxu1 %v13482_v13  ;;  %v15261_v29 = vcombine.low %v102_v3, %v110_v4  ;;  %v135_v13 = vld [vmem:[%s22019_s0 + $0x388] sm:$0xff] }
  0x76   :  { %v514_v16 = vld [vmem:[%s22020_s1 + $0xb60] sm:$0xff]  ;;  %7334 = vmatpush2.bf16.msra.mxu1 %v13481_v24 }
  0x77   :  { %22347 = vst [vmem:[#allocation22_spill] sm:$0xff] %v15232_v14  ;;  %v638_v19 = vld [vmem:[%s22020_s1 + $0xf40] sm:$0xff]  ;;  %v13346_v26 = vcombine.high %v510_v15, %v514_v16  ;;  %7058 = vmatprep.mubr.bf16.mxu0 %v15232_v14  ;;  %22349 = vst [vmem:[#allocation24_spill] sm:$0xff] %v15261_v29  ;;  %v13345_v36 = vcombine.low %v510_v15, %v514_v16  ;;  %v143_v15 = vld [vmem:[%s22019_s0 + $0x3c8] sm:$0xff] }
  0x78   :  { %v642_v20 = vld [vmem:[%s22020_s1 + $0xf60] sm:$0xff]  ;;  %7059 = vmatmul.mubr.bf16.gmra.mxu0 %v15261_v29 }
  0x79   :  { %v13474_v54 = vcombine.high %v638_v19, %v642_v20  ;;  %v502_v55 = vld [vmem:[%s22020_s1 + $0xb00] sm:$0xff]  ;;  %7222 = vmatprep.subr.bf16.mxu0 %v13346_v26  ;;  %v13473_v39 = vcombine.low %v638_v19, %v642_v20  ;;  %7182 = vmatmul.mubr.bf16.gmra.mxu1 %v15320_v10 }
  0x7a   :  { %v506_v27 = vld [vmem:[%s22020_s1 + $0xb20] sm:$0xff]  ;;  %7223 = vmatpush2.bf16.msra.mxu0 %v13345_v36 }
  0x7b   :  { %v630_v28 = vld [vmem:[%s22020_s1 + $0xf00] sm:$0xff]  ;;  %v13338_v40 = vcombine.high %v502_v55, %v506_v27  ;;  %7335 = vmatprep.subr.bf16.mxu1 %v13474_v54  ;;  %v13337_v53 = vcombine.low %v502_v55, %v506_v27  ;;  %v15343_v27 = vcombine.high %v135_v13, %v143_v15 }
  0x7c   :  { %v634_v59 = vld [vmem:[%s22020_s1 + $0xf20] sm:$0xff]  ;;  %7336 = vmatpush2.bf16.msra.mxu1 %v13473_v39  ;;  %v24_v39 = vld [vmem:[%s22019_s0 + $0x10] sm:$0xff] }
  0x7d   :  { %v118_v32 = vld [vmem:[%s22019_s0 + $0x300] sm:$0xff]  ;;  %v13466_v42 = vcombine.high %v630_v28, %v634_v59  ;;  %7224 = vmatprep.subr.bf16.mxu0 %v13338_v40  ;;  %v13465_v62 = vcombine.low %v630_v28, %v634_v59  ;;  %22356 = vst [vmem:[#allocation31_spill] sm:$0xff] %v15343_v27  ;;  %7191 = vmatprep.mubr.bf16.mxu1 %v15343_v27 }
  0x7e   :  { %v126_v33 = vld [vmem:[%s22019_s0 + $0x340] sm:$0xff]  ;;  %7225 = vmatpush2.bf16.msra.mxu0 %v13337_v53  ;;  %v33_v53 = vld [vmem:[%s22019_s0 + $0x58] sm:$0xff] }
  0x7f   :  { %v15280_v44 = vcombine.high %v118_v32, %v126_v33  ;;  %v494_v46 = vld [vmem:[%s22020_s1 + $0xac0] sm:$0xff]  ;;  %7337 = vmatprep.subr.bf16.mxu1 %v13466_v42  ;;  %v15318_v9 = vcombine.low %v118_v32, %v126_v33  ;;  %v32_v42 = vld [vmem:[%s22019_s0 + $0x50] sm:$0xff] }
  0x80   :  { %v498_v48 = vld [vmem:[%s22020_s1 + $0xae0] sm:$0xff]  ;;  %7338 = vmatpush2.bf16.msra.mxu1 %v13465_v62 }
  0x81   :  { %22351 = vst [vmem:[#allocation26_spill] sm:$0xff] %v15280_v44  ;;  %v622_v50 = vld [vmem:[%s22020_s1 + $0xec0] sm:$0xff]  ;;  %v13330_v0 = vcombine.high %v494_v46, %v498_v48  ;;  %7068 = vmatprep.mubr.bf16.mxu0 %v15280_v44  ;;  %22353 = vst [vmem:[#allocation28_spill] sm:$0xff] %v15318_v9  ;;  %v13329_v12 = vcombine.low %v494_v46, %v498_v48  ;;  %v15368_v48 = vcombine.low %v135_v13, %v143_v15 }
  0x82   :  { %v626_v51 = vld [vmem:[%s22020_s1 + $0xee0] sm:$0xff]  ;;  %7069 = vmatmul.mubr.bf16.gmra.mxu0 %v15318_v9 }
  0x83   :  { %v486_v56 = vld [vmem:[%s22020_s1 + $0xa80] sm:$0xff]  ;;  %v13458_v6 = vcombine.high %v622_v50, %v626_v51  ;;  %7226 = vmatprep.subr.bf16.mxu0 %v13330_v0  ;;  %v13457_v16 = vcombine.low %v622_v50, %v626_v51  ;;  %22358 = vst [vmem:[#allocation33_spill] sm:$0xff] %v15368_v48  ;;  %v25_v51 = vld [vmem:[%s22019_s0 + $0x18] sm:$0xff]  ;;  %7192 = vmatmul.mubr.bf16.gmra.mxu1 %v15368_v48 }
  0x84   :  { %v490_v61 = vld [vmem:[%s22020_s1 + $0xaa0] sm:$0xff]  ;;  %7227 = vmatpush2.bf16.msra.mxu0 %v13329_v12 }
  0x85   :  { %v614_v2 = vld [vmem:[%s22020_s1 + $0xe80] sm:$0xff]  ;;  %v13322_v19 = vcombine.high %v486_v56, %v490_v61  ;;  %7339 = vmatprep.subr.bf16.mxu1 %v13458_v6  ;;  %v13321_v28 = vcombine.low %v486_v56, %v490_v61 }
  0x86   :  { %v618_v3 = vld [vmem:[%s22020_s1 + $0xea0] sm:$0xff]  ;;  %7340 = vmatpush2.bf16.msra.mxu1 %v13457_v16 }
  0x87   :  { %v134_v4 = vld [vmem:[%s22019_s0 + $0x380] sm:$0xff]  ;;  %v13450_v24 = vcombine.high %v614_v2, %v618_v3  ;;  %7228 = vmatprep.subr.bf16.mxu0 %v13322_v19  ;;  %v13449_v33 = vcombine.low %v614_v2, %v618_v3  ;;  %v15382_v3 = vcombine.high %v24_v39, %v32_v42 }
  0x88   :  { %v142_v8 = vld [vmem:[%s22019_s0 + $0x3c0] sm:$0xff]  ;;  %7229 = vmatpush2.bf16.msra.mxu0 %v13321_v28  ;;  %v15413_v28 = vcombine.low %v24_v39, %v32_v42 }
  0x89   :  { %v478_v20 = vld [vmem:[%s22020_s1 + $0xa40] sm:$0xff]  ;;  %v15334_v26 = vcombine.high %v134_v4, %v142_v8  ;;  %7341 = vmatprep.subr.bf16.mxu1 %v13450_v24  ;;  %v15366_v46 = vcombine.low %v134_v4, %v142_v8  ;;  %22359 = vst [vmem:[#allocation34_spill] sm:$0xff] %v15382_v3  ;;  %v15391_v8 = vcombine.high %v25_v51, %v33_v53  ;;  %v40_v24 = vld [vmem:[%s22019_s0 + $0x90] sm:$0xff] }
  0x8a   :  { %v482_v23 = vld [vmem:[%s22020_s1 + $0xa60] sm:$0xff]  ;;  %7342 = vmatpush2.bf16.msra.mxu1 %v13449_v33  ;;  %22361 = vst [vmem:[#allocation36_spill] sm:$0xff] %v15413_v28  ;;  %v41_v33 = vld [vmem:[%s22019_s0 + $0x98] sm:$0xff] }
  0x8b   :  { %22355 = vst [vmem:[#allocation30_spill] sm:$0xff] %v15334_v26  ;;  %v606_v54 = vld [vmem:[%s22020_s1 + $0xe40] sm:$0xff]  ;;  %v13314_v36 = vcombine.high %v478_v20, %v482_v23  ;;  %7078 = vmatprep.mubr.bf16.mxu0 %v15334_v26  ;;  %22357 = vst [vmem:[#allocation32_spill] sm:$0xff] %v15366_v46  ;;  %v13313_v50 = vcombine.low %v478_v20, %v482_v23  ;;  %7347 = vmatprep.mubr.bf16.mxu1 %v15391_v8 }
  0x8c   :  { %v610_v55 = vld [vmem:[%s22020_s1 + $0xe60] sm:$0xff]  ;;  %7079 = vmatmul.mubr.bf16.gmra.mxu0 %v15366_v46  ;;  %22360 = vst [vmem:[#allocation35_spill] sm:$0xff] %v15391_v8 }
  0x8d   :  { %v470_v59 = vld [vmem:[%s22020_s1 + $0xa00] sm:$0xff]  ;;  %v13442_v40 = vcombine.high %v606_v54, %v610_v55  ;;  %7230 = vmatprep.subr.bf16.mxu0 %v13314_v36  ;;  %v13441_v56 = vcombine.low %v606_v54, %v610_v55  ;;  %7234 = vmatprep.mubr.bf16.mxu0 %v15382_v3  ;;  %v48_v55 = vld [vmem:[%s22019_s0 + $0xd0] sm:$0xff]  ;;  %v49_v36 = vld [vmem:[%s22019_s0 + $0xd8] sm:$0xff] }
  0x8e   :  { %v474_v32 = vld [vmem:[%s22020_s1 + $0xa20] sm:$0xff]  ;;  %7231 = vmatpush2.bf16.msra.mxu0 %v13313_v50  ;;  %v15427_v42 = vcombine.high %v40_v24, %v48_v55 }
  0x8f   :  { %v598_v37 = vld [vmem:[%s22020_s1 + $0xe00] sm:$0xff]  ;;  %v13306_v61 = vcombine.high %v470_v59, %v474_v32  ;;  %7343 = vmatprep.subr.bf16.mxu1 %v13442_v40  ;;  %v13305_v12 = vcombine.low %v470_v59, %v474_v32  ;;  %v15416_v59 = vcombine.low %v25_v51, %v33_v53 }
  0x90   :  { %v602_v38 = vld [vmem:[%s22020_s1 + $0xe20] sm:$0xff]  ;;  %7344 = vmatpush2.bf16.msra.mxu1 %v13441_v56  ;;  %22363 = vst [vmem:[#allocation38_spill] sm:$0xff] %v15427_v42  ;;  %v15439_v56 = vcombine.high %v41_v33, %v49_v36 }
  0x91   :  { %v718_v62 = vld [vmem:[%s22020_s1 + $0x11c0] sm:$0xff]  ;;  %v13434_v2 = vcombine.high %v598_v37, %v602_v38  ;;  %7232 = vmatprep.subr.bf16.mxu0 %v13306_v61  ;;  %v13433_v16 = vcombine.low %v598_v37, %v602_v38  ;;  %22362 = vst [vmem:[#allocation37_spill] sm:$0xff] %v15416_v59 }
  0x92   :  { %v722_v0 = vld [vmem:[%s22020_s1 + $0x11e0] sm:$0xff]  ;;  %7233 = vmatpush2.bf16.msra.mxu0 %v13305_v12  ;;  %22364 = vst [vmem:[#allocation39_spill] sm:$0xff] %v15439_v56 }
  0x93   :  { %v846_v4 = vld [vmem:[%s22020_s1 + $0x15c0] sm:$0xff]  ;;  %v13554_v19 = vcombine.high %v718_v62, %v722_v0  ;;  %7345 = vmatprep.subr.bf16.mxu1 %v13434_v2  ;;  %v13553_v32 = vcombine.low %v718_v62, %v722_v0 }
  0x94   :  { %v850_v6 = vld [vmem:[%s22020_s1 + $0x15e0] sm:$0xff]  ;;  %7346 = vmatpush2.bf16.msra.mxu1 %v13433_v16  ;;  %v64_v16 = vld [vmem:[%s22019_s0 + $0x150] sm:$0xff] }
  0x95   :  { %v710_v13 = vld [vmem:[%s22020_s1 + $0x1180] sm:$0xff]  ;;  %v13682_v54 = vcombine.high %v846_v4, %v850_v6  ;;  %7428 = vmatprep.subr.bf16.mxu0 %v13554_v19  ;;  %v13681_v37 = vcombine.low %v846_v4, %v850_v6  ;;  %7235 = vmatmul.mubr.bf16.vlgmr.msra.gmra.mxu0 %v15413_v28  ;;  %v15462_v19 = vcombine.low %v40_v24, %v48_v55 }
  0x96   :  { %v714_v15 = vld [vmem:[%s22020_s1 + $0x11a0] sm:$0xff]  ;;  %7429 = vmatpush1.bf16.msra.mxu0 %v13553_v32  ;;  %7244 = vmatprep.mubr.bf16.mxu0 %v15427_v42  ;;  %v65_v32 = vld [vmem:[%s22019_s0 + $0x158] sm:$0xff] }
  0x97   :  { %v838_v20 = vld [vmem:[%s22020_s1 + $0x1580] sm:$0xff]  ;;  %v13546_v38 = vcombine.high %v710_v13, %v714_v15  ;;  %7541 = vmatprep.subr.bf16.mxu1 %v13682_v54  ;;  %7348 = vmatmul.mubr.bf16.vlgmr.msra.gmra.mxu1 %v15416_v59  ;;  %v13545_v61 = vcombine.low %v710_v13, %v714_v15  ;;  %v56_v13 = vld [vmem:[%s22019_s0 + $0x110] sm:$0xff]  ;;  %22365 = vst [vmem:[#allocation40_spill] sm:$0xff] %v15462_v19  ;;  %v57_v54 = vld [vmem:[%s22019_s0 + $0x118] sm:$0xff] }
  0x98   :  { %v842_v23 = vld [vmem:[%s22020_s1 + $0x15a0] sm:$0xff]  ;;  %7542 = vmatpush1.bf16.msra.mxu1 %v13681_v37  ;;  %7357 = vmatprep.mubr.bf16.mxu1 %v15439_v56  ;;  %v207_v59 = vld [vmem:[%s22020_s1 + $0x1c8] sm:$0xff] }
  0x99   :  { %v702_v39 = vld [vmem:[%s22020_s1 + $0x1140] sm:$0xff]  ;;  %v13674_v40 = vcombine.high %v838_v20, %v842_v23  ;;  %7430 = vmatprep.subr.bf16.mxu0 %v13546_v38  ;;  %v13673_v2 = vcombine.low %v838_v20, %v842_v23  ;;  %v15464_v20 = vcombine.low %v41_v33, %v49_v36  ;;  %v15478_v36 = vcombine.high %v56_v13, %v64_v16 }
  0x9a   :  { %v706_v50 = vld [vmem:[%s22020_s1 + $0x1160] sm:$0xff]  ;;  %7431 = vmatpush1.bf16.msra.mxu0 %v13545_v61 }
  0x9b   :  { %v830_v51 = vld [vmem:[%s22020_s1 + $0x1540] sm:$0xff]  ;;  %v13538_v4 = vcombine.high %v702_v39, %v706_v50  ;;  %7543 = vmatprep.subr.bf16.mxu1 %v13674_v40  ;;  %22366 = vst [vmem:[#allocation41_spill] sm:$0xff] %v15464_v20  ;;  %v13537_v23 = vcombine.low %v702_v39, %v706_v50  ;;  %22367 = vst [vmem:[#allocation42_spill] sm:$0xff] %v15478_v36  ;;  %v15487_v50 = vcombine.high %v57_v54, %v65_v32 }
  0x9c   :  { %v834_v53 = vld [vmem:[%s22020_s1 + $0x1560] sm:$0xff]  ;;  %7544 = vmatpush1.bf16.msra.mxu1 %v13673_v2 }
  0x9d   :  { %v694_v62 = vld [vmem:[%s22020_s1 + $0x1100] sm:$0xff]  ;;  %v13666_v15 = vcombine.high %v830_v51, %v834_v53  ;;  %7432 = vmatprep.subr.bf16.mxu0 %v13538_v4  ;;  %v13665_v37 = vcombine.low %v830_v51, %v834_v53  ;;  %7245 = vmatmul.mubr.bf16.gmra.mxu0 %v15462_v19  ;;  %22368 = vst [vmem:[#allocation43_spill] sm:$0xff] %v15487_v50 }
  0x9e   :  { %v698_v0 = vld [vmem:[%s22020_s1 + $0x1120] sm:$0xff]  ;;  %7433 = vmatpush1.bf16.msra.mxu0 %v13537_v23  ;;  %7254 = vmatprep.mubr.bf16.mxu0 %v15478_v36 }
  0x9f   :  { %v822_v6 = vld [vmem:[%s22020_s1 + $0x1500] sm:$0xff]  ;;  %v13530_v38 = vcombine.high %v694_v62, %v698_v0  ;;  %7545 = vmatprep.subr.bf16.mxu1 %v13666_v15  ;;  %7358 = vmatmul.mubr.bf16.gmra.mxu1 %v15464_v20  ;;  %v13529_v51 = vcombine.low %v694_v62, %v698_v0  ;;  %v72_v0 = vld [vmem:[%s22019_s0 + $0x190] sm:$0xff]  ;;  %v73_v20 = vld [vmem:[%s22019_s0 + $0x198] sm:$0xff] }
  0xa0   :  { %v826_v12 = vld [vmem:[%s22020_s1 + $0x1520] sm:$0xff]  ;;  %7546 = vmatpush1.bf16.msra.mxu1 %v13665_v37  ;;  %7367 = vmatprep.mubr.bf16.mxu1 %v15487_v50  ;;  %v15512_v37 = vcombine.low %v57_v54, %v65_v32 }
  0xa1   :  { %v686_v24 = vld [vmem:[%s22020_s1 + $0x10c0] sm:$0xff]  ;;  %v13658_v33 = vcombine.high %v822_v6, %v826_v12  ;;  %7434 = vmatprep.subr.bf16.mxu0 %v13530_v38  ;;  %v13657_v2 = vcombine.low %v822_v6, %v826_v12  ;;  %v80_v6 = vld [vmem:[%s22019_s0 + $0x1d0] sm:$0xff]  ;;  %v15510_v12 = vcombine.low %v56_v13, %v64_v16 }
  0xa2   :  { %v690_v55 = vld [vmem:[%s22020_s1 + $0x10e0] sm:$0xff]  ;;  %7435 = vmatpush1.bf16.msra.mxu0 %v13529_v51  ;;  %22370 = vst [vmem:[#allocation45_spill] sm:$0xff] %v15512_v37  ;;  %v15526_v32 = vcombine.high %v72_v0, %v80_v6 }
  0xa3   :  { %v814_v39 = vld [vmem:[%s22020_s1 + $0x14c0] sm:$0xff]  ;;  %v13522_v4 = vcombine.high %v686_v24, %v690_v55  ;;  %7547 = vmatprep.subr.bf16.mxu1 %v13658_v33  ;;  %22369 = vst [vmem:[#allocation44_spill] sm:$0xff] %v15510_v12  ;;  %v13521_v38 = vcombine.low %v686_v24, %v690_v55  ;;  %v81_v33 = vld [vmem:[%s22019_s0 + $0x1d8] sm:$0xff] }
  0xa4   :  { %v818_v40 = vld [vmem:[%s22020_s1 + $0x14e0] sm:$0xff]  ;;  %7548 = vmatpush1.bf16.msra.mxu1 %v13657_v2  ;;  %22371 = vst [vmem:[#allocation46_spill] sm:$0xff] %v15526_v32 }
  0xa5   :  { %v678_v53 = vld [vmem:[%s22020_s1 + $0x1080] sm:$0xff]  ;;  %v13650_v23 = vcombine.high %v814_v39, %v818_v40  ;;  %7436 = vmatprep.subr.bf16.mxu0 %v13522_v4  ;;  %v13649_v36 = vcombine.low %v814_v39, %v818_v40  ;;  %7255 = vmatmul.mubr.bf16.gmra.mxu0 %v15510_v12  ;;  %v15535_v39 = vcombine.high %v73_v20, %v81_v33 }
  0xa6   :  { %v682_v61 = vld [vmem:[%s22020_s1 + $0x10a0] sm:$0xff]  ;;  %7437 = vmatpush1.bf16.msra.mxu0 %v13521_v38  ;;  %7264 = vmatprep.mubr.bf16.mxu0 %v15526_v32 }
  0xa7   :  { %v806_v15 = vld [vmem:[%s22020_s1 + $0x1480] sm:$0xff]  ;;  %v13514_v19 = vcombine.high %v678_v53, %v682_v61  ;;  %7549 = vmatprep.subr.bf16.mxu1 %v13650_v23  ;;  %22372 = vst [vmem:[#allocation47_spill] sm:$0xff] %v15535_v39  ;;  %7368 = vmatmul.mubr.bf16.gmra.mxu1 %v15512_v37  ;;  %v13513_v40 = vcombine.low %v678_v53, %v682_v61  ;;  %v88_v61 = vld [vmem:[%s22019_s0 + $0x210] sm:$0xff]  ;;  %v89_v37 = vld [vmem:[%s22019_s0 + $0x218] sm:$0xff] }
  0xa8   :  { %v810_v62 = vld [vmem:[%s22020_s1 + $0x14a0] sm:$0xff]  ;;  %7550 = vmatpush1.bf16.msra.mxu1 %v13649_v36  ;;  %7377 = vmatprep.mubr.bf16.mxu1 %v15535_v39  ;;  %v15558_v36 = vcombine.low %v72_v0, %v80_v6 }
  0xa9   :  { %v670_v13 = vld [vmem:[%s22020_s1 + $0x1040] sm:$0xff]  ;;  %v13642_v54 = vcombine.high %v806_v15, %v810_v62  ;;  %7438 = vmatprep.subr.bf16.mxu0 %v13514_v19  ;;  %v13641_v4 = vcombine.low %v806_v15, %v810_v62  ;;  %v96_v19 = vld [vmem:[%s22019_s0 + $0x250] sm:$0xff]  ;;  %v15560_v15 = vcombine.low %v73_v20, %v81_v33 }
  0xaa   :  { %v674_v16 = vld [vmem:[%s22020_s1 + $0x1060] sm:$0xff]  ;;  %22373 = vst [vmem:[#allocation48_spill] sm:$0xff] %v15558_v36  ;;  %7439 = vmatpush1.bf16.msra.mxu0 %v13513_v40  ;;  %v15574_v33 = vcombine.high %v88_v61, %v96_v19 }
  0xab   :  { %v798_v24 = vld [vmem:[%s22020_s1 + $0x1440] sm:$0xff]  ;;  %v13506_v23 = vcombine.high %v670_v13, %v674_v16  ;;  %7551 = vmatprep.subr.bf16.mxu1 %v13642_v54  ;;  %22374 = vst [vmem:[#allocation49_spill] sm:$0xff] %v15560_v15  ;;  %v13505_v62 = vcombine.low %v670_v13, %v674_v16  ;;  %v97_v54 = vld [vmem:[%s22019_s0 + $0x258] sm:$0xff] }
  0xac   :  { %v802_v55 = vld [vmem:[%s22020_s1 + $0x1460] sm:$0xff]  ;;  %7552 = vmatpush1.bf16.msra.mxu1 %v13641_v4  ;;  %22375 = vst [vmem:[#allocation50_spill] sm:$0xff] %v15574_v33 }
  0xad   :  { %v662_v51 = vld [vmem:[%s22020_s1 + $0x1000] sm:$0xff]  ;;  %v13634_v38 = vcombine.high %v798_v24, %v802_v55  ;;  %7440 = vmatprep.subr.bf16.mxu0 %v13506_v23  ;;  %v13633_v32 = vcombine.low %v798_v24, %v802_v55  ;;  %7265 = vmatmul.mubr.bf16.gmra.mxu0 %v15558_v36  ;;  %v15583_v24 = vcombine.high %v89_v37, %v97_v54 }
  0xae   :  { %v666_v2 = vld [vmem:[%s22020_s1 + $0x1020] sm:$0xff]  ;;  %7441 = vmatpush1.bf16.msra.mxu0 %v13505_v62  ;;  %7274 = vmatprep.mubr.bf16.mxu0 %v15574_v33 }
  0xaf   :  { %v790_v12 = vld [vmem:[%s22020_s1 + $0x1400] sm:$0xff]  ;;  %v13498_v50 = vcombine.high %v662_v51, %v666_v2  ;;  %7553 = vmatprep.subr.bf16.mxu1 %v13634_v38  ;;  %22376 = vst [vmem:[#allocation51_spill] sm:$0xff] %v15583_v24  ;;  %7378 = vmatmul.mubr.bf16.gmra.mxu1 %v15560_v15  ;;  %v13497_v55 = vcombine.low %v662_v51, %v666_v2  ;;  %v104_v2 = vld [vmem:[%s22019_s0 + $0x290] sm:$0xff]  ;;  %v105_v15 = vld [vmem:[%s22019_s0 + $0x298] sm:$0xff] }
  0xb0   :  { %v794_v53 = vld [vmem:[%s22020_s1 + $0x1420] sm:$0xff]  ;;  %7554 = vmatpush1.bf16.msra.mxu1 %v13633_v32  ;;  %7387 = vmatprep.mubr.bf16.mxu1 %v15583_v24  ;;  %v15608_v32 = vcombine.low %v89_v37, %v97_v54 }
  0xb1   :  { %v782_v0 = vld [vmem:[%s22020_s1 + $0x13c0] sm:$0xff]  ;;  %v13626_v6 = vcombine.high %v790_v12, %v794_v53  ;;  %7442 = vmatprep.subr.bf16.mxu0 %v13498_v50  ;;  %v13625_v23 = vcombine.low %v790_v12, %v794_v53  ;;  %v112_v50 = vld [vmem:[%s22019_s0 + $0x2d0] sm:$0xff]  ;;  %v15606_v12 = vcombine.low %v88_v61, %v96_v19 }
  0xb2   :  { %v786_v20 = vld [vmem:[%s22020_s1 + $0x13e0] sm:$0xff]  ;;  %7443 = vmatpush1.bf16.msra.mxu0 %v13497_v55  ;;  %22378 = vst [vmem:[#allocation53_spill] sm:$0xff] %v15608_v32  ;;  %v15622_v54 = vcombine.high %v104_v2, %v112_v50 }
  0xb3   :  { %v910_v13 = vld [vmem:[%s22020_s1 + $0x17c0] sm:$0xff]  ;;  %v13618_v38 = vcombine.high %v782_v0, %v786_v20  ;;  %7555 = vmatprep.subr.bf16.mxu1 %v13626_v6  ;;  %22377 = vst [vmem:[#allocation52_spill] sm:$0xff] %v15606_v12  ;;  %v13617_v53 = vcombine.low %v782_v0, %v786_v20  ;;  %v113_v6 = vld [vmem:[%s22019_s0 + $0x2d8] sm:$0xff] }
  0xb4   :  { %v914_v16 = vld [vmem:[%s22020_s1 + $0x17e0] sm:$0xff]  ;;  %7556 = vmatpush1.bf16.msra.mxu1 %v13625_v23  ;;  %22379 = vst [vmem:[#allocation54_spill] sm:$0xff] %v15622_v54 }
  0xb5   :  { %v774_v40 = vld [vmem:[%s22020_s1 + $0x1380] sm:$0xff]  ;;  %v13746_v62 = vcombine.high %v910_v13, %v914_v16  ;;  %7444 = vmatprep.subr.bf16.mxu0 %v13618_v38  ;;  %v13745_v33 = vcombine.low %v910_v13, %v914_v16  ;;  %7275 = vmatmul.mubr.bf16.gmra.mxu0 %v15606_v12  ;;  %v15631_v13 = vcombine.high %v105_v15, %v113_v6 }
  0xb6   :  { %v778_v4 = vld [vmem:[%s22020_s1 + $0x13a0] sm:$0xff]  ;;  %7445 = vmatpush2.bf16.msra.mxu0 %v13617_v53  ;;  %7284 = vmatprep.mubr.bf16.mxu0 %v15622_v54 }
  0xb7   :  { %v902_v36 = vld [vmem:[%s22020_s1 + $0x1780] sm:$0xff]  ;;  %v13610_v39 = vcombine.high %v774_v40, %v778_v4  ;;  %7557 = vmatprep.subr.bf16.mxu1 %v13746_v62  ;;  %22380 = vst [vmem:[#allocation55_spill] sm:$0xff] %v15631_v13  ;;  %7388 = vmatmul.mubr.bf16.gmra.mxu1 %v15608_v32  ;;  %v13609_v16 = vcombine.low %v774_v40, %v778_v4  ;;  %v120_v4 = vld [vmem:[%s22019_s0 + $0x310] sm:$0xff]  ;;  %v121_v32 = vld [vmem:[%s22019_s0 + $0x318] sm:$0xff] }
  0xb8   :  { %v906_v51 = vld [vmem:[%s22020_s1 + $0x17a0] sm:$0xff]  ;;  %7558 = vmatpush2.bf16.msra.mxu1 %v13745_v33  ;;  %7397 = vmatprep.mubr.bf16.mxu1 %v15631_v13  ;;  %v15656_v33 = vcombine.low %v105_v15, %v113_v6 }
  0xb9   :  { %v766_v61 = vld [vmem:[%s22020_s1 + $0x1340] sm:$0xff]  ;;  %v13738_v19 = vcombine.high %v902_v36, %v906_v51  ;;  %7446 = vmatprep.subr.bf16.mxu0 %v13610_v39  ;;  %v13737_v38 = vcombine.low %v902_v36, %v906_v51  ;;  %v128_v39 = vld [vmem:[%s22019_s0 + $0x350] sm:$0xff]  ;;  %v15654_v36 = vcombine.low %v104_v2, %v112_v50 }
  0xba   :  { %v770_v37 = vld [vmem:[%s22020_s1 + $0x1360] sm:$0xff]  ;;  %7447 = vmatpush2.bf16.msra.mxu0 %v13609_v16  ;;  %22382 = vst [vmem:[#allocation57_spill] sm:$0xff] %v15656_v33  ;;  %v15670_v6 = vcombine.high %v120_v4, %v128_v39 }
  0xbb   :  { %v894_v0 = vld [vmem:[%s22020_s1 + $0x1740] sm:$0xff]  ;;  %v13602_v62 = vcombine.high %v766_v61, %v770_v37  ;;  %7559 = vmatprep.subr.bf16.mxu1 %v13738_v19  ;;  %22381 = vst [vmem:[#allocation56_spill] sm:$0xff] %v15654_v36  ;;  %v13601_v51 = vcombine.low %v766_v61, %v770_v37  ;;  %v129_v19 = vld [vmem:[%s22019_s0 + $0x358] sm:$0xff] }
  0xbc   :  { %v898_v20 = vld [vmem:[%s22020_s1 + $0x1760] sm:$0xff]  ;;  %7560 = vmatpush2.bf16.msra.mxu1 %v13737_v38  ;;  %22383 = vst [vmem:[#allocation58_spill] sm:$0xff] %v15670_v6 }
  0xbd   :  { %v758_v55 = vld [vmem:[%s22020_s1 + $0x1300] sm:$0xff]  ;;  %v13730_v53 = vcombine.high %v894_v0, %v898_v20  ;;  %7448 = vmatprep.subr.bf16.mxu0 %v13602_v62  ;;  %v13729_v54 = vcombine.low %v894_v0, %v898_v20  ;;  %7285 = vmatmul.mubr.bf16.gmra.mxu0 %v15654_v36  ;;  %v15679_v0 = vcombine.high %v121_v32, %v129_v19 }
  0xbe   :  { %v762_v23 = vld [vmem:[%s22020_s1 + $0x1320] sm:$0xff]  ;;  %7449 = vmatpush2.bf16.msra.mxu0 %v13601_v51  ;;  %7294 = vmatprep.mubr.bf16.mxu0 %v15670_v6 }
  0xbf   :  { %v886_v12 = vld [vmem:[%s22020_s1 + $0x1700] sm:$0xff]  ;;  %v13594_v24 = vcombine.high %v758_v55, %v762_v23  ;;  %7561 = vmatprep.subr.bf16.mxu1 %v13730_v53  ;;  %22384 = vst [vmem:[#allocation59_spill] sm:$0xff] %v15679_v0  ;;  %7398 = vmatmul.mubr.bf16.gmra.mxu1 %v15656_v33  ;;  %v13593_v20 = vcombine.low %v758_v55, %v762_v23  ;;  %v136_v23 = vld [vmem:[%s22019_s0 + $0x390] sm:$0xff]  ;;  %v137_v33 = vld [vmem:[%s22019_s0 + $0x398] sm:$0xff] }
  0xc0   :  { %v890_v40 = vld [vmem:[%s22020_s1 + $0x1720] sm:$0xff]  ;;  %7562 = vmatpush2.bf16.msra.mxu1 %v13729_v54  ;;  %7407 = vmatprep.mubr.bf16.mxu1 %v15679_v0  ;;  %v15704_v54 = vcombine.low %v121_v32, %v129_v19 }
  0xc1   :  { %v750_v2 = vld [vmem:[%s22020_s1 + $0x12c0] sm:$0xff]  ;;  %v13722_v50 = vcombine.high %v886_v12, %v890_v40  ;;  %7450 = vmatprep.subr.bf16.mxu0 %v13594_v24  ;;  %v13721_v62 = vcombine.low %v886_v12, %v890_v40  ;;  %v144_v24 = vld [vmem:[%s22019_s0 + $0x3d0] sm:$0xff]  ;;  %v15702_v12 = vcombine.low %v120_v4, %v128_v39 }
  0xc2   :  { %v754_v15 = vld [vmem:[%s22020_s1 + $0x12e0] sm:$0xff]  ;;  %7451 = vmatpush2.bf16.msra.mxu0 %v13593_v20  ;;  %22386 = vst [vmem:[#allocation61_spill] sm:$0xff] %v15704_v54  ;;  %v15718_v19 = vcombine.high %v136_v23, %v144_v24 }
  0xc3   :  { %v878_v61 = vld [vmem:[%s22020_s1 + $0x16c0] sm:$0xff]  ;;  %v13586_v53 = vcombine.high %v750_v2, %v754_v15  ;;  %7563 = vmatprep.subr.bf16.mxu1 %v13722_v50  ;;  %22385 = vst [vmem:[#allocation60_spill] sm:$0xff] %v15702_v12  ;;  %v13585_v40 = vcombine.low %v750_v2, %v754_v15  ;;  %v145_v50 = vld [vmem:[%s22019_s0 + $0x3d8] sm:$0xff] }
  0xc4   :  { %v882_v37 = vld [vmem:[%s22020_s1 + $0x16e0] sm:$0xff]  ;;  %7564 = vmatpush2.bf16.msra.mxu1 %v13721_v62  ;;  %22387 = vst [vmem:[#allocation62_spill] sm:$0xff] %v15718_v19 }
  0xc5   :  { %v742_v16 = vld [vmem:[%s22020_s1 + $0x1280] sm:$0xff]  ;;  %v13714_v51 = vcombine.high %v878_v61, %v882_v37  ;;  %7452 = vmatprep.subr.bf16.mxu0 %v13586_v53  ;;  %v13713_v6 = vcombine.low %v878_v61, %v882_v37  ;;  %7295 = vmatmul.mubr.bf16.gmra.mxu0 %v15702_v12  ;;  %v15727_v61 = vcombine.high %v137_v33, %v145_v50 }
  0xc6   :  { %v746_v38 = vld [vmem:[%s22020_s1 + $0x12a0] sm:$0xff]  ;;  %7453 = vmatpush2.bf16.msra.mxu0 %v13585_v40  ;;  %7304 = vmatprep.mubr.bf16.mxu0 %v15718_v19 }
  0xc7   :  { %v870_v36 = vld [vmem:[%s22020_s1 + $0x1680] sm:$0xff]  ;;  %v13578_v13 = vcombine.high %v742_v16, %v746_v38  ;;  %7565 = vmatprep.subr.bf16.mxu1 %v13714_v51  ;;  %22388 = vst [vmem:[#allocation63_spill] sm:$0xff] %v15727_v61  ;;  %7408 = vmatmul.mubr.bf16.gmra.mxu1 %v15704_v54  ;;  %v13577_v37 = vcombine.low %v742_v16, %v746_v38  ;;  %v27_v54 = vld [vmem:[%s22019_s0 + $0x28] sm:$0xff] }
  0xc8   :  { %v874_v55 = vld [vmem:[%s22020_s1 + $0x16a0] sm:$0xff]  ;;  %7566 = vmatpush2.bf16.msra.mxu1 %v13713_v6  ;;  %7417 = vmatprep.mubr.bf16.mxu1 %v15727_v61  ;;  %v15752_v6 = vcombine.low %v137_v33, %v145_v50 }
  0xc9   :  { %v734_v4 = vld [vmem:[%s22020_s1 + $0x1240] sm:$0xff]  ;;  %v13706_v39 = vcombine.high %v870_v36, %v874_v55  ;;  %7454 = vmatprep.subr.bf16.mxu0 %v13578_v13  ;;  %v13705_v53 = vcombine.low %v870_v36, %v874_v55  ;;  %v15750_v36 = vcombine.low %v136_v23, %v144_v24 }
  0xca   :  { %v738_v32 = vld [vmem:[%s22020_s1 + $0x1260] sm:$0xff]  ;;  %7455 = vmatpush2.bf16.msra.mxu0 %v13577_v37  ;;  %22390 = vst [vmem:[#allocation65_spill] sm:$0xff] %v15752_v6 }
  0xcb   :  { %v862_v2 = vld [vmem:[%s22020_s1 + $0x1640] sm:$0xff]  ;;  %v13570_v51 = vcombine.high %v734_v4, %v738_v32  ;;  %7567 = vmatprep.subr.bf16.mxu1 %v13706_v39  ;;  %22389 = vst [vmem:[#allocation64_spill] sm:$0xff] %v15750_v36  ;;  %v13569_v55 = vcombine.low %v734_v4, %v738_v32  ;;  %v35_v39 = vld [vmem:[%s22019_s0 + $0x68] sm:$0xff] }
  0xcc   :  { %v866_v15 = vld [vmem:[%s22020_s1 + $0x1660] sm:$0xff]  ;;  %7568 = vmatpush2.bf16.msra.mxu1 %v13705_v53 }
  0xcd   :  { %v726_v20 = vld [vmem:[%s22020_s1 + $0x1200] sm:$0xff]  ;;  %v13698_v40 = vcombine.high %v862_v2, %v866_v15  ;;  %7456 = vmatprep.subr.bf16.mxu0 %v13570_v51  ;;  %v13697_v19 = vcombine.low %v862_v2, %v866_v15  ;;  %7305 = vmatmul.mubr.bf16.gmra.mxu0 %v15750_v36  ;;  %v15775_v2 = vcombine.high %v27_v54, %v35_v39 }
  0xce   :  { %v730_v62 = vld [vmem:[%s22020_s1 + $0x1220] sm:$0xff]  ;;  %7457 = vmatpush2.bf16.msra.mxu0 %v13569_v55 }
  0xcf   :  { %v854_v12 = vld [vmem:[%s22020_s1 + $0x1600] sm:$0xff]  ;;  %v13562_v0 = vcombine.high %v726_v20, %v730_v62  ;;  %7569 = vmatprep.subr.bf16.mxu1 %v13698_v40  ;;  %22392 = vst [vmem:[#allocation67_spill] sm:$0xff] %v15775_v2  ;;  %7418 = vmatmul.mubr.bf16.gmra.mxu1 %v15752_v6  ;;  %v13561_v15 = vcombine.low %v726_v20, %v730_v62 }
  0xd0   :  { %v858_v16 = vld [vmem:[%s22020_s1 + $0x1620] sm:$0xff]  ;;  %7570 = vmatpush2.bf16.msra.mxu1 %v13697_v19  ;;  %v51_v19 = vld [vmem:[%s22019_s0 + $0xe8] sm:$0xff]  ;;  %7573 = vmatprep.mubr.bf16.mxu1 %v15775_v2  ;;  %v15806_v6 = vcombine.low %v27_v54, %v35_v39 }
  0xd1   :  { %v26_v38 = vld [vmem:[%s22019_s0 + $0x20] sm:$0xff]  ;;  %v13690_v24 = vcombine.high %v854_v12, %v858_v16  ;;  %7458 = vmatprep.subr.bf16.mxu0 %v13562_v0  ;;  %v13689_v51 = vcombine.low %v854_v12, %v858_v16  ;;  %v43_v12 = vld [vmem:[%s22019_s0 + $0xa8] sm:$0xff] }
  0xd2   :  { %v34_v13 = vld [vmem:[%s22019_s0 + $0x60] sm:$0xff]  ;;  %7459 = vmatpush2.bf16.msra.mxu0 %v13561_v15  ;;  %22394 = vst [vmem:[#allocation69_spill] sm:$0xff] %v15806_v6 }
  0xd3   :  { %v974_v23 = vld [vmem:[%s22020_s1 + $0x19c0] sm:$0xff]  ;;  %v15766_v50 = vcombine.high %v26_v38, %v34_v13  ;;  %7571 = vmatprep.subr.bf16.mxu1 %v13690_v24  ;;  %v15803_v16 = vcombine.low %v26_v38, %v34_v13 }
  0xd4   :  { %v978_v33 = vld [vmem:[%s22020_s1 + $0x19e0] sm:$0xff]  ;;  %7572 = vmatpush2.bf16.msra.mxu1 %v13689_v51 }
  0xd5   :  { %22391 = vst [vmem:[#allocation66_spill] sm:$0xff] %v15766_v50  ;;  %v1102_v4 = vld [vmem:[%s22020_s1 + $0x1dc0] sm:$0xff]  ;;  %v13810_v40 = vcombine.high %v974_v23, %v978_v33  ;;  %7460 = vmatprep.mubr.bf16.mxu0 %v15766_v50  ;;  %22393 = vst [vmem:[#allocation68_spill] sm:$0xff] %v15803_v16  ;;  %v13809_v61 = vcombine.low %v974_v23, %v978_v33  ;;  %v15823_v23 = vcombine.high %v43_v12, %v51_v19 }
  0xd6   :  { %v1106_v32 = vld [vmem:[%s22020_s1 + $0x1de0] sm:$0xff]  ;;  %7461 = vmatmul.mubr.bf16.vlgmr.msra.gmra.mxu0 %v15803_v16 }
  0xd7   :  { %v966_v37 = vld [vmem:[%s22020_s1 + $0x1980] sm:$0xff]  ;;  %v13938_v0 = vcombine.high %v1102_v4, %v1106_v32  ;;  %7654 = vmatprep.subr.bf16.mxu0 %v13810_v40  ;;  %v13937_v24 = vcombine.low %v1102_v4, %v1106_v32  ;;  %22396 = vst [vmem:[#allocation71_spill] sm:$0xff] %v15823_v23  ;;  %7574 = vmatmul.mubr.bf16.vlgmr.msra.gmra.mxu1 %v15806_v6 }
  0xd8   :  { %v970_v53 = vld [vmem:[%s22020_s1 + $0x19a0] sm:$0xff]  ;;  %7655 = vmatpush1.bf16.msra.mxu0 %v13809_v61  ;;  %7583 = vmatprep.mubr.bf16.mxu1 %v15823_v23 }
  0xd9   :  { %v1094_v36 = vld [vmem:[%s22020_s1 + $0x1d80] sm:$0xff]  ;;  %v13802_v50 = vcombine.high %v966_v37, %v970_v53  ;;  %7767 = vmatprep.subr.bf16.mxu1 %v13938_v0  ;;  %v13801_v33 = vcombine.low %v966_v37, %v970_v53 }
  0xda   :  { %v1098_v20 = vld [vmem:[%s22020_s1 + $0x1da0] sm:$0xff]  ;;  %7768 = vmatpush1.bf16.msra.mxu1 %v13937_v24  ;;  %v15854_v24 = vcombine.low %v43_v12, %v51_v19 }
  0xdb   :  { %v42_v62 = vld [vmem:[%s22019_s0 + $0xa0] sm:$0xff]  ;;  %v13930_v54 = vcombine.high %v1094_v36, %v1098_v20  ;;  %7656 = vmatprep.subr.bf16.mxu0 %v13802_v50  ;;  %v13929_v15 = vcombine.low %v1094_v36, %v1098_v20  ;;  %v59_v50 = vld [vmem:[%s22019_s0 + $0x128] sm:$0xff] }
  0xdc   :  { %v50_v55 = vld [vmem:[%s22019_s0 + $0xe0] sm:$0xff]  ;;  %v67_v20 = vld [vmem:[%s22019_s0 + $0x168] sm:$0xff]  ;;  %7657 = vmatpush1.bf16.msra.mxu0 %v13801_v33  ;;  %22398 = vst [vmem:[#allocation73_spill] sm:$0xff] %v15854_v24 }
  0xdd   :  { %v958_v56 = vld [vmem:[%s22020_s1 + $0x1940] sm:$0xff]  ;;  %v15817_v13 = vcombine.high %v42_v62, %v50_v55  ;;  %7769 = vmatprep.subr.bf16.mxu1 %v13930_v54  ;;  %v15852_v0 = vcombine.low %v42_v62, %v50_v55 }
  0xde   :  { %v962_v42 = vld [vmem:[%s22020_s1 + $0x1960] sm:$0xff]  ;;  %7770 = vmatpush1.bf16.msra.mxu1 %v13929_v15 }
  0xdf   :  { %v1086_v38 = vld [vmem:[%s22020_s1 + $0x1d40] sm:$0xff]  ;;  %22395 = vst [vmem:[#allocation70_spill] sm:$0xff] %v15817_v13  ;;  %v13794_v51 = vcombine.high %v958_v56, %v962_v42  ;;  %7470 = vmatprep.mubr.bf16.mxu0 %v15817_v13  ;;  %22397 = vst [vmem:[#allocation72_spill] sm:$0xff] %v15852_v0  ;;  %v13793_v6 = vcombine.low %v958_v56, %v962_v42  ;;  %v15871_v56 = vcombine.high %v59_v50, %v67_v20 }
  0xe0   :  { %v1090_v39 = vld [vmem:[%s22020_s1 + $0x1d60] sm:$0xff]  ;;  %7471 = vmatmul.mubr.bf16.gmra.mxu0 %v15852_v0  ;;  %7584 = vmatmul.mubr.bf16.gmra.mxu1 %v15854_v24 }
  0xe1   :  { %v950_v4 = vld [vmem:[%s22020_s1 + $0x1900] sm:$0xff]  ;;  %v13922_v36 = vcombine.high %v1086_v38, %v1090_v39  ;;  %7658 = vmatprep.subr.bf16.mxu0 %v13794_v51  ;;  %v13921_v54 = vcombine.low %v1086_v38, %v1090_v39  ;;  %22400 = vst [vmem:[#allocation75_spill] sm:$0xff] %v15871_v56  ;;  %7593 = vmatprep.mubr.bf16.mxu1 %v15871_v56 }
  0xe2   :  { %v954_v32 = vld [vmem:[%s22020_s1 + $0x1920] sm:$0xff]  ;;  %7659 = vmatpush1.bf16.msra.mxu0 %v13793_v6 }
  0xe3   :  { %v1078_v40 = vld [vmem:[%s22020_s1 + $0x1d00] sm:$0xff]  ;;  %v13786_v13 = vcombine.high %v950_v4, %v954_v32  ;;  %7771 = vmatprep.subr.bf16.mxu1 %v13922_v36  ;;  %v13785_v19 = vcombine.low %v950_v4, %v954_v32 }
  0xe4   :  { %v1082_v61 = vld [vmem:[%s22020_s1 + $0x1d20] sm:$0xff]  ;;  %7772 = vmatpush1.bf16.msra.mxu1 %v13921_v54  ;;  %v15902_v54 = vcombine.low %v59_v50, %v67_v20 }
  0xe5   :  { %v58_v37 = vld [vmem:[%s22019_s0 + $0x120] sm:$0xff]  ;;  %v13914_v55 = vcombine.high %v1078_v40, %v1082_v61  ;;  %7660 = vmatprep.subr.bf16.mxu0 %v13786_v13  ;;  %v13913_v33 = vcombine.low %v1078_v40, %v1082_v61  ;;  %v75_v40 = vld [vmem:[%s22019_s0 + $0x1a8] sm:$0xff] }
  0xe6   :  { %v66_v53 = vld [vmem:[%s22019_s0 + $0x160] sm:$0xff]  ;;  %v83_v61 = vld [vmem:[%s22019_s0 + $0x1e8] sm:$0xff]  ;;  %7661 = vmatpush1.bf16.msra.mxu0 %v13785_v19  ;;  %22402 = vst [vmem:[#allocation77_spill] sm:$0xff] %v15902_v54 }
  0xe7   :  { %v942_v16 = vld [vmem:[%s22020_s1 + $0x18c0] sm:$0xff]  ;;  %v15865_v12 = vcombine.high %v58_v37, %v66_v53  ;;  %7773 = vmatprep.subr.bf16.mxu1 %v13914_v55  ;;  %v15900_v36 = vcombine.low %v58_v37, %v66_v53 }
  0xe8   :  { %v946_v2 = vld [vmem:[%s22020_s1 + $0x18e0] sm:$0xff]  ;;  %7774 = vmatpush1.bf16.msra.mxu1 %v13913_v33 }
  0xe9   :  { %v1070_v62 = vld [vmem:[%s22020_s1 + $0x1cc0] sm:$0xff]  ;;  %22399 = vst [vmem:[#allocation74_spill] sm:$0xff] %v15865_v12  ;;  %v13778_v15 = vcombine.high %v942_v16, %v946_v2  ;;  %7480 = vmatprep.mubr.bf16.mxu0 %v15865_v12  ;;  %22401 = vst [vmem:[#allocation76_spill] sm:$0xff] %v15900_v36  ;;  %v13777_v24 = vcombine.low %v942_v16, %v946_v2  ;;  %v15919_v16 = vcombine.high %v75_v40, %v83_v61 }
  0xea   :  { %v1074_v42 = vld [vmem:[%s22020_s1 + $0x1ce0] sm:$0xff]  ;;  %7481 = vmatmul.mubr.bf16.gmra.mxu0 %v15900_v36  ;;  %7594 = vmatmul.mubr.bf16.gmra.mxu1 %v15902_v54 }
  0xeb   :  { %v934_v38 = vld [vmem:[%s22020_s1 + $0x1880] sm:$0xff]  ;;  %v13906_v13 = vcombine.high %v1070_v62, %v1074_v42  ;;  %7662 = vmatprep.subr.bf16.mxu0 %v13778_v15  ;;  %v13905_v55 = vcombine.low %v1070_v62, %v1074_v42  ;;  %22404 = vst [vmem:[#allocation79_spill] sm:$0xff] %v15919_v16  ;;  %7603 = vmatprep.mubr.bf16.mxu1 %v15919_v16 }
  0xec   :  { %v938_v39 = vld [vmem:[%s22020_s1 + $0x18a0] sm:$0xff]  ;;  %7663 = vmatpush1.bf16.msra.mxu0 %v13777_v24 }
  0xed   :  { %v1062_v51 = vld [vmem:[%s22020_s1 + $0x1c80] sm:$0xff]  ;;  %v13770_v12 = vcombine.high %v934_v38, %v938_v39  ;;  %7775 = vmatprep.subr.bf16.mxu1 %v13906_v13  ;;  %v13769_v20 = vcombine.low %v934_v38, %v938_v39 }
  0xee   :  { %v1066_v6 = vld [vmem:[%s22020_s1 + $0x1ca0] sm:$0xff]  ;;  %7776 = vmatpush1.bf16.msra.mxu1 %v13905_v55  ;;  %v15950_v55 = vcombine.low %v75_v40, %v83_v61 }
  0xef   :  { %v74_v4 = vld [vmem:[%s22019_s0 + $0x1a0] sm:$0xff]  ;;  %v13898_v53 = vcombine.high %v1062_v51, %v1066_v6  ;;  %7664 = vmatprep.subr.bf16.mxu0 %v13770_v12  ;;  %v13897_v19 = vcombine.low %v1062_v51, %v1066_v6  ;;  %v91_v51 = vld [vmem:[%s22019_s0 + $0x228] sm:$0xff] }
  0xf0   :  { %v82_v32 = vld [vmem:[%s22019_s0 + $0x1e0] sm:$0xff]  ;;  %v99_v6 = vld [vmem:[%s22019_s0 + $0x268] sm:$0xff]  ;;  %7665 = vmatpush1.bf16.msra.mxu0 %v13769_v20  ;;  %22406 = vst [vmem:[#allocation81_spill] sm:$0xff] %v15950_v55 }
  0xf1   :  { %v926_v0 = vld [vmem:[%s22020_s1 + $0x1840] sm:$0xff]  ;;  %v15913_v50 = vcombine.high %v74_v4, %v82_v32  ;;  %7777 = vmatprep.subr.bf16.mxu1 %v13898_v53  ;;  %v15948_v13 = vcombine.low %v74_v4, %v82_v32 }
  0xf2   :  { %v930_v23 = vld [vmem:[%s22020_s1 + $0x1860] sm:$0xff]  ;;  %7778 = vmatpush1.bf16.msra.mxu1 %v13897_v19 }
  0xf3   :  { %v1054_v37 = vld [vmem:[%s22020_s1 + $0x1c40] sm:$0xff]  ;;  %22403 = vst [vmem:[#allocation78_spill] sm:$0xff] %v15913_v50  ;;  %v13762_v33 = vcombine.high %v926_v0, %v930_v23  ;;  %7490 = vmatprep.mubr.bf16.mxu0 %v15913_v50  ;;  %22405 = vst [vmem:[#allocation80_spill] sm:$0xff] %v15948_v13  ;;  %v13761_v54 = vcombine.low %v926_v0, %v930_v23  ;;  %v15967_v0 = vcombine.high %v91_v51, %v99_v6 }
  0xf4   :  { %v1058_v2 = vld [vmem:[%s22020_s1 + $0x1c60] sm:$0xff]  ;;  %7491 = vmatmul.mubr.bf16.gmra.mxu0 %v15948_v13  ;;  %7604 = vmatmul.mubr.bf16.gmra.mxu1 %v15950_v55 }
  0xf5   :  { %v918_v62 = vld [vmem:[%s22020_s1 + $0x1800] sm:$0xff]  ;;  %v13890_v12 = vcombine.high %v1054_v37, %v1058_v2  ;;  %7666 = vmatprep.subr.bf16.mxu0 %v13762_v33  ;;  %v13889_v53 = vcombine.low %v1054_v37, %v1058_v2  ;;  %22408 = vst [vmem:[#allocation83_spill] sm:$0xff] %v15967_v0  ;;  %7613 = vmatprep.mubr.bf16.mxu1 %v15967_v0 }
  0xf6   :  { %v922_v42 = vld [vmem:[%s22020_s1 + $0x1820] sm:$0xff]  ;;  %7667 = vmatpush1.bf16.msra.mxu0 %v13761_v54 }
  0xf7   :  { %v1046_v15 = vld [vmem:[%s22020_s1 + $0x1c00] sm:$0xff]  ;;  %v13754_v50 = vcombine.high %v918_v62, %v922_v42  ;;  %7779 = vmatprep.subr.bf16.mxu1 %v13890_v12  ;;  %v13753_v61 = vcombine.low %v918_v62, %v922_v42 }
  0xf8   :  { %v1050_v24 = vld [vmem:[%s22020_s1 + $0x1c20] sm:$0xff]  ;;  %7780 = vmatpush1.bf16.msra.mxu1 %v13889_v53  ;;  %v15998_v53 = vcombine.low %v91_v51, %v99_v6 }
  0xf9   :  { %v90_v38 = vld [vmem:[%s22019_s0 + $0x220] sm:$0xff]  ;;  %v13882_v32 = vcombine.high %v1046_v15, %v1050_v24  ;;  %7668 = vmatprep.subr.bf16.mxu0 %v13754_v50  ;;  %v13881_v20 = vcombine.low %v1046_v15, %v1050_v24  ;;  %v107_v15 = vld [vmem:[%s22019_s0 + $0x2a8] sm:$0xff] }
  0xfa   :  { %v98_v39 = vld [vmem:[%s22019_s0 + $0x260] sm:$0xff]  ;;  %v115_v24 = vld [vmem:[%s22019_s0 + $0x2e8] sm:$0xff]  ;;  %7669 = vmatpush1.bf16.msra.mxu0 %v13753_v61  ;;  %22410 = vst [vmem:[#allocation85_spill] sm:$0xff] %v15998_v53 }
  0xfb   :  { %v1038_v36 = vld [vmem:[%s22020_s1 + $0x1bc0] sm:$0xff]  ;;  %v15961_v40 = vcombine.high %v90_v38, %v98_v39  ;;  %7781 = vmatprep.subr.bf16.mxu1 %v13882_v32  ;;  %v15996_v12 = vcombine.low %v90_v38, %v98_v39 }
  0xfc   :  { %v1042_v56 = vld [vmem:[%s22020_s1 + $0x1be0] sm:$0xff]  ;;  %7782 = vmatpush1.bf16.msra.mxu1 %v13881_v20 }
  0xfd   :  { %v1166_v4 = vld [vmem:[%s22020_s1 + $0x1fc0] sm:$0xff]  ;;  %22407 = vst [vmem:[#allocation82_spill] sm:$0xff] %v15961_v40  ;;  %v13874_v19 = vcombine.high %v1038_v36, %v1042_v56  ;;  %7500 = vmatprep.mubr.bf16.mxu0 %v15961_v40  ;;  %22409 = vst [vmem:[#allocation84_spill] sm:$0xff] %v15996_v12  ;;  %v13873_v55 = vcombine.low %v1038_v36, %v1042_v56  ;;  %v16015_v36 = vcombine.high %v107_v15, %v115_v24 }
  0xfe   :  { %v1170_v23 = vld [vmem:[%s22020_s1 + $0x1fe0] sm:$0xff]  ;;  %7501 = vmatmul.mubr.bf16.gmra.mxu0 %v15996_v12  ;;  %7614 = vmatmul.mubr.bf16.gmra.mxu1 %v15998_v53 }
  0xff   :  { %v1030_v37 = vld [vmem:[%s22020_s1 + $0x1b80] sm:$0xff]  ;;  %v14002_v50 = vcombine.high %v1166_v4, %v1170_v23  ;;  %7670 = vmatprep.subr.bf16.mxu0 %v13874_v19  ;;  %v14001_v32 = vcombine.low %v1166_v4, %v1170_v23  ;;  %22412 = vst [vmem:[#allocation87_spill] sm:$0xff] %v16015_v36  ;;  %7623 = vmatprep.mubr.bf16.mxu1 %v16015_v36 }
 0x100   :  { %v1034_v2 = vld [vmem:[%s22020_s1 + $0x1ba0] sm:$0xff]  ;;  %7671 = vmatpush2.bf16.msra.mxu0 %v13873_v55 }
 0x101   :  { %v1158_v33 = vld [vmem:[%s22020_s1 + $0x1f80] sm:$0xff]  ;;  %v13866_v40 = vcombine.high %v1030_v37, %v1034_v2  ;;  %7783 = vmatprep.subr.bf16.mxu1 %v14002_v50  ;;  %v13865_v6 = vcombine.low %v1030_v37, %v1034_v2 }
 0x102   :  { %v1162_v54 = vld [vmem:[%s22020_s1 + $0x1fa0] sm:$0xff]  ;;  %7784 = vmatpush2.bf16.msra.mxu1 %v14001_v32  ;;  %v16046_v32 = vcombine.low %v107_v15, %v115_v24 }
 0x103   :  { %v106_v62 = vld [vmem:[%s22019_s0 + $0x2a0] sm:$0xff]  ;;  %v13994_v39 = vcombine.high %v1158_v33, %v1162_v54  ;;  %7672 = vmatprep.subr.bf16.mxu0 %v13866_v40  ;;  %v13993_v61 = vcombine.low %v1158_v33, %v1162_v54  ;;  %v123_v33 = vld [vmem:[%s22019_s0 + $0x328] sm:$0xff] }
 0x104   :  { %v114_v42 = vld [vmem:[%s22019_s0 + $0x2e0] sm:$0xff]  ;;  %v131_v54 = vld [vmem:[%s22019_s0 + $0x368] sm:$0xff]  ;;  %7673 = vmatpush2.bf16.msra.mxu0 %v13865_v6  ;;  %22414 = vst [vmem:[#allocation89_spill] sm:$0xff] %v16046_v32 }
 0x105   :  { %v1022_v13 = vld [vmem:[%s22020_s1 + $0x1b40] sm:$0xff]  ;;  %v16009_v51 = vcombine.high %v106_v62, %v114_v42  ;;  %7785 = vmatprep.subr.bf16.mxu1 %v13994_v39  ;;  %v16044_v50 = vcombine.low %v106_v62, %v114_v42 }
 0x106   :  { %v1026_v16 = vld [vmem:[%s22020_s1 + $0x1b60] sm:$0xff]  ;;  %7786 = vmatpush2.bf16.msra.mxu1 %v13993_v61 }
 0x107   :  { %v1150_v38 = vld [vmem:[%s22020_s1 + $0x1f40] sm:$0xff]  ;;  %22411 = vst [vmem:[#allocation86_spill] sm:$0xff] %v16009_v51  ;;  %v13858_v20 = vcombine.high %v1022_v13, %v1026_v16  ;;  %7510 = vmatprep.mubr.bf16.mxu0 %v16009_v51  ;;  %22413 = vst [vmem:[#allocation88_spill] sm:$0xff] %v16044_v50  ;;  %v13857_v53 = vcombine.low %v1022_v13, %v1026_v16  ;;  %v16063_v13 = vcombine.high %v123_v33, %v131_v54 }
 0x108   :  { %v1154_v56 = vld [vmem:[%s22020_s1 + $0x1f60] sm:$0xff]  ;;  %7511 = vmatmul.mubr.bf16.gmra.mxu0 %v16044_v50  ;;  %7624 = vmatmul.mubr.bf16.gmra.mxu1 %v16046_v32 }
 0x109   :  { %v1014_v4 = vld [vmem:[%s22020_s1 + $0x1b00] sm:$0xff]  ;;  %v13986_v40 = vcombine.high %v1150_v38, %v1154_v56  ;;  %7674 = vmatprep.subr.bf16.mxu0 %v13858_v20  ;;  %v13985_v39 = vcombine.low %v1150_v38, %v1154_v56  ;;  %22416 = vst [vmem:[#allocation91_spill] sm:$0xff] %v16063_v13  ;;  %7633 = vmatprep.mubr.bf16.mxu1 %v16063_v13 }
 0x10a   :  { %v1018_v23 = vld [vmem:[%s22020_s1 + $0x1b20] sm:$0xff]  ;;  %7675 = vmatpush2.bf16.msra.mxu0 %v13857_v53 }
 0x10b   :  { %v1142_v19 = vld [vmem:[%s22020_s1 + $0x1f00] sm:$0xff]  ;;  %v13850_v51 = vcombine.high %v1014_v4, %v1018_v23  ;;  %7787 = vmatprep.subr.bf16.mxu1 %v13986_v40  ;;  %v13849_v24 = vcombine.low %v1014_v4, %v1018_v23 }
 0x10c   :  { %v1146_v55 = vld [vmem:[%s22020_s1 + $0x1f20] sm:$0xff]  ;;  %7788 = vmatpush2.bf16.msra.mxu1 %v13985_v39  ;;  %v16094_v39 = vcombine.low %v123_v33, %v131_v54 }
 0x10d   :  { %v122_v37 = vld [vmem:[%s22019_s0 + $0x320] sm:$0xff]  ;;  %v13978_v42 = vcombine.high %v1142_v19, %v1146_v55  ;;  %7676 = vmatprep.subr.bf16.mxu0 %v13850_v51  ;;  %v13977_v6 = vcombine.low %v1142_v19, %v1146_v55  ;;  %v139_v19 = vld [vmem:[%s22019_s0 + $0x3a8] sm:$0xff] }
 0x10e   :  { %v130_v2 = vld [vmem:[%s22019_s0 + $0x360] sm:$0xff]  ;;  %v147_v55 = vld [vmem:[%s22019_s0 + $0x3e8] sm:$0xff]  ;;  %7677 = vmatpush2.bf16.msra.mxu0 %v13849_v24  ;;  %22418 = vst [vmem:[#allocation93_spill] sm:$0xff] %v16094_v39 }
 0x10f   :  { %v1006_v12 = vld [vmem:[%s22020_s1 + $0x1ac0] sm:$0xff]  ;;  %v16057_v15 = vcombine.high %v122_v37, %v130_v2  ;;  %7789 = vmatprep.subr.bf16.mxu1 %v13978_v42  ;;  %v16092_v40 = vcombine.low %v122_v37, %v130_v2  ;;  %v16111_v54 = vcombine.high %v139_v19, %v147_v55 }
 0x110   :  { %v1010_v0 = vld [vmem:[%s22020_s1 + $0x1ae0] sm:$0xff]  ;;  %7790 = vmatpush2.bf16.msra.mxu1 %v13977_v6 }
 0x111   :  { %v1134_v62 = vld [vmem:[%s22020_s1 + $0x1ec0] sm:$0xff]  ;;  %22415 = vst [vmem:[#allocation90_spill] sm:$0xff] %v16057_v15  ;;  %v13842_v61 = vcombine.high %v1006_v12, %v1010_v0  ;;  %7520 = vmatprep.mubr.bf16.mxu0 %v16057_v15  ;;  %22417 = vst [vmem:[#allocation92_spill] sm:$0xff] %v16092_v40  ;;  %v13841_v32 = vcombine.low %v1006_v12, %v1010_v0  ;;  %v1176_v12 = vlaneseq  ;;  %7634 = vmatmul.mubr.bf16.gmra.mxu1 %v16094_v39 }
 0x112   :  { %v1138_v16 = vld [vmem:[%s22020_s1 + $0x1ee0] sm:$0xff]  ;;  %7521 = vmatmul.mubr.bf16.gmra.mxu0 %v16092_v40  ;;  %22420 = vst [vmem:[#allocation95_spill] sm:$0xff] %v16111_v54  ;;  %7643 = vmatprep.mubr.bf16.mxu1 %v16111_v54  ;;  %v16144_v40 = vcombine.low %v139_v19, %v147_v55 }
 0x113   :  { %v998_v38 = vld [vmem:[%s22020_s1 + $0x1a80] sm:$0xff]  ;;  %v13970_v51 = vcombine.high %v1134_v62, %v1138_v16  ;;  %7678 = vmatprep.subr.bf16.mxu0 %v13842_v61  ;;  %v13969_v42 = vcombine.low %v1134_v62, %v1138_v16 }
 0x114   :  { %v1002_v56 = vld [vmem:[%s22020_s1 + $0x1aa0] sm:$0xff]  ;;  %7679 = vmatpush2.bf16.msra.mxu0 %v13841_v32  ;;  %22423 = vst [vmem:[#allocation98_spill] sm:$0xff] %v16144_v40 }
 0x115   :  { %v1126_v20 = vld [vmem:[%s22020_s1 + $0x1e80] sm:$0xff]  ;;  %v13834_v15 = vcombine.high %v998_v38, %v1002_v56  ;;  %7791 = vmatprep.subr.bf16.mxu1 %v13970_v51  ;;  %v13833_v62 = vcombine.low %v998_v38, %v1002_v56  ;;  %v28_v38 = vld [vmem:[%s22019_s0 + $0x30] sm:$0xff] }
 0x116   :  { %v1130_v53 = vld [vmem:[%s22020_s1 + $0x1ea0] sm:$0xff]  ;;  %7792 = vmatpush2.bf16.msra.mxu1 %v13969_v42  ;;  %v36_v56 = vld [vmem:[%s22019_s0 + $0x70] sm:$0xff]  ;;  %v16139_v42 = vshrl.u32 %v1176_v12, 7  ;;  %v211_v12 = vld [vmem:[%s22020_s1 + $0x1e8] sm:$0xff] }
 0x117   :  { %v138_v4 = vld [vmem:[%s22019_s0 + $0x3a0] sm:$0xff]  ;;  %v13962_v2 = vcombine.high %v1126_v20, %v1130_v53  ;;  %7680 = vmatprep.subr.bf16.mxu0 %v13834_v15  ;;  %v13961_v6 = vcombine.low %v1126_v20, %v1130_v53  ;;  %v29_v20 = vld [vmem:[%s22019_s0 + $0x38] sm:$0xff]  ;;  %v16155_v19 = vcombine.high %v28_v38, %v36_v56 }
 0x118   :  { %v146_v23 = vld [vmem:[%s22019_s0 + $0x3e0] sm:$0xff]  ;;  %v37_v53 = vld [vmem:[%s22019_s0 + $0x78] sm:$0xff]  ;;  %22421 = vst [vmem:[#allocation96_spill] sm:$0xff] %v16139_v42  ;;  %7681 = vmatpush2.bf16.msra.mxu0 %v13833_v62  ;;  %v16171_v62 = vld [vmem:[%s22020_s1 + $0x188] sm:$0xff] }
 0x119   :  { %v990_v50 = vld [vmem:[%s22020_s1 + $0x1a40] sm:$0xff]  ;;  %v16105_v33 = vcombine.high %v138_v4, %v146_v23  ;;  %7793 = vmatprep.subr.bf16.mxu1 %v13962_v2  ;;  %v16142_v39 = vcombine.low %v138_v4, %v146_v23  ;;  %v335_v4 = vld [vmem:[%s22020_s1 + $0x5c8] sm:$0xff]  ;;  %22424 = vst [vmem:[#allocation99_spill] sm:$0xff] %v16155_v19  ;;  %v16162_v55 = vcombine.high %v29_v20, %v37_v53 }
 0x11a   :  { %v994_v36 = vld [vmem:[%s22020_s1 + $0x1a60] sm:$0xff]  ;;  %7794 = vmatpush2.bf16.msra.mxu1 %v13961_v6  ;;  %v16176_v6 = vld [vmem:[%s22020_s1 + $0x1a8] sm:$0xff] }
 0x11b   :  { %v1118_v37 = vld [vmem:[%s22020_s1 + $0x1e40] sm:$0xff]  ;;  %22419 = vst [vmem:[#allocation94_spill] sm:$0xff] %v16105_v33  ;;  %v13826_v61 = vcombine.high %v990_v50, %v994_v36  ;;  %7530 = vmatprep.mubr.bf16.mxu0 %v16105_v33  ;;  %22422 = vst [vmem:[#allocation97_spill] sm:$0xff] %v16142_v39  ;;  %v13825_v2 = vcombine.low %v990_v50, %v994_v36  ;;  %v339_v50 = vld [vmem:[%s22020_s1 + $0x5e8] sm:$0xff]  ;;  %7644 = vmatmul.mubr.bf16.gmra.mxu1 %v16144_v40 }
 0x11c   :  { %v1122_v0 = vld [vmem:[%s22020_s1 + $0x1e60] sm:$0xff]  ;;  %7531 = vmatmul.mubr.bf16.gmra.mxu0 %v16142_v39  ;;  %22425 = vst [vmem:[#allocation100_spill] sm:$0xff] %v16162_v55  ;;  %v16181_v36 = vld [vmem:[%s22020_s1 + $0x588] sm:$0xff]  ;;  %7799 = vmatprep.mubr.bf16.mxu1 %v16162_v55  ;;  %v16202_v40 = vcombine.low %v29_v20, %v37_v53  ;;  %v22428_v39 = vsub.s32 0, %v16139_v42 }
 0x11d   :  { %v982_v16 = vld [vmem:[%s22020_s1 + $0x1a00] sm:$0xff]  ;;  %v13954_v15 = vcombine.high %v1118_v37, %v1122_v0  ;;  %7682 = vmatprep.subr.bf16.mxu0 %v13826_v61  ;;  %v13953_v33 = vcombine.low %v1118_v37, %v1122_v0  ;;  %7686 = vmatprep.mubr.bf16.mxu0 %v16155_v19 }
 0x11e   :  { %v986_v24 = vld [vmem:[%s22020_s1 + $0x1a20] sm:$0xff]  ;;  %7683 = vmatpush2.bf16.msra.mxu0 %v13825_v2  ;;  %v16199_v2 = vcombine.low %v28_v38, %v36_v56  ;;  %22427 = vst [vmem:[#allocation102_spill] sm:$0xff] %v16202_v40 }
 0x11f   :  { %v1110_v51 = vld [vmem:[%s22020_s1 + $0x1e00] sm:$0xff]  ;;  %v13818_v13 = vcombine.high %v982_v16, %v986_v24  ;;  %7795 = vmatprep.subr.bf16.mxu1 %v13954_v15  ;;  %v13817_v0 = vcombine.low %v982_v16, %v986_v24  ;;  %v13044_v15 = vcombine.high %v207_v59, %v211_v12  ;;  %v16186_v16 = vld [vmem:[%s22020_s1 + $0x5a8] sm:$0xff]  ;;  %v44_v24 = vld [vmem:[%s22019_s0 + $0xb0] sm:$0xff] }
 0x120   :  { %v1114_v32 = vld [vmem:[%s22020_s1 + $0x1e20] sm:$0xff]  ;;  %7796 = vmatpush2.bf16.msra.mxu1 %v13953_v33  ;;  %v13172_v33 = vcombine.high %v335_v4, %v339_v50  ;;  %22426 = vst [vmem:[#allocation101_spill] sm:$0xff] %v16199_v2 }
 0x121   :  { %v13946_v23 = vcombine.high %v1110_v51, %v1114_v32  ;;  %v1174_v37 = vld [vmem:[%s22021_s2] sm:$0xff]  ;;  %7684 = vmatprep.subr.bf16.mxu0 %v13818_v13  ;;  %v13945_v61 = vcombine.low %v1110_v51, %v1114_v32  ;;  %v52_v13 = vld [vmem:[%s22019_s0 + $0xf0] sm:$0xff]  ;;  %v45_v32 = vld [vmem:[%s22019_s0 + $0xb8] sm:$0xff] }
 0x122   :  { %7685 = vmatpush2.bf16.msra.mxu0 %v13817_v0  ;;  %v16206_v54 = vrot.slane %v1174_v37, %v22428_v39  ;;  %v53_v51 = vld [vmem:[%s22019_s0 + $0xf8] sm:$0xff] }
 0x123   :  { %7797 = vmatprep.subr.bf16.mxu1 %v13946_v23  ;;  %v13043_v23 = vcombine.low %v207_v59, %v211_v12 }
 0x124   :  { %10 = vsyncpa [#allocation3], 0  ;;  %7798 = vmatpush2.bf16.msra.mxu1 %v13945_v61  ;;  %7880 = vmatprep.subr.bf16.mxu0 %v13044_v15  ;;  %v13171_v19 = vcombine.low %v335_v4, %v339_v50  ;;  %v13036_v38 = vcombine.high %v16171_v62, %v16176_v6  ;;  %v22429_v56 = vsub.s32 1, %v16139_v42  ;;  %v13164_v39 = vcombine.high %v16181_v36, %v16186_v16  ;;  %v191_v53 = vld [vmem:[%s22020_s1 + $0x148] sm:$0xff]  ;;  %v7010_v4 = vpop.f32.mrf.mxu0  ;;  %v7123_v15 = vpop.f32.mrf.mxu1 }
 0x125   :  { %7993 = vmatprep.subr.bf16.mxu1 %v13172_v33  ;;  %v16219_v59 = vcombine.high %v44_v24, %v52_v13  ;;  %v195_v12 = vld [vmem:[%s22020_s1 + $0x168] sm:$0xff]  ;;  %7687 = vmatmul.mubr.bf16.vlgmr.msra.gmra.mxu0 %v16199_v2  ;;  %v16228_v50 = vcombine.high %v45_v32, %v53_v51  ;;  %v7011_v61 = vadd.f32 %v7010_v4, %v16206_v54 }
 0x126   :  { %v16215_v20 = vrot.slane %v1174_v37, %v22429_v56  ;;  %v319_v37 = vld [vmem:[%s22020_s1 + $0x548] sm:$0xff]  ;;  %7881 = vmatpush1.bf16.msra.mxu0 %v13043_v23  ;;  %v13035_v33 = vcombine.low %v16171_v62, %v16176_v6  ;;  %v7012_v56 = vpop.f32.mrf.mxu0  ;;  %v13163_v2 = vcombine.low %v16181_v36, %v16186_v16  ;;  %v13028_v55 = vcombine.high %v191_v53, %v195_v12  ;;  %v7125_v8 = vpop.f32.mrf.mxu1 }
 0x127   :  { %22430 = vst [vmem:[#allocation103_spill] sm:$0xff] %v16219_v59  ;;  %22431 = vst [vmem:[#allocation104_spill] sm:$0xff] %v16228_v50  ;;  %v323_v0 = vld [vmem:[%s22020_s1 + $0x568] sm:$0xff]  ;;  %7800 = vmatmul.mubr.bf16.vlgmr.msra.gmra.mxu1 %v16202_v40  ;;  %7882 = vmatprep.subr.bf16.mxu0 %v13036_v38  ;;  %v16242_v42 = vadd.f32 %v7123_v15, %v7011_v61  ;;  %v16262_v16 = vcombine.low %v44_v24, %v52_v13  ;;  %v60_v38 = vld [vmem:[%s22019_s0 + $0x130] sm:$0xff] }
 0x128   :  { %7994 = vmatpush1.bf16.msra.mxu1 %v13171_v19  ;;  %v7013_v28 = vadd.f32 %v7012_v56, %v16215_v20  ;;  %7696 = vmatprep.mubr.bf16.mxu0 %v16219_v59  ;;  %v13156_v4 = vcombine.high %v319_v37, %v323_v0  ;;  %v16249_v62 = vld [vmem:[%s22020_s1 + $0x108] sm:$0xff]  ;;  %v7014_v6 = vpop.f32.mrf.mxu0  ;;  %v7127_v56 = vpop.f32.mrf.mxu1  ;;  %v16278_v24 = vcombine.low %v45_v32, %v53_v51  ;;  %v69_v59 = vld [vmem:[%s22019_s0 + $0x178] sm:$0xff] }
 0x129   :  { %7995 = vmatprep.subr.bf16.mxu1 %v13164_v39  ;;  %v16254_v19 = vld [vmem:[%s22020_s1 + $0x128] sm:$0xff]  ;;  %7809 = vmatprep.mubr.bf16.mxu1 %v16228_v50  ;;  %22432 = vst [vmem:[#allocation105_spill] sm:$0xff] %v16262_v16  ;;  %v68_v39 = vld [vmem:[%s22019_s0 + $0x170] sm:$0xff]  ;;  %v7015_v15 = vadd.f32 %v7014_v6, %v16206_v54  ;;  %v13027_v13 = vcombine.low %v191_v53, %v195_v12  ;;  %v61_v50 = vld [vmem:[%s22019_s0 + $0x138] sm:$0xff] }
 0x12a   :  { %v16259_v36 = vld [vmem:[%s22020_s1 + $0x508] sm:$0xff]  ;;  %v16275_v61 = vadd.f32 %v7125_v8, %v7013_v28  ;;  %7883 = vmatpush1.bf16.msra.mxu0 %v13035_v33  ;;  %22433 = vst [vmem:[#allocation106_spill] sm:$0xff] %v16278_v24  ;;  %v7016_v40 = vpop.f32.mrf.mxu0  ;;  %v13155_v8 = vcombine.low %v319_v37, %v323_v0  ;;  %v13020_v28 = vcombine.high %v16249_v62, %v16254_v19  ;;  %v7129_v32 = vpop.f32.mrf.mxu1 }
 0x12b   :  { %v16267_v23 = vld [vmem:[%s22020_s1 + $0x528] sm:$0xff]  ;;  %7884 = vmatprep.subr.bf16.mxu0 %v13028_v55  ;;  %v16288_v6 = vadd.f32 %v7127_v56, %v7015_v15  ;;  %v7017_v51 = vadd.f32 %v7016_v40, %v16215_v20  ;;  %v16293_v12 = vcombine.high %v60_v38, %v68_v39  ;;  %v16304_v40 = vcombine.high %v61_v50, %v69_v59 }
 0x12c   :  { %7996 = vmatpush1.bf16.msra.mxu1 %v13163_v2  ;;  %v13148_v53 = vcombine.high %v16259_v36, %v16267_v23  ;;  %v16298_v2 = vld [vmem:[%s22020_s1 + $0xc8] sm:$0xff]  ;;  %v7020_v37 = vpop.f32.mrf.mxu0  ;;  %v7133_v56 = vpop.f32.mrf.mxu1  ;;  %v13147_v48 = vcombine.low %v16259_v36, %v16267_v23  ;;  %v16341_v23 = vcombine.low %v60_v38, %v68_v39  ;;  %v16357_v38 = vcombine.low %v61_v50, %v69_v59 }
 0x12d   :  { %7997 = vmatprep.subr.bf16.mxu1 %v13156_v4  ;;  %22434 = vst [vmem:[#allocation107_spill] sm:$0xff] %v16293_v12  ;;  %v179_v55 = vld [vmem:[%s22020_s1 + $0xe8] sm:$0xff]  ;;  %7697 = vmatmul.mubr.bf16.gmra.mxu0 %v16262_v16  ;;  %22435 = vst [vmem:[#allocation108_spill] sm:$0xff] %v16304_v40  ;;  %v16312_v4 = vadd.f32 %v7129_v32, %v7017_v51  ;;  %v7021_v15 = vadd.f32 %v7020_v37, %v16206_v54 }
 0x12e   :  { %v303_v0 = vld [vmem:[%s22020_s1 + $0x4c8] sm:$0xff]  ;;  %7885 = vmatpush1.bf16.msra.mxu0 %v13027_v13  ;;  %v13019_v16 = vcombine.low %v16249_v62, %v16254_v19  ;;  %v7022_v3 = vpop.f32.mrf.mxu0  ;;  %v13012_v46 = vcombine.high %v16298_v2, %v179_v55  ;;  %v7135_v32 = vpop.f32.mrf.mxu1  ;;  %7706 = vmatprep.mubr.bf16.mxu0 %v16293_v12  ;;  %22436 = vst [vmem:[#allocation109_spill] sm:$0xff] %v16341_v23  ;;  %22437 = vst [vmem:[#allocation110_spill] sm:$0xff] %v16357_v38  ;;  %v85_v12 = vld [vmem:[%s22019_s0 + $0x1f8] sm:$0xff] }
 0x12f   :  { %v307_v33 = vld [vmem:[%s22020_s1 + $0x4e8] sm:$0xff]  ;;  %7810 = vmatmul.mubr.bf16.gmra.mxu1 %v16278_v24  ;;  %7886 = vmatprep.subr.bf16.mxu0 %v13020_v28  ;;  %v16321_v27 = vadd.f32 %v7133_v56, %v7021_v15  ;;  %v7023_v51 = vadd.f32 %v7022_v3, %v16215_v20  ;;  %v76_v28 = vld [vmem:[%s22019_s0 + $0x1b0] sm:$0xff]  ;;  %v13011_v39 = vcombine.low %v16298_v2, %v179_v55 }
 0x130   :  { %7998 = vmatpush1.bf16.msra.mxu1 %v13155_v8  ;;  %v13140_v13 = vcombine.high %v303_v0, %v307_v33  ;;  %v16328_v62 = vld [vmem:[%s22020_s1 + $0x88] sm:$0xff]  ;;  %v7024_v3 = vpop.f32.mrf.mxu0  ;;  %7819 = vmatprep.mubr.bf16.mxu1 %v16304_v40  ;;  %v7137_v56 = vpop.f32.mrf.mxu1  ;;  %v77_v40 = vld [vmem:[%s22019_s0 + $0x1b8] sm:$0xff] }
 0x131   :  { %7999 = vmatprep.subr.bf16.mxu1 %v13148_v53  ;;  %v16333_v19 = vld [vmem:[%s22020_s1 + $0xa8] sm:$0xff]  ;;  %v84_v53 = vld [vmem:[%s22019_s0 + $0x1f0] sm:$0xff]  ;;  %v16354_v37 = vadd.f32 %v7135_v32, %v7023_v51  ;;  %v7025_v15 = vadd.f32 %v7024_v3, %v16206_v54  ;;  %v13139_v51 = vcombine.low %v303_v0, %v307_v33 }
 0x132   :  { %v16338_v36 = vld [vmem:[%s22020_s1 + $0x488] sm:$0xff]  ;;  %7887 = vmatpush1.bf16.msra.mxu0 %v13019_v16  ;;  %v7026_v24 = vpop.f32.mrf.mxu0  ;;  %v13004_v32 = vcombine.high %v16328_v62, %v16333_v19  ;;  %v7139_v50 = vpop.f32.mrf.mxu1  ;;  %v16373_v55 = vcombine.high %v76_v28, %v84_v53 }
 0x133   :  { %v16346_v8 = vld [vmem:[%s22020_s1 + $0x4a8] sm:$0xff]  ;;  %7888 = vmatprep.subr.bf16.mxu0 %v13012_v46  ;;  %v16368_v16 = vadd.f32 %v7137_v56, %v7025_v15  ;;  %v7027_v59 = vadd.f32 %v7026_v24, %v16215_v20  ;;  %v16384_v24 = vcombine.high %v77_v40, %v85_v12 }
 0x134   :  { %8000 = vmatpush1.bf16.msra.mxu1 %v13147_v48  ;;  %v13132_v2 = vcombine.high %v16338_v36, %v16346_v8  ;;  %22438 = vst [vmem:[#allocation111_spill] sm:$0xff] %v16373_v55  ;;  %v16378_v48 = vld [vmem:[%s22020_s1 + $0x48] sm:$0xff]  ;;  %v7030_v0 = vpop.f32.mrf.mxu0  ;;  %v7143_v56 = vpop.f32.mrf.mxu1  ;;  %v13131_v10 = vcombine.low %v16338_v36, %v16346_v8  ;;  %v16421_v8 = vcombine.low %v76_v28, %v84_v53 }
 0x135   :  { %8001 = vmatprep.subr.bf16.mxu1 %v13140_v13  ;;  %v163_v46 = vld [vmem:[%s22020_s1 + $0x68] sm:$0xff]  ;;  %7707 = vmatmul.mubr.bf16.gmra.mxu0 %v16341_v23  ;;  %22439 = vst [vmem:[#allocation112_spill] sm:$0xff] %v16384_v24  ;;  %v16392_v3 = vadd.f32 %v7139_v50, %v7027_v59  ;;  %v7031_v15 = vadd.f32 %v7030_v0, %v16206_v54 }
 0x136   :  { %v287_v33 = vld [vmem:[%s22020_s1 + $0x448] sm:$0xff]  ;;  %7889 = vmatpush1.bf16.msra.mxu0 %v13011_v39  ;;  %v13003_v23 = vcombine.low %v16328_v62, %v16333_v19  ;;  %v7032_v26 = vpop.f32.mrf.mxu0  ;;  %v12996_v9 = vcombine.high %v16378_v48, %v163_v46  ;;  %v7145_v50 = vpop.f32.mrf.mxu1  ;;  %7716 = vmatprep.mubr.bf16.mxu0 %v16373_v55  ;;  %22440 = vst [vmem:[#allocation113_spill] sm:$0xff] %v16421_v8  ;;  %v101_v55 = vld [vmem:[%s22019_s0 + $0x278] sm:$0xff] }
 0x137   :  { %v291_v13 = vld [vmem:[%s22020_s1 + $0x468] sm:$0xff]  ;;  %7820 = vmatmul.mubr.bf16.gmra.mxu1 %v16357_v38  ;;  %7890 = vmatprep.subr.bf16.mxu0 %v13004_v32  ;;  %v16401_v49 = vadd.f32 %v7143_v56, %v7031_v15  ;;  %v7033_v59 = vadd.f32 %v7032_v26, %v16215_v20  ;;  %v92_v32 = vld [vmem:[%s22019_s0 + $0x230] sm:$0xff]  ;;  %v16437_v28 = vcombine.low %v77_v40, %v85_v12 }
 0x138   :  { %8002 = vmatpush1.bf16.msra.mxu1 %v13139_v51  ;;  %v13124_v39 = vcombine.high %v287_v33, %v291_v13  ;;  %v16408_v62 = vld [vmem:[%s22020_s1 + $0x8] sm:$0xff]  ;;  %v7034_v26 = vpop.f32.mrf.mxu0  ;;  %7829 = vmatprep.mubr.bf16.mxu1 %v16384_v24  ;;  %v7147_v56 = vpop.f32.mrf.mxu1  ;;  %v12995_v53 = vcombine.low %v16378_v48, %v163_v46  ;;  %v93_v24 = vld [vmem:[%s22019_s0 + $0x238] sm:$0xff] }
 0x139   :  { %8003 = vmatprep.subr.bf16.mxu1 %v13132_v2  ;;  %v16413_v19 = vld [vmem:[%s22020_s1 + $0x28] sm:$0xff]  ;;  %v100_v2 = vld [vmem:[%s22019_s0 + $0x270] sm:$0xff]  ;;  %v16434_v0 = vadd.f32 %v7145_v50, %v7033_v59  ;;  %v7035_v15 = vadd.f32 %v7034_v26, %v16206_v54  ;;  %22441 = vst [vmem:[#allocation114_spill] sm:$0xff] %v16437_v28  ;;  %v13123_v59 = vcombine.low %v287_v33, %v291_v13 }
 0x13a   :  { %v16418_v36 = vld [vmem:[%s22020_s1 + $0x408] sm:$0xff]  ;;  %7891 = vmatpush1.bf16.msra.mxu0 %v13003_v23  ;;  %v7036_v38 = vpop.f32.mrf.mxu0  ;;  %v12988_v50 = vcombine.high %v16408_v62, %v16413_v19  ;;  %v7149_v40 = vpop.f32.mrf.mxu1  ;;  %v16453_v46 = vcombine.high %v92_v32, %v100_v2 }
 0x13b   :  { %v16426_v51 = vld [vmem:[%s22020_s1 + $0x428] sm:$0xff]  ;;  %7892 = vmatprep.subr.bf16.mxu0 %v12996_v9  ;;  %v16448_v23 = vadd.f32 %v7147_v56, %v7035_v15  ;;  %v7037_v12 = vadd.f32 %v7036_v38, %v16215_v20  ;;  %v16464_v38 = vcombine.high %v93_v24, %v101_v55 }
 0x13c   :  { %8004 = vmatpush1.bf16.msra.mxu1 %v13131_v10  ;;  %v13116_v48 = vcombine.high %v16418_v36, %v16426_v51  ;;  %22442 = vst [vmem:[#allocation115_spill] sm:$0xff] %v16453_v46  ;;  %v16458_v10 = vld [vmem:[%s22020_s1 + $0x3c8] sm:$0xff]  ;;  %v7040_v33 = vpop.f32.mrf.mxu0  ;;  %v7153_v56 = vpop.f32.mrf.mxu1  ;;  %v13115_v34 = vcombine.low %v16418_v36, %v16426_v51  ;;  %v16501_v51 = vcombine.low %v92_v32, %v100_v2 }
 0x13d   :  { %8005 = vmatprep.subr.bf16.mxu1 %v13124_v39  ;;  %v275_v9 = vld [vmem:[%s22020_s1 + $0x3e8] sm:$0xff]  ;;  %7717 = vmatmul.mubr.bf16.gmra.mxu0 %v16421_v8  ;;  %22443 = vst [vmem:[#allocation116_spill] sm:$0xff] %v16464_v38  ;;  %v16472_v26 = vadd.f32 %v7149_v40, %v7037_v12  ;;  %v7041_v15 = vadd.f32 %v7040_v33, %v16206_v54 }
 0x13e   :  { %v399_v13 = vld [vmem:[%s22020_s1 + $0x7c8] sm:$0xff]  ;;  %7893 = vmatpush1.bf16.msra.mxu0 %v12995_v53  ;;  %v12987_v8 = vcombine.low %v16408_v62, %v16413_v19  ;;  %v7042_v44 = vpop.f32.mrf.mxu0  ;;  %v13108_v29 = vcombine.high %v16458_v10, %v275_v9  ;;  %v7155_v40 = vpop.f32.mrf.mxu1  ;;  %7726 = vmatprep.mubr.bf16.mxu0 %v16453_v46  ;;  %22444 = vst [vmem:[#allocation117_spill] sm:$0xff] %v16501_v51  ;;  %v117_v46 = vld [vmem:[%s22019_s0 + $0x2f8] sm:$0xff] }
 0x13f   :  { %v403_v39 = vld [vmem:[%s22020_s1 + $0x7e8] sm:$0xff]  ;;  %7830 = vmatmul.mubr.bf16.gmra.mxu1 %v16437_v28  ;;  %7894 = vmatprep.subr.bf16.mxu0 %v12988_v50  ;;  %v16481_v17 = vadd.f32 %v7153_v56, %v7041_v15  ;;  %v7043_v12 = vadd.f32 %v7042_v44, %v16215_v20  ;;  %v108_v50 = vld [vmem:[%s22019_s0 + $0x2b0] sm:$0xff]  ;;  %v16517_v32 = vcombine.low %v93_v24, %v101_v55 }
 0x140   :  { %8006 = vmatpush1.bf16.msra.mxu1 %v13123_v59  ;;  %v13236_v53 = vcombine.high %v399_v13, %v403_v39  ;;  %v16488_v62 = vld [vmem:[%s22020_s1 + $0x388] sm:$0xff]  ;;  %v7044_v44 = vpop.f32.mrf.mxu0  ;;  %7839 = vmatprep.mubr.bf16.mxu1 %v16464_v38  ;;  %v7157_v56 = vpop.f32.mrf.mxu1  ;;  %v13107_v2 = vcombine.low %v16458_v10, %v275_v9  ;;  %v109_v38 = vld [vmem:[%s22019_s0 + $0x2b8] sm:$0xff] }
 0x141   :  { %8007 = vmatprep.subr.bf16.mxu1 %v13116_v48  ;;  %v16493_v19 = vld [vmem:[%s22020_s1 + $0x3a8] sm:$0xff]  ;;  %v116_v48 = vld [vmem:[%s22019_s0 + $0x2f0] sm:$0xff]  ;;  %v16514_v33 = vadd.f32 %v7155_v40, %v7043_v12  ;;  %v7045_v15 = vadd.f32 %v7044_v44, %v16206_v54  ;;  %22445 = vst [vmem:[#allocation118_spill] sm:$0xff] %v16517_v32  ;;  %v13235_v12 = vcombine.low %v399_v13, %v403_v39 }
 0x142   :  { %v16498_v36 = vld [vmem:[%s22020_s1 + $0x788] sm:$0xff]  ;;  %7895 = vmatpush1.bf16.msra.mxu0 %v12987_v8  ;;  %v7046_v28 = vpop.f32.mrf.mxu0  ;;  %v13100_v40 = vcombine.high %v16488_v62, %v16493_v19  ;;  %v7159_v24 = vpop.f32.mrf.mxu1  ;;  %v16533_v9 = vcombine.high %v108_v50, %v116_v48 }
 0x143   :  { %v16506_v59 = vld [vmem:[%s22020_s1 + $0x7a8] sm:$0xff]  ;;  %7896 = vmatprep.subr.bf16.mxu0 %v13108_v29  ;;  %v16528_v8 = vadd.f32 %v7157_v56, %v7045_v15  ;;  %v7047_v55 = vadd.f32 %v7046_v28, %v16215_v20  ;;  %v16544_v28 = vcombine.high %v109_v38, %v117_v46 }
 0x144   :  { %8008 = vmatpush1.bf16.msra.mxu1 %v13115_v34  ;;  %v13228_v10 = vcombine.high %v16498_v36, %v16506_v59  ;;  %22447 = vst [vmem:[#allocation120_spill] sm:$0xff] %v16533_v9  ;;  %v16538_v34 = vld [vmem:[%s22020_s1 + $0x348] sm:$0xff]  ;;  %v7050_v13 = vpop.f32.mrf.mxu0  ;;  %v7163_v56 = vpop.f32.mrf.mxu1  ;;  %v13227_v5 = vcombine.low %v16498_v36, %v16506_v59  ;;  %v16581_v59 = vcombine.low %v108_v50, %v116_v48 }
 0x145   :  { %22446 = vst [vmem:[#allocation119_spill] sm:$0xff] %v16528_v8  ;;  %8009 = vmatprep.subr.bf16.mxu1 %v13236_v53  ;;  %v259_v29 = vld [vmem:[%s22020_s1 + $0x368] sm:$0xff]  ;;  %7727 = vmatmul.mubr.bf16.gmra.mxu0 %v16501_v51  ;;  %22448 = vst [vmem:[#allocation121_spill] sm:$0xff] %v16544_v28  ;;  %v16552_v44 = vadd.f32 %v7159_v24, %v7047_v55  ;;  %v7051_v15 = vadd.f32 %v7050_v13, %v16206_v54 }
 0x146   :  { %v383_v39 = vld [vmem:[%s22020_s1 + $0x748] sm:$0xff]  ;;  %7897 = vmatpush2.bf16.msra.mxu0 %v13107_v2  ;;  %v13099_v51 = vcombine.low %v16488_v62, %v16493_v19  ;;  %v7052_v14 = vpop.f32.mrf.mxu0  ;;  %v13092_v1 = vcombine.high %v16538_v34, %v259_v29  ;;  %v7165_v24 = vpop.f32.mrf.mxu1  ;;  %7736 = vmatprep.mubr.bf16.mxu0 %v16533_v9  ;;  %22451 = vst [vmem:[#allocation124_spill] sm:$0xff] %v16581_v59  ;;  %v133_v9 = vld [vmem:[%s22019_s0 + $0x378] sm:$0xff] }
 0x147   :  { %v387_v53 = vld [vmem:[%s22020_s1 + $0x768] sm:$0xff]  ;;  %22449 = vst [vmem:[#allocation122_spill] sm:$0xff] %v16552_v44  ;;  %7840 = vmatmul.mubr.bf16.gmra.mxu1 %v16517_v32  ;;  %7898 = vmatprep.subr.bf16.mxu0 %v13100_v40  ;;  %v16561_v8 = vadd.f32 %v7163_v56, %v7051_v15  ;;  %v7053_v55 = vadd.f32 %v7052_v14, %v16215_v20  ;;  %v124_v40 = vld [vmem:[%s22019_s0 + $0x330] sm:$0xff] }
 0x148   :  { %8010 = vmatpush2.bf16.msra.mxu1 %v13235_v12  ;;  %v13220_v2 = vcombine.high %v383_v39, %v387_v53  ;;  %v16568_v62 = vld [vmem:[%s22020_s1 + $0x308] sm:$0xff]  ;;  %v7054_v14 = vpop.f32.mrf.mxu0  ;;  %7849 = vmatprep.mubr.bf16.mxu1 %v16544_v28  ;;  %v7167_v56 = vpop.f32.mrf.mxu1  ;;  %v16597_v50 = vcombine.low %v109_v38, %v117_v46  ;;  %v13091_v48 = vcombine.low %v16538_v34, %v259_v29  ;;  %v125_v28 = vld [vmem:[%s22019_s0 + $0x338] sm:$0xff] }
 0x149   :  { %22450 = vst [vmem:[#allocation123_spill] sm:$0xff] %v16561_v8  ;;  %8011 = vmatprep.subr.bf16.mxu1 %v13228_v10  ;;  %v16573_v19 = vld [vmem:[%s22020_s1 + $0x328] sm:$0xff]  ;;  %v132_v10 = vld [vmem:[%s22019_s0 + $0x370] sm:$0xff]  ;;  %v16594_v13 = vadd.f32 %v7165_v24, %v7053_v55  ;;  %v7055_v15 = vadd.f32 %v7054_v14, %v16206_v54  ;;  %v13219_v55 = vcombine.low %v383_v39, %v387_v53 }
 0x14a   :  { %v16578_v36 = vld [vmem:[%s22020_s1 + $0x708] sm:$0xff]  ;;  %7899 = vmatpush2.bf16.msra.mxu0 %v13099_v51  ;;  %22453 = vst [vmem:[#allocation126_spill] sm:$0xff] %v16597_v50  ;;  %v7056_v32 = vpop.f32.mrf.mxu0  ;;  %v13084_v24 = vcombine.high %v16568_v62, %v16573_v19  ;;  %v7169_v38 = vpop.f32.mrf.mxu1  ;;  %v16613_v29 = vcombine.high %v124_v40, %v132_v10 }
 0x14b   :  { %v16586_v12 = vld [vmem:[%s22020_s1 + $0x728] sm:$0xff]  ;;  %22452 = vst [vmem:[#allocation125_spill] sm:$0xff] %v16594_v13  ;;  %7900 = vmatprep.subr.bf16.mxu0 %v13092_v1  ;;  %v16608_v51 = vadd.f32 %v7167_v56, %v7055_v15  ;;  %v7057_v46 = vadd.f32 %v7056_v32, %v16215_v20  ;;  %v16624_v32 = vcombine.high %v125_v28, %v133_v9 }
 0x14c   :  { %8012 = vmatpush2.bf16.msra.mxu1 %v13227_v5  ;;  %v13212_v34 = vcombine.high %v16578_v36, %v16586_v12  ;;  %22455 = vst [vmem:[#allocation128_spill] sm:$0xff] %v16613_v29  ;;  %v16618_v5 = vld [vmem:[%s22020_s1 + $0x2c8] sm:$0xff]  ;;  %v7060_v39 = vpop.f32.mrf.mxu0  ;;  %v7173_v56 = vpop.f32.mrf.mxu1  ;;  %v13211_v13 = vcombine.low %v16578_v36, %v16586_v12 }
 0x14d   :  { %22454 = vst [vmem:[#allocation127_spill] sm:$0xff] %v16608_v51  ;;  %8013 = vmatprep.subr.bf16.mxu1 %v13220_v2  ;;  %v243_v1 = vld [vmem:[%s22020_s1 + $0x2e8] sm:$0xff]  ;;  %7737 = vmatmul.mubr.bf16.gmra.mxu0 %v16581_v59  ;;  %22456 = vst [vmem:[#allocation129_spill] sm:$0xff] %v16624_v32  ;;  %v16632_v14 = vadd.f32 %v7169_v38, %v7057_v46  ;;  %v7061_v15 = vadd.f32 %v7060_v39, %v16206_v54 }
 0x14e   :  { %v367_v53 = vld [vmem:[%s22020_s1 + $0x6c8] sm:$0xff]  ;;  %7901 = vmatpush2.bf16.msra.mxu0 %v13091_v48  ;;  %v13083_v59 = vcombine.low %v16568_v62, %v16573_v19  ;;  %v7062_v51 = vpop.f32.mrf.mxu0  ;;  %v13076_v8 = vcombine.high %v16618_v5, %v243_v1  ;;  %v7175_v38 = vpop.f32.mrf.mxu1  ;;  %7746 = vmatprep.mubr.bf16.mxu0 %v16613_v29  ;;  %v149_v29 = vld [vmem:[%s22019_s0 + $0x3f8] sm:$0xff] }
 0x14f   :  { %v371_v2 = vld [vmem:[%s22020_s1 + $0x6e8] sm:$0xff]  ;;  %22457 = vst [vmem:[#allocation130_spill] sm:$0xff] %v16632_v14  ;;  %7850 = vmatmul.mubr.bf16.gmra.mxu1 %v16597_v50  ;;  %7902 = vmatprep.subr.bf16.mxu0 %v13084_v24  ;;  %v16641_v44 = vadd.f32 %v7173_v56, %v7061_v15  ;;  %v7063_v46 = vadd.f32 %v7062_v51, %v16215_v20  ;;  %v140_v51 = vld [vmem:[%s22019_s0 + $0x3b0] sm:$0xff] }
 0x150   :  { %8014 = vmatpush2.bf16.msra.mxu1 %v13219_v55  ;;  %v13204_v48 = vcombine.high %v367_v53, %v371_v2  ;;  %v231_v62 = vld [vmem:[%s22020_s1 + $0x288] sm:$0xff]  ;;  %v7064_v12 = vpop.f32.mrf.mxu0  ;;  %7859 = vmatprep.mubr.bf16.mxu1 %v16624_v32  ;;  %v16657_v55 = vcombine.low %v124_v40, %v132_v10  ;;  %v7177_v56 = vpop.f32.mrf.mxu1  ;;  %v16671_v40 = vcombine.low %v125_v28, %v133_v9  ;;  %v141_v32 = vld [vmem:[%s22019_s0 + $0x3b8] sm:$0xff] }
 0x151   :  { %22458 = vst [vmem:[#allocation131_spill] sm:$0xff] %v16641_v44  ;;  %8015 = vmatprep.subr.bf16.mxu1 %v13212_v34  ;;  %v235_v19 = vld [vmem:[%s22020_s1 + $0x2a8] sm:$0xff]  ;;  %v148_v34 = vld [vmem:[%s22019_s0 + $0x3f0] sm:$0xff]  ;;  %v16668_v39 = vadd.f32 %v7175_v38, %v7063_v46  ;;  %v7065_v15 = vadd.f32 %v7064_v12, %v16206_v54  ;;  %v13075_v10 = vcombine.low %v16618_v5, %v243_v1 }
 0x152   :  { %v16654_v36 = vld [vmem:[%s22020_s1 + $0x688] sm:$0xff]  ;;  %22459 = vst [vmem:[#allocation132_spill] sm:$0xff] %v16657_v55  ;;  %7903 = vmatpush2.bf16.msra.mxu0 %v13083_v59  ;;  %22461 = vst [vmem:[#allocation134_spill] sm:$0xff] %v16671_v40  ;;  %v7066_v50 = vpop.f32.mrf.mxu0  ;;  %v13203_v46 = vcombine.low %v367_v53, %v371_v2  ;;  %v13068_v38 = vcombine.high %v231_v62, %v235_v19  ;;  %v7179_v28 = vpop.f32.mrf.mxu1  ;;  %v16684_v5 = vcombine.high %v140_v51, %v148_v34 }
 0x153   :  { %v363_v24 = vld [vmem:[%s22020_s1 + $0x6a8] sm:$0xff]  ;;  %22460 = vst [vmem:[#allocation133_spill] sm:$0xff] %v16668_v39  ;;  %7904 = vmatprep.subr.bf16.mxu0 %v13076_v8  ;;  %v16680_v12 = vadd.f32 %v7177_v56, %v7065_v15  ;;  %v7067_v9 = vadd.f32 %v7066_v50, %v16215_v20  ;;  %v16693_v53 = vcombine.high %v141_v32, %v149_v29 }
 0x154   :  { %8016 = vmatpush2.bf16.msra.mxu1 %v13211_v13  ;;  %v13196_v59 = vcombine.high %v16654_v36, %v363_v24  ;;  %22463 = vst [vmem:[#allocation136_spill] sm:$0xff] %v16684_v5  ;;  %v223_v1 = vld [vmem:[%s22020_s1 + $0x248] sm:$0xff]  ;;  %v7070_v13 = vpop.f32.mrf.mxu0  ;;  %v7183_v56 = vpop.f32.mrf.mxu1  ;;  %v13195_v39 = vcombine.low %v16654_v36, %v363_v24  ;;  %v16717_v36 = vcombine.low %v140_v51, %v148_v34 }
 0x155   :  { %22462 = vst [vmem:[#allocation135_spill] sm:$0xff] %v16680_v12  ;;  %8017 = vmatprep.subr.bf16.mxu1 %v13204_v48  ;;  %v227_v8 = vld [vmem:[%s22020_s1 + $0x268] sm:$0xff]  ;;  %7747 = vmatmul.mubr.bf16.gmra.mxu0 %v16657_v55  ;;  %22464 = vst [vmem:[#allocation137_spill] sm:$0xff] %v16693_v53  ;;  %v16701_v48 = vadd.f32 %v7179_v28, %v7067_v9  ;;  %v7071_v15 = vadd.f32 %v7070_v13, %v16206_v54 }
 0x156   :  { %v351_v50 = vld [vmem:[%s22020_s1 + $0x648] sm:$0xff]  ;;  %7905 = vmatpush2.bf16.msra.mxu0 %v13075_v10  ;;  %v13067_v12 = vcombine.low %v231_v62, %v235_v19  ;;  %v7072_v55 = vpop.f32.mrf.mxu0  ;;  %v13060_v44 = vcombine.high %v223_v1, %v227_v8  ;;  %v7185_v43 = vpop.f32.mrf.mxu1  ;;  %7756 = vmatprep.mubr.bf16.mxu0 %v16684_v5  ;;  %22465 = vst [vmem:[#allocation138_spill] sm:$0xff] %v16717_v36 }
 0x157   :  { %v355_v2 = vld [vmem:[%s22020_s1 + $0x668] sm:$0xff]  ;;  %7860 = vmatmul.mubr.bf16.gmra.mxu1 %v16671_v40  ;;  %7906 = vmatprep.subr.bf16.mxu0 %v13068_v38  ;;  %v16706_v14 = vadd.f32 %v7183_v56, %v7071_v15  ;;  %v7073_v47 = vadd.f32 %v7072_v55, %v16215_v20  ;;  %v13059_v13 = vcombine.low %v223_v1, %v227_v8 }
 0x158   :  { %8018 = vmatpush2.bf16.msra.mxu1 %v13203_v46  ;;  %v13188_v9 = vcombine.high %v351_v50, %v355_v2  ;;  %v215_v10 = vld [vmem:[%s22020_s1 + $0x208] sm:$0xff]  ;;  %v7074_v19 = vpop.f32.mrf.mxu0  ;;  %7869 = vmatprep.mubr.bf16.mxu1 %v16693_v53  ;;  %v7187_v28 = vpop.f32.mrf.mxu1  ;;  %v13187_v34 = vcombine.low %v351_v50, %v355_v2 }
 0x159   :  { %8019 = vmatprep.subr.bf16.mxu1 %v13196_v59  ;;  %v219_v62 = vld [vmem:[%s22020_s1 + $0x228] sm:$0xff]  ;;  %v16725_v46 = vadd.f32 %v7185_v43, %v7073_v47  ;;  %v7075_v38 = vadd.f32 %v7074_v19, %v16206_v54  ;;  %v16728_v59 = vcombine.low %v141_v32, %v149_v29 }
 0x15a   :  { %v343_v55 = vld [vmem:[%s22020_s1 + $0x608] sm:$0xff]  ;;  %7907 = vmatpush2.bf16.msra.mxu0 %v13067_v12  ;;  %v7076_v51 = vpop.f32.mrf.mxu0  ;;  %v13052_v15 = vcombine.high %v215_v10, %v219_v62  ;;  %v7189_v5 = vpop.f32.mrf.mxu1  ;;  %v13051_v50 = vcombine.low %v215_v10, %v219_v62 }
 0x15b   :  { %v347_v24 = vld [vmem:[%s22020_s1 + $0x628] sm:$0xff]  ;;  %22466 = vst [vmem:[#allocation139_spill] sm:$0xff] %v16728_v59  ;;  %7908 = vmatprep.subr.bf16.mxu0 %v13060_v44  ;;  %v16730_v56 = vadd.f32 %v7187_v28, %v7075_v38  ;;  %v7077_v53 = vadd.f32 %v7076_v51, %v16215_v20 }
 0x15c   :  { %8020 = vmatpush2.bf16.msra.mxu1 %v13195_v39  ;;  %v13180_v43 = vcombine.high %v343_v55, %v347_v24  ;;  %v463_v47 = vld [vmem:[%s22020_s1 + $0x9c8] sm:$0xff]  ;;  %v7080_v32 = vpop.f32.mrf.mxu0  ;;  %v7193_v8 = vpop.f32.mrf.mxu1 }
 0x15d   :  { %8021 = vmatprep.subr.bf16.mxu1 %v13188_v9  ;;  %v467_v29 = vld [vmem:[%s22020_s1 + $0x9e8] sm:$0xff]  ;;  %7757 = vmatmul.mubr.bf16.gmra.mxu0 %v16717_v36  ;;  %v16746_v12 = vadd.f32 %v7189_v5, %v7077_v53  ;;  %v7081_v1 = vadd.f32 %v7080_v32, %v16206_v54  ;;  %v13179_v9 = vcombine.low %v343_v55, %v347_v24 }
 0x15e   :  { %v591_v44 = vld [vmem:[%s22020_s1 + $0xdc8] sm:$0xff]  ;;  %7909 = vmatpush2.bf16.msra.mxu0 %v13059_v13  ;;  %v7082_v2 = vpop.f32.mrf.mxu0  ;;  %v13300_v19 = vcombine.high %v463_v47, %v467_v29  ;;  %v7195_v51 = vpop.f32.mrf.mxu1  ;;  %7912 = vmatprep.mubr.bf16.mxu0 %v14876_v58 }
 0x15f   :  { %v595_v39 = vld [vmem:[%s22020_s1 + $0xde8] sm:$0xff]  ;;  %7870 = vmatmul.mubr.bf16.gmra.mxu1 %v16728_v59  ;;  %7910 = vmatprep.subr.bf16.mxu0 %v13052_v15  ;;  %v16750_v38 = vadd.f32 %v7193_v8, %v7081_v1  ;;  %v7083_v28 = vadd.f32 %v7082_v2, %v16215_v20 }
 0x160   :  { %8022 = vmatpush2.bf16.msra.mxu1 %v13187_v34  ;;  %v13428_v5 = vcombine.high %v591_v44, %v595_v39  ;;  %v455_v53 = vld [vmem:[%s22020_s1 + $0x988] sm:$0xff]  ;;  %v7084_v62 = vpop.f32.mrf.mxu0  ;;  %8025 = vmatprep.mubr.bf16.mxu1 %v14896_v63  ;;  %v7197_v15 = vpop.f32.mrf.mxu1  ;;  %v13427_v1 = vcombine.low %v591_v44, %v595_v39 }
 0x161   :  { %8023 = vmatprep.subr.bf16.mxu1 %v13180_v43  ;;  %v459_v10 = vld [vmem:[%s22020_s1 + $0x9a8] sm:$0xff]  ;;  %v16767_v13 = vadd.f32 %v7195_v51, %v7083_v28  ;;  %v7085_v34 = vadd.f32 %v7084_v62, %v16206_v54  ;;  %v13299_v43 = vcombine.low %v463_v47, %v467_v29 }
 0x162   :  { %v583_v55 = vld [vmem:[%s22020_s1 + $0xd88] sm:$0xff]  ;;  %7911 = vmatpush2.bf16.msra.mxu0 %v13051_v50  ;;  %v7086_v32 = vpop.f32.mrf.mxu0  ;;  %v13292_v8 = vcombine.high %v455_v53, %v459_v10  ;;  %v7199_v58 = vpop.f32.mrf.mxu1 }
 0x163   :  { %v587_v24 = vld [vmem:[%s22020_s1 + $0xda8] sm:$0xff]  ;;  %8106 = vmatprep.subr.bf16.mxu0 %v13300_v19  ;;  %v16770_v2 = vadd.f32 %v7197_v15, %v7085_v34  ;;  %v7087_v63 = vadd.f32 %v7086_v32, %v16215_v20 }
 0x164   :  { %8024 = vmatpush2.bf16.msra.mxu1 %v13179_v9  ;;  %v13420_v59 = vcombine.high %v583_v55, %v587_v24  ;;  %v447_v28 = vld [vmem:[%s22020_s1 + $0x948] sm:$0xff]  ;;  %v7236_v47 = vpop.f32.mrf.mxu0  ;;  %v7349_v50 = vpop.f32.mrf.mxu1  ;;  %v13291_v9 = vcombine.low %v455_v53, %v459_v10  ;;  %v13419_v51 = vcombine.low %v583_v55, %v587_v24 }
 0x165   :  { %8219 = vmatprep.subr.bf16.mxu1 %v13428_v5  ;;  %v451_v54 = vld [vmem:[%s22020_s1 + $0x968] sm:$0xff]  ;;  %7913 = vmatmul.mubr.bf16.vlgmr.msra.gmra.mxu0 %v15019_v21  ;;  %v16786_v44 = vadd.f32 %v7199_v58, %v7087_v63  ;;  %v7237_v39 = vadd.f32 %v7236_v47, %v16242_v42 }
 0x166   :  { %v575_v29 = vld [vmem:[%s22020_s1 + $0xd48] sm:$0xff]  ;;  %8107 = vmatpush1.bf16.msra.mxu0 %v13299_v43  ;;  %v7238_v19 = vpop.f32.mrf.mxu0  ;;  %v13284_v5 = vcombine.high %v447_v28, %v451_v54  ;;  %v7351_v15 = vpop.f32.mrf.mxu1  ;;  %7922 = vmatprep.mubr.bf16.mxu0 %v15040_v30  ;;  %v13283_v43 = vcombine.low %v447_v28, %v451_v54 }
 0x167   :  { %v579_v20 = vld [vmem:[%s22020_s1 + $0xd68] sm:$0xff]  ;;  %8026 = vmatmul.mubr.bf16.vlgmr.msra.gmra.mxu1 %v15032_v25  ;;  %8108 = vmatprep.subr.bf16.mxu0 %v13292_v8  ;;  %v16790_v62 = vadd.f32 %v7349_v50, %v7237_v39  ;;  %v7239_v34 = vadd.f32 %v7238_v19, %v16275_v61 }
 0x168   :  { %8220 = vmatpush1.bf16.msra.mxu1 %v13427_v1  ;;  %v13412_v58 = vcombine.high %v575_v29, %v579_v20  ;;  %v439_v63 = vld [vmem:[%s22020_s1 + $0x908] sm:$0xff]  ;;  %v7240_v53 = vpop.f32.mrf.mxu0  ;;  %8035 = vmatprep.mubr.bf16.mxu1 %v15049_v31  ;;  %v7353_v24 = vpop.f32.mrf.mxu1  ;;  %v13411_v1 = vcombine.low %v575_v29, %v579_v20 }
 0x169   :  { %8221 = vmatprep.subr.bf16.mxu1 %v13420_v59  ;;  %v443_v42 = vld [vmem:[%s22020_s1 + $0x928] sm:$0xff]  ;;  %v16807_v10 = vadd.f32 %v7351_v15, %v7239_v34  ;;  %v7241_v55 = vadd.f32 %v7240_v53, %v16288_v6 }
 0x16a   :  { %v567_v61 = vld [vmem:[%s22020_s1 + $0xd08] sm:$0xff]  ;;  %8109 = vmatpush1.bf16.msra.mxu0 %v13291_v9  ;;  %v7242_v32 = vpop.f32.mrf.mxu0  ;;  %v13276_v8 = vcombine.high %v439_v63, %v443_v42  ;;  %v7355_v50 = vpop.f32.mrf.mxu1 }
 0x16b   :  { %v571_v59 = vld [vmem:[%s22020_s1 + $0xd28] sm:$0xff]  ;;  %8110 = vmatprep.subr.bf16.mxu0 %v13284_v5  ;;  %v16810_v47 = vadd.f32 %v7353_v24, %v7241_v55  ;;  %v7243_v39 = vadd.f32 %v7242_v32, %v16312_v4 }
 0x16c   :  { %8222 = vmatpush1.bf16.msra.mxu1 %v13419_v51  ;;  %v13404_v19 = vcombine.high %v567_v61, %v571_v59  ;;  %v431_v34 = vld [vmem:[%s22020_s1 + $0x8c8] sm:$0xff]  ;;  %v7246_v28 = vpop.f32.mrf.mxu0  ;;  %v7359_v9 = vpop.f32.mrf.mxu1  ;;  %v13275_v51 = vcombine.low %v439_v63, %v443_v42  ;;  %v13403_v15 = vcombine.low %v567_v61, %v571_v59 }
 0x16d   :  { %8223 = vmatprep.subr.bf16.mxu1 %v13412_v58  ;;  %v435_v6 = vld [vmem:[%s22020_s1 + $0x8e8] sm:$0xff]  ;;  %7923 = vmatmul.mubr.bf16.gmra.mxu0 %v15069_v41  ;;  %v16826_v29 = vadd.f32 %v7355_v50, %v7243_v39  ;;  %v7247_v20 = vadd.f32 %v7246_v28, %v16321_v27 }
 0x16e   :  { %v559_v54 = vld [vmem:[%s22020_s1 + $0xcc8] sm:$0xff]  ;;  %8111 = vmatpush1.bf16.msra.mxu0 %v13283_v43  ;;  %v7248_v5 = vpop.f32.mrf.mxu0  ;;  %v13268_v58 = vcombine.high %v431_v34, %v435_v6  ;;  %v7361_v24 = vpop.f32.mrf.mxu1  ;;  %7932 = vmatprep.mubr.bf16.mxu0 %v15088_v52 }
 0x16f   :  { %v563_v4 = vld [vmem:[%s22020_s1 + $0xce8] sm:$0xff]  ;;  %8036 = vmatmul.mubr.bf16.gmra.mxu1 %v15080_v45  ;;  %8112 = vmatprep.subr.bf16.mxu0 %v13276_v8  ;;  %v16830_v53 = vadd.f32 %v7359_v9, %v7247_v20  ;;  %v7249_v55 = vadd.f32 %v7248_v5, %v16354_v37  ;;  %v13267_v8 = vcombine.low %v431_v34, %v435_v6 }
 0x170   :  { %8224 = vmatpush1.bf16.msra.mxu1 %v13411_v1  ;;  %v13396_v32 = vcombine.high %v559_v54, %v563_v4  ;;  %v423_v27 = vld [vmem:[%s22020_s1 + $0x888] sm:$0xff]  ;;  %v7250_v42 = vpop.f32.mrf.mxu0  ;;  %8045 = vmatprep.mubr.bf16.mxu1 %v15097_v57  ;;  %v7363_v1 = vpop.f32.mrf.mxu1  ;;  %v13395_v50 = vcombine.low %v559_v54, %v563_v4 }
 0x171   :  { %8225 = vmatprep.subr.bf16.mxu1 %v13404_v19  ;;  %v427_v63 = vld [vmem:[%s22020_s1 + $0x8a8] sm:$0xff]  ;;  %v16847_v59 = vadd.f32 %v7361_v24, %v7249_v55  ;;  %v7251_v43 = vadd.f32 %v7250_v42, %v16368_v16 }
 0x172   :  { %v551_v37 = vld [vmem:[%s22020_s1 + $0xc88] sm:$0xff]  ;;  %8113 = vmatpush1.bf16.msra.mxu0 %v13275_v51  ;;  %v7252_v39 = vpop.f32.mrf.mxu0  ;;  %v13260_v19 = vcombine.high %v423_v27, %v427_v63  ;;  %v7365_v9 = vpop.f32.mrf.mxu1 }
 0x173   :  { %v555_v61 = vld [vmem:[%s22020_s1 + $0xca8] sm:$0xff]  ;;  %8114 = vmatprep.subr.bf16.mxu0 %v13268_v58  ;;  %v16850_v28 = vadd.f32 %v7363_v1, %v7251_v43  ;;  %v7253_v20 = vadd.f32 %v7252_v39, %v16392_v3 }
 0x174   :  { %8226 = vmatpush1.bf16.msra.mxu1 %v13403_v15  ;;  %v13388_v5 = vcombine.high %v551_v37, %v555_v61  ;;  %v415_v55 = vld [vmem:[%s22020_s1 + $0x848] sm:$0xff]  ;;  %v7256_v34 = vpop.f32.mrf.mxu0  ;;  %v7369_v51 = vpop.f32.mrf.mxu1  ;;  %v13259_v15 = vcombine.low %v423_v27, %v427_v63  ;;  %v13387_v24 = vcombine.low %v551_v37, %v555_v61 }
 0x175   :  { %8227 = vmatprep.subr.bf16.mxu1 %v13396_v32  ;;  %v419_v16 = vld [vmem:[%s22020_s1 + $0x868] sm:$0xff]  ;;  %7933 = vmatmul.mubr.bf16.gmra.mxu0 %v15117_v7  ;;  %v16866_v54 = vadd.f32 %v7365_v9, %v7253_v20  ;;  %v7257_v4 = vadd.f32 %v7256_v34, %v16401_v49 }
 0x176   :  { %v543_v6 = vld [vmem:[%s22020_s1 + $0xc48] sm:$0xff]  ;;  %8115 = vmatpush1.bf16.msra.mxu0 %v13267_v8  ;;  %v7258_v58 = vpop.f32.mrf.mxu0  ;;  %v13252_v32 = vcombine.high %v415_v55, %v419_v16  ;;  %v7371_v1 = vpop.f32.mrf.mxu1  ;;  %7942 = vmatprep.mubr.bf16.mxu0 %v15136_v18 }
 0x177   :  { %v547_v3 = vld [vmem:[%s22020_s1 + $0xc68] sm:$0xff]  ;;  %8046 = vmatmul.mubr.bf16.gmra.mxu1 %v15128_v11  ;;  %8116 = vmatprep.subr.bf16.mxu0 %v13260_v19  ;;  %v16870_v42 = vadd.f32 %v7369_v51, %v7257_v4  ;;  %v7259_v43 = vadd.f32 %v7258_v58, %v16434_v0  ;;  %v13251_v19 = vcombine.low %v415_v55, %v419_v16 }
 0x178   :  { %8228 = vmatpush1.bf16.msra.mxu1 %v13395_v50  ;;  %v13380_v39 = vcombine.high %v543_v6, %v547_v3  ;;  %v407_v49 = vld [vmem:[%s22020_s1 + $0x808] sm:$0xff]  ;;  %v7260_v63 = vpop.f32.mrf.mxu0  ;;  %8055 = vmatprep.mubr.bf16.mxu1 %v15145_v22  ;;  %v7373_v50 = vpop.f32.mrf.mxu1  ;;  %v13379_v9 = vcombine.low %v543_v6, %v547_v3 }
 0x179   :  { %8229 = vmatprep.subr.bf16.mxu1 %v13388_v5  ;;  %v411_v27 = vld [vmem:[%s22020_s1 + $0x828] sm:$0xff]  ;;  %v16887_v61 = vadd.f32 %v7371_v1, %v7259_v43  ;;  %v7261_v8 = vadd.f32 %v7260_v63, %v16448_v23 }
 0x17a   :  { %v535_v0 = vld [vmem:[%s22020_s1 + $0xc08] sm:$0xff]  ;;  %8117 = vmatpush1.bf16.msra.mxu0 %v13259_v15  ;;  %v7262_v20 = vpop.f32.mrf.mxu0  ;;  %v13244_v5 = vcombine.high %v407_v49, %v411_v27  ;;  %v7375_v51 = vpop.f32.mrf.mxu1 }
 0x17b   :  { %v539_v37 = vld [vmem:[%s22020_s1 + $0xc28] sm:$0xff]  ;;  %8118 = vmatprep.subr.bf16.mxu0 %v13252_v32  ;;  %v16890_v34 = vadd.f32 %v7373_v50, %v7261_v8  ;;  %v7263_v4 = vadd.f32 %v7262_v20, %v16472_v26 }
 0x17c   :  { %8230 = vmatpush1.bf16.msra.mxu1 %v13387_v24  ;;  %v13372_v58 = vcombine.high %v535_v0, %v539_v37  ;;  %v527_v43 = vld [vmem:[%s22020_s1 + $0xbc8] sm:$0xff]  ;;  %v7266_v55 = vpop.f32.mrf.mxu0  ;;  %v7379_v15 = vpop.f32.mrf.mxu1  ;;  %v13243_v24 = vcombine.low %v407_v49, %v411_v27  ;;  %v13371_v1 = vcombine.low %v535_v0, %v539_v37  ;;  %v22468_v0 = vld [vmem:[#allocation19_spill] sm:$0xff] }
 0x17d   :  { %8231 = vmatprep.subr.bf16.mxu1 %v13380_v39  ;;  %v531_v23 = vld [vmem:[%s22020_s1 + $0xbe8] sm:$0xff]  ;;  %7943 = vmatmul.mubr.bf16.gmra.mxu0 %v15165_v60  ;;  %v16906_v6 = vadd.f32 %v7375_v51, %v7263_v4  ;;  %v7267_v3 = vadd.f32 %v7266_v55, %v16481_v17 }
 0x17e   :  { %v655_v16 = vld [vmem:[%s22020_s1 + $0xfc8] sm:$0xff]  ;;  %8119 = vmatpush1.bf16.msra.mxu0 %v13251_v19  ;;  %v7268_v32 = vpop.f32.mrf.mxu0  ;;  %v13364_v39 = vcombine.high %v527_v43, %v531_v23  ;;  %v7381_v50 = vpop.f32.mrf.mxu1 }
 0x17f   :  { %v659_v26 = vld [vmem:[%s22020_s1 + $0xfe8] sm:$0xff]  ;;  %8056 = vmatmul.mubr.bf16.gmra.mxu1 %v15176_v35  ;;  %8120 = vmatprep.subr.bf16.mxu0 %v13244_v5  ;;  %v16910_v63 = vadd.f32 %v7379_v15, %v7267_v3  ;;  %v7269_v8 = vadd.f32 %v7268_v32, %v16514_v33 }
 0x180   :  { %8232 = vmatpush1.bf16.msra.mxu1 %v13379_v9  ;;  %v22467_v20 = vld [vmem:[#allocation18_spill] sm:$0xff]  ;;  %v13492_v4 = vcombine.high %v655_v16, %v659_v26  ;;  %v7270_v27 = vpop.f32.mrf.mxu0  ;;  %8065 = vmatprep.mubr.bf16.mxu1 %v22468_v0  ;;  %v22469_v9 = vld [vmem:[#allocation119_spill] sm:$0xff]  ;;  %v7383_v51 = vpop.f32.mrf.mxu1  ;;  %v13491_v3 = vcombine.low %v655_v16, %v659_v26 }
 0x181   :  { %8233 = vmatprep.subr.bf16.mxu1 %v13372_v58  ;;  %7952 = vmatprep.mubr.bf16.mxu0 %v22467_v20  ;;  %v519_v17 = vld [vmem:[%s22020_s1 + $0xb88] sm:$0xff]  ;;  %v16927_v19 = vadd.f32 %v7381_v50, %v7269_v8  ;;  %v7271_v5 = vadd.f32 %v7270_v27, %v22469_v9  ;;  %v13363_v58 = vcombine.low %v527_v43, %v531_v23  ;;  %v22473_v27 = vld [vmem:[#allocation21_spill] sm:$0xff] }
 0x182   :  { %v523_v49 = vld [vmem:[%s22020_s1 + $0xba8] sm:$0xff]  ;;  %8121 = vmatpush1.bf16.msra.mxu0 %v13243_v24  ;;  %v7272_v55 = vpop.f32.mrf.mxu0  ;;  %v7385_v35 = vpop.f32.mrf.mxu1  ;;  %v22471_v24 = vld [vmem:[#allocation20_spill] sm:$0xff] }
 0x183   :  { %v647_v33 = vld [vmem:[%s22020_s1 + $0xf88] sm:$0xff]  ;;  %8122 = vmatprep.subr.bf16.mxu0 %v13364_v39  ;;  %v13356_v15 = vcombine.high %v519_v17, %v523_v49  ;;  %v16930_v32 = vadd.f32 %v7383_v51, %v7271_v5  ;;  %v22472_v39 = vld [vmem:[#allocation123_spill] sm:$0xff] }
 0x184   :  { %v651_v37 = vld [vmem:[%s22020_s1 + $0xfa8] sm:$0xff]  ;;  %8234 = vmatpush1.bf16.msra.mxu1 %v13371_v1  ;;  %v7276_v23 = vpop.f32.mrf.mxu0 }
 0x185   :  { %v22470_v0 = vld [vmem:[#allocation122_spill] sm:$0xff]  ;;  %8235 = vmatprep.subr.bf16.mxu1 %v13492_v4  ;;  %v13484_v60 = vcombine.high %v647_v33, %v651_v37  ;;  %7953 = vmatmul.mubr.bf16.gmra.mxu0 %v22471_v24  ;;  %v7277_v50 = vadd.f32 %v7276_v23, %v22472_v39  ;;  %v7389_v4 = vpop.f32.mrf.mxu1  ;;  %v13483_v5 = vcombine.low %v647_v33, %v651_v37  ;;  %v22474_v24 = vld [vmem:[#allocation125_spill] sm:$0xff]  ;;  %v22476_v33 = vld [vmem:[#allocation23_spill] sm:$0xff] }
 0x186   :  { %v7273_v20 = vadd.f32 %v7272_v55, %v22470_v0  ;;  %v511_v8 = vld [vmem:[%s22020_s1 + $0xb48] sm:$0xff]  ;;  %8123 = vmatpush2.bf16.msra.mxu0 %v13363_v58  ;;  %v13355_v0 = vcombine.low %v519_v17, %v523_v49  ;;  %v7278_v9 = vpop.f32.mrf.mxu0 }
 0x187   :  { %v515_v43 = vld [vmem:[%s22020_s1 + $0xb68] sm:$0xff]  ;;  %8066 = vmatmul.mubr.bf16.gmra.mxu1 %v22473_v27  ;;  %8124 = vmatprep.subr.bf16.mxu0 %v13356_v15  ;;  %v16950_v55 = vadd.f32 %v7389_v4, %v7277_v50  ;;  %v7279_v22 = vadd.f32 %v7278_v9, %v22474_v24  ;;  %v7391_v18 = vpop.f32.mrf.mxu1 }
 0x188   :  { %v639_v16 = vld [vmem:[%s22020_s1 + $0xf48] sm:$0xff]  ;;  %v16946_v1 = vadd.f32 %v7385_v35, %v7273_v20  ;;  %8236 = vmatpush2.bf16.msra.mxu1 %v13491_v3  ;;  %v13348_v51 = vcombine.high %v511_v8, %v515_v43  ;;  %v7280_v49 = vpop.f32.mrf.mxu0  ;;  %8075 = vmatprep.mubr.bf16.mxu1 %v22476_v33  ;;  %v22477_v3 = vld [vmem:[#allocation127_spill] sm:$0xff]  ;;  %v13347_v39 = vcombine.low %v511_v8, %v515_v43  ;;  %v22479_v43 = vld [vmem:[#allocation24_spill] sm:$0xff] }
 0x189   :  { %v643_v26 = vld [vmem:[%s22020_s1 + $0xf68] sm:$0xff]  ;;  %8237 = vmatprep.subr.bf16.mxu1 %v13484_v60  ;;  %v16967_v58 = vadd.f32 %v7391_v18, %v7279_v22  ;;  %v7281_v15 = vadd.f32 %v7280_v49, %v22477_v3  ;;  %v7393_v24 = vpop.f32.mrf.mxu1 }
 0x18a   :  { %v22475_v35 = vld [vmem:[#allocation22_spill] sm:$0xff]  ;;  %v13476_v20 = vcombine.high %v639_v16, %v643_v26  ;;  %8125 = vmatpush2.bf16.msra.mxu0 %v13355_v0  ;;  %v7282_v50 = vpop.f32.mrf.mxu0  ;;  %v13475_v4 = vcombine.low %v639_v16, %v643_v26 }
 0x18b   :  { %7962 = vmatprep.mubr.bf16.mxu0 %v22475_v35  ;;  %v503_v23 = vld [vmem:[%s22020_s1 + $0xb08] sm:$0xff]  ;;  %8126 = vmatprep.subr.bf16.mxu0 %v13348_v51  ;;  %v16970_v33 = vadd.f32 %v7393_v24, %v7281_v15  ;;  %v7395_v11 = vpop.f32.mrf.mxu1 }
 0x18c   :  { %v507_v17 = vld [vmem:[%s22020_s1 + $0xb28] sm:$0xff]  ;;  %8238 = vmatpush2.bf16.msra.mxu1 %v13483_v5  ;;  %v7286_v8 = vpop.f32.mrf.mxu0  ;;  %v22480_v5 = vld [vmem:[#allocation131_spill] sm:$0xff] }
 0x18d   :  { %v631_v37 = vld [vmem:[%s22020_s1 + $0xf08] sm:$0xff]  ;;  %v13340_v9 = vcombine.high %v503_v23, %v507_v17  ;;  %8239 = vmatprep.subr.bf16.mxu1 %v13476_v20  ;;  %7963 = vmatmul.mubr.bf16.gmra.mxu0 %v22479_v43  ;;  %v7287_v51 = vadd.f32 %v7286_v8, %v22480_v5  ;;  %v22481_v20 = vld [vmem:[#allocation25_spill] sm:$0xff]  ;;  %v13339_v49 = vcombine.low %v503_v23, %v507_v17 }
 0x18e   :  { %v635_v60 = vld [vmem:[%s22020_s1 + $0xf28] sm:$0xff]  ;;  %8127 = vmatpush2.bf16.msra.mxu0 %v13347_v39  ;;  %v7288_v3 = vpop.f32.mrf.mxu0  ;;  %v22482_v43 = vld [vmem:[#allocation133_spill] sm:$0xff] }
 0x18f   :  { %v22478_v35 = vld [vmem:[#allocation130_spill] sm:$0xff]  ;;  %v13468_v7 = vcombine.high %v631_v37, %v635_v60  ;;  %8076 = vmatmul.mubr.bf16.gmra.mxu1 %v22481_v20  ;;  %8128 = vmatprep.subr.bf16.mxu0 %v13340_v9  ;;  %v13467_v15 = vcombine.low %v631_v37, %v635_v60  ;;  %v7289_v57 = vadd.f32 %v7288_v3, %v22482_v43  ;;  %v22484_v37 = vld [vmem:[#allocation27_spill] sm:$0xff] }
 0x190   :  { %v7283_v27 = vadd.f32 %v7282_v50, %v22478_v35  ;;  %v495_v18 = vld [vmem:[%s22020_s1 + $0xac8] sm:$0xff]  ;;  %v7399_v35 = vpop.f32.mrf.mxu1  ;;  %8240 = vmatpush2.bf16.msra.mxu1 %v13475_v4  ;;  %v7290_v17 = vpop.f32.mrf.mxu0  ;;  %8085 = vmatprep.mubr.bf16.mxu1 %v22484_v37  ;;  %v22485_v4 = vld [vmem:[#allocation135_spill] sm:$0xff] }
 0x191   :  { %v499_v22 = vld [vmem:[%s22020_s1 + $0xae8] sm:$0xff]  ;;  %v16990_v50 = vadd.f32 %v7399_v35, %v7287_v51  ;;  %8241 = vmatprep.subr.bf16.mxu1 %v13468_v7  ;;  %v7291_v9 = vadd.f32 %v7290_v17, %v22485_v4 }
 0x192   :  { %v623_v16 = vld [vmem:[%s22020_s1 + $0xec8] sm:$0xff]  ;;  %v16986_v0 = vadd.f32 %v7395_v11, %v7283_v27  ;;  %v13332_v24 = vcombine.high %v495_v18, %v499_v22  ;;  %v7401_v52 = vpop.f32.mrf.mxu1  ;;  %8129 = vmatpush2.bf16.msra.mxu0 %v13339_v49  ;;  %v13331_v5 = vcombine.low %v495_v18, %v499_v22  ;;  %v7292_v51 = vpop.f32.mrf.mxu0  ;;  %v22486_v22 = vld [vmem:[#allocation28_spill] sm:$0xff] }
 0x193   :  { %v627_v26 = vld [vmem:[%s22020_s1 + $0xee8] sm:$0xff]  ;;  %v17007_v39 = vadd.f32 %v7401_v52, %v7289_v57 }
 0x194   :  { %v22483_v11 = vld [vmem:[#allocation26_spill] sm:$0xff]  ;;  %v13460_v27 = vcombine.high %v623_v16, %v627_v26  ;;  %v7403_v43 = vpop.f32.mrf.mxu1  ;;  %8242 = vmatpush2.bf16.msra.mxu1 %v13467_v15  ;;  %8130 = vmatprep.subr.bf16.mxu0 %v13332_v24  ;;  %v13459_v35 = vcombine.low %v623_v16, %v627_v26  ;;  %v7296_v18 = vpop.f32.mrf.mxu0  ;;  %v22487_v24 = vld [vmem:[#allocation29_spill] sm:$0xff] }
 0x195   :  { %7972 = vmatprep.mubr.bf16.mxu0 %v22483_v11  ;;  %v487_v8 = vld [vmem:[%s22020_s1 + $0xa88] sm:$0xff]  ;;  %v17010_v37 = vadd.f32 %v7403_v43, %v7291_v9  ;;  %v7293_v11 = vadd.f32 %v7292_v51, %v16701_v48  ;;  %v7297_v49 = vadd.f32 %v7296_v18, %v16706_v14 }
 0x196   :  { %v491_v23 = vld [vmem:[%s22020_s1 + $0xaa8] sm:$0xff]  ;;  %v7405_v20 = vpop.f32.mrf.mxu1  ;;  %8243 = vmatprep.subr.bf16.mxu1 %v13460_v27  ;;  %7973 = vmatmul.mubr.bf16.gmra.mxu0 %v22486_v22  ;;  %v7298_v17 = vpop.f32.mrf.mxu0 }
 0x197   :  { %v615_v60 = vld [vmem:[%s22020_s1 + $0xe88] sm:$0xff]  ;;  %v13324_v3 = vcombine.high %v487_v8, %v491_v23  ;;  %v17026_v26 = vadd.f32 %v7405_v20, %v7293_v11  ;;  %8086 = vmatmul.mubr.bf16.gmra.mxu1 %v22487_v24  ;;  %8131 = vmatpush2.bf16.msra.mxu0 %v13331_v5  ;;  %v13323_v27 = vcombine.low %v487_v8, %v491_v23 }
 0x198   :  { %v619_v7 = vld [vmem:[%s22020_s1 + $0xea8] sm:$0xff]  ;;  %v7409_v15 = vpop.f32.mrf.mxu1  ;;  %8244 = vmatpush2.bf16.msra.mxu1 %v13459_v35  ;;  %v7299_v51 = vadd.f32 %v7298_v17, %v16725_v46  ;;  %v7300_v23 = vpop.f32.mrf.mxu0 }
 0x199   :  { %v13452_v45 = vcombine.high %v615_v60, %v619_v7  ;;  %v479_v52 = vld [vmem:[%s22020_s1 + $0xa48] sm:$0xff]  ;;  %8132 = vmatprep.subr.bf16.mxu0 %v13324_v3  ;;  %v13451_v4 = vcombine.low %v615_v60, %v619_v7  ;;  %v17030_v43 = vadd.f32 %v7409_v15, %v7297_v49  ;;  %v22489_v60 = vld [vmem:[#allocation31_spill] sm:$0xff]  ;;  %v7301_v5 = vadd.f32 %v7300_v23, %v16730_v56 }
 0x19a   :  { %v483_v57 = vld [vmem:[%s22020_s1 + $0xa68] sm:$0xff]  ;;  %v7411_v22 = vpop.f32.mrf.mxu1  ;;  %8095 = vmatprep.mubr.bf16.mxu1 %v22489_v60  ;;  %v7302_v18 = vpop.f32.mrf.mxu0 }
 0x19b   :  { %v607_v16 = vld [vmem:[%s22020_s1 + $0xe48] sm:$0xff]  ;;  %v13316_v9 = vcombine.high %v479_v52, %v483_v57  ;;  %8245 = vmatprep.subr.bf16.mxu1 %v13452_v45  ;;  %v17047_v7 = vadd.f32 %v7411_v22, %v7299_v51  ;;  %8133 = vmatpush2.bf16.msra.mxu0 %v13323_v27  ;;  %v13315_v3 = vcombine.low %v479_v52, %v483_v57  ;;  %v22490_v57 = vld [vmem:[#allocation32_spill] sm:$0xff] }
 0x19c   :  { %v611_v48 = vld [vmem:[%s22020_s1 + $0xe68] sm:$0xff]  ;;  %v7413_v35 = vpop.f32.mrf.mxu1  ;;  %8246 = vmatpush2.bf16.msra.mxu1 %v13451_v4  ;;  %v7303_v60 = vadd.f32 %v7302_v18, %v16746_v12  ;;  %v7306_v52 = vpop.f32.mrf.mxu0 }
 0x19d   :  { %v22488_v20 = vld [vmem:[#allocation30_spill] sm:$0xff]  ;;  %v13444_v11 = vcombine.high %v607_v16, %v611_v48  ;;  %8134 = vmatprep.subr.bf16.mxu0 %v13316_v9  ;;  %v13443_v49 = vcombine.low %v607_v16, %v611_v48  ;;  %v17050_v17 = vadd.f32 %v7413_v35, %v7301_v5  ;;  %v7307_v27 = vadd.f32 %v7306_v52, %v16750_v38  ;;  %v22491_v9 = vld [vmem:[#allocation33_spill] sm:$0xff] }
 0x19e   :  { %7982 = vmatprep.mubr.bf16.mxu0 %v22488_v20  ;;  %v471_v14 = vld [vmem:[%s22020_s1 + $0xa08] sm:$0xff]  ;;  %v7415_v20 = vpop.f32.mrf.mxu1 }
 0x19f   :  { %v475_v8 = vld [vmem:[%s22020_s1 + $0xa28] sm:$0xff]  ;;  %8247 = vmatprep.subr.bf16.mxu1 %v13444_v11  ;;  %7983 = vmatmul.mubr.bf16.gmra.mxu0 %v22490_v57  ;;  %v17066_v48 = vadd.f32 %v7415_v20, %v7303_v60  ;;  %v7308_v11 = vpop.f32.mrf.mxu0 }
 0x1a0   :  { %v599_v46 = vld [vmem:[%s22020_s1 + $0xe08] sm:$0xff]  ;;  %v13308_v15 = vcombine.high %v471_v14, %v475_v8  ;;  %v7419_v4 = vpop.f32.mrf.mxu1  ;;  %8096 = vmatmul.mubr.bf16.gmra.mxu1 %v22491_v9  ;;  %8135 = vmatpush2.bf16.msra.mxu0 %v13315_v3  ;;  %v13307_v51 = vcombine.low %v471_v14, %v475_v8  ;;  %v7309_v18 = vadd.f32 %v7308_v11, %v16767_v13 }
 0x1a1   :  { %v603_v45 = vld [vmem:[%s22020_s1 + $0xe28] sm:$0xff]  ;;  %8248 = vmatpush2.bf16.msra.mxu1 %v13443_v49  ;;  %v17070_v35 = vadd.f32 %v7419_v4, %v7307_v27  ;;  %v7310_v8 = vpop.f32.mrf.mxu0 }
 0x1a2   :  { %v13436_v24 = vcombine.high %v599_v46, %v603_v45  ;;  %v719_v22 = vld [vmem:[%s22020_s1 + $0x11c8] sm:$0xff]  ;;  %8136 = vmatprep.subr.bf16.mxu0 %v13308_v15  ;;  %v13435_v23 = vcombine.low %v599_v46, %v603_v45  ;;  %v7421_v57 = vpop.f32.mrf.mxu1  ;;  %v22493_v46 = vld [vmem:[#allocation35_spill] sm:$0xff]  ;;  %v7311_v3 = vadd.f32 %v7310_v8, %v16770_v2 }
 0x1a3   :  { %v723_v56 = vld [vmem:[%s22020_s1 + $0x11e8] sm:$0xff]  ;;  %8251 = vmatprep.mubr.bf16.mxu1 %v22493_v46  ;;  %v17087_v45 = vadd.f32 %v7421_v57, %v7309_v18  ;;  %v7312_v52 = vpop.f32.mrf.mxu0 }
 0x1a4   :  { %v847_v16 = vld [vmem:[%s22020_s1 + $0x15c8] sm:$0xff]  ;;  %v13556_v5 = vcombine.high %v719_v22, %v723_v56  ;;  %8249 = vmatprep.subr.bf16.mxu1 %v13436_v24  ;;  %v7423_v49 = vpop.f32.mrf.mxu1  ;;  %8137 = vmatpush2.bf16.msra.mxu0 %v13307_v51  ;;  %v13555_v15 = vcombine.low %v719_v22, %v723_v56  ;;  %v7313_v46 = vadd.f32 %v7312_v52, %v16786_v44  ;;  %v22494_v56 = vld [vmem:[#allocation36_spill] sm:$0xff] }
 0x1a5   :  { %v851_v12 = vld [vmem:[%s22020_s1 + $0x15e8] sm:$0xff]  ;;  %8250 = vmatpush2.bf16.msra.mxu1 %v13435_v23  ;;  %v17090_v11 = vadd.f32 %v7423_v49, %v7311_v3  ;;  %v7462_v22 = vpop.f32.mrf.mxu0 }
 0x1a6   :  { %v22492_v20 = vld [vmem:[#allocation34_spill] sm:$0xff]  ;;  %v13684_v60 = vcombine.high %v847_v16, %v851_v12  ;;  %8332 = vmatprep.subr.bf16.mxu0 %v13556_v5  ;;  %v13683_v27 = vcombine.low %v847_v16, %v851_v12  ;;  %v7463_v51 = vadd.f32 %v7462_v22, %v16790_v62  ;;  %v22495_v5 = vld [vmem:[#allocation37_spill] sm:$0xff] }
 0x1a7   :  { %8138 = vmatprep.mubr.bf16.mxu0 %v22492_v20  ;;  %v711_v38 = vld [vmem:[%s22020_s1 + $0x1188] sm:$0xff]  ;;  %v7425_v20 = vpop.f32.mrf.mxu1 }
 0x1a8   :  { %v715_v14 = vld [vmem:[%s22020_s1 + $0x11a8] sm:$0xff]  ;;  %8445 = vmatprep.subr.bf16.mxu1 %v13684_v60  ;;  %8139 = vmatmul.mubr.bf16.vlgmr.msra.gmra.mxu0 %v22494_v56  ;;  %v17106_v12 = vadd.f32 %v7425_v20, %v7313_v46  ;;  %v7464_v60 = vpop.f32.mrf.mxu0 }
 0x1a9   :  { %v839_v13 = vld [vmem:[%s22020_s1 + $0x1588] sm:$0xff]  ;;  %v13548_v4 = vcombine.high %v711_v38, %v715_v14  ;;  %v7575_v23 = vpop.f32.mrf.mxu1  ;;  %8252 = vmatmul.mubr.bf16.vlgmr.msra.gmra.mxu1 %v22495_v5  ;;  %8333 = vmatpush1.bf16.msra.mxu0 %v13555_v15  ;;  %v13547_v18 = vcombine.low %v711_v38, %v715_v14  ;;  %v7465_v52 = vadd.f32 %v7464_v60, %v16807_v10 }
 0x1aa   :  { %v843_v24 = vld [vmem:[%s22020_s1 + $0x15a8] sm:$0xff]  ;;  %8446 = vmatpush1.bf16.msra.mxu1 %v13683_v27  ;;  %v17110_v49 = vadd.f32 %v7575_v23, %v7463_v51  ;;  %v7466_v14 = vpop.f32.mrf.mxu0 }
 0x1ab   :  { %v13676_v9 = vcombine.high %v839_v13, %v843_v24  ;;  %v703_v57 = vld [vmem:[%s22020_s1 + $0x1148] sm:$0xff]  ;;  %8334 = vmatprep.subr.bf16.mxu0 %v13548_v4  ;;  %v13675_v8 = vcombine.low %v839_v13, %v843_v24  ;;  %v7577_v56 = vpop.f32.mrf.mxu1  ;;  %v22497_v13 = vld [vmem:[#allocation39_spill] sm:$0xff]  ;;  %v7467_v15 = vadd.f32 %v7466_v14, %v16810_v47 }
 0x1ac   :  { %v707_v2 = vld [vmem:[%s22020_s1 + $0x1168] sm:$0xff]  ;;  %8261 = vmatprep.mubr.bf16.mxu1 %v22497_v13  ;;  %v17127_v24 = vadd.f32 %v7577_v56, %v7465_v52  ;;  %v7468_v22 = vpop.f32.mrf.mxu0 }
 0x1ad   :  { %v831_v16 = vld [vmem:[%s22020_s1 + $0x1548] sm:$0xff]  ;;  %v13540_v3 = vcombine.high %v703_v57, %v707_v2  ;;  %8447 = vmatprep.subr.bf16.mxu1 %v13676_v9  ;;  %v7579_v27 = vpop.f32.mrf.mxu1  ;;  %8335 = vmatpush1.bf16.msra.mxu0 %v13547_v18  ;;  %v13539_v4 = vcombine.low %v703_v57, %v707_v2  ;;  %v7469_v13 = vadd.f32 %v7468_v22, %v16826_v29  ;;  %v22498_v2 = vld [vmem:[#allocation40_spill] sm:$0xff] }
 0x1ae   :  { %v835_v44 = vld [vmem:[%s22020_s1 + $0x1568] sm:$0xff]  ;;  %8448 = vmatpush1.bf16.msra.mxu1 %v13675_v8  ;;  %v17130_v60 = vadd.f32 %v7579_v27, %v7467_v15  ;;  %v7472_v57 = vpop.f32.mrf.mxu0 }
 0x1af   :  { %v22496_v20 = vld [vmem:[#allocation38_spill] sm:$0xff]  ;;  %v13668_v46 = vcombine.high %v831_v16, %v835_v44  ;;  %8336 = vmatprep.subr.bf16.mxu0 %v13540_v3  ;;  %v13667_v51 = vcombine.low %v831_v16, %v835_v44  ;;  %v7473_v18 = vadd.f32 %v7472_v57, %v16830_v53  ;;  %v22499_v3 = vld [vmem:[#allocation41_spill] sm:$0xff] }
 0x1b0   :  { %8148 = vmatprep.mubr.bf16.mxu0 %v22496_v20  ;;  %v695_v62 = vld [vmem:[%s22020_s1 + $0x1108] sm:$0xff]  ;;  %v7581_v20 = vpop.f32.mrf.mxu1 }
 0x1b1   :  { %v699_v38 = vld [vmem:[%s22020_s1 + $0x1128] sm:$0xff]  ;;  %8449 = vmatprep.subr.bf16.mxu1 %v13668_v46  ;;  %8149 = vmatmul.mubr.bf16.gmra.mxu0 %v22498_v2  ;;  %v17146_v44 = vadd.f32 %v7581_v20, %v7469_v13  ;;  %v7474_v46 = vpop.f32.mrf.mxu0 }
 0x1b2   :  { %v823_v10 = vld [vmem:[%s22020_s1 + $0x1508] sm:$0xff]  ;;  %v13532_v23 = vcombine.high %v695_v62, %v699_v38  ;;  %v7585_v8 = vpop.f32.mrf.mxu1  ;;  %8262 = vmatmul.mubr.bf16.gmra.mxu1 %v22499_v3  ;;  %8337 = vmatpush1.bf16.msra.mxu0 %v13539_v4  ;;  %v13531_v52 = vcombine.low %v695_v62, %v699_v38  ;;  %v7475_v22 = vadd.f32 %v7474_v46, %v16847_v59 }
 0x1b3   :  { %v827_v9 = vld [vmem:[%s22020_s1 + $0x1528] sm:$0xff]  ;;  %8450 = vmatpush1.bf16.msra.mxu1 %v13667_v51  ;;  %v17150_v27 = vadd.f32 %v7585_v8, %v7473_v18  ;;  %v7476_v38 = vpop.f32.mrf.mxu0 }
 0x1b4   :  { %v13660_v5 = vcombine.high %v823_v10, %v827_v9  ;;  %v687_v56 = vld [vmem:[%s22020_s1 + $0x10c8] sm:$0xff]  ;;  %8338 = vmatprep.subr.bf16.mxu0 %v13532_v23  ;;  %v13659_v14 = vcombine.low %v823_v10, %v827_v9  ;;  %v7587_v2 = vpop.f32.mrf.mxu1  ;;  %v22501_v10 = vld [vmem:[#allocation43_spill] sm:$0xff]  ;;  %v7477_v4 = vadd.f32 %v7476_v38, %v16850_v28 }
 0x1b5   :  { %v691_v47 = vld [vmem:[%s22020_s1 + $0x10e8] sm:$0xff]  ;;  %8271 = vmatprep.mubr.bf16.mxu1 %v22501_v10  ;;  %v17167_v9 = vadd.f32 %v7587_v2, %v7475_v22  ;;  %v7478_v57 = vpop.f32.mrf.mxu0 }
 0x1b6   :  { %v815_v16 = vld [vmem:[%s22020_s1 + $0x14c8] sm:$0xff]  ;;  %v13524_v15 = vcombine.high %v687_v56, %v691_v47  ;;  %8451 = vmatprep.subr.bf16.mxu1 %v13660_v5  ;;  %v7589_v51 = vpop.f32.mrf.mxu1  ;;  %8339 = vmatpush1.bf16.msra.mxu0 %v13531_v52  ;;  %v13523_v23 = vcombine.low %v687_v56, %v691_v47  ;;  %v7479_v10 = vadd.f32 %v7478_v57, %v16866_v54  ;;  %v22502_v47 = vld [vmem:[#allocation44_spill] sm:$0xff] }
 0x1b7   :  { %v819_v29 = vld [vmem:[%s22020_s1 + $0x14e8] sm:$0xff]  ;;  %8452 = vmatpush1.bf16.msra.mxu1 %v13659_v14  ;;  %v17170_v46 = vadd.f32 %v7589_v51, %v7477_v4  ;;  %v7482_v56 = vpop.f32.mrf.mxu0 }
 0x1b8   :  { %v22500_v20 = vld [vmem:[#allocation42_spill] sm:$0xff]  ;;  %v13652_v13 = vcombine.high %v815_v16, %v819_v29  ;;  %8340 = vmatprep.subr.bf16.mxu0 %v13524_v15  ;;  %v13651_v18 = vcombine.low %v815_v16, %v819_v29  ;;  %v7483_v52 = vadd.f32 %v7482_v56, %v16870_v42  ;;  %v22503_v15 = vld [vmem:[#allocation45_spill] sm:$0xff] }
 0x1b9   :  { %8158 = vmatprep.mubr.bf16.mxu0 %v22500_v20  ;;  %v679_v53 = vld [vmem:[%s22020_s1 + $0x1088] sm:$0xff]  ;;  %v7591_v20 = vpop.f32.mrf.mxu1 }
 0x1ba   :  { %v683_v62 = vld [vmem:[%s22020_s1 + $0x10a8] sm:$0xff]  ;;  %8453 = vmatprep.subr.bf16.mxu1 %v13652_v13  ;;  %8159 = vmatmul.mubr.bf16.gmra.mxu0 %v22502_v47  ;;  %v17186_v29 = vadd.f32 %v7591_v20, %v7479_v10  ;;  %v7484_v13 = vpop.f32.mrf.mxu0 }
 0x1bb   :  { %v807_v59 = vld [vmem:[%s22020_s1 + $0x1488] sm:$0xff]  ;;  %v13516_v8 = vcombine.high %v679_v53, %v683_v62  ;;  %v7595_v14 = vpop.f32.mrf.mxu1  ;;  %8272 = vmatmul.mubr.bf16.gmra.mxu1 %v22503_v15  ;;  %8341 = vmatpush1.bf16.msra.mxu0 %v13523_v23  ;;  %v13515_v22 = vcombine.low %v679_v53, %v683_v62  ;;  %v7485_v57 = vadd.f32 %v7484_v13, %v16887_v61 }
 0x1bc   :  { %v811_v5 = vld [vmem:[%s22020_s1 + $0x14a8] sm:$0xff]  ;;  %8454 = vmatpush1.bf16.msra.mxu1 %v13651_v18  ;;  %v17190_v51 = vadd.f32 %v7595_v14, %v7483_v52  ;;  %v7486_v62 = vpop.f32.mrf.mxu0 }
 0x1bd   :  { %v13644_v3 = vcombine.high %v807_v59, %v811_v5  ;;  %v671_v2 = vld [vmem:[%s22020_s1 + $0x1048] sm:$0xff]  ;;  %8342 = vmatprep.subr.bf16.mxu0 %v13516_v8  ;;  %v13643_v38 = vcombine.low %v807_v59, %v811_v5  ;;  %v7597_v47 = vpop.f32.mrf.mxu1  ;;  %v22505_v59 = vld [vmem:[#allocation47_spill] sm:$0xff]  ;;  %v7487_v23 = vadd.f32 %v7486_v62, %v16890_v34 }
 0x1be   :  { %v675_v28 = vld [vmem:[%s22020_s1 + $0x1068] sm:$0xff]  ;;  %8281 = vmatprep.mubr.bf16.mxu1 %v22505_v59  ;;  %v17207_v5 = vadd.f32 %v7597_v47, %v7485_v57  ;;  %v7488_v56 = vpop.f32.mrf.mxu0 }
 0x1bf   :  { %v799_v16 = vld [vmem:[%s22020_s1 + $0x1448] sm:$0xff]  ;;  %v13508_v4 = vcombine.high %v671_v2, %v675_v28  ;;  %8455 = vmatprep.subr.bf16.mxu1 %v13644_v3  ;;  %v7599_v18 = vpop.f32.mrf.mxu1  ;;  %8343 = vmatpush1.bf16.msra.mxu0 %v13515_v22  ;;  %v13507_v8 = vcombine.low %v671_v2, %v675_v28  ;;  %v7489_v59 = vadd.f32 %v7488_v56, %v16906_v6  ;;  %v22506_v28 = vld [vmem:[#allocation48_spill] sm:$0xff] }
 0x1c0   :  { %v803_v54 = vld [vmem:[%s22020_s1 + $0x1468] sm:$0xff]  ;;  %8456 = vmatpush1.bf16.msra.mxu1 %v13643_v38  ;;  %v17210_v13 = vadd.f32 %v7599_v18, %v7487_v23  ;;  %v7492_v2 = vpop.f32.mrf.mxu0 }
 0x1c1   :  { %v22504_v20 = vld [vmem:[#allocation46_spill] sm:$0xff]  ;;  %v13636_v10 = vcombine.high %v799_v16, %v803_v54  ;;  %8344 = vmatprep.subr.bf16.mxu0 %v13508_v4  ;;  %v13635_v52 = vcombine.low %v799_v16, %v803_v54  ;;  %v7493_v22 = vadd.f32 %v7492_v2, %v16910_v63  ;;  %v22507_v4 = vld [vmem:[#allocation49_spill] sm:$0xff] }
 0x1c2   :  { %8168 = vmatprep.mubr.bf16.mxu0 %v22504_v20  ;;  %v663_v42 = vld [vmem:[%s22020_s1 + $0x1008] sm:$0xff]  ;;  %v7601_v20 = vpop.f32.mrf.mxu1 }
 0x1c3   :  { %v667_v53 = vld [vmem:[%s22020_s1 + $0x1028] sm:$0xff]  ;;  %8457 = vmatprep.subr.bf16.mxu1 %v13636_v10  ;;  %8169 = vmatmul.mubr.bf16.gmra.mxu0 %v22506_v28  ;;  %v17226_v54 = vadd.f32 %v7601_v20, %v7489_v59  ;;  %v7494_v10 = vpop.f32.mrf.mxu0 }
 0x1c4   :  { %v791_v61 = vld [vmem:[%s22020_s1 + $0x1408] sm:$0xff]  ;;  %v13500_v14 = vcombine.high %v663_v42, %v667_v53  ;;  %v7605_v38 = vpop.f32.mrf.mxu1  ;;  %8282 = vmatmul.mubr.bf16.gmra.mxu1 %v22507_v4  ;;  %8345 = vmatpush1.bf16.msra.mxu0 %v13507_v8  ;;  %v13499_v57 = vcombine.low %v663_v42, %v667_v53  ;;  %v7495_v56 = vadd.f32 %v7494_v10, %v16927_v19 }
 0x1c5   :  { %v795_v3 = vld [vmem:[%s22020_s1 + $0x1428] sm:$0xff]  ;;  %8458 = vmatpush1.bf16.msra.mxu1 %v13635_v52  ;;  %v17230_v18 = vadd.f32 %v7605_v38, %v7493_v22  ;;  %v7496_v53 = vpop.f32.mrf.mxu0 }
 0x1c6   :  { %v13628_v15 = vcombine.high %v791_v61, %v795_v3  ;;  %v783_v47 = vld [vmem:[%s22020_s1 + $0x13c8] sm:$0xff]  ;;  %8346 = vmatprep.subr.bf16.mxu0 %v13500_v14  ;;  %v13627_v62 = vcombine.low %v791_v61, %v795_v3  ;;  %v7607_v28 = vpop.f32.mrf.mxu1  ;;  %v22509_v61 = vld [vmem:[#allocation51_spill] sm:$0xff]  ;;  %v7497_v8 = vadd.f32 %v7496_v53, %v16930_v32 }
 0x1c7   :  { %v787_v34 = vld [vmem:[%s22020_s1 + $0x13e8] sm:$0xff]  ;;  %8291 = vmatprep.mubr.bf16.mxu1 %v22509_v61  ;;  %v17247_v3 = vadd.f32 %v7607_v28, %v7495_v56  ;;  %v7498_v2 = vpop.f32.mrf.mxu0 }
 0x1c8   :  { %v911_v16 = vld [vmem:[%s22020_s1 + $0x17c8] sm:$0xff]  ;;  %v13620_v23 = vcombine.high %v783_v47, %v787_v34  ;;  %8459 = vmatprep.subr.bf16.mxu1 %v13628_v15  ;;  %v7609_v52 = vpop.f32.mrf.mxu1  ;;  %8347 = vmatpush1.bf16.msra.mxu0 %v13499_v57  ;;  %v13619_v14 = vcombine.low %v783_v47, %v787_v34  ;;  %v7499_v61 = vadd.f32 %v7498_v2, %v16946_v1  ;;  %v22510_v34 = vld [vmem:[#allocation52_spill] sm:$0xff] }
 0x1c9   :  { %v915_v6 = vld [vmem:[%s22020_s1 + $0x17e8] sm:$0xff]  ;;  %8460 = vmatpush1.bf16.msra.mxu1 %v13627_v62  ;;  %v17250_v10 = vadd.f32 %v7609_v52, %v7497_v8  ;;  %v7502_v47 = vpop.f32.mrf.mxu0 }
 0x1ca   :  { %v22508_v20 = vld [vmem:[#allocation50_spill] sm:$0xff]  ;;  %v13748_v59 = vcombine.high %v911_v16, %v915_v6  ;;  %8348 = vmatprep.subr.bf16.mxu0 %v13620_v23  ;;  %v13747_v22 = vcombine.low %v911_v16, %v915_v6  ;;  %v7503_v57 = vadd.f32 %v7502_v47, %v16950_v55  ;;  %v22511_v23 = vld [vmem:[#allocation53_spill] sm:$0xff] }
 0x1cb   :  { %8178 = vmatprep.mubr.bf16.mxu0 %v22508_v20  ;;  %v775_v63 = vld [vmem:[%s22020_s1 + $0x1388] sm:$0xff]  ;;  %v7611_v20 = vpop.f32.mrf.mxu1 }
 0x1cc   :  { %v779_v42 = vld [vmem:[%s22020_s1 + $0x13a8] sm:$0xff]  ;;  %8461 = vmatprep.subr.bf16.mxu1 %v13748_v59  ;;  %8179 = vmatmul.mubr.bf16.gmra.mxu0 %v22510_v34  ;;  %v17266_v6 = vadd.f32 %v7611_v20, %v7499_v61  ;;  %v7504_v59 = vpop.f32.mrf.mxu0 }
 0x1cd   :  { %v903_v19 = vld [vmem:[%s22020_s1 + $0x1788] sm:$0xff]  ;;  %v13612_v38 = vcombine.high %v775_v63, %v779_v42  ;;  %v7615_v62 = vpop.f32.mrf.mxu1  ;;  %8292 = vmatmul.mubr.bf16.gmra.mxu1 %v22511_v23  ;;  %8349 = vmatpush2.bf16.msra.mxu0 %v13619_v14  ;;  %v13611_v56 = vcombine.low %v775_v63, %v779_v42  ;;  %v7505_v2 = vadd.f32 %v7504_v59, %v16967_v58 }
 0x1ce   :  { %v907_v15 = vld [vmem:[%s22020_s1 + $0x17a8] sm:$0xff]  ;;  %8462 = vmatpush2.bf16.msra.mxu1 %v13747_v22  ;;  %v17270_v52 = vadd.f32 %v7615_v62, %v7503_v57  ;;  %v7506_v42 = vpop.f32.mrf.mxu0 }
 0x1cf   :  { %v13740_v4 = vcombine.high %v903_v19, %v907_v15  ;;  %v767_v28 = vld [vmem:[%s22020_s1 + $0x1348] sm:$0xff]  ;;  %8350 = vmatprep.subr.bf16.mxu0 %v13612_v38  ;;  %v13739_v53 = vcombine.low %v903_v19, %v907_v15  ;;  %v7617_v34 = vpop.f32.mrf.mxu1  ;;  %v22513_v19 = vld [vmem:[#allocation55_spill] sm:$0xff]  ;;  %v7507_v14 = vadd.f32 %v7506_v42, %v16970_v33 }
 0x1d0   :  { %v771_v32 = vld [vmem:[%s22020_s1 + $0x1368] sm:$0xff]  ;;  %8301 = vmatprep.mubr.bf16.mxu1 %v22513_v19  ;;  %v17287_v15 = vadd.f32 %v7617_v34, %v7505_v2  ;;  %v7508_v47 = vpop.f32.mrf.mxu0 }
 0x1d1   :  { %v895_v16 = vld [vmem:[%s22020_s1 + $0x1748] sm:$0xff]  ;;  %v13604_v8 = vcombine.high %v767_v28, %v771_v32  ;;  %8463 = vmatprep.subr.bf16.mxu1 %v13740_v4  ;;  %v7619_v22 = vpop.f32.mrf.mxu1  ;;  %8351 = vmatpush2.bf16.msra.mxu0 %v13611_v56  ;;  %v13603_v38 = vcombine.low %v767_v28, %v771_v32  ;;  %v7509_v19 = vadd.f32 %v7508_v47, %v16986_v0  ;;  %v22514_v32 = vld [vmem:[#allocation56_spill] sm:$0xff] }
 0x1d2   :  { %v899_v1 = vld [vmem:[%s22020_s1 + $0x1768] sm:$0xff]  ;;  %8464 = vmatpush2.bf16.msra.mxu1 %v13739_v53  ;;  %v17290_v59 = vadd.f32 %v7619_v22, %v7507_v14  ;;  %v7512_v28 = vpop.f32.mrf.mxu0 }
 0x1d3   :  { %v22512_v20 = vld [vmem:[#allocation54_spill] sm:$0xff]  ;;  %v13732_v61 = vcombine.high %v895_v16, %v899_v1  ;;  %8352 = vmatprep.subr.bf16.mxu0 %v13604_v8  ;;  %v13731_v57 = vcombine.low %v895_v16, %v899_v1  ;;  %v7513_v56 = vadd.f32 %v7512_v28, %v16990_v50  ;;  %v22515_v8 = vld [vmem:[#allocation57_spill] sm:$0xff] }
 0x1d4   :  { %8188 = vmatprep.mubr.bf16.mxu0 %v22512_v20  ;;  %v759_v55 = vld [vmem:[%s22020_s1 + $0x1308] sm:$0xff]  ;;  %v7621_v20 = vpop.f32.mrf.mxu1 }
 0x1d5   :  { %v763_v63 = vld [vmem:[%s22020_s1 + $0x1328] sm:$0xff]  ;;  %8465 = vmatprep.subr.bf16.mxu1 %v13732_v61  ;;  %8189 = vmatmul.mubr.bf16.gmra.mxu0 %v22514_v32  ;;  %v17306_v1 = vadd.f32 %v7621_v20, %v7509_v19  ;;  %v7514_v61 = vpop.f32.mrf.mxu0 }
 0x1d6   :  { %v887_v58 = vld [vmem:[%s22020_s1 + $0x1708] sm:$0xff]  ;;  %v13596_v62 = vcombine.high %v759_v55, %v763_v63  ;;  %v7625_v53 = vpop.f32.mrf.mxu1  ;;  %8302 = vmatmul.mubr.bf16.gmra.mxu1 %v22515_v8  ;;  %8353 = vmatpush2.bf16.msra.mxu0 %v13603_v38  ;;  %v13595_v2 = vcombine.low %v759_v55, %v763_v63  ;;  %v7515_v47 = vadd.f32 %v7514_v61, %v17007_v39 }
 0x1d7   :  { %v891_v4 = vld [vmem:[%s22020_s1 + $0x1728] sm:$0xff]  ;;  %8466 = vmatpush2.bf16.msra.mxu1 %v13731_v57  ;;  %v17310_v22 = vadd.f32 %v7625_v53, %v7513_v56  ;;  %v7516_v63 = vpop.f32.mrf.mxu0 }
 0x1d8   :  { %v13724_v23 = vcombine.high %v887_v58, %v891_v4  ;;  %v751_v34 = vld [vmem:[%s22020_s1 + $0x12c8] sm:$0xff]  ;;  %8354 = vmatprep.subr.bf16.mxu0 %v13596_v62  ;;  %v13723_v42 = vcombine.low %v887_v58, %v891_v4  ;;  %v7627_v32 = vpop.f32.mrf.mxu1  ;;  %v22517_v58 = vld [vmem:[#allocation59_spill] sm:$0xff]  ;;  %v7517_v38 = vadd.f32 %v7516_v63, %v17010_v37 }
 0x1d9   :  { %v755_v33 = vld [vmem:[%s22020_s1 + $0x12e8] sm:$0xff]  ;;  %8311 = vmatprep.mubr.bf16.mxu1 %v22517_v58  ;;  %v17327_v4 = vadd.f32 %v7627_v32, %v7515_v47  ;;  %v7518_v28 = vpop.f32.mrf.mxu0 }
 0x1da   :  { %v879_v16 = vld [vmem:[%s22020_s1 + $0x16c8] sm:$0xff]  ;;  %v13588_v14 = vcombine.high %v751_v34, %v755_v33  ;;  %8467 = vmatprep.subr.bf16.mxu1 %v13724_v23  ;;  %v7629_v57 = vpop.f32.mrf.mxu1  ;;  %8355 = vmatpush2.bf16.msra.mxu0 %v13595_v2  ;;  %v13587_v62 = vcombine.low %v751_v34, %v755_v33  ;;  %v7519_v58 = vadd.f32 %v7518_v28, %v17026_v26  ;;  %v22518_v33 = vld [vmem:[#allocation60_spill] sm:$0xff] }
 0x1db   :  { %v883_v0 = vld [vmem:[%s22020_s1 + $0x16e8] sm:$0xff]  ;;  %8468 = vmatpush2.bf16.msra.mxu1 %v13723_v42  ;;  %v17330_v61 = vadd.f32 %v7629_v57, %v7517_v38  ;;  %v7522_v34 = vpop.f32.mrf.mxu0 }
 0x1dc   :  { %v22516_v20 = vld [vmem:[#allocation58_spill] sm:$0xff]  ;;  %v13716_v19 = vcombine.high %v879_v16, %v883_v0  ;;  %8356 = vmatprep.subr.bf16.mxu0 %v13588_v14  ;;  %v13715_v56 = vcombine.low %v879_v16, %v883_v0  ;;  %v7523_v2 = vadd.f32 %v7522_v34, %v17030_v43  ;;  %v22519_v14 = vld [vmem:[#allocation61_spill] sm:$0xff] }
 0x1dd   :  { %8198 = vmatprep.mubr.bf16.mxu0 %v22516_v20  ;;  %v743_v50 = vld [vmem:[%s22020_s1 + $0x1288] sm:$0xff]  ;;  %v7631_v20 = vpop.f32.mrf.mxu1 }
 0x1de   :  { %v747_v55 = vld [vmem:[%s22020_s1 + $0x12a8] sm:$0xff]  ;;  %8469 = vmatprep.subr.bf16.mxu1 %v13716_v19  ;;  %8199 = vmatmul.mubr.bf16.gmra.mxu0 %v22518_v33  ;;  %v17346_v0 = vadd.f32 %v7631_v20, %v7519_v58  ;;  %v7524_v19 = vpop.f32.mrf.mxu0 }
 0x1df   :  { %v871_v39 = vld [vmem:[%s22020_s1 + $0x1688] sm:$0xff]  ;;  %v13580_v53 = vcombine.high %v743_v50, %v747_v55  ;;  %v7635_v42 = vpop.f32.mrf.mxu1  ;;  %8312 = vmatmul.mubr.bf16.gmra.mxu1 %v22519_v14  ;;  %8357 = vmatpush2.bf16.msra.mxu0 %v13587_v62  ;;  %v13579_v47 = vcombine.low %v743_v50, %v747_v55  ;;  %v7525_v28 = vadd.f32 %v7524_v19, %v17047_v7 }
 0x1e0   :  { %v875_v23 = vld [vmem:[%s22020_s1 + $0x16a8] sm:$0xff]  ;;  %8470 = vmatpush2.bf16.msra.mxu1 %v13715_v56  ;;  %v17350_v57 = vadd.f32 %v7635_v42, %v7523_v2  ;;  %v7526_v55 = vpop.f32.mrf.mxu0 }
 0x1e1   :  { %v13708_v8 = vcombine.high %v871_v39, %v875_v23  ;;  %v735_v32 = vld [vmem:[%s22020_s1 + $0x1248] sm:$0xff]  ;;  %8358 = vmatprep.subr.bf16.mxu0 %v13580_v53  ;;  %v13707_v63 = vcombine.low %v871_v39, %v875_v23  ;;  %v7637_v33 = vpop.f32.mrf.mxu1  ;;  %v22521_v39 = vld [vmem:[#allocation63_spill] sm:$0xff]  ;;  %v7527_v62 = vadd.f32 %v7526_v55, %v17050_v17 }
 0x1e2   :  { %v739_v37 = vld [vmem:[%s22020_s1 + $0x1268] sm:$0xff]  ;;  %8321 = vmatprep.mubr.bf16.mxu1 %v22521_v39  ;;  %v17367_v23 = vadd.f32 %v7637_v33, %v7525_v28  ;;  %v7528_v34 = vpop.f32.mrf.mxu0 }
 0x1e3   :  { %v863_v16 = vld [vmem:[%s22020_s1 + $0x1648] sm:$0xff]  ;;  %v13572_v38 = vcombine.high %v735_v32, %v739_v37  ;;  %8471 = vmatprep.subr.bf16.mxu1 %v13708_v8  ;;  %v7639_v56 = vpop.f32.mrf.mxu1  ;;  %8359 = vmatpush2.bf16.msra.mxu0 %v13579_v47  ;;  %v13571_v53 = vcombine.low %v735_v32, %v739_v37  ;;  %v7529_v39 = vadd.f32 %v7528_v34, %v17066_v48  ;;  %v22522_v37 = vld [vmem:[#allocation64_spill] sm:$0xff] }
 0x1e4   :  { %v867_v26 = vld [vmem:[%s22020_s1 + $0x1668] sm:$0xff]  ;;  %8472 = vmatpush2.bf16.msra.mxu1 %v13707_v63  ;;  %v17370_v19 = vadd.f32 %v7639_v56, %v7527_v62  ;;  %v7532_v32 = vpop.f32.mrf.mxu0 }
 0x1e5   :  { %v22520_v20 = vld [vmem:[#allocation62_spill] sm:$0xff]  ;;  %v13700_v58 = vcombine.high %v863_v16, %v867_v26  ;;  %8360 = vmatprep.subr.bf16.mxu0 %v13572_v38  ;;  %v13699_v2 = vcombine.low %v863_v16, %v867_v26  ;;  %v7533_v47 = vadd.f32 %v7532_v32, %v17070_v35  ;;  %v22523_v38 = vld [vmem:[#allocation65_spill] sm:$0xff] }
 0x1e6   :  { %8208 = vmatprep.mubr.bf16.mxu0 %v22520_v20  ;;  %v727_v43 = vld [vmem:[%s22020_s1 + $0x1208] sm:$0xff]  ;;  %v7641_v20 = vpop.f32.mrf.mxu1 }
 0x1e7   :  { %v731_v50 = vld [vmem:[%s22020_s1 + $0x1228] sm:$0xff]  ;;  %8473 = vmatprep.subr.bf16.mxu1 %v13700_v58  ;;  %8209 = vmatmul.mubr.bf16.gmra.mxu0 %v22522_v37  ;;  %v17386_v26 = vadd.f32 %v7641_v20, %v7529_v39  ;;  %v7534_v58 = vpop.f32.mrf.mxu0 }
 0x1e8   :  { %v855_v7 = vld [vmem:[%s22020_s1 + $0x1608] sm:$0xff]  ;;  %v13564_v42 = vcombine.high %v727_v43, %v731_v50  ;;  %v7645_v63 = vpop.f32.mrf.mxu1  ;;  %8322 = vmatmul.mubr.bf16.gmra.mxu1 %v22523_v38  ;;  %8361 = vmatpush2.bf16.msra.mxu0 %v13571_v53  ;;  %v13563_v28 = vcombine.low %v727_v43, %v731_v50  ;;  %v7535_v34 = vadd.f32 %v7534_v58, %v17087_v45 }
 0x1e9   :  { %v859_v8 = vld [vmem:[%s22020_s1 + $0x1628] sm:$0xff]  ;;  %8474 = vmatpush2.bf16.msra.mxu1 %v13699_v2  ;;  %v17390_v56 = vadd.f32 %v7645_v63, %v7533_v47  ;;  %v7536_v50 = vpop.f32.mrf.mxu0 }
 0x1ea   :  { %v13692_v14 = vcombine.high %v855_v7, %v859_v8  ;;  %v975_v33 = vld [vmem:[%s22020_s1 + $0x19c8] sm:$0xff]  ;;  %8362 = vmatprep.subr.bf16.mxu0 %v13564_v42  ;;  %v13691_v55 = vcombine.low %v855_v7, %v859_v8  ;;  %v7647_v37 = vpop.f32.mrf.mxu1  ;;  %v22525_v7 = vld [vmem:[#allocation67_spill] sm:$0xff]  ;;  %v7537_v53 = vadd.f32 %v7536_v50, %v17090_v11 }
 0x1eb   :  { %v979_v17 = vld [vmem:[%s22020_s1 + $0x19e8] sm:$0xff]  ;;  %8477 = vmatprep.mubr.bf16.mxu1 %v22525_v7  ;;  %v17407_v8 = vadd.f32 %v7647_v37, %v7535_v34  ;;  %v7538_v32 = vpop.f32.mrf.mxu0 }
 0x1ec   :  { %v1103_v16 = vld [vmem:[%s22020_s1 + $0x1dc8] sm:$0xff]  ;;  %v13812_v62 = vcombine.high %v975_v33, %v979_v17  ;;  %8475 = vmatprep.subr.bf16.mxu1 %v13692_v14  ;;  %v7649_v2 = vpop.f32.mrf.mxu1  ;;  %8363 = vmatpush2.bf16.msra.mxu0 %v13563_v28  ;;  %v13811_v42 = vcombine.low %v975_v33, %v979_v17  ;;  %v7539_v7 = vadd.f32 %v7538_v32, %v17106_v12  ;;  %v22526_v17 = vld [vmem:[#allocation68_spill] sm:$0xff] }
 0x1ed   :  { %v1107_v48 = vld [vmem:[%s22020_s1 + $0x1de8] sm:$0xff]  ;;  %8476 = vmatpush2.bf16.msra.mxu1 %v13691_v55  ;;  %v17410_v58 = vadd.f32 %v7649_v2, %v7537_v53  ;;  %v7688_v33 = vpop.f32.mrf.mxu0 }
 0x1ee   :  { %v22524_v20 = vld [vmem:[#allocation66_spill] sm:$0xff]  ;;  %v13940_v39 = vcombine.high %v1103_v16, %v1107_v48  ;;  %8558 = vmatprep.subr.bf16.mxu0 %v13812_v62  ;;  %v13939_v47 = vcombine.low %v1103_v16, %v1107_v48  ;;  %v7689_v28 = vadd.f32 %v7688_v33, %v17110_v49  ;;  %v22527_v62 = vld [vmem:[#allocation69_spill] sm:$0xff] }
 0x1ef   :  { %8364 = vmatprep.mubr.bf16.mxu0 %v22524_v20  ;;  %v967_v35 = vld [vmem:[%s22020_s1 + $0x1988] sm:$0xff]  ;;  %v7651_v20 = vpop.f32.mrf.mxu1 }
 0x1f0   :  { %v971_v43 = vld [vmem:[%s22020_s1 + $0x19a8] sm:$0xff]  ;;  %8671 = vmatprep.subr.bf16.mxu1 %v13940_v39  ;;  %8365 = vmatmul.mubr.bf16.vlgmr.msra.gmra.mxu0 %v22526_v17  ;;  %v17426_v48 = vadd.f32 %v7651_v20, %v7539_v7  ;;  %v7690_v39 = vpop.f32.mrf.mxu0  ;;  %v22529_v7 = vld [vmem:[#allocation71_spill] sm:$0xff] }
 0x1f1   :  { %v1095_v45 = vld [vmem:[%s22020_s1 + $0x1d88] sm:$0xff]  ;;  %v13804_v63 = vcombine.high %v967_v35, %v971_v43  ;;  %v7801_v55 = vpop.f32.mrf.mxu1  ;;  %8478 = vmatmul.mubr.bf16.vlgmr.msra.gmra.mxu1 %v22527_v62  ;;  %8559 = vmatpush1.bf16.msra.mxu0 %v13811_v42  ;;  %v13803_v34 = vcombine.low %v967_v35, %v971_v43  ;;  %v7691_v32 = vadd.f32 %v7690_v39, %v17127_v24 }
 0x1f2   :  { %v1099_v14 = vld [vmem:[%s22020_s1 + $0x1da8] sm:$0xff]  ;;  %8672 = vmatpush1.bf16.msra.mxu1 %v13939_v47  ;;  %v7802_v2 = vadd.f32 %v7801_v55, %v7689_v28  ;;  %v7692_v43 = vpop.f32.mrf.mxu0  ;;  %8487 = vmatprep.mubr.bf16.mxu1 %v22529_v7 }
 0x1f3   :  { %v13932_v38 = vcombine.high %v1095_v45, %v1099_v14  ;;  %v959_v37 = vld [vmem:[%s22020_s1 + $0x1948] sm:$0xff]  ;;  %8560 = vmatprep.subr.bf16.mxu0 %v13804_v63  ;;  %v13931_v50 = vcombine.low %v1095_v45, %v1099_v14  ;;  %v7803_v17 = vpop.f32.mrf.mxu1  ;;  %v7693_v14 = vadd.f32 %v7692_v43, %v17130_v60 }
 0x1f4   :  { %v963_v11 = vld [vmem:[%s22020_s1 + $0x1968] sm:$0xff]  ;;  %v7804_v45 = vadd.f32 %v7803_v17, %v7691_v32  ;;  %v7694_v63 = vpop.f32.mrf.mxu0 }
 0x1f5   :  { %v1087_v16 = vld [vmem:[%s22020_s1 + $0x1d48] sm:$0xff]  ;;  %v13796_v53 = vcombine.high %v959_v37, %v963_v11  ;;  %8673 = vmatprep.subr.bf16.mxu1 %v13932_v38  ;;  %v7805_v42 = vpop.f32.mrf.mxu1  ;;  %8561 = vmatpush1.bf16.msra.mxu0 %v13803_v34  ;;  %v13795_v47 = vcombine.low %v959_v37, %v963_v11  ;;  %v7695_v7 = vadd.f32 %v7694_v63, %v17146_v44 }
 0x1f6   :  { %v1091_v12 = vld [vmem:[%s22020_s1 + $0x1d68] sm:$0xff]  ;;  %8674 = vmatpush1.bf16.msra.mxu1 %v13931_v50  ;;  %v7806_v39 = vadd.f32 %v7805_v42, %v7693_v14 }
 0x1f7   :  { %v22528_v41 = vld [vmem:[#allocation70_spill] sm:$0xff]  ;;  %v13924_v20 = vcombine.high %v1087_v16, %v1091_v12  ;;  %8562 = vmatprep.subr.bf16.mxu0 %v13796_v53  ;;  %v13923_v33 = vcombine.low %v1087_v16, %v1091_v12  ;;  %v7698_v16 = vpop.f32.mrf.mxu0  ;;  %v22530_v12 = vld [vmem:[#allocation72_spill] sm:$0xff] }
 0x1f8   :  { %8374 = vmatprep.mubr.bf16.mxu0 %v22528_v41  ;;  %v951_v49 = vld [vmem:[%s22020_s1 + $0x1908] sm:$0xff]  ;;  %v7807_v41 = vpop.f32.mrf.mxu1  ;;  %v17462_v44 = vpack.c.bf16 %v7806_v39, %v7802_v2  ;;  %v7699_v53 = vadd.f32 %v7698_v16, %v17150_v27 }
 0x1f9   :  { %v955_v35 = vld [vmem:[%s22020_s1 + $0x1928] sm:$0xff]  ;;  %8675 = vmatprep.subr.bf16.mxu1 %v13924_v20  ;;  %8375 = vmatmul.mubr.bf16.gmra.mxu0 %v22530_v12  ;;  %v7808_v50 = vadd.f32 %v7807_v41, %v7695_v7  ;;  %v22532_v20 = vld [vmem:[#allocation73_spill] sm:$0xff]  ;;  %v7700_v43 = vpop.f32.mrf.mxu0 }
 0x1fa   :  { %v1079_v24 = vld [vmem:[%s22020_s1 + $0x1d08] sm:$0xff]  ;;  %v13788_v28 = vcombine.high %v951_v49, %v955_v35  ;;  %v13787_v34 = vcombine.low %v951_v49, %v955_v35  ;;  %22531 = vst [vmem:[#allocation119_spill] sm:$0xff] %v17462_v44  ;;  %v7811_v32 = vpop.f32.mrf.mxu1  ;;  %8488 = vmatmul.mubr.bf16.gmra.mxu1 %v22532_v20  ;;  %8563 = vmatpush1.bf16.msra.mxu0 %v13795_v47 }
 0x1fb   :  { %v1083_v38 = vld [vmem:[%s22020_s1 + $0x1d28] sm:$0xff]  ;;  %8676 = vmatpush1.bf16.msra.mxu1 %v13923_v33  ;;  %v17467_v62 = vpack.c.bf16 %v7808_v50, %v7804_v45  ;;  %v7812_v12 = vadd.f32 %v7811_v32, %v7699_v53  ;;  %v7701_v2 = vadd.f32 %v7700_v43, %v17167_v9  ;;  %v7702_v7 = vpop.f32.mrf.mxu0 }
 0x1fc   :  { %v17449_v55 = vld [vmem:[%s22020_s1 + $0x18c8] sm:$0xff]  ;;  %v13916_v17 = vcombine.high %v1079_v24, %v1083_v38  ;;  %8564 = vmatprep.subr.bf16.mxu0 %v13788_v28  ;;  %v13915_v14 = vcombine.low %v1079_v24, %v1083_v38  ;;  %v7813_v49 = vpop.f32.mrf.mxu1  ;;  %v22535_v24 = vld [vmem:[#allocation75_spill] sm:$0xff]  ;;  %v7703_v47 = vadd.f32 %v7702_v7, %v17170_v46 }
 0x1fd   :  { %v947_v60 = vld [vmem:[%s22020_s1 + $0x18e8] sm:$0xff]  ;;  %22533 = vst [vmem:[#allocation122_spill] sm:$0xff] %v17467_v62  ;;  %8497 = vmatprep.mubr.bf16.mxu1 %v22535_v24  ;;  %v7814_v45 = vadd.f32 %v7813_v49, %v7701_v2  ;;  %v7704_v39 = vpop.f32.mrf.mxu0  ;;  %v22538_v49 = vld [vmem:[#allocation77_spill] sm:$0xff] }
 0x1fe   :  { %v1071_v37 = vld [vmem:[%s22020_s1 + $0x1cc8] sm:$0xff]  ;;  %v13780_v42 = vcombine.high %v17449_v55, %v947_v60  ;;  %8677 = vmatprep.subr.bf16.mxu1 %v13916_v17  ;;  %v7815_v33 = vpop.f32.mrf.mxu1  ;;  %8565 = vmatpush1.bf16.msra.mxu0 %v13787_v34  ;;  %v13779_v28 = vcombine.low %v17449_v55, %v947_v60  ;;  %v7705_v32 = vadd.f32 %v7704_v39, %v17186_v29  ;;  %v22536_v34 = vld [vmem:[#allocation76_spill] sm:$0xff] }
 0x1ff   :  { %v1075_v11 = vld [vmem:[%s22020_s1 + $0x1ce8] sm:$0xff]  ;;  %8678 = vmatpush1.bf16.msra.mxu1 %v13915_v14  ;;  %v7816_v53 = vadd.f32 %v7815_v33, %v7703_v47 }
 0x200   :  { %v13908_v63 = vcombine.high %v1071_v37, %v1075_v11  ;;  %v22534_v41 = vld [vmem:[#allocation74_spill] sm:$0xff]  ;;  %8566 = vmatprep.subr.bf16.mxu0 %v13780_v42  ;;  %v13907_v17 = vcombine.low %v1071_v37, %v1075_v11  ;;  %v7817_v43 = vpop.f32.mrf.mxu1  ;;  %v7708_v11 = vpop.f32.mrf.mxu0 }
 0x201   :  { %8384 = vmatprep.mubr.bf16.mxu0 %v22534_v41  ;;  %v935_v27 = vld [vmem:[%s22020_s1 + $0x1888] sm:$0xff]  ;;  %v17502_v29 = vpack.c.bf16 %v7816_v53, %v7812_v12  ;;  %v7818_v42 = vadd.f32 %v7817_v43, %v7705_v32 }
 0x202   :  { %v939_v35 = vld [vmem:[%s22020_s1 + $0x18a8] sm:$0xff]  ;;  %8679 = vmatprep.subr.bf16.mxu1 %v13908_v63  ;;  %8385 = vmatmul.mubr.bf16.gmra.mxu0 %v22536_v34  ;;  %v7709_v63 = vadd.f32 %v7708_v11, %v17190_v51  ;;  %v7821_v2 = vpop.f32.mrf.mxu1  ;;  %v7710_v7 = vpop.f32.mrf.mxu0 }
 0x203   :  { %v1063_v38 = vld [vmem:[%s22020_s1 + $0x1c88] sm:$0xff]  ;;  %v13772_v16 = vcombine.high %v935_v27, %v939_v35  ;;  %v13771_v14 = vcombine.low %v935_v27, %v939_v35  ;;  %22537 = vst [vmem:[#allocation123_spill] sm:$0xff] %v17502_v29  ;;  %8498 = vmatmul.mubr.bf16.gmra.mxu1 %v22538_v49  ;;  %8567 = vmatpush1.bf16.msra.mxu0 %v13779_v28  ;;  %v22541_v28 = vld [vmem:[#allocation79_spill] sm:$0xff] }
 0x204   :  { %v1067_v9 = vld [vmem:[%s22020_s1 + $0x1ca8] sm:$0xff]  ;;  %8680 = vmatpush1.bf16.msra.mxu1 %v13907_v17  ;;  %v17507_v44 = vpack.c.bf16 %v7818_v42, %v7814_v45  ;;  %v7822_v62 = vadd.f32 %v7821_v2, %v7709_v63  ;;  %v7711_v12 = vadd.f32 %v7710_v7, %v17207_v5  ;;  %v7823_v27 = vpop.f32.mrf.mxu1  ;;  %8507 = vmatprep.mubr.bf16.mxu1 %v22541_v28 }
 0x205   :  { %v17489_v50 = vld [vmem:[%s22020_s1 + $0x1848] sm:$0xff]  ;;  %v13900_v46 = vcombine.high %v1063_v38, %v1067_v9  ;;  %8568 = vmatprep.subr.bf16.mxu0 %v13772_v16  ;;  %v13899_v47 = vcombine.low %v1063_v38, %v1067_v9  ;;  %v7712_v9 = vpop.f32.mrf.mxu0 }
 0x206   :  { %v931_v55 = vld [vmem:[%s22020_s1 + $0x1868] sm:$0xff]  ;;  %22539 = vst [vmem:[#allocation125_spill] sm:$0xff] %v17507_v44  ;;  %v7824_v17 = vadd.f32 %v7823_v27, %v7711_v12  ;;  %v7713_v16 = vadd.f32 %v7712_v9, %v17210_v13  ;;  %v7825_v53 = vpop.f32.mrf.mxu1  ;;  %v22544_v27 = vld [vmem:[#allocation81_spill] sm:$0xff] }
 0x207   :  { %v1055_v60 = vld [vmem:[%s22020_s1 + $0x1c48] sm:$0xff]  ;;  %v13764_v33 = vcombine.high %v17489_v50, %v931_v55  ;;  %8681 = vmatprep.subr.bf16.mxu1 %v13900_v46  ;;  %8569 = vmatpush1.bf16.msra.mxu0 %v13771_v14  ;;  %v13763_v32 = vcombine.low %v17489_v50, %v931_v55  ;;  %v7714_v43 = vpop.f32.mrf.mxu0  ;;  %v22542_v14 = vld [vmem:[#allocation80_spill] sm:$0xff] }
 0x208   :  { %v1059_v37 = vld [vmem:[%s22020_s1 + $0x1c68] sm:$0xff]  ;;  %8682 = vmatpush1.bf16.msra.mxu1 %v13899_v47  ;;  %v7826_v63 = vadd.f32 %v7825_v53, %v7713_v16  ;;  %v7715_v2 = vadd.f32 %v7714_v43, %v17226_v54  ;;  %v7827_v7 = vpop.f32.mrf.mxu1 }
 0x209   :  { %v13892_v39 = vcombine.high %v1055_v60, %v1059_v37  ;;  %v22540_v35 = vld [vmem:[#allocation78_spill] sm:$0xff]  ;;  %8570 = vmatprep.subr.bf16.mxu0 %v13764_v33  ;;  %v13891_v46 = vcombine.low %v1055_v60, %v1059_v37  ;;  %v7718_v37 = vpop.f32.mrf.mxu0 }
 0x20a   :  { %8394 = vmatprep.mubr.bf16.mxu0 %v22540_v35  ;;  %v919_v51 = vld [vmem:[%s22020_s1 + $0x1808] sm:$0xff]  ;;  %v17542_v54 = vpack.c.bf16 %v7826_v63, %v7822_v62  ;;  %v7828_v33 = vadd.f32 %v7827_v7, %v7715_v2  ;;  %v7831_v12 = vpop.f32.mrf.mxu1 }
 0x20b   :  { %v923_v38 = vld [vmem:[%s22020_s1 + $0x1828] sm:$0xff]  ;;  %8683 = vmatprep.subr.bf16.mxu1 %v13892_v39  ;;  %8395 = vmatmul.mubr.bf16.gmra.mxu0 %v22542_v14  ;;  %v7719_v39 = vadd.f32 %v7718_v37, %v17230_v18  ;;  %v7720_v9 = vpop.f32.mrf.mxu0 }
 0x20c   :  { %v1047_v45 = vld [vmem:[%s22020_s1 + $0x1c08] sm:$0xff]  ;;  %v13756_v11 = vcombine.high %v919_v51, %v923_v38  ;;  %v13755_v47 = vcombine.low %v919_v51, %v923_v38  ;;  %22543 = vst [vmem:[#allocation127_spill] sm:$0xff] %v17542_v54  ;;  %8508 = vmatmul.mubr.bf16.gmra.mxu1 %v22544_v27  ;;  %8571 = vmatpush1.bf16.msra.mxu0 %v13763_v32  ;;  %v7833_v51 = vpop.f32.mrf.mxu1  ;;  %v22547_v32 = vld [vmem:[#allocation83_spill] sm:$0xff] }
 0x20d   :  { %v1051_v5 = vld [vmem:[%s22020_s1 + $0x1c28] sm:$0xff]  ;;  %8684 = vmatpush1.bf16.msra.mxu1 %v13891_v46  ;;  %v17547_v29 = vpack.c.bf16 %v7828_v33, %v7824_v17  ;;  %v7832_v44 = vadd.f32 %v7831_v12, %v7719_v39  ;;  %v7721_v62 = vadd.f32 %v7720_v9, %v17247_v3  ;;  %8517 = vmatprep.mubr.bf16.mxu1 %v22547_v32 }
 0x20e   :  { %v17529_v42 = vld [vmem:[%s22020_s1 + $0x1bc8] sm:$0xff]  ;;  %v13884_v13 = vcombine.high %v1047_v45, %v1051_v5  ;;  %8572 = vmatprep.subr.bf16.mxu0 %v13756_v11  ;;  %v13883_v16 = vcombine.low %v1047_v45, %v1051_v5  ;;  %v7722_v5 = vpop.f32.mrf.mxu0  ;;  %v7835_v63 = vpop.f32.mrf.mxu1 }
 0x20f   :  { %v1043_v50 = vld [vmem:[%s22020_s1 + $0x1be8] sm:$0xff]  ;;  %22545 = vst [vmem:[#allocation130_spill] sm:$0xff] %v17547_v29  ;;  %v7834_v46 = vadd.f32 %v7833_v51, %v7721_v62  ;;  %v7723_v11 = vadd.f32 %v7722_v5, %v17250_v10  ;;  %v22550_v51 = vld [vmem:[#allocation85_spill] sm:$0xff] }
 0x210   :  { %v1167_v55 = vld [vmem:[%s22020_s1 + $0x1fc8] sm:$0xff]  ;;  %v13876_v53 = vcombine.high %v17529_v42, %v1043_v50  ;;  %8685 = vmatprep.subr.bf16.mxu1 %v13884_v13  ;;  %8573 = vmatpush1.bf16.msra.mxu0 %v13755_v47  ;;  %v13875_v2 = vcombine.low %v17529_v42, %v1043_v50  ;;  %v7724_v7 = vpop.f32.mrf.mxu0  ;;  %v7837_v9 = vpop.f32.mrf.mxu1  ;;  %v22548_v47 = vld [vmem:[#allocation84_spill] sm:$0xff] }
 0x211   :  { %v1171_v60 = vld [vmem:[%s22020_s1 + $0x1fe8] sm:$0xff]  ;;  %8686 = vmatpush1.bf16.msra.mxu1 %v13883_v16  ;;  %v7836_v39 = vadd.f32 %v7835_v63, %v7723_v11  ;;  %v7725_v12 = vadd.f32 %v7724_v7, %v17266_v6 }
 0x212   :  { %v14004_v43 = vcombine.high %v1167_v55, %v1171_v60  ;;  %v22546_v38 = vld [vmem:[#allocation82_spill] sm:$0xff]  ;;  %8574 = vmatprep.subr.bf16.mxu0 %v13876_v53  ;;  %v14003_v13 = vcombine.low %v1167_v55, %v1171_v60  ;;  %v7728_v60 = vpop.f32.mrf.mxu0  ;;  %v7841_v62 = vpop.f32.mrf.mxu1 }
 0x213   :  { %8404 = vmatprep.mubr.bf16.mxu0 %v22546_v38  ;;  %v1031_v18 = vld [vmem:[%s22020_s1 + $0x1b88] sm:$0xff]  ;;  %v17582_v6 = vpack.c.bf16 %v7836_v39, %v7832_v44  ;;  %v7838_v53 = vadd.f32 %v7837_v9, %v7725_v12 }
 0x214   :  { %v1035_v45 = vld [vmem:[%s22020_s1 + $0x1ba8] sm:$0xff]  ;;  %8687 = vmatprep.subr.bf16.mxu1 %v14004_v43  ;;  %8405 = vmatmul.mubr.bf16.gmra.mxu0 %v22548_v47  ;;  %v7729_v43 = vadd.f32 %v7728_v60, %v17270_v52  ;;  %v7730_v5 = vpop.f32.mrf.mxu0 }
 0x215   :  { %v1159_v17 = vld [vmem:[%s22020_s1 + $0x1f88] sm:$0xff]  ;;  %v13868_v37 = vcombine.high %v1031_v18, %v1035_v45  ;;  %v13867_v16 = vcombine.low %v1031_v18, %v1035_v45  ;;  %22549 = vst [vmem:[#allocation131_spill] sm:$0xff] %v17582_v6  ;;  %8518 = vmatmul.mubr.bf16.gmra.mxu1 %v22550_v51  ;;  %8575 = vmatpush2.bf16.msra.mxu0 %v13875_v2  ;;  %v7843_v18 = vpop.f32.mrf.mxu1  ;;  %v22553_v2 = vld [vmem:[#allocation87_spill] sm:$0xff] }
 0x216   :  { %v1163_v3 = vld [vmem:[%s22020_s1 + $0x1fa8] sm:$0xff]  ;;  %8688 = vmatpush2.bf16.msra.mxu1 %v14003_v13  ;;  %v17587_v54 = vpack.c.bf16 %v7838_v53, %v7834_v46  ;;  %v7842_v29 = vadd.f32 %v7841_v62, %v7729_v43  ;;  %v7731_v44 = vadd.f32 %v7730_v5, %v17287_v15  ;;  %8527 = vmatprep.mubr.bf16.mxu1 %v22553_v2 }
 0x217   :  { %v17569_v33 = vld [vmem:[%s22020_s1 + $0x1b48] sm:$0xff]  ;;  %v13996_v10 = vcombine.high %v1159_v17, %v1163_v3  ;;  %8576 = vmatprep.subr.bf16.mxu0 %v13868_v37  ;;  %v13995_v11 = vcombine.low %v1159_v17, %v1163_v3  ;;  %v7732_v3 = vpop.f32.mrf.mxu0  ;;  %v7845_v39 = vpop.f32.mrf.mxu1 }
 0x218   :  { %v1027_v42 = vld [vmem:[%s22020_s1 + $0x1b68] sm:$0xff]  ;;  %22551 = vst [vmem:[#allocation133_spill] sm:$0xff] %v17587_v54  ;;  %v7844_v13 = vadd.f32 %v7843_v18, %v7731_v44  ;;  %v7733_v37 = vadd.f32 %v7732_v3, %v17290_v59  ;;  %v22556_v18 = vld [vmem:[#allocation89_spill] sm:$0xff] }
 0x219   :  { %v1151_v50 = vld [vmem:[%s22020_s1 + $0x1f48] sm:$0xff]  ;;  %v13860_v63 = vcombine.high %v17569_v33, %v1027_v42  ;;  %8689 = vmatprep.subr.bf16.mxu1 %v13996_v10  ;;  %8577 = vmatpush2.bf16.msra.mxu0 %v13867_v16  ;;  %v13859_v12 = vcombine.low %v17569_v33, %v1027_v42  ;;  %v7734_v9 = vpop.f32.mrf.mxu0  ;;  %v7847_v5 = vpop.f32.mrf.mxu1  ;;  %v22554_v16 = vld [vmem:[#allocation88_spill] sm:$0xff] }
 0x21a   :  { %v1155_v55 = vld [vmem:[%s22020_s1 + $0x1f68] sm:$0xff]  ;;  %8690 = vmatpush2.bf16.msra.mxu1 %v13995_v11  ;;  %v7846_v43 = vadd.f32 %v7845_v39, %v7733_v37  ;;  %v7735_v62 = vadd.f32 %v7734_v9, %v17306_v1 }
 0x21b   :  { %v13988_v7 = vcombine.high %v1151_v50, %v1155_v55  ;;  %v22552_v45 = vld [vmem:[#allocation86_spill] sm:$0xff]  ;;  %8578 = vmatprep.subr.bf16.mxu0 %v13860_v63  ;;  %v13987_v10 = vcombine.low %v1151_v50, %v1155_v55  ;;  %v7738_v55 = vpop.f32.mrf.mxu0  ;;  %v7851_v44 = vpop.f32.mrf.mxu1 }
 0x21c   :  { %8414 = vmatprep.mubr.bf16.mxu0 %v22552_v45  ;;  %v1015_v52 = vld [vmem:[%s22020_s1 + $0x1b08] sm:$0xff]  ;;  %v17622_v1 = vpack.c.bf16 %v7846_v43, %v7842_v29  ;;  %v7848_v63 = vadd.f32 %v7847_v5, %v7735_v62 }
 0x21d   :  { %v1019_v17 = vld [vmem:[%s22020_s1 + $0x1b28] sm:$0xff]  ;;  %8691 = vmatprep.subr.bf16.mxu1 %v13988_v7  ;;  %8415 = vmatmul.mubr.bf16.gmra.mxu0 %v22554_v16  ;;  %v7739_v7 = vadd.f32 %v7738_v55, %v17310_v22  ;;  %v7740_v3 = vpop.f32.mrf.mxu0 }
 0x21e   :  { %v1143_v46 = vld [vmem:[%s22020_s1 + $0x1f08] sm:$0xff]  ;;  %v13852_v60 = vcombine.high %v1015_v52, %v1019_v17  ;;  %v13851_v11 = vcombine.low %v1015_v52, %v1019_v17  ;;  %22555 = vst [vmem:[#allocation135_spill] sm:$0xff] %v17622_v1  ;;  %8528 = vmatmul.mubr.bf16.gmra.mxu1 %v22556_v18  ;;  %8579 = vmatpush2.bf16.msra.mxu0 %v13859_v12  ;;  %v7853_v52 = vpop.f32.mrf.mxu1  ;;  %v22559_v12 = vld [vmem:[#allocation91_spill] sm:$0xff] }
 0x21f   :  { %v1147_v15 = vld [vmem:[%s22020_s1 + $0x1f28] sm:$0xff]  ;;  %8692 = vmatpush2.bf16.msra.mxu1 %v13987_v10  ;;  %v17627_v6 = vpack.c.bf16 %v7848_v63, %v7844_v13  ;;  %v7852_v54 = vadd.f32 %v7851_v44, %v7739_v7  ;;  %v7741_v29 = vadd.f32 %v7740_v3, %v17327_v4  ;;  %8537 = vmatprep.mubr.bf16.mxu1 %v22559_v12 }
 0x220   :  { %v17609_v53 = vld [vmem:[%s22020_s1 + $0x1ac8] sm:$0xff]  ;;  %v13980_v59 = vcombine.high %v1143_v46, %v1147_v15  ;;  %8580 = vmatprep.subr.bf16.mxu0 %v13852_v60  ;;  %v13979_v37 = vcombine.low %v1143_v46, %v1147_v15  ;;  %v7742_v15 = vpop.f32.mrf.mxu0  ;;  %v7855_v43 = vpop.f32.mrf.mxu1 }
 0x221   :  { %v1011_v33 = vld [vmem:[%s22020_s1 + $0x1ae8] sm:$0xff]  ;;  %22557 = vst [vmem:[#allocation73_spill] sm:$0xff] %v17627_v6  ;;  %v7854_v10 = vadd.f32 %v7853_v52, %v7741_v29  ;;  %v7743_v60 = vadd.f32 %v7742_v15, %v17330_v61  ;;  %v22562_v52 = vld [vmem:[#allocation93_spill] sm:$0xff] }
 0x222   :  { %v1135_v42 = vld [vmem:[%s22020_s1 + $0x1ec8] sm:$0xff]  ;;  %v13844_v39 = vcombine.high %v17609_v53, %v1011_v33  ;;  %8693 = vmatprep.subr.bf16.mxu1 %v13980_v59  ;;  %8581 = vmatpush2.bf16.msra.mxu0 %v13851_v11  ;;  %v13843_v62 = vcombine.low %v17609_v53, %v1011_v33  ;;  %v7744_v5 = vpop.f32.mrf.mxu0  ;;  %v7857_v3 = vpop.f32.mrf.mxu1  ;;  %v22560_v11 = vld [vmem:[#allocation92_spill] sm:$0xff] }
 0x223   :  { %v1139_v50 = vld [vmem:[%s22020_s1 + $0x1ee8] sm:$0xff]  ;;  %8694 = vmatpush2.bf16.msra.mxu1 %v13979_v37  ;;  %v7856_v7 = vadd.f32 %v7855_v43, %v7743_v60  ;;  %v7745_v44 = vadd.f32 %v7744_v5, %v17346_v0 }
 0x224   :  { %v13972_v9 = vcombine.high %v1135_v42, %v1139_v50  ;;  %v22558_v17 = vld [vmem:[#allocation90_spill] sm:$0xff]  ;;  %8582 = vmatprep.subr.bf16.mxu0 %v13844_v39  ;;  %v13971_v59 = vcombine.low %v1135_v42, %v1139_v50  ;;  %v7748_v50 = vpop.f32.mrf.mxu0  ;;  %v7861_v29 = vpop.f32.mrf.mxu1 }
 0x225   :  { %8424 = vmatprep.mubr.bf16.mxu0 %v22558_v17  ;;  %v999_v22 = vld [vmem:[%s22020_s1 + $0x1a88] sm:$0xff]  ;;  %v17662_v0 = vpack.c.bf16 %v7856_v7, %v7852_v54  ;;  %v7858_v39 = vadd.f32 %v7857_v3, %v7745_v44 }
 0x226   :  { %v1003_v46 = vld [vmem:[%s22020_s1 + $0x1aa8] sm:$0xff]  ;;  %8695 = vmatprep.subr.bf16.mxu1 %v13972_v9  ;;  %8425 = vmatmul.mubr.bf16.gmra.mxu0 %v22560_v11  ;;  %v7749_v9 = vadd.f32 %v7748_v50, %v17350_v57  ;;  %v7750_v15 = vpop.f32.mrf.mxu0 }
 0x227   :  { %v1127_v13 = vld [vmem:[%s22020_s1 + $0x1e88] sm:$0xff]  ;;  %v13836_v55 = vcombine.high %v999_v22, %v1003_v46  ;;  %v13835_v37 = vcombine.low %v999_v22, %v1003_v46  ;;  %22561 = vst [vmem:[#allocation74_spill] sm:$0xff] %v17662_v0  ;;  %8538 = vmatmul.mubr.bf16.gmra.mxu1 %v22562_v52  ;;  %8583 = vmatpush2.bf16.msra.mxu0 %v13843_v62  ;;  %v7863_v22 = vpop.f32.mrf.mxu1  ;;  %v22565_v62 = vld [vmem:[#allocation95_spill] sm:$0xff] }
 0x228   :  { %v1131_v4 = vld [vmem:[%s22020_s1 + $0x1ea8] sm:$0xff]  ;;  %8696 = vmatpush2.bf16.msra.mxu1 %v13971_v59  ;;  %v17667_v1 = vpack.c.bf16 %v7858_v39, %v7854_v10  ;;  %v7862_v6 = vadd.f32 %v7861_v29, %v7749_v9  ;;  %v7751_v54 = vadd.f32 %v7750_v15, %v17367_v23  ;;  %8547 = vmatprep.mubr.bf16.mxu1 %v22565_v62  ;;  %v17689_v39 = vld [vmem:[%s22020_s1 + $0x1d0] sm:$0xff] }
 0x229   :  { %v17649_v63 = vld [vmem:[%s22020_s1 + $0x1a48] sm:$0xff]  ;;  %v13964_v61 = vcombine.high %v1127_v13, %v1131_v4  ;;  %8584 = vmatprep.subr.bf16.mxu0 %v13836_v55  ;;  %v13963_v60 = vcombine.low %v1127_v13, %v1131_v4  ;;  %v7752_v4 = vpop.f32.mrf.mxu0  ;;  %v7865_v7 = vpop.f32.mrf.mxu1 }
 0x22a   :  { %v995_v53 = vld [vmem:[%s22020_s1 + $0x1a68] sm:$0xff]  ;;  %22563 = vst [vmem:[#allocation75_spill] sm:$0xff] %v17667_v1  ;;  %v7864_v59 = vadd.f32 %v7863_v22, %v7751_v54  ;;  %v7753_v55 = vadd.f32 %v7752_v4, %v17370_v19  ;;  %v22569_v4 = vld [vmem:[#allocation96_spill] sm:$0xff] }
 0x22b   :  { %v1119_v33 = vld [vmem:[%s22020_s1 + $0x1e48] sm:$0xff]  ;;  %v13828_v43 = vcombine.high %v17649_v63, %v995_v53  ;;  %8697 = vmatprep.subr.bf16.mxu1 %v13964_v61  ;;  %8585 = vmatpush2.bf16.msra.mxu0 %v13835_v37  ;;  %v13827_v44 = vcombine.low %v17649_v63, %v995_v53  ;;  %v7754_v3 = vpop.f32.mrf.mxu0  ;;  %v7867_v15 = vpop.f32.mrf.mxu1  ;;  %v212_v63 = vld [vmem:[%s22020_s1 + $0x1f0] sm:$0xff]  ;;  %v22566_v37 = vld [vmem:[#allocation97_spill] sm:$0xff] }
 0x22c   :  { %v1123_v42 = vld [vmem:[%s22020_s1 + $0x1e68] sm:$0xff]  ;;  %8698 = vmatpush2.bf16.msra.mxu1 %v13963_v60  ;;  %v7866_v9 = vadd.f32 %v7865_v7, %v7753_v55  ;;  %v7755_v29 = vadd.f32 %v7754_v3, %v17386_v26  ;;  %v336_v53 = vld [vmem:[%s22020_s1 + $0x5d0] sm:$0xff]  ;;  %v22283_v55 = vsub.s32 2, %v22569_v4  ;;  %v13046_v0 = vcombine.high %v17689_v39, %v212_v63 }
 0x22d   :  { %v13956_v5 = vcombine.high %v1119_v33, %v1123_v42  ;;  %v22564_v46 = vld [vmem:[#allocation94_spill] sm:$0xff]  ;;  %8586 = vmatprep.subr.bf16.mxu0 %v13828_v43  ;;  %v13955_v61 = vcombine.low %v1119_v33, %v1123_v42  ;;  %v340_v33 = vld [vmem:[%s22020_s1 + $0x5f0] sm:$0xff]  ;;  %v7758_v42 = vpop.f32.mrf.mxu0  ;;  %v7871_v54 = vpop.f32.mrf.mxu1 }
 0x22e   :  { %8434 = vmatprep.mubr.bf16.mxu0 %v22564_v46  ;;  %v983_v57 = vld [vmem:[%s22020_s1 + $0x1a08] sm:$0xff]  ;;  %v17702_v26 = vpack.c.bf16 %v7866_v9, %v7862_v6  ;;  %v7868_v43 = vadd.f32 %v7867_v15, %v7755_v29  ;;  %v13174_v1 = vcombine.high %v336_v53, %v340_v33 }
 0x22f   :  { %v987_v13 = vld [vmem:[%s22020_s1 + $0x1a28] sm:$0xff]  ;;  %8699 = vmatprep.subr.bf16.mxu1 %v13956_v5  ;;  %8435 = vmatmul.mubr.bf16.gmra.mxu0 %v22566_v37  ;;  %v7759_v5 = vadd.f32 %v7758_v42, %v17390_v56  ;;  %v7760_v7 = vpop.f32.mrf.mxu0  ;;  %v22571_v56 = vld [vmem:[#allocation99_spill] sm:$0xff] }
 0x230   :  { %v1111_v10 = vld [vmem:[%s22020_s1 + $0x1e08] sm:$0xff]  ;;  %v13820_v50 = vcombine.high %v983_v57, %v987_v13  ;;  %v13819_v60 = vcombine.low %v983_v57, %v987_v13  ;;  %22567 = vst [vmem:[#allocation140_spill] sm:$0xff] %v17702_v26  ;;  %8587 = vmatpush2.bf16.msra.mxu0 %v13827_v44  ;;  %8700 = vmatpush2.bf16.msra.mxu1 %v13955_v61  ;;  %v7873_v13 = vpop.f32.mrf.mxu1  ;;  %v1190_v44 = vsub.s32 3, %v22569_v4  ;;  %v200_v61 = vld [vmem:[%s22020_s1 + $0x190] sm:$0xff] }
 0x231   :  { %v1115_v23 = vld [vmem:[%s22020_s1 + $0x1e28] sm:$0xff]  ;;  %v17708_v37 = vpack.c.bf16 %v7868_v43, %v7864_v59  ;;  %v7872_v6 = vadd.f32 %v7871_v54, %v7759_v5  ;;  %v7761_v57 = vadd.f32 %v7760_v7, %v17407_v8  ;;  %8590 = vmatprep.mubr.bf16.mxu0 %v22571_v56  ;;  %v22572_v59 = vld [vmem:[#allocation100_spill] sm:$0xff]  ;;  %v328_v8 = vld [vmem:[%s22020_s1 + $0x590] sm:$0xff]  ;;  %v13045_v43 = vcombine.low %v17689_v39, %v212_v63 }
 0x232   :  { %v13948_v19 = vcombine.high %v1111_v10, %v1115_v23  ;;  %v22568_v22 = vld [vmem:[#allocation98_spill] sm:$0xff]  ;;  %8588 = vmatprep.subr.bf16.mxu0 %v13820_v50  ;;  %v13947_v3 = vcombine.low %v1111_v10, %v1115_v23  ;;  %v204_v10 = vld [vmem:[%s22020_s1 + $0x1b0] sm:$0xff]  ;;  %v7762_v23 = vpop.f32.mrf.mxu0  ;;  %v7875_v15 = vpop.f32.mrf.mxu1  ;;  %v13173_v54 = vcombine.low %v336_v53, %v340_v33  ;;  %v22573_v33 = vld [vmem:[#allocation101_spill] sm:$0xff] }
 0x233   :  { %8548 = vmatmul.mubr.bf16.gmra.mxu1 %v22568_v22  ;;  %22570 = vst [vmem:[#allocation141_spill] sm:$0xff] %v17708_v37  ;;  %v332_v50 = vld [vmem:[%s22020_s1 + $0x5b0] sm:$0xff]  ;;  %v7874_v9 = vadd.f32 %v7873_v13, %v7761_v57  ;;  %v7763_v29 = vadd.f32 %v7762_v23, %v17410_v58  ;;  %v13038_v7 = vcombine.high %v200_v61, %v204_v10 }
 0x234   :  { %8701 = vmatprep.subr.bf16.mxu1 %v13948_v19  ;;  %8703 = vmatprep.mubr.bf16.mxu1 %v22572_v59  ;;  %v14716_v19 = vld [vmem:[%s22021_s2] sm:$0xff]  ;;  %v7764_v5 = vpop.f32.mrf.mxu0  ;;  %v192_v58 = vld [vmem:[%s22020_s1 + $0x150] sm:$0xff]  ;;  %v7877_v13 = vpop.f32.mrf.mxu1 }
 0x235   :  { %8589 = vmatpush2.bf16.msra.mxu0 %v13819_v60  ;;  %v17732_v42 = vrot.slane %v14716_v19, %v22283_v55  ;;  %8702 = vmatpush2.bf16.msra.mxu1 %v13947_v3  ;;  %v7876_v60 = vadd.f32 %v7875_v15, %v7763_v29  ;;  %v7765_v57 = vadd.f32 %v7764_v5, %v17426_v48  ;;  %v196_v39 = vld [vmem:[%s22020_s1 + $0x170] sm:$0xff]  ;;  %v22575_v15 = vld [vmem:[#allocation102_spill] sm:$0xff] }
 0x236   :  { %8784 = vmatprep.subr.bf16.mxu0 %v13046_v0  ;;  %8897 = vmatprep.subr.bf16.mxu1 %v13174_v1  ;;  %v17739_v23 = vrot.slane %v14716_v19, %v1190_v44  ;;  %v13166_v55 = vcombine.high %v328_v8, %v332_v50  ;;  %v320_v0 = vld [vmem:[%s22020_s1 + $0x550] sm:$0xff]  ;;  %v7914_v53 = vpop.f32.mrf.mxu0  ;;  %v13037_v48 = vcombine.low %v200_v61, %v204_v10  ;;  %v8027_v29 = vpop.f32.mrf.mxu1 }
 0x237   :  { %v324_v63 = vld [vmem:[%s22020_s1 + $0x570] sm:$0xff]  ;;  %v17751_v1 = vpack.c.bf16 %v7876_v60, %v7872_v6  ;;  %v7878_v3 = vadd.f32 %v7877_v13, %v7765_v57  ;;  %v7915_v44 = vadd.f32 %v7914_v53, %v17732_v42  ;;  %v13165_v5 = vcombine.low %v328_v8, %v332_v50 }
 0x238   :  { %8591 = vmatmul.mubr.bf16.vlgmr.msra.gmra.mxu0 %v22573_v33  ;;  %v7916_v19 = vpop.f32.mrf.mxu0  ;;  %v13030_v26 = vcombine.high %v192_v58, %v196_v39  ;;  %v13158_v37 = vcombine.high %v320_v0, %v324_v63  ;;  %v8029_v61 = vpop.f32.mrf.mxu1  ;;  %v22577_v10 = vld [vmem:[#allocation103_spill] sm:$0xff]  ;;  %v13029_v13 = vcombine.low %v192_v58, %v196_v39 }
 0x239   :  { %22574 = vst [vmem:[#allocation142_spill] sm:$0xff] %v17751_v1  ;;  %8785 = vmatpush1.bf16.msra.mxu0 %v13045_v43  ;;  %v17755_v59 = vpack.c.bf16 %v7878_v3, %v7874_v9  ;;  %v17757_v56 = vadd.f32 %v8027_v29, %v7915_v44  ;;  %v7917_v6 = vadd.f32 %v7916_v19, %v17739_v23  ;;  %v184_v43 = vld [vmem:[%s22020_s1 + $0x110] sm:$0xff] }
 0x23a   :  { %8786 = vmatprep.subr.bf16.mxu0 %v13038_v7  ;;  %8600 = vmatprep.mubr.bf16.mxu0 %v22577_v10  ;;  %v188_v8 = vld [vmem:[%s22020_s1 + $0x130] sm:$0xff]  ;;  %v7918_v50 = vpop.f32.mrf.mxu0  ;;  %v8031_v57 = vpop.f32.mrf.mxu1  ;;  %v13157_v3 = vcombine.low %v320_v0, %v324_v63 }
 0x23b   :  { %8704 = vmatmul.mubr.bf16.vlgmr.msra.gmra.mxu1 %v22575_v15  ;;  %22576 = vst [vmem:[#allocation143_spill] sm:$0xff] %v17755_v59  ;;  %v312_v9 = vld [vmem:[%s22020_s1 + $0x510] sm:$0xff]  ;;  %v17774_v7 = vadd.f32 %v8029_v61, %v7917_v6  ;;  %v7919_v60 = vadd.f32 %v7918_v50, %v17732_v42  ;;  %v13022_v44 = vcombine.high %v184_v43, %v188_v8  ;;  %v22580_v61 = vld [vmem:[#allocation106_spill] sm:$0xff] }
 0x23c   :  { %8898 = vmatpush1.bf16.msra.mxu1 %v13173_v54  ;;  %v22578_v54 = vld [vmem:[#allocation104_spill] sm:$0xff]  ;;  %v7920_v53 = vpop.f32.mrf.mxu0  ;;  %v8033_v1 = vpop.f32.mrf.mxu1  ;;  %v176_v6 = vld [vmem:[%s22020_s1 + $0xd0] sm:$0xff]  ;;  %v13021_v50 = vcombine.low %v184_v43, %v188_v8 }
 0x23d   :  { %8899 = vmatprep.subr.bf16.mxu1 %v13166_v55  ;;  %8713 = vmatprep.mubr.bf16.mxu1 %v22578_v54  ;;  %v316_v55 = vld [vmem:[%s22020_s1 + $0x530] sm:$0xff]  ;;  %v17777_v29 = vadd.f32 %v8031_v57, %v7919_v60  ;;  %v7921_v19 = vadd.f32 %v7920_v53, %v17739_v23 }
 0x23e   :  { %8787 = vmatpush1.bf16.msra.mxu0 %v13037_v48  ;;  %v13150_v59 = vcombine.high %v312_v9, %v316_v55  ;;  %v180_v58 = vld [vmem:[%s22020_s1 + $0xf0] sm:$0xff]  ;;  %v7924_v39 = vpop.f32.mrf.mxu0  ;;  %v22579_v48 = vld [vmem:[#allocation105_spill] sm:$0xff]  ;;  %v13149_v57 = vcombine.low %v312_v9, %v316_v55  ;;  %v22582_v9 = vld [vmem:[#allocation108_spill] sm:$0xff] }
 0x23f   :  { %8788 = vmatprep.subr.bf16.mxu0 %v13030_v26  ;;  %v304_v26 = vld [vmem:[%s22020_s1 + $0x4d0] sm:$0xff]  ;;  %v17793_v0 = vadd.f32 %v8033_v1, %v7921_v19  ;;  %v7925_v63 = vadd.f32 %v7924_v39, %v17732_v42  ;;  %v13014_v53 = vcombine.high %v176_v6, %v180_v58 }
 0x240   :  { %8900 = vmatpush1.bf16.msra.mxu1 %v13165_v5  ;;  %8601 = vmatmul.mubr.bf16.gmra.mxu0 %v22579_v48  ;;  %v8037_v5 = vpop.f32.mrf.mxu1  ;;  %v7926_v60 = vpop.f32.mrf.mxu0  ;;  %v22581_v1 = vld [vmem:[#allocation107_spill] sm:$0xff] }
 0x241   :  { %8901 = vmatprep.subr.bf16.mxu1 %v13158_v37  ;;  %v308_v37 = vld [vmem:[%s22020_s1 + $0x4f0] sm:$0xff]  ;;  %v17797_v48 = vadd.f32 %v8037_v5, %v7925_v63  ;;  %v7927_v54 = vadd.f32 %v7926_v60, %v17739_v23  ;;  %8610 = vmatprep.mubr.bf16.mxu0 %v22581_v1  ;;  %v13013_v63 = vcombine.low %v176_v6, %v180_v58  ;;  %v22583_v58 = vld [vmem:[#allocation109_spill] sm:$0xff] }
 0x242   :  { %8789 = vmatpush1.bf16.msra.mxu0 %v13029_v13  ;;  %v8039_v10 = vpop.f32.mrf.mxu1  ;;  %v13142_v19 = vcombine.high %v304_v26, %v308_v37  ;;  %v168_v39 = vld [vmem:[%s22020_s1 + $0x90] sm:$0xff]  ;;  %v7928_v8 = vpop.f32.mrf.mxu0  ;;  %v13141_v60 = vcombine.low %v304_v26, %v308_v37 }
 0x243   :  { %8714 = vmatmul.mubr.bf16.gmra.mxu1 %v22580_v61  ;;  %8790 = vmatprep.subr.bf16.mxu0 %v13022_v44  ;;  %v172_v43 = vld [vmem:[%s22020_s1 + $0xb0] sm:$0xff]  ;;  %v17814_v13 = vadd.f32 %v8039_v10, %v7927_v54 }
 0x244   :  { %8902 = vmatpush1.bf16.msra.mxu1 %v13157_v3  ;;  %8723 = vmatprep.mubr.bf16.mxu1 %v22582_v9  ;;  %v296_v55 = vld [vmem:[%s22020_s1 + $0x490] sm:$0xff]  ;;  %v7929_v3 = vadd.f32 %v7928_v8, %v17732_v42  ;;  %v8041_v44 = vpop.f32.mrf.mxu1  ;;  %v7930_v5 = vpop.f32.mrf.mxu0  ;;  %v13006_v9 = vcombine.high %v168_v39, %v172_v43  ;;  %v13005_v8 = vcombine.low %v168_v39, %v172_v43 }
 0x245   :  { %8903 = vmatprep.subr.bf16.mxu1 %v13150_v59  ;;  %v300_v59 = vld [vmem:[%s22020_s1 + $0x4b0] sm:$0xff]  ;;  %v7931_v61 = vadd.f32 %v7930_v5, %v17739_v23 }
 0x246   :  { %8791 = vmatpush1.bf16.msra.mxu0 %v13021_v50  ;;  %v17817_v1 = vadd.f32 %v8041_v44, %v7929_v3  ;;  %v8043_v15 = vpop.f32.mrf.mxu1  ;;  %v13134_v33 = vcombine.high %v296_v55, %v300_v59  ;;  %v160_v10 = vld [vmem:[%s22020_s1 + $0x50] sm:$0xff]  ;;  %v7934_v6 = vpop.f32.mrf.mxu0  ;;  %v13133_v44 = vcombine.low %v296_v55, %v300_v59 }
 0x247   :  { %8792 = vmatprep.subr.bf16.mxu0 %v13014_v53  ;;  %v164_v54 = vld [vmem:[%s22020_s1 + $0x70] sm:$0xff]  ;;  %v17833_v50 = vadd.f32 %v8043_v15, %v7931_v61 }
 0x248   :  { %8904 = vmatpush1.bf16.msra.mxu1 %v13149_v57  ;;  %8611 = vmatmul.mubr.bf16.gmra.mxu0 %v22583_v58  ;;  %v288_v26 = vld [vmem:[%s22020_s1 + $0x450] sm:$0xff]  ;;  %v7935_v57 = vadd.f32 %v7934_v6, %v17732_v42  ;;  %v8047_v53 = vpop.f32.mrf.mxu1  ;;  %v7936_v3 = vpop.f32.mrf.mxu0  ;;  %v12998_v5 = vcombine.high %v160_v10, %v164_v54 }
 0x249   :  { %8905 = vmatprep.subr.bf16.mxu1 %v13142_v19  ;;  %v292_v37 = vld [vmem:[%s22020_s1 + $0x470] sm:$0xff]  ;;  %v22584_v19 = vld [vmem:[#allocation110_spill] sm:$0xff]  ;;  %v7937_v4 = vadd.f32 %v7936_v3, %v17739_v23 }
 0x24a   :  { %8793 = vmatpush1.bf16.msra.mxu0 %v13013_v63  ;;  %v17837_v58 = vadd.f32 %v8047_v53, %v7935_v57  ;;  %v8049_v22 = vpop.f32.mrf.mxu1  ;;  %v22585_v15 = vld [vmem:[#allocation111_spill] sm:$0xff]  ;;  %v13126_v61 = vcombine.high %v288_v26, %v292_v37  ;;  %v7938_v43 = vpop.f32.mrf.mxu0  ;;  %v12997_v57 = vcombine.low %v160_v10, %v164_v54  ;;  %v13125_v3 = vcombine.low %v288_v26, %v292_v37  ;;  %v22587_v54 = vld [vmem:[#allocation113_spill] sm:$0xff] }
 0x24b   :  { %8724 = vmatmul.mubr.bf16.gmra.mxu1 %v22584_v19  ;;  %8794 = vmatprep.subr.bf16.mxu0 %v13006_v9  ;;  %v152_v6 = vld [vmem:[%s22020_s1 + $0x10] sm:$0xff]  ;;  %v22586_v9 = vld [vmem:[#allocation112_spill] sm:$0xff]  ;;  %v17854_v59 = vadd.f32 %v8049_v22, %v7937_v4  ;;  %v7939_v63 = vadd.f32 %v7938_v43, %v17732_v42 }
 0x24c   :  { %8906 = vmatpush1.bf16.msra.mxu1 %v13141_v60  ;;  %8620 = vmatprep.mubr.bf16.mxu0 %v22585_v15  ;;  %v156_v39 = vld [vmem:[%s22020_s1 + $0x30] sm:$0xff]  ;;  %v8051_v60 = vpop.f32.mrf.mxu1  ;;  %v7940_v53 = vpop.f32.mrf.mxu0 }
 0x24d   :  { %8907 = vmatprep.subr.bf16.mxu1 %v13134_v33  ;;  %8733 = vmatprep.mubr.bf16.mxu1 %v22586_v9  ;;  %v280_v55 = vld [vmem:[%s22020_s1 + $0x410] sm:$0xff]  ;;  %v12990_v9 = vcombine.high %v152_v6, %v156_v39  ;;  %v17857_v15 = vadd.f32 %v8051_v60, %v7939_v63  ;;  %v7941_v19 = vadd.f32 %v7940_v53, %v17739_v23 }
 0x24e   :  { %v284_v33 = vld [vmem:[%s22020_s1 + $0x430] sm:$0xff]  ;;  %8795 = vmatpush1.bf16.msra.mxu0 %v13005_v8  ;;  %v8053_v62 = vpop.f32.mrf.mxu1  ;;  %v7944_v10 = vpop.f32.mrf.mxu0  ;;  %v12989_v43 = vcombine.low %v152_v6, %v156_v39 }
 0x24f   :  { %8796 = vmatprep.subr.bf16.mxu0 %v12998_v5  ;;  %v13118_v46 = vcombine.high %v280_v55, %v284_v33  ;;  %v272_v22 = vld [vmem:[%s22020_s1 + $0x3d0] sm:$0xff]  ;;  %v17873_v8 = vadd.f32 %v8053_v62, %v7941_v19  ;;  %v13117_v60 = vcombine.low %v280_v55, %v284_v33 }
 0x250   :  { %8908 = vmatpush1.bf16.msra.mxu1 %v13133_v44  ;;  %v276_v4 = vld [vmem:[%s22020_s1 + $0x3f0] sm:$0xff]  ;;  %8621 = vmatmul.mubr.bf16.gmra.mxu0 %v22587_v54  ;;  %v7945_v44 = vadd.f32 %v7944_v10, %v17732_v42  ;;  %v8057_v5 = vpop.f32.mrf.mxu1  ;;  %v7946_v63 = vpop.f32.mrf.mxu0 }
 0x251   :  { %8909 = vmatprep.subr.bf16.mxu1 %v13126_v61  ;;  %v400_v26 = vld [vmem:[%s22020_s1 + $0x7d0] sm:$0xff]  ;;  %v22588_v61 = vld [vmem:[#allocation114_spill] sm:$0xff]  ;;  %v13110_v53 = vcombine.high %v272_v22, %v276_v4  ;;  %v7947_v52 = vadd.f32 %v7946_v63, %v17739_v23 }
 0x252   :  { %v404_v37 = vld [vmem:[%s22020_s1 + $0x7f0] sm:$0xff]  ;;  %8797 = vmatpush1.bf16.msra.mxu0 %v12997_v57  ;;  %v17877_v54 = vadd.f32 %v8057_v5, %v7945_v44  ;;  %v8059_v11 = vpop.f32.mrf.mxu1  ;;  %v7948_v39 = vpop.f32.mrf.mxu0  ;;  %v13109_v44 = vcombine.low %v272_v22, %v276_v4  ;;  %v22591_v4 = vld [vmem:[#allocation117_spill] sm:$0xff] }
 0x253   :  { %8734 = vmatmul.mubr.bf16.gmra.mxu1 %v22588_v61  ;;  %8798 = vmatprep.subr.bf16.mxu0 %v12990_v9  ;;  %v22589_v62 = vld [vmem:[#allocation115_spill] sm:$0xff]  ;;  %v13238_v19 = vcombine.high %v400_v26, %v404_v37  ;;  %v22590_v9 = vld [vmem:[#allocation116_spill] sm:$0xff]  ;;  %v17894_v33 = vadd.f32 %v8059_v11, %v7947_v52  ;;  %v7949_v57 = vadd.f32 %v7948_v39, %v17732_v42 }
 0x254   :  { %8910 = vmatpush1.bf16.msra.mxu1 %v13125_v3  ;;  %8630 = vmatprep.mubr.bf16.mxu0 %v22589_v62  ;;  %v264_v10 = vld [vmem:[%s22020_s1 + $0x390] sm:$0xff]  ;;  %v8061_v3 = vpop.f32.mrf.mxu1  ;;  %v7950_v5 = vpop.f32.mrf.mxu0  ;;  %v13237_v63 = vcombine.low %v400_v26, %v404_v37 }
 0x255   :  { %8911 = vmatprep.subr.bf16.mxu1 %v13118_v46  ;;  %v268_v6 = vld [vmem:[%s22020_s1 + $0x3b0] sm:$0xff]  ;;  %8743 = vmatprep.mubr.bf16.mxu1 %v22590_v9  ;;  %v17897_v62 = vadd.f32 %v8061_v3, %v7949_v57  ;;  %v7951_v61 = vadd.f32 %v7950_v5, %v17739_v23 }
 0x256   :  { %v392_v55 = vld [vmem:[%s22020_s1 + $0x790] sm:$0xff]  ;;  %8799 = vmatpush1.bf16.msra.mxu0 %v12989_v43  ;;  %v13102_v9 = vcombine.high %v264_v10, %v268_v6  ;;  %v8063_v12 = vpop.f32.mrf.mxu1  ;;  %v7954_v22 = vpop.f32.mrf.mxu0  ;;  %v13101_v39 = vcombine.low %v264_v10, %v268_v6 }
 0x257   :  { %v396_v46 = vld [vmem:[%s22020_s1 + $0x7b0] sm:$0xff]  ;;  %8800 = vmatprep.subr.bf16.mxu0 %v13110_v53  ;;  %v17913_v43 = vadd.f32 %v8063_v12, %v7951_v61  ;;  %v22593_v12 = vld [vmem:[#allocation120_spill] sm:$0xff] }
 0x258   :  { %8912 = vmatpush1.bf16.msra.mxu1 %v13117_v60  ;;  %v13230_v17 = vcombine.high %v392_v55, %v396_v46  ;;  %v256_v11 = vld [vmem:[%s22020_s1 + $0x350] sm:$0xff]  ;;  %8631 = vmatmul.mubr.bf16.gmra.mxu0 %v22591_v4  ;;  %v7955_v60 = vadd.f32 %v7954_v22, %v17732_v42  ;;  %v8067_v53 = vpop.f32.mrf.mxu1  ;;  %v7956_v57 = vpop.f32.mrf.mxu0  ;;  %v13229_v3 = vcombine.low %v392_v55, %v396_v46 }
 0x259   :  { %8913 = vmatprep.subr.bf16.mxu1 %v13238_v19  ;;  %v260_v52 = vld [vmem:[%s22020_s1 + $0x370] sm:$0xff]  ;;  %v22592_v19 = vld [vmem:[#allocation118_spill] sm:$0xff]  ;;  %v7957_v18 = vadd.f32 %v7956_v57, %v17739_v23  ;;  %8640 = vmatprep.mubr.bf16.mxu0 %v22593_v12 }
 0x25a   :  { %v384_v26 = vld [vmem:[%s22020_s1 + $0x750] sm:$0xff]  ;;  %8801 = vmatpush2.bf16.msra.mxu0 %v13109_v44  ;;  %v13094_v5 = vcombine.high %v256_v11, %v260_v52  ;;  %v17917_v4 = vadd.f32 %v8067_v53, %v7955_v60  ;;  %v8069_v16 = vpop.f32.mrf.mxu1  ;;  %v7958_v6 = vpop.f32.mrf.mxu0  ;;  %v13093_v60 = vcombine.low %v256_v11, %v260_v52  ;;  %v22595_v52 = vld [vmem:[#allocation124_spill] sm:$0xff] }
 0x25b   :  { %v388_v37 = vld [vmem:[%s22020_s1 + $0x770] sm:$0xff]  ;;  %8744 = vmatmul.mubr.bf16.gmra.mxu1 %v22592_v19  ;;  %8802 = vmatprep.subr.bf16.mxu0 %v13102_v9  ;;  %v22594_v9 = vld [vmem:[#allocation121_spill] sm:$0xff]  ;;  %v17934_v46 = vadd.f32 %v8069_v16, %v7957_v18  ;;  %v7959_v44 = vadd.f32 %v7958_v6, %v17732_v42 }
 0x25c   :  { %8914 = vmatpush2.bf16.msra.mxu1 %v13237_v63  ;;  %v13222_v61 = vcombine.high %v384_v26, %v388_v37  ;;  %v248_v22 = vld [vmem:[%s22020_s1 + $0x310] sm:$0xff]  ;;  %8753 = vmatprep.mubr.bf16.mxu1 %v22594_v9  ;;  %v8071_v63 = vpop.f32.mrf.mxu1  ;;  %v7960_v53 = vpop.f32.mrf.mxu0  ;;  %v13221_v57 = vcombine.low %v384_v26, %v388_v37 }
 0x25d   :  { %8915 = vmatprep.subr.bf16.mxu1 %v13230_v17  ;;  %v252_v10 = vld [vmem:[%s22020_s1 + $0x330] sm:$0xff]  ;;  %v17937_v12 = vadd.f32 %v8071_v63, %v7959_v44  ;;  %v7961_v19 = vadd.f32 %v7960_v53, %v17739_v23 }
 0x25e   :  { %v376_v55 = vld [vmem:[%s22020_s1 + $0x710] sm:$0xff]  ;;  %8803 = vmatpush2.bf16.msra.mxu0 %v13101_v39  ;;  %v13086_v9 = vcombine.high %v248_v22, %v252_v10  ;;  %v8073_v2 = vpop.f32.mrf.mxu1  ;;  %v7964_v11 = vpop.f32.mrf.mxu0  ;;  %v13085_v6 = vcombine.low %v248_v22, %v252_v10 }
 0x25f   :  { %v380_v17 = vld [vmem:[%s22020_s1 + $0x730] sm:$0xff]  ;;  %8804 = vmatprep.subr.bf16.mxu0 %v13094_v5  ;;  %v17953_v39 = vadd.f32 %v8073_v2, %v7961_v19  ;;  %v22597_v2 = vld [vmem:[#allocation128_spill] sm:$0xff] }
 0x260   :  { %8916 = vmatpush2.bf16.msra.mxu1 %v13229_v3  ;;  %v13214_v45 = vcombine.high %v376_v55, %v380_v17  ;;  %v240_v16 = vld [vmem:[%s22020_s1 + $0x2d0] sm:$0xff]  ;;  %8641 = vmatmul.mubr.bf16.gmra.mxu0 %v22595_v52  ;;  %v7965_v3 = vadd.f32 %v7964_v11, %v17732_v42  ;;  %v8077_v5 = vpop.f32.mrf.mxu1  ;;  %v7966_v44 = vpop.f32.mrf.mxu0  ;;  %v13213_v63 = vcombine.low %v376_v55, %v380_v17 }
 0x261   :  { %8917 = vmatprep.subr.bf16.mxu1 %v13222_v61  ;;  %v244_v18 = vld [vmem:[%s22020_s1 + $0x2f0] sm:$0xff]  ;;  %v22596_v61 = vld [vmem:[#allocation126_spill] sm:$0xff]  ;;  %v7967_v51 = vadd.f32 %v7966_v44, %v17739_v23  ;;  %8650 = vmatprep.mubr.bf16.mxu0 %v22597_v2 }
 0x262   :  { %v368_v26 = vld [vmem:[%s22020_s1 + $0x6d0] sm:$0xff]  ;;  %8805 = vmatpush2.bf16.msra.mxu0 %v13093_v60  ;;  %v13078_v53 = vcombine.high %v240_v16, %v244_v18  ;;  %v17957_v52 = vadd.f32 %v8077_v5, %v7965_v3  ;;  %v8079_v47 = vpop.f32.mrf.mxu1  ;;  %v7968_v10 = vpop.f32.mrf.mxu0  ;;  %v13077_v3 = vcombine.low %v240_v16, %v244_v18  ;;  %v22599_v18 = vld [vmem:[#allocation132_spill] sm:$0xff] }
 0x263   :  { %v372_v37 = vld [vmem:[%s22020_s1 + $0x6f0] sm:$0xff]  ;;  %8754 = vmatmul.mubr.bf16.gmra.mxu1 %v22596_v61  ;;  %8806 = vmatprep.subr.bf16.mxu0 %v13086_v9  ;;  %v22598_v9 = vld [vmem:[#allocation129_spill] sm:$0xff]  ;;  %v17974_v17 = vadd.f32 %v8079_v47, %v7967_v51  ;;  %v7969_v60 = vadd.f32 %v7968_v10, %v17732_v42 }
 0x264   :  { %8918 = vmatpush2.bf16.msra.mxu1 %v13221_v57  ;;  %v13206_v19 = vcombine.high %v368_v26, %v372_v37  ;;  %v232_v11 = vld [vmem:[%s22020_s1 + $0x290] sm:$0xff]  ;;  %8763 = vmatprep.mubr.bf16.mxu1 %v22598_v9  ;;  %v8081_v57 = vpop.f32.mrf.mxu1  ;;  %v7970_v5 = vpop.f32.mrf.mxu0  ;;  %v13205_v44 = vcombine.low %v368_v26, %v372_v37 }
 0x265   :  { %8919 = vmatprep.subr.bf16.mxu1 %v13214_v45  ;;  %v236_v22 = vld [vmem:[%s22020_s1 + $0x2b0] sm:$0xff]  ;;  %v17977_v2 = vadd.f32 %v8081_v57, %v7969_v60  ;;  %v7971_v61 = vadd.f32 %v7970_v5, %v17739_v23 }
 0x266   :  { %v360_v55 = vld [vmem:[%s22020_s1 + $0x690] sm:$0xff]  ;;  %8807 = vmatpush2.bf16.msra.mxu0 %v13085_v6  ;;  %v13070_v9 = vcombine.high %v232_v11, %v236_v22  ;;  %v8083_v32 = vpop.f32.mrf.mxu1  ;;  %v7974_v16 = vpop.f32.mrf.mxu0 }
 0x267   :  { %v364_v45 = vld [vmem:[%s22020_s1 + $0x6b0] sm:$0xff]  ;;  %8808 = vmatprep.subr.bf16.mxu0 %v13078_v53  ;;  %v17993_v6 = vadd.f32 %v8083_v32, %v7971_v61  ;;  %v22600_v32 = vld [vmem:[#allocation136_spill] sm:$0xff] }
 0x268   :  { %8920 = vmatpush2.bf16.msra.mxu1 %v13213_v63  ;;  %v13198_v38 = vcombine.high %v360_v55, %v364_v45  ;;  %v224_v47 = vld [vmem:[%s22020_s1 + $0x250] sm:$0xff]  ;;  %8651 = vmatmul.mubr.bf16.gmra.mxu0 %v22599_v18  ;;  %v7975_v63 = vadd.f32 %v7974_v16, %v17732_v42  ;;  %v8087_v53 = vpop.f32.mrf.mxu1  ;;  %v7976_v10 = vpop.f32.mrf.mxu0  ;;  %v13197_v60 = vcombine.low %v360_v55, %v364_v45 }
 0x269   :  { %8921 = vmatprep.subr.bf16.mxu1 %v13206_v19  ;;  %v228_v51 = vld [vmem:[%s22020_s1 + $0x270] sm:$0xff]  ;;  %v13069_v19 = vcombine.low %v232_v11, %v236_v22  ;;  %v7977_v18 = vadd.f32 %v7976_v10, %v17739_v23  ;;  %8660 = vmatprep.mubr.bf16.mxu0 %v22600_v32 }
 0x26a   :  { %v352_v26 = vld [vmem:[%s22020_s1 + $0x650] sm:$0xff]  ;;  %8809 = vmatpush2.bf16.msra.mxu0 %v13077_v3  ;;  %v13062_v57 = vcombine.high %v224_v47, %v228_v51  ;;  %v17997_v5 = vadd.f32 %v8087_v53, %v7975_v63  ;;  %v8089_v27 = vpop.f32.mrf.mxu1  ;;  %v7978_v22 = vpop.f32.mrf.mxu0  ;;  %v13061_v63 = vcombine.low %v224_v47, %v228_v51 }
 0x26b   :  { %v356_v37 = vld [vmem:[%s22020_s1 + $0x670] sm:$0xff]  ;;  %8764 = vmatmul.mubr.bf16.gmra.mxu1 %v16671_v40  ;;  %8810 = vmatprep.subr.bf16.mxu0 %v13070_v9  ;;  %v22601_v9 = vld [vmem:[#allocation137_spill] sm:$0xff]  ;;  %v18014_v45 = vadd.f32 %v8089_v27, %v7977_v18  ;;  %v7979_v3 = vadd.f32 %v7978_v22, %v17732_v42 }
 0x26c   :  { %8922 = vmatpush2.bf16.msra.mxu1 %v13205_v44  ;;  %v13190_v61 = vcombine.high %v352_v26, %v356_v37  ;;  %v216_v16 = vld [vmem:[%s22020_s1 + $0x210] sm:$0xff]  ;;  %8773 = vmatprep.mubr.bf16.mxu1 %v22601_v9  ;;  %v8091_v44 = vpop.f32.mrf.mxu1  ;;  %v7980_v53 = vpop.f32.mrf.mxu0  ;;  %v13189_v10 = vcombine.low %v352_v26, %v356_v37 }
 0x26d   :  { %8923 = vmatprep.subr.bf16.mxu1 %v13198_v38  ;;  %v220_v11 = vld [vmem:[%s22020_s1 + $0x230] sm:$0xff]  ;;  %v18017_v32 = vadd.f32 %v8091_v44, %v7979_v3  ;;  %v7981_v40 = vadd.f32 %v7980_v53, %v17739_v23 }
 0x26e   :  { %v344_v55 = vld [vmem:[%s22020_s1 + $0x610] sm:$0xff]  ;;  %8811 = vmatpush2.bf16.msra.mxu0 %v13069_v19  ;;  %v13054_v9 = vcombine.high %v216_v16, %v220_v11  ;;  %v8093_v14 = vpop.f32.mrf.mxu1  ;;  %v7984_v51 = vpop.f32.mrf.mxu0 }
 0x26f   :  { %v348_v38 = vld [vmem:[%s22020_s1 + $0x630] sm:$0xff]  ;;  %8812 = vmatprep.subr.bf16.mxu0 %v13062_v57  ;;  %v18033_v37 = vadd.f32 %v8093_v14, %v7981_v40  ;;  %v7985_v19 = vadd.f32 %v7984_v51, %v17732_v42  ;;  %v22603_v40 = vld [vmem:[#allocation5_spill] sm:$0xff] }
 0x270   :  { %8924 = vmatpush2.bf16.msra.mxu1 %v13197_v60  ;;  %v13182_v28 = vcombine.high %v344_v55, %v348_v38  ;;  %v464_v27 = vld [vmem:[%s22020_s1 + $0x9d0] sm:$0xff]  ;;  %8661 = vmatmul.mubr.bf16.gmra.mxu0 %v16717_v36  ;;  %v8097_v60 = vpop.f32.mrf.mxu1  ;;  %v7986_v22 = vpop.f32.mrf.mxu0  ;;  %v13181_v3 = vcombine.low %v344_v55, %v348_v38 }
 0x271   :  { %8925 = vmatprep.subr.bf16.mxu1 %v13190_v61  ;;  %v468_v47 = vld [vmem:[%s22020_s1 + $0x9f0] sm:$0xff]  ;;  %v13053_v61 = vcombine.low %v216_v16, %v220_v11  ;;  %v18037_v53 = vadd.f32 %v8097_v60, %v7985_v19  ;;  %v7987_v36 = vadd.f32 %v7986_v22, %v17739_v23  ;;  %8816 = vmatprep.mubr.bf16.mxu0 %v22603_v40 }
 0x272   :  { %v592_v18 = vld [vmem:[%s22020_s1 + $0xdd0] sm:$0xff]  ;;  %8813 = vmatpush2.bf16.msra.mxu0 %v13061_v63  ;;  %v13302_v44 = vcombine.high %v464_v27, %v468_v47  ;;  %v8099_v35 = vpop.f32.mrf.mxu1  ;;  %v7988_v11 = vpop.f32.mrf.mxu0  ;;  %v13301_v19 = vcombine.low %v464_v27, %v468_v47 }
 0x273   :  { %v596_v26 = vld [vmem:[%s22020_s1 + $0xdf0] sm:$0xff]  ;;  %8814 = vmatprep.subr.bf16.mxu0 %v13054_v9  ;;  %v22604_v9 = vld [vmem:[#allocation6_spill] sm:$0xff]  ;;  %v18054_v38 = vadd.f32 %v8099_v35, %v7987_v36  ;;  %v7989_v63 = vadd.f32 %v7988_v11, %v17732_v42 }
 0x274   :  { %v22602_v57 = vld [vmem:[#allocation139_spill] sm:$0xff]  ;;  %8926 = vmatpush2.bf16.msra.mxu1 %v13189_v10  ;;  %v13430_v14 = vcombine.high %v592_v18, %v596_v26  ;;  %v8101_v10 = vpop.f32.mrf.mxu1  ;;  %v7990_v60 = vpop.f32.mrf.mxu0  ;;  %v13429_v22 = vcombine.low %v592_v18, %v596_v26 }
 0x275   :  { %8774 = vmatmul.mubr.bf16.gmra.mxu1 %v22602_v57  ;;  %8927 = vmatprep.subr.bf16.mxu1 %v13182_v28  ;;  %v456_v51 = vld [vmem:[%s22020_s1 + $0x990] sm:$0xff]  ;;  %v18057_v40 = vadd.f32 %v8101_v10, %v7989_v63  ;;  %v7991_v57 = vadd.f32 %v7990_v60, %v17739_v23 }
 0x276   :  { %v460_v16 = vld [vmem:[%s22020_s1 + $0x9b0] sm:$0xff]  ;;  %8929 = vmatprep.mubr.bf16.mxu1 %v22604_v9  ;;  %8815 = vmatpush2.bf16.msra.mxu0 %v13053_v61  ;;  %v8103_v49 = vpop.f32.mrf.mxu1  ;;  %v8140_v42 = vpop.f32.mrf.mxu0 }
 0x277   :  { %v584_v55 = vld [vmem:[%s22020_s1 + $0xd90] sm:$0xff]  ;;  %9010 = vmatprep.subr.bf16.mxu0 %v13302_v44  ;;  %v13294_v9 = vcombine.high %v456_v51, %v460_v16  ;;  %v18073_v47 = vadd.f32 %v8103_v49, %v7991_v57  ;;  %v8141_v18 = vadd.f32 %v8140_v42, %v17757_v56  ;;  %v13293_v61 = vcombine.low %v456_v51, %v460_v16 }
 0x278   :  { %v588_v28 = vld [vmem:[%s22020_s1 + $0xdb0] sm:$0xff]  ;;  %8928 = vmatpush2.bf16.msra.mxu1 %v13181_v3  ;;  %v8253_v26 = vpop.f32.mrf.mxu1  ;;  %v8142_v3 = vpop.f32.mrf.mxu0 }
 0x279   :  { %9123 = vmatprep.subr.bf16.mxu1 %v13430_v14  ;;  %v13422_v34 = vcombine.high %v584_v55, %v588_v28  ;;  %v448_v36 = vld [vmem:[%s22020_s1 + $0x950] sm:$0xff]  ;;  %8817 = vmatmul.mubr.bf16.vlgmr.msra.gmra.mxu0 %v15019_v21  ;;  %v13421_v44 = vcombine.low %v584_v55, %v588_v28  ;;  %v18077_v11 = vadd.f32 %v8253_v26, %v8141_v18 }
 0x27a   :  { %v452_v35 = vld [vmem:[%s22020_s1 + $0x970] sm:$0xff]  ;;  %9011 = vmatpush1.bf16.msra.mxu0 %v13301_v19  ;;  %v8143_v63 = vadd.f32 %v8142_v3, %v17774_v7  ;;  %v8255_v10 = vpop.f32.mrf.mxu1  ;;  %8826 = vmatprep.mubr.bf16.mxu0 %v15040_v30  ;;  %v8144_v51 = vpop.f32.mrf.mxu0 }
 0x27b   :  { %v576_v27 = vld [vmem:[%s22020_s1 + $0xd50] sm:$0xff]  ;;  %9012 = vmatprep.subr.bf16.mxu0 %v13294_v9  ;;  %v13286_v14 = vcombine.high %v448_v36, %v452_v35  ;;  %v8145_v9 = vadd.f32 %v8144_v51, %v17777_v29  ;;  %v13285_v28 = vcombine.low %v448_v36, %v452_v35  ;;  %v22605_v35 = vld [vmem:[#allocation8_spill] sm:$0xff] }
 0x27c   :  { %v580_v23 = vld [vmem:[%s22020_s1 + $0xd70] sm:$0xff]  ;;  %v18094_v16 = vadd.f32 %v8255_v10, %v8143_v63  ;;  %v8257_v55 = vpop.f32.mrf.mxu1  ;;  %v8146_v19 = vpop.f32.mrf.mxu0 }
 0x27d   :  { %8930 = vmatmul.mubr.bf16.vlgmr.msra.gmra.mxu1 %v15032_v25  ;;  %v13414_v49 = vcombine.high %v576_v27, %v580_v23  ;;  %v440_v56 = vld [vmem:[%s22020_s1 + $0x910] sm:$0xff]  ;;  %v13413_v60 = vcombine.low %v576_v27, %v580_v23  ;;  %v18097_v42 = vadd.f32 %v8257_v55, %v8145_v9  ;;  %v8147_v18 = vadd.f32 %v8146_v19, %v17793_v0 }
 0x27e   :  { %9124 = vmatpush1.bf16.msra.mxu1 %v13429_v22  ;;  %v444_v57 = vld [vmem:[%s22020_s1 + $0x930] sm:$0xff]  ;;  %8939 = vmatprep.mubr.bf16.mxu1 %v15049_v31  ;;  %v8259_v26 = vpop.f32.mrf.mxu1  ;;  %v8150_v36 = vpop.f32.mrf.mxu0  ;;  %v22667_v31 = vld [vmem:[#allocation70_spill] sm:$0xff] }
 0x27f   :  { %9125 = vmatprep.subr.bf16.mxu1 %v13422_v34  ;;  %v568_v7 = vld [vmem:[%s22020_s1 + $0xd10] sm:$0xff]  ;;  %9013 = vmatpush1.bf16.msra.mxu0 %v13293_v61  ;;  %v13278_v22 = vcombine.high %v440_v56, %v444_v57  ;;  %v18113_v23 = vadd.f32 %v8259_v26, %v8147_v18  ;;  %v8151_v61 = vadd.f32 %v8150_v36, %v17797_v48  ;;  %v22607_v18 = vld [vmem:[#allocation10_spill] sm:$0xff] }
 0x280   :  { %v572_v34 = vld [vmem:[%s22020_s1 + $0xd30] sm:$0xff]  ;;  %9014 = vmatprep.subr.bf16.mxu0 %v13286_v14  ;;  %v22606_v14 = vld [vmem:[#allocation9_spill] sm:$0xff]  ;;  %v13277_v10 = vcombine.low %v440_v56, %v444_v57 }
 0x281   :  { %v13406_v3 = vcombine.high %v568_v7, %v572_v34  ;;  %v432_v63 = vld [vmem:[%s22020_s1 + $0x8d0] sm:$0xff]  ;;  %8827 = vmatmul.mubr.bf16.gmra.mxu0 %v22605_v35  ;;  %v13405_v51 = vcombine.low %v568_v7, %v572_v34 }
 0x282   :  { %9126 = vmatpush1.bf16.msra.mxu1 %v13421_v44  ;;  %v436_v29 = vld [vmem:[%s22020_s1 + $0x8f0] sm:$0xff]  ;;  %v8263_v44 = vpop.f32.mrf.mxu1  ;;  %8836 = vmatprep.mubr.bf16.mxu0 %v22607_v18 }
 0x283   :  { %9127 = vmatprep.subr.bf16.mxu1 %v13414_v49  ;;  %v560_v27 = vld [vmem:[%s22020_s1 + $0xcd0] sm:$0xff]  ;;  %9015 = vmatpush1.bf16.msra.mxu0 %v13285_v28  ;;  %v8152_v49 = vpop.f32.mrf.mxu0  ;;  %v13270_v9 = vcombine.high %v432_v63, %v436_v29  ;;  %v18117_v55 = vadd.f32 %v8263_v44, %v8151_v61 }
 0x284   :  { %v564_v0 = vld [vmem:[%s22020_s1 + $0xcf0] sm:$0xff]  ;;  %9016 = vmatprep.subr.bf16.mxu0 %v13278_v22  ;;  %v8153_v19 = vadd.f32 %v8152_v49, %v17814_v13  ;;  %v8265_v35 = vpop.f32.mrf.mxu1 }
 0x285   :  { %8940 = vmatmul.mubr.bf16.gmra.mxu1 %v22606_v14  ;;  %v13398_v26 = vcombine.high %v560_v27, %v564_v0  ;;  %v424_v48 = vld [vmem:[%s22020_s1 + $0x890] sm:$0xff]  ;;  %v8154_v57 = vpop.f32.mrf.mxu0  ;;  %v13397_v61 = vcombine.low %v560_v27, %v564_v0 }
 0x286   :  { %9128 = vmatpush1.bf16.msra.mxu1 %v13413_v60  ;;  %v428_v56 = vld [vmem:[%s22020_s1 + $0x8b0] sm:$0xff]  ;;  %v18134_v28 = vadd.f32 %v8265_v35, %v8153_v19  ;;  %v8155_v60 = vadd.f32 %v8154_v57, %v17817_v1  ;;  %v8267_v22 = vpop.f32.mrf.mxu1 }
 0x287   :  { %9129 = vmatprep.subr.bf16.mxu1 %v13406_v3  ;;  %v22608_v7 = vld [vmem:[#allocation11_spill] sm:$0xff]  ;;  %9017 = vmatpush1.bf16.msra.mxu0 %v13277_v10  ;;  %v13269_v3 = vcombine.low %v432_v63, %v436_v29  ;;  %v8156_v36 = vpop.f32.mrf.mxu0  ;;  %v13262_v44 = vcombine.high %v424_v48, %v428_v56  ;;  %v22609_v29 = vld [vmem:[#allocation12_spill] sm:$0xff]  ;;  %v13261_v19 = vcombine.low %v424_v48, %v428_v56 }
 0x288   :  { %8949 = vmatprep.mubr.bf16.mxu1 %v22608_v7  ;;  %v552_v13 = vld [vmem:[%s22020_s1 + $0xc90] sm:$0xff]  ;;  %9018 = vmatprep.subr.bf16.mxu0 %v13270_v9  ;;  %v18137_v49 = vadd.f32 %v8267_v22, %v8155_v60  ;;  %v8157_v7 = vadd.f32 %v8156_v36, %v17833_v50  ;;  %v8269_v18 = vpop.f32.mrf.mxu1  ;;  %v22610_v9 = vld [vmem:[#allocation13_spill] sm:$0xff] }
 0x289   :  { %v556_v34 = vld [vmem:[%s22020_s1 + $0xcb0] sm:$0xff]  ;;  %v8160_v63 = vpop.f32.mrf.mxu0  ;;  %8837 = vmatmul.mubr.bf16.gmra.mxu0 %v22609_v29 }
 0x28a   :  { %9130 = vmatpush1.bf16.msra.mxu1 %v13405_v51  ;;  %v13390_v14 = vcombine.high %v552_v13, %v556_v34  ;;  %v416_v35 = vld [vmem:[%s22020_s1 + $0x850] sm:$0xff]  ;;  %v18153_v0 = vadd.f32 %v8269_v18, %v8157_v7  ;;  %v8161_v10 = vadd.f32 %v8160_v63, %v17837_v58  ;;  %v8273_v51 = vpop.f32.mrf.mxu1  ;;  %v13389_v57 = vcombine.low %v552_v13, %v556_v34  ;;  %v22611_v18 = vld [vmem:[#allocation14_spill] sm:$0xff] }
 0x28b   :  { %9131 = vmatprep.subr.bf16.mxu1 %v13398_v26  ;;  %v420_v1 = vld [vmem:[%s22020_s1 + $0x870] sm:$0xff]  ;;  %9019 = vmatpush1.bf16.msra.mxu0 %v13269_v3  ;;  %v8162_v26 = vpop.f32.mrf.mxu0 }
 0x28c   :  { %v544_v27 = vld [vmem:[%s22020_s1 + $0xc50] sm:$0xff]  ;;  %9020 = vmatprep.subr.bf16.mxu0 %v13262_v44  ;;  %v13254_v60 = vcombine.high %v416_v35, %v420_v1  ;;  %v18157_v22 = vadd.f32 %v8273_v51, %v8161_v10  ;;  %v8163_v36 = vadd.f32 %v8162_v26, %v17854_v59  ;;  %v8275_v29 = vpop.f32.mrf.mxu1  ;;  %8846 = vmatprep.mubr.bf16.mxu0 %v22611_v18 }
 0x28d   :  { %v548_v50 = vld [vmem:[%s22020_s1 + $0xc70] sm:$0xff]  ;;  %8950 = vmatmul.mubr.bf16.gmra.mxu1 %v22610_v9  ;;  %v8164_v56 = vpop.f32.mrf.mxu0  ;;  %v13253_v44 = vcombine.low %v416_v35, %v420_v1  ;;  %v22613_v1 = vld [vmem:[#allocation16_spill] sm:$0xff] }
 0x28e   :  { %9132 = vmatpush1.bf16.msra.mxu1 %v13397_v61  ;;  %v13382_v7 = vcombine.high %v544_v27, %v548_v50  ;;  %v408_v58 = vld [vmem:[%s22020_s1 + $0x810] sm:$0xff]  ;;  %v18174_v34 = vadd.f32 %v8275_v29, %v8163_v36  ;;  %v8165_v3 = vadd.f32 %v8164_v56, %v17857_v15  ;;  %v8277_v61 = vpop.f32.mrf.mxu1  ;;  %v13381_v10 = vcombine.low %v544_v27, %v548_v50 }
 0x28f   :  { %9133 = vmatprep.subr.bf16.mxu1 %v13390_v14  ;;  %v412_v48 = vld [vmem:[%s22020_s1 + $0x830] sm:$0xff]  ;;  %9021 = vmatpush1.bf16.msra.mxu0 %v13261_v19  ;;  %v8166_v63 = vpop.f32.mrf.mxu0 }
 0x290   :  { %v22612_v13 = vld [vmem:[#allocation15_spill] sm:$0xff]  ;;  %9022 = vmatprep.subr.bf16.mxu0 %v13254_v60  ;;  %v13246_v51 = vcombine.high %v408_v58, %v412_v48  ;;  %v18177_v26 = vadd.f32 %v8277_v61, %v8165_v3  ;;  %v8279_v18 = vpop.f32.mrf.mxu1  ;;  %v22614_v60 = vld [vmem:[#allocation17_spill] sm:$0xff]  ;;  %v13245_v36 = vcombine.low %v408_v58, %v412_v48 }
 0x291   :  { %8959 = vmatprep.mubr.bf16.mxu1 %v22612_v13  ;;  %v536_v59 = vld [vmem:[%s22020_s1 + $0xc10] sm:$0xff]  ;;  %v8167_v13 = vadd.f32 %v8166_v63, %v17873_v8  ;;  %v8170_v35 = vpop.f32.mrf.mxu0  ;;  %8847 = vmatmul.mubr.bf16.gmra.mxu0 %v22613_v1 }
 0x292   :  { %v540_v14 = vld [vmem:[%s22020_s1 + $0xc30] sm:$0xff]  ;;  %9134 = vmatpush1.bf16.msra.mxu1 %v13389_v57  ;;  %v8171_v19 = vadd.f32 %v8170_v35, %v17877_v54  ;;  %v8283_v57 = vpop.f32.mrf.mxu1 }
 0x293   :  { %9135 = vmatprep.subr.bf16.mxu1 %v13382_v7  ;;  %v13374_v9 = vcombine.high %v536_v59, %v540_v14  ;;  %v528_v29 = vld [vmem:[%s22020_s1 + $0xbd0] sm:$0xff]  ;;  %v18193_v50 = vadd.f32 %v8279_v18, %v8167_v13  ;;  %9023 = vmatpush1.bf16.msra.mxu0 %v13253_v44  ;;  %v8172_v7 = vpop.f32.mrf.mxu0  ;;  %v13373_v56 = vcombine.low %v536_v59, %v540_v14  ;;  %v22615_v18 = vld [vmem:[#allocation18_spill] sm:$0xff] }
 0x294   :  { %v532_v15 = vld [vmem:[%s22020_s1 + $0xbf0] sm:$0xff]  ;;  %9024 = vmatprep.subr.bf16.mxu0 %v13246_v51  ;;  %v18197_v61 = vadd.f32 %v8283_v57, %v8171_v19  ;;  %v8173_v63 = vadd.f32 %v8172_v7, %v17894_v33  ;;  %v8285_v1 = vpop.f32.mrf.mxu1  ;;  %8856 = vmatprep.mubr.bf16.mxu0 %v22615_v18 }
 0x295   :  { %v656_v27 = vld [vmem:[%s22020_s1 + $0xfd0] sm:$0xff]  ;;  %8960 = vmatmul.mubr.bf16.gmra.mxu1 %v22614_v60  ;;  %v13366_v3 = vcombine.high %v528_v29, %v532_v15  ;;  %v8174_v48 = vpop.f32.mrf.mxu0  ;;  %v13365_v51 = vcombine.low %v528_v29, %v532_v15  ;;  %v22617_v15 = vld [vmem:[#allocation20_spill] sm:$0xff] }
 0x296   :  { %v660_v8 = vld [vmem:[%s22020_s1 + $0xff0] sm:$0xff]  ;;  %9136 = vmatpush1.bf16.msra.mxu1 %v13381_v10  ;;  %v18214_v14 = vadd.f32 %v8285_v1, %v8173_v63  ;;  %v8175_v44 = vadd.f32 %v8174_v48, %v17897_v62  ;;  %v8287_v10 = vpop.f32.mrf.mxu1 }
 0x297   :  { %9137 = vmatprep.subr.bf16.mxu1 %v13374_v9  ;;  %v13494_v13 = vcombine.high %v656_v27, %v660_v8  ;;  %v520_v54 = vld [vmem:[%s22020_s1 + $0xb90] sm:$0xff]  ;;  %9025 = vmatpush1.bf16.msra.mxu0 %v13245_v36  ;;  %v8176_v35 = vpop.f32.mrf.mxu0  ;;  %v13493_v19 = vcombine.low %v656_v27, %v660_v8 }
 0x298   :  { %v524_v58 = vld [vmem:[%s22020_s1 + $0xbb0] sm:$0xff]  ;;  %9026 = vmatprep.subr.bf16.mxu0 %v13366_v3  ;;  %v18217_v7 = vadd.f32 %v8287_v10, %v8175_v44  ;;  %v8289_v18 = vpop.f32.mrf.mxu1  ;;  %v22618_v3 = vld [vmem:[#allocation21_spill] sm:$0xff] }
 0x299   :  { %v22616_v59 = vld [vmem:[#allocation19_spill] sm:$0xff]  ;;  %v13358_v57 = vcombine.high %v520_v54, %v524_v58  ;;  %v8180_v29 = vpop.f32.mrf.mxu0  ;;  %8857 = vmatmul.mubr.bf16.gmra.mxu0 %v22617_v15  ;;  %v13357_v63 = vcombine.low %v520_v54, %v524_v58 }
 0x29a   :  { %8969 = vmatprep.mubr.bf16.mxu1 %v22616_v59  ;;  %v648_v33 = vld [vmem:[%s22020_s1 + $0xf90] sm:$0xff]  ;;  %9138 = vmatpush1.bf16.msra.mxu1 %v13373_v56  ;;  %v8177_v59 = vadd.f32 %v8176_v35, %v17913_v43  ;;  %v8181_v36 = vadd.f32 %v8180_v29, %v17917_v4  ;;  %v8293_v56 = vpop.f32.mrf.mxu1 }
 0x29b   :  { %v652_v9 = vld [vmem:[%s22020_s1 + $0xfb0] sm:$0xff]  ;;  %9139 = vmatprep.subr.bf16.mxu1 %v13494_v13  ;;  %9027 = vmatpush2.bf16.msra.mxu0 %v13365_v51  ;;  %v8182_v13 = vpop.f32.mrf.mxu0 }
 0x29c   :  { %v13486_v60 = vcombine.high %v648_v33, %v652_v9  ;;  %v512_v1 = vld [vmem:[%s22020_s1 + $0xb50] sm:$0xff]  ;;  %v18233_v8 = vadd.f32 %v8289_v18, %v8177_v59  ;;  %9028 = vmatprep.subr.bf16.mxu0 %v13358_v57  ;;  %v13485_v48 = vcombine.low %v648_v33, %v652_v9  ;;  %v18237_v10 = vadd.f32 %v8293_v56, %v8181_v36  ;;  %v8295_v15 = vpop.f32.mrf.mxu1  ;;  %v22619_v18 = vld [vmem:[#allocation22_spill] sm:$0xff] }
 0x29d   :  { %v516_v62 = vld [vmem:[%s22020_s1 + $0xb70] sm:$0xff]  ;;  %8970 = vmatmul.mubr.bf16.gmra.mxu1 %v22618_v3  ;;  %v8183_v35 = vadd.f32 %v8182_v13, %v17934_v46  ;;  %8866 = vmatprep.mubr.bf16.mxu0 %v22619_v18  ;;  %v8184_v58 = vpop.f32.mrf.mxu0 }
 0x29e   :  { %v640_v27 = vld [vmem:[%s22020_s1 + $0xf50] sm:$0xff]  ;;  %9140 = vmatpush2.bf16.msra.mxu1 %v13493_v19  ;;  %v13350_v44 = vcombine.high %v512_v1, %v516_v62  ;;  %v8185_v51 = vadd.f32 %v8184_v58, %v17937_v12  ;;  %v8297_v19 = vpop.f32.mrf.mxu1  ;;  %v13349_v57 = vcombine.low %v512_v1, %v516_v62  ;;  %v22621_v62 = vld [vmem:[#allocation24_spill] sm:$0xff] }
 0x29f   :  { %v644_v43 = vld [vmem:[%s22020_s1 + $0xf70] sm:$0xff]  ;;  %9141 = vmatprep.subr.bf16.mxu1 %v13486_v60  ;;  %v18254_v9 = vadd.f32 %v8295_v15, %v8183_v35  ;;  %9029 = vmatpush2.bf16.msra.mxu0 %v13357_v63  ;;  %v8186_v29 = vpop.f32.mrf.mxu0 }
 0x2a0   :  { %v13478_v59 = vcombine.high %v640_v27, %v644_v43  ;;  %v504_v4 = vld [vmem:[%s22020_s1 + $0xb10] sm:$0xff]  ;;  %9030 = vmatprep.subr.bf16.mxu0 %v13350_v44  ;;  %v13477_v36 = vcombine.low %v640_v27, %v644_v43  ;;  %v18257_v13 = vadd.f32 %v8297_v19, %v8185_v51  ;;  %v8299_v18 = vpop.f32.mrf.mxu1  ;;  %v22622_v44 = vld [vmem:[#allocation25_spill] sm:$0xff] }
 0x2a1   :  { %v508_v54 = vld [vmem:[%s22020_s1 + $0xb30] sm:$0xff]  ;;  %v8190_v1 = vpop.f32.mrf.mxu0  ;;  %8867 = vmatmul.mubr.bf16.gmra.mxu0 %v22621_v62 }
 0x2a2   :  { %v22620_v33 = vld [vmem:[#allocation23_spill] sm:$0xff]  ;;  %9142 = vmatpush2.bf16.msra.mxu1 %v13485_v48  ;;  %v13342_v56 = vcombine.high %v504_v4, %v508_v54  ;;  %v8191_v63 = vadd.f32 %v8190_v1, %v17957_v52  ;;  %v8303_v48 = vpop.f32.mrf.mxu1  ;;  %v13341_v35 = vcombine.low %v504_v4, %v508_v54 }
 0x2a3   :  { %8979 = vmatprep.mubr.bf16.mxu1 %v22620_v33  ;;  %v632_v46 = vld [vmem:[%s22020_s1 + $0xf10] sm:$0xff]  ;;  %v8187_v33 = vadd.f32 %v8186_v29, %v17953_v39  ;;  %9143 = vmatprep.subr.bf16.mxu1 %v13478_v59  ;;  %v8192_v59 = vpop.f32.mrf.mxu0 }
 0x2a4   :  { %v636_v60 = vld [vmem:[%s22020_s1 + $0xf30] sm:$0xff]  ;;  %9031 = vmatpush2.bf16.msra.mxu0 %v13349_v57  ;;  %v18277_v19 = vadd.f32 %v8303_v48, %v8191_v63  ;;  %v8193_v29 = vadd.f32 %v8192_v59, %v17974_v17  ;;  %v8305_v62 = vpop.f32.mrf.mxu1 }
 0x2a5   :  { %v13470_v3 = vcombine.high %v632_v46, %v636_v60  ;;  %v496_v15 = vld [vmem:[%s22020_s1 + $0xad0] sm:$0xff]  ;;  %v18273_v43 = vadd.f32 %v8299_v18, %v8187_v33  ;;  %8980 = vmatmul.mubr.bf16.gmra.mxu1 %v22622_v44  ;;  %9032 = vmatprep.subr.bf16.mxu0 %v13342_v56  ;;  %v13469_v58 = vcombine.low %v632_v46, %v636_v60  ;;  %v22623_v18 = vld [vmem:[#allocation26_spill] sm:$0xff]  ;;  %v8194_v54 = vpop.f32.mrf.mxu0 }
 0x2a6   :  { %v500_v12 = vld [vmem:[%s22020_s1 + $0xaf0] sm:$0xff]  ;;  %9144 = vmatpush2.bf16.msra.mxu1 %v13477_v36  ;;  %8876 = vmatprep.mubr.bf16.mxu0 %v22623_v18  ;;  %v18294_v60 = vadd.f32 %v8305_v62, %v8193_v29  ;;  %v8195_v57 = vadd.f32 %v8194_v54, %v17977_v2  ;;  %v8307_v36 = vpop.f32.mrf.mxu1 }
 0x2a7   :  { %v624_v27 = vld [vmem:[%s22020_s1 + $0xed0] sm:$0xff]  ;;  %v13334_v51 = vcombine.high %v496_v15, %v500_v12  ;;  %9145 = vmatprep.subr.bf16.mxu1 %v13470_v3  ;;  %v13333_v56 = vcombine.low %v496_v15, %v500_v12  ;;  %v8196_v1 = vpop.f32.mrf.mxu0  ;;  %v22625_v12 = vld [vmem:[#allocation28_spill] sm:$0xff] }
 0x2a8   :  { %v628_v39 = vld [vmem:[%s22020_s1 + $0xef0] sm:$0xff]  ;;  %9033 = vmatpush2.bf16.msra.mxu0 %v13341_v35  ;;  %v18297_v59 = vadd.f32 %v8307_v36, %v8195_v57  ;;  %v8309_v18 = vpop.f32.mrf.mxu1 }
 0x2a9   :  { %v13462_v33 = vcombine.high %v624_v27, %v628_v39  ;;  %v488_v52 = vld [vmem:[%s22020_s1 + $0xa90] sm:$0xff]  ;;  %9034 = vmatprep.subr.bf16.mxu0 %v13334_v51  ;;  %v13461_v63 = vcombine.low %v624_v27, %v628_v39  ;;  %v8200_v15 = vpop.f32.mrf.mxu0  ;;  %8877 = vmatmul.mubr.bf16.gmra.mxu0 %v22625_v12  ;;  %v22626_v51 = vld [vmem:[#allocation29_spill] sm:$0xff] }
 0x2aa   :  { %v492_v4 = vld [vmem:[%s22020_s1 + $0xab0] sm:$0xff]  ;;  %9146 = vmatpush2.bf16.msra.mxu1 %v13469_v58  ;;  %v8201_v35 = vadd.f32 %v8200_v15, %v17997_v5  ;;  %v8313_v58 = vpop.f32.mrf.mxu1 }
 0x2ab   :  { %v22624_v46 = vld [vmem:[#allocation27_spill] sm:$0xff]  ;;  %v13326_v48 = vcombine.high %v488_v52, %v492_v4  ;;  %9147 = vmatprep.subr.bf16.mxu1 %v13462_v33  ;;  %v13325_v29 = vcombine.low %v488_v52, %v492_v4  ;;  %v8202_v33 = vpop.f32.mrf.mxu0 }
 0x2ac   :  { %8989 = vmatprep.mubr.bf16.mxu1 %v22624_v46  ;;  %v616_v17 = vld [vmem:[%s22020_s1 + $0xe90] sm:$0xff]  ;;  %v8197_v46 = vadd.f32 %v8196_v1, %v17993_v6  ;;  %9035 = vmatpush2.bf16.msra.mxu0 %v13333_v56  ;;  %v18317_v36 = vadd.f32 %v8313_v58, %v8201_v35  ;;  %v8203_v1 = vadd.f32 %v8202_v33, %v18014_v45  ;;  %v8315_v12 = vpop.f32.mrf.mxu1 }
 0x2ad   :  { %v620_v3 = vld [vmem:[%s22020_s1 + $0xeb0] sm:$0xff]  ;;  %8990 = vmatmul.mubr.bf16.gmra.mxu1 %v22626_v51  ;;  %9036 = vmatprep.subr.bf16.mxu0 %v13326_v48  ;;  %v8204_v4 = vpop.f32.mrf.mxu0 }
 0x2ae   :  { %v13454_v44 = vcombine.high %v616_v17, %v620_v3  ;;  %v480_v62 = vld [vmem:[%s22020_s1 + $0xa50] sm:$0xff]  ;;  %v18313_v39 = vadd.f32 %v8309_v18, %v8197_v46  ;;  %9148 = vmatpush2.bf16.msra.mxu1 %v13461_v63  ;;  %v13453_v54 = vcombine.low %v616_v17, %v620_v3  ;;  %v22627_v18 = vld [vmem:[#allocation30_spill] sm:$0xff]  ;;  %v18334_v3 = vadd.f32 %v8315_v12, %v8203_v1  ;;  %v8317_v63 = vpop.f32.mrf.mxu1 }
 0x2af   :  { %v484_v2 = vld [vmem:[%s22020_s1 + $0xa70] sm:$0xff]  ;;  %8886 = vmatprep.mubr.bf16.mxu0 %v22627_v18  ;;  %v8205_v56 = vadd.f32 %v8204_v4, %v18017_v32  ;;  %v8206_v15 = vpop.f32.mrf.mxu0 }
 0x2b0   :  { %v608_v27 = vld [vmem:[%s22020_s1 + $0xe50] sm:$0xff]  ;;  %v13318_v57 = vcombine.high %v480_v62, %v484_v2  ;;  %9149 = vmatprep.subr.bf16.mxu1 %v13454_v44  ;;  %9037 = vmatpush2.bf16.msra.mxu0 %v13325_v29  ;;  %v13317_v48 = vcombine.low %v480_v62, %v484_v2  ;;  %v8319_v18 = vpop.f32.mrf.mxu1  ;;  %v22629_v2 = vld [vmem:[#allocation32_spill] sm:$0xff] }
 0x2b1   :  { %v612_v6 = vld [vmem:[%s22020_s1 + $0xe70] sm:$0xff]  ;;  %v18337_v33 = vadd.f32 %v8317_v63, %v8205_v56  ;;  %v8210_v62 = vpop.f32.mrf.mxu0  ;;  %8887 = vmatmul.mubr.bf16.gmra.mxu0 %v22629_v2 }
 0x2b2   :  { %v13446_v46 = vcombine.high %v608_v27, %v612_v6  ;;  %v472_v5 = vld [vmem:[%s22020_s1 + $0xa10] sm:$0xff]  ;;  %9150 = vmatpush2.bf16.msra.mxu1 %v13453_v54  ;;  %9038 = vmatprep.subr.bf16.mxu0 %v13318_v57  ;;  %v13445_v35 = vcombine.low %v608_v27, %v612_v6  ;;  %v8211_v29 = vadd.f32 %v8210_v62, %v18037_v53  ;;  %v8323_v54 = vpop.f32.mrf.mxu1  ;;  %v22630_v57 = vld [vmem:[#allocation33_spill] sm:$0xff] }
 0x2b3   :  { %v476_v52 = vld [vmem:[%s22020_s1 + $0xa30] sm:$0xff] }
 0x2b4   :  { %v22628_v17 = vld [vmem:[#allocation31_spill] sm:$0xff]  ;;  %v13310_v58 = vcombine.high %v472_v5, %v476_v52  ;;  %9151 = vmatprep.subr.bf16.mxu1 %v13446_v46  ;;  %9039 = vmatpush2.bf16.msra.mxu0 %v13317_v48  ;;  %v13309_v1 = vcombine.low %v472_v5, %v476_v52  ;;  %v8212_v46 = vpop.f32.mrf.mxu0  ;;  %v18357_v63 = vadd.f32 %v8323_v54, %v8211_v29  ;;  %v8325_v2 = vpop.f32.mrf.mxu1 }
 0x2b5   :  { %8999 = vmatprep.mubr.bf16.mxu1 %v22628_v17  ;;  %v600_v45 = vld [vmem:[%s22020_s1 + $0xe10] sm:$0xff]  ;;  %v8207_v17 = vadd.f32 %v8206_v15, %v18033_v37  ;;  %v8213_v15 = vadd.f32 %v8212_v46, %v18054_v38 }
 0x2b6   :  { %v604_v44 = vld [vmem:[%s22020_s1 + $0xe30] sm:$0xff]  ;;  %9000 = vmatmul.mubr.bf16.gmra.mxu1 %v22630_v57  ;;  %9040 = vmatprep.subr.bf16.mxu0 %v13310_v58  ;;  %v8214_v52 = vpop.f32.mrf.mxu0 }
 0x2b7   :  { %v13438_v51 = vcombine.high %v600_v45, %v604_v44  ;;  %v720_v12 = vld [vmem:[%s22020_s1 + $0x11d0] sm:$0xff]  ;;  %v18353_v6 = vadd.f32 %v8319_v18, %v8207_v17  ;;  %9152 = vmatpush2.bf16.msra.mxu1 %v13445_v35  ;;  %v13437_v4 = vcombine.low %v600_v45, %v604_v44  ;;  %v22631_v18 = vld [vmem:[#allocation34_spill] sm:$0xff]  ;;  %v18374_v44 = vadd.f32 %v8325_v2, %v8213_v15  ;;  %v8327_v35 = vpop.f32.mrf.mxu1 }
 0x2b8   :  { %v724_v32 = vld [vmem:[%s22020_s1 + $0x11f0] sm:$0xff]  ;;  %9042 = vmatprep.mubr.bf16.mxu0 %v22631_v18  ;;  %v8215_v48 = vadd.f32 %v8214_v52, %v18057_v40  ;;  %9041 = vmatpush2.bf16.msra.mxu0 %v13309_v1  ;;  %v8216_v62 = vpop.f32.mrf.mxu0 }
 0x2b9   :  { %v848_v27 = vld [vmem:[%s22020_s1 + $0x15d0] sm:$0xff]  ;;  %v13558_v56 = vcombine.high %v720_v12, %v724_v32  ;;  %9153 = vmatprep.subr.bf16.mxu1 %v13438_v51  ;;  %v13557_v58 = vcombine.low %v720_v12, %v724_v32  ;;  %v8329_v18 = vpop.f32.mrf.mxu1  ;;  %v22633_v32 = vld [vmem:[#allocation36_spill] sm:$0xff] }
 0x2ba   :  { %v852_v37 = vld [vmem:[%s22020_s1 + $0x15f0] sm:$0xff]  ;;  %v18377_v46 = vadd.f32 %v8327_v35, %v8215_v48  ;;  %v8366_v12 = vpop.f32.mrf.mxu0 }
 0x2bb   :  { %v13686_v17 = vcombine.high %v848_v27, %v852_v37  ;;  %v712_v53 = vld [vmem:[%s22020_s1 + $0x1190] sm:$0xff]  ;;  %9154 = vmatpush2.bf16.msra.mxu1 %v13437_v4  ;;  %9236 = vmatprep.subr.bf16.mxu0 %v13558_v56  ;;  %v13685_v29 = vcombine.low %v848_v27, %v852_v37  ;;  %v8367_v1 = vadd.f32 %v8366_v12, %v18077_v11  ;;  %v8479_v4 = vpop.f32.mrf.mxu1  ;;  %v22634_v56 = vld [vmem:[#allocation37_spill] sm:$0xff] }
 0x2bc   :  { %v716_v5 = vld [vmem:[%s22020_s1 + $0x11b0] sm:$0xff]  ;;  %9043 = vmatmul.mubr.bf16.vlgmr.msra.gmra.mxu0 %v22633_v32 }
 0x2bd   :  { %v22632_v45 = vld [vmem:[#allocation35_spill] sm:$0xff]  ;;  %v13550_v54 = vcombine.high %v712_v53, %v716_v5  ;;  %9349 = vmatprep.subr.bf16.mxu1 %v13686_v17  ;;  %9237 = vmatpush1.bf16.msra.mxu0 %v13557_v58  ;;  %v13549_v15 = vcombine.low %v712_v53, %v716_v5  ;;  %v8368_v17 = vpop.f32.mrf.mxu0  ;;  %v18397_v35 = vadd.f32 %v8479_v4, %v8367_v1  ;;  %v8481_v32 = vpop.f32.mrf.mxu1 }
 0x2be   :  { %9155 = vmatprep.mubr.bf16.mxu1 %v22632_v45  ;;  %v840_v38 = vld [vmem:[%s22020_s1 + $0x1590] sm:$0xff]  ;;  %v8217_v45 = vadd.f32 %v8216_v62, %v18073_v47  ;;  %v8369_v62 = vadd.f32 %v8368_v17, %v18094_v16 }
 0x2bf   :  { %v844_v51 = vld [vmem:[%s22020_s1 + $0x15b0] sm:$0xff]  ;;  %9156 = vmatmul.mubr.bf16.vlgmr.msra.gmra.mxu1 %v22634_v56  ;;  %9238 = vmatprep.subr.bf16.mxu0 %v13550_v54  ;;  %v8370_v5 = vpop.f32.mrf.mxu0 }
 0x2c0   :  { %v13678_v57 = vcombine.high %v840_v38, %v844_v51  ;;  %v704_v2 = vld [vmem:[%s22020_s1 + $0x1150] sm:$0xff]  ;;  %v18393_v37 = vadd.f32 %v8329_v18, %v8217_v45  ;;  %9350 = vmatpush1.bf16.msra.mxu1 %v13685_v29  ;;  %v13677_v52 = vcombine.low %v840_v38, %v844_v51  ;;  %v22635_v18 = vld [vmem:[#allocation38_spill] sm:$0xff]  ;;  %v18414_v51 = vadd.f32 %v8481_v32, %v8369_v62  ;;  %v8483_v29 = vpop.f32.mrf.mxu1 }
 0x2c1   :  { %v708_v40 = vld [vmem:[%s22020_s1 + $0x1170] sm:$0xff]  ;;  %9052 = vmatprep.mubr.bf16.mxu0 %v22635_v18  ;;  %v8371_v58 = vadd.f32 %v8370_v5, %v18097_v42  ;;  %9239 = vmatpush1.bf16.msra.mxu0 %v13549_v15  ;;  %v8372_v12 = vpop.f32.mrf.mxu0 }
 0x2c2   :  { %v832_v27 = vld [vmem:[%s22020_s1 + $0x1550] sm:$0xff]  ;;  %v13542_v48 = vcombine.high %v704_v2, %v708_v40  ;;  %9351 = vmatprep.subr.bf16.mxu1 %v13678_v57  ;;  %v13541_v54 = vcombine.low %v704_v2, %v708_v40  ;;  %v8485_v18 = vpop.f32.mrf.mxu1  ;;  %v22637_v40 = vld [vmem:[#allocation40_spill] sm:$0xff] }
 0x2c3   :  { %v836_v47 = vld [vmem:[%s22020_s1 + $0x1570] sm:$0xff]  ;;  %v18417_v17 = vadd.f32 %v8483_v29, %v8371_v58  ;;  %v8376_v2 = vpop.f32.mrf.mxu0 }
 0x2c4   :  { %v13670_v45 = vcombine.high %v832_v27, %v836_v47  ;;  %v696_v11 = vld [vmem:[%s22020_s1 + $0x1110] sm:$0xff]  ;;  %9352 = vmatpush1.bf16.msra.mxu1 %v13677_v52  ;;  %9240 = vmatprep.subr.bf16.mxu0 %v13542_v48  ;;  %v13669_v1 = vcombine.low %v832_v27, %v836_v47  ;;  %v8377_v15 = vadd.f32 %v8376_v2, %v18117_v55  ;;  %v8489_v52 = vpop.f32.mrf.mxu1  ;;  %v22638_v48 = vld [vmem:[#allocation41_spill] sm:$0xff] }
 0x2c5   :  { %v700_v53 = vld [vmem:[%s22020_s1 + $0x1130] sm:$0xff]  ;;  %9053 = vmatmul.mubr.bf16.gmra.mxu0 %v22637_v40 }
 0x2c6   :  { %v22636_v38 = vld [vmem:[#allocation39_spill] sm:$0xff]  ;;  %v13534_v4 = vcombine.high %v696_v11, %v700_v53  ;;  %9353 = vmatprep.subr.bf16.mxu1 %v13670_v45  ;;  %9241 = vmatpush1.bf16.msra.mxu0 %v13541_v54  ;;  %v13533_v62 = vcombine.low %v696_v11, %v700_v53  ;;  %v8378_v45 = vpop.f32.mrf.mxu0  ;;  %v18437_v29 = vadd.f32 %v8489_v52, %v8377_v15  ;;  %v8491_v40 = vpop.f32.mrf.mxu1 }
 0x2c7   :  { %9165 = vmatprep.mubr.bf16.mxu1 %v22636_v38  ;;  %v824_v16 = vld [vmem:[%s22020_s1 + $0x1510] sm:$0xff]  ;;  %v8373_v38 = vadd.f32 %v8372_v12, %v18113_v23  ;;  %v8379_v12 = vadd.f32 %v8378_v45, %v18134_v28 }
 0x2c8   :  { %v828_v57 = vld [vmem:[%s22020_s1 + $0x1530] sm:$0xff]  ;;  %9166 = vmatmul.mubr.bf16.gmra.mxu1 %v22638_v48  ;;  %9242 = vmatprep.subr.bf16.mxu0 %v13534_v4  ;;  %v8380_v53 = vpop.f32.mrf.mxu0 }
 0x2c9   :  { %v13662_v56 = vcombine.high %v824_v16, %v828_v57  ;;  %v688_v32 = vld [vmem:[%s22020_s1 + $0x10d0] sm:$0xff]  ;;  %v18433_v47 = vadd.f32 %v8485_v18, %v8373_v38  ;;  %9354 = vmatpush1.bf16.msra.mxu1 %v13669_v1  ;;  %v13661_v5 = vcombine.low %v824_v16, %v828_v57  ;;  %v22639_v18 = vld [vmem:[#allocation42_spill] sm:$0xff]  ;;  %v18454_v57 = vadd.f32 %v8491_v40, %v8379_v12  ;;  %v8493_v1 = vpop.f32.mrf.mxu1 }
 0x2ca   :  { %v692_v42 = vld [vmem:[%s22020_s1 + $0x10f0] sm:$0xff]  ;;  %9062 = vmatprep.mubr.bf16.mxu0 %v22639_v18  ;;  %v8381_v54 = vadd.f32 %v8380_v53, %v18137_v49  ;;  %9243 = vmatpush1.bf16.msra.mxu0 %v13533_v62  ;;  %v8382_v2 = vpop.f32.mrf.mxu0 }
 0x2cb   :  { %v816_v27 = vld [vmem:[%s22020_s1 + $0x14d0] sm:$0xff]  ;;  %v13526_v58 = vcombine.high %v688_v32, %v692_v42  ;;  %9355 = vmatprep.subr.bf16.mxu1 %v13662_v56  ;;  %v13525_v4 = vcombine.low %v688_v32, %v692_v42  ;;  %v8495_v18 = vpop.f32.mrf.mxu1  ;;  %v22641_v42 = vld [vmem:[#allocation44_spill] sm:$0xff] }
 0x2cc   :  { %v820_v23 = vld [vmem:[%s22020_s1 + $0x14f0] sm:$0xff]  ;;  %v18457_v45 = vadd.f32 %v8493_v1, %v8381_v54  ;;  %v8386_v32 = vpop.f32.mrf.mxu0 }
 0x2cd   :  { %v13654_v38 = vcombine.high %v816_v27, %v820_v23  ;;  %v680_v55 = vld [vmem:[%s22020_s1 + $0x1090] sm:$0xff]  ;;  %9356 = vmatpush1.bf16.msra.mxu1 %v13661_v5  ;;  %9244 = vmatprep.subr.bf16.mxu0 %v13526_v58  ;;  %v13653_v15 = vcombine.low %v816_v27, %v820_v23  ;;  %v8387_v62 = vadd.f32 %v8386_v32, %v18157_v22  ;;  %v8499_v5 = vpop.f32.mrf.mxu1  ;;  %v22642_v58 = vld [vmem:[#allocation45_spill] sm:$0xff] }
 0x2ce   :  { %v684_v11 = vld [vmem:[%s22020_s1 + $0x10b0] sm:$0xff]  ;;  %9063 = vmatmul.mubr.bf16.gmra.mxu0 %v22641_v42 }
 0x2cf   :  { %v22640_v16 = vld [vmem:[#allocation43_spill] sm:$0xff]  ;;  %v13518_v52 = vcombine.high %v680_v55, %v684_v11  ;;  %9357 = vmatprep.subr.bf16.mxu1 %v13654_v38  ;;  %9245 = vmatpush1.bf16.msra.mxu0 %v13525_v4  ;;  %v13517_v12 = vcombine.low %v680_v55, %v684_v11  ;;  %v8388_v38 = vpop.f32.mrf.mxu0  ;;  %v18477_v1 = vadd.f32 %v8499_v5, %v8387_v62  ;;  %v8501_v42 = vpop.f32.mrf.mxu1 }
 0x2d0   :  { %9175 = vmatprep.mubr.bf16.mxu1 %v22640_v16  ;;  %v808_v28 = vld [vmem:[%s22020_s1 + $0x1490] sm:$0xff]  ;;  %v8383_v16 = vadd.f32 %v8382_v2, %v18153_v0  ;;  %v8389_v2 = vadd.f32 %v8388_v38, %v18174_v34 }
 0x2d1   :  { %v812_v56 = vld [vmem:[%s22020_s1 + $0x14b0] sm:$0xff]  ;;  %9176 = vmatmul.mubr.bf16.gmra.mxu1 %v22642_v58  ;;  %9246 = vmatprep.subr.bf16.mxu0 %v13518_v52  ;;  %v8390_v11 = vpop.f32.mrf.mxu0 }
 0x2d2   :  { %v13646_v48 = vcombine.high %v808_v28, %v812_v56  ;;  %v672_v40 = vld [vmem:[%s22020_s1 + $0x1050] sm:$0xff]  ;;  %v18473_v23 = vadd.f32 %v8495_v18, %v8383_v16  ;;  %9358 = vmatpush1.bf16.msra.mxu1 %v13653_v15  ;;  %v13645_v53 = vcombine.low %v808_v28, %v812_v56  ;;  %v22643_v18 = vld [vmem:[#allocation46_spill] sm:$0xff]  ;;  %v18494_v56 = vadd.f32 %v8501_v42, %v8389_v2  ;;  %v8503_v15 = vpop.f32.mrf.mxu1 }
 0x2d3   :  { %v676_v49 = vld [vmem:[%s22020_s1 + $0x1070] sm:$0xff]  ;;  %9072 = vmatprep.mubr.bf16.mxu0 %v22643_v18  ;;  %v8391_v4 = vadd.f32 %v8390_v11, %v18177_v26  ;;  %9247 = vmatpush1.bf16.msra.mxu0 %v13517_v12  ;;  %v8392_v32 = vpop.f32.mrf.mxu0 }
 0x2d4   :  { %v800_v27 = vld [vmem:[%s22020_s1 + $0x1450] sm:$0xff]  ;;  %v13510_v54 = vcombine.high %v672_v40, %v676_v49  ;;  %9359 = vmatprep.subr.bf16.mxu1 %v13646_v48  ;;  %v13509_v52 = vcombine.low %v672_v40, %v676_v49  ;;  %v8505_v18 = vpop.f32.mrf.mxu1  ;;  %v22645_v49 = vld [vmem:[#allocation48_spill] sm:$0xff] }
 0x2d5   :  { %v804_v0 = vld [vmem:[%s22020_s1 + $0x1470] sm:$0xff]  ;;  %v18497_v38 = vadd.f32 %v8503_v15, %v8391_v4  ;;  %v8396_v40 = vpop.f32.mrf.mxu0 }
 0x2d6   :  { %v13638_v16 = vcombine.high %v800_v27, %v804_v0  ;;  %v664_v22 = vld [vmem:[%s22020_s1 + $0x1010] sm:$0xff]  ;;  %9360 = vmatpush1.bf16.msra.mxu1 %v13645_v53  ;;  %9248 = vmatprep.subr.bf16.mxu0 %v13510_v54  ;;  %v13637_v62 = vcombine.low %v800_v27, %v804_v0  ;;  %v8397_v12 = vadd.f32 %v8396_v40, %v18197_v61  ;;  %v8509_v53 = vpop.f32.mrf.mxu1  ;;  %v22646_v54 = vld [vmem:[#allocation49_spill] sm:$0xff] }
 0x2d7   :  { %v668_v55 = vld [vmem:[%s22020_s1 + $0x1030] sm:$0xff]  ;;  %9073 = vmatmul.mubr.bf16.gmra.mxu0 %v22645_v49 }
 0x2d8   :  { %v22644_v28 = vld [vmem:[#allocation47_spill] sm:$0xff]  ;;  %v13502_v5 = vcombine.high %v664_v22, %v668_v55  ;;  %9361 = vmatprep.subr.bf16.mxu1 %v13638_v16  ;;  %9249 = vmatpush1.bf16.msra.mxu0 %v13509_v52  ;;  %v13501_v2 = vcombine.low %v664_v22, %v668_v55  ;;  %v8398_v16 = vpop.f32.mrf.mxu0  ;;  %v18517_v15 = vadd.f32 %v8509_v53, %v8397_v12  ;;  %v8511_v49 = vpop.f32.mrf.mxu1 }
 0x2d9   :  { %9185 = vmatprep.mubr.bf16.mxu1 %v22644_v28  ;;  %v792_v34 = vld [vmem:[%s22020_s1 + $0x1410] sm:$0xff]  ;;  %v8393_v28 = vadd.f32 %v8392_v32, %v18193_v50  ;;  %v8399_v32 = vadd.f32 %v8398_v16, %v18214_v14 }
 0x2da   :  { %v796_v48 = vld [vmem:[%s22020_s1 + $0x1430] sm:$0xff]  ;;  %9186 = vmatmul.mubr.bf16.gmra.mxu1 %v22646_v54  ;;  %9250 = vmatprep.subr.bf16.mxu0 %v13502_v5  ;;  %v8400_v55 = vpop.f32.mrf.mxu0 }
 0x2db   :  { %v13630_v58 = vcombine.high %v792_v34, %v796_v48  ;;  %v784_v42 = vld [vmem:[%s22020_s1 + $0x13d0] sm:$0xff]  ;;  %v18513_v0 = vadd.f32 %v8505_v18, %v8393_v28  ;;  %9362 = vmatpush1.bf16.msra.mxu1 %v13637_v62  ;;  %v13629_v11 = vcombine.low %v792_v34, %v796_v48  ;;  %v22647_v18 = vld [vmem:[#allocation50_spill] sm:$0xff]  ;;  %v18534_v48 = vadd.f32 %v8511_v49, %v8399_v32  ;;  %v8513_v62 = vpop.f32.mrf.mxu1 }
 0x2dc   :  { %v788_v26 = vld [vmem:[%s22020_s1 + $0x13f0] sm:$0xff]  ;;  %9082 = vmatprep.mubr.bf16.mxu0 %v22647_v18  ;;  %v8401_v52 = vadd.f32 %v8400_v55, %v18217_v7  ;;  %9251 = vmatpush1.bf16.msra.mxu0 %v13501_v2  ;;  %v8402_v40 = vpop.f32.mrf.mxu0 }
 0x2dd   :  { %v912_v27 = vld [vmem:[%s22020_s1 + $0x17d0] sm:$0xff]  ;;  %v13622_v4 = vcombine.high %v784_v42, %v788_v26  ;;  %9363 = vmatprep.subr.bf16.mxu1 %v13630_v58  ;;  %v13621_v5 = vcombine.low %v784_v42, %v788_v26  ;;  %v8515_v18 = vpop.f32.mrf.mxu1  ;;  %v22649_v26 = vld [vmem:[#allocation52_spill] sm:$0xff] }
 0x2de   :  { %v916_v50 = vld [vmem:[%s22020_s1 + $0x17f0] sm:$0xff]  ;;  %v18537_v16 = vadd.f32 %v8513_v62, %v8401_v52  ;;  %v8406_v42 = vpop.f32.mrf.mxu0 }
 0x2df   :  { %v13750_v28 = vcombine.high %v912_v27, %v916_v50  ;;  %v776_v61 = vld [vmem:[%s22020_s1 + $0x1390] sm:$0xff]  ;;  %9364 = vmatpush1.bf16.msra.mxu1 %v13629_v11  ;;  %9252 = vmatprep.subr.bf16.mxu0 %v13622_v4  ;;  %v13749_v12 = vcombine.low %v912_v27, %v916_v50  ;;  %v8407_v2 = vadd.f32 %v8406_v42, %v18237_v10  ;;  %v8519_v11 = vpop.f32.mrf.mxu1  ;;  %v22650_v4 = vld [vmem:[#allocation53_spill] sm:$0xff] }
 0x2e0   :  { %v780_v22 = vld [vmem:[%s22020_s1 + $0x13b0] sm:$0xff]  ;;  %9083 = vmatmul.mubr.bf16.gmra.mxu0 %v22649_v26 }
 0x2e1   :  { %v22648_v34 = vld [vmem:[#allocation51_spill] sm:$0xff]  ;;  %v13614_v53 = vcombine.high %v776_v61, %v780_v22  ;;  %9365 = vmatprep.subr.bf16.mxu1 %v13750_v28  ;;  %9253 = vmatpush2.bf16.msra.mxu0 %v13621_v5  ;;  %v13613_v32 = vcombine.low %v776_v61, %v780_v22  ;;  %v8408_v28 = vpop.f32.mrf.mxu0  ;;  %v18557_v62 = vadd.f32 %v8519_v11, %v8407_v2  ;;  %v8521_v26 = vpop.f32.mrf.mxu1 }
 0x2e2   :  { %9195 = vmatprep.mubr.bf16.mxu1 %v22648_v34  ;;  %v904_v14 = vld [vmem:[%s22020_s1 + $0x1790] sm:$0xff]  ;;  %v8403_v34 = vadd.f32 %v8402_v40, %v18233_v8  ;;  %v8409_v40 = vadd.f32 %v8408_v28, %v18254_v9 }
 0x2e3   :  { %v908_v58 = vld [vmem:[%s22020_s1 + $0x17b0] sm:$0xff]  ;;  %9196 = vmatmul.mubr.bf16.gmra.mxu1 %v22650_v4  ;;  %9254 = vmatprep.subr.bf16.mxu0 %v13614_v53  ;;  %v8410_v22 = vpop.f32.mrf.mxu0 }
 0x2e4   :  { %v13742_v54 = vcombine.high %v904_v14, %v908_v58  ;;  %v768_v49 = vld [vmem:[%s22020_s1 + $0x1350] sm:$0xff]  ;;  %v18553_v50 = vadd.f32 %v8515_v18, %v8403_v34  ;;  %9366 = vmatpush2.bf16.msra.mxu1 %v13749_v12  ;;  %v13741_v55 = vcombine.low %v904_v14, %v908_v58  ;;  %v22651_v18 = vld [vmem:[#allocation54_spill] sm:$0xff]  ;;  %v18574_v58 = vadd.f32 %v8521_v26, %v8409_v40  ;;  %v8523_v12 = vpop.f32.mrf.mxu1 }
 0x2e5   :  { %v772_v7 = vld [vmem:[%s22020_s1 + $0x1370] sm:$0xff]  ;;  %9092 = vmatprep.mubr.bf16.mxu0 %v22651_v18  ;;  %v8411_v5 = vadd.f32 %v8410_v22, %v18257_v13  ;;  %9255 = vmatpush2.bf16.msra.mxu0 %v13613_v32  ;;  %v8412_v42 = vpop.f32.mrf.mxu0 }
 0x2e6   :  { %v896_v27 = vld [vmem:[%s22020_s1 + $0x1750] sm:$0xff]  ;;  %v13606_v52 = vcombine.high %v768_v49, %v772_v7  ;;  %9367 = vmatprep.subr.bf16.mxu1 %v13742_v54  ;;  %v13605_v53 = vcombine.low %v768_v49, %v772_v7  ;;  %v8525_v18 = vpop.f32.mrf.mxu1  ;;  %v22653_v7 = vld [vmem:[#allocation56_spill] sm:$0xff] }
 0x2e7   :  { %v900_v8 = vld [vmem:[%s22020_s1 + $0x1770] sm:$0xff]  ;;  %v18577_v28 = vadd.f32 %v8523_v12, %v8411_v5  ;;  %v8416_v49 = vpop.f32.mrf.mxu0 }
 0x2e8   :  { %v13734_v34 = vcombine.high %v896_v27, %v900_v8  ;;  %v760_v10 = vld [vmem:[%s22020_s1 + $0x1310] sm:$0xff]  ;;  %9368 = vmatpush2.bf16.msra.mxu1 %v13741_v55  ;;  %9256 = vmatprep.subr.bf16.mxu0 %v13606_v52  ;;  %v13733_v2 = vcombine.low %v896_v27, %v900_v8  ;;  %v8417_v32 = vadd.f32 %v8416_v49, %v18277_v19  ;;  %v8529_v55 = vpop.f32.mrf.mxu1  ;;  %v22654_v52 = vld [vmem:[#allocation57_spill] sm:$0xff] }
 0x2e9   :  { %v764_v61 = vld [vmem:[%s22020_s1 + $0x1330] sm:$0xff]  ;;  %9093 = vmatmul.mubr.bf16.gmra.mxu0 %v22653_v7 }
 0x2ea   :  { %v22652_v14 = vld [vmem:[#allocation55_spill] sm:$0xff]  ;;  %v13598_v11 = vcombine.high %v760_v10, %v764_v61  ;;  %9369 = vmatprep.subr.bf16.mxu1 %v13734_v34  ;;  %9257 = vmatpush2.bf16.msra.mxu0 %v13605_v53  ;;  %v13597_v40 = vcombine.low %v760_v10, %v764_v61  ;;  %v8418_v34 = vpop.f32.mrf.mxu0  ;;  %v18597_v12 = vadd.f32 %v8529_v55, %v8417_v32  ;;  %v8531_v7 = vpop.f32.mrf.mxu1 }
 0x2eb   :  { %9205 = vmatprep.mubr.bf16.mxu1 %v22652_v14  ;;  %v888_v9 = vld [vmem:[%s22020_s1 + $0x1710] sm:$0xff]  ;;  %v8413_v14 = vadd.f32 %v8412_v42, %v18273_v43  ;;  %v8419_v42 = vadd.f32 %v8418_v34, %v18294_v60 }
 0x2ec   :  { %v892_v54 = vld [vmem:[%s22020_s1 + $0x1730] sm:$0xff]  ;;  %9206 = vmatmul.mubr.bf16.gmra.mxu1 %v22654_v52  ;;  %9258 = vmatprep.subr.bf16.mxu0 %v13598_v11  ;;  %v8420_v61 = vpop.f32.mrf.mxu0 }
 0x2ed   :  { %v13726_v4 = vcombine.high %v888_v9, %v892_v54  ;;  %v752_v26 = vld [vmem:[%s22020_s1 + $0x12d0] sm:$0xff]  ;;  %v18593_v8 = vadd.f32 %v8525_v18, %v8413_v14  ;;  %9370 = vmatpush2.bf16.msra.mxu1 %v13733_v2  ;;  %v13725_v22 = vcombine.low %v888_v9, %v892_v54  ;;  %v22655_v18 = vld [vmem:[#allocation58_spill] sm:$0xff]  ;;  %v18614_v54 = vadd.f32 %v8531_v7, %v8419_v42  ;;  %v8533_v2 = vpop.f32.mrf.mxu1 }
 0x2ee   :  { %v756_v13 = vld [vmem:[%s22020_s1 + $0x12f0] sm:$0xff]  ;;  %9102 = vmatprep.mubr.bf16.mxu0 %v22655_v18  ;;  %v8421_v53 = vadd.f32 %v8420_v61, %v18297_v59  ;;  %9259 = vmatpush2.bf16.msra.mxu0 %v13597_v40  ;;  %v8422_v49 = vpop.f32.mrf.mxu0 }
 0x2ef   :  { %v880_v27 = vld [vmem:[%s22020_s1 + $0x16d0] sm:$0xff]  ;;  %v13590_v5 = vcombine.high %v752_v26, %v756_v13  ;;  %9371 = vmatprep.subr.bf16.mxu1 %v13726_v4  ;;  %v13589_v11 = vcombine.low %v752_v26, %v756_v13  ;;  %v8535_v18 = vpop.f32.mrf.mxu1  ;;  %v22657_v13 = vld [vmem:[#allocation60_spill] sm:$0xff] }
 0x2f0   :  { %v884_v43 = vld [vmem:[%s22020_s1 + $0x16f0] sm:$0xff]  ;;  %v18617_v34 = vadd.f32 %v8533_v2, %v8421_v53  ;;  %v8426_v26 = vpop.f32.mrf.mxu0 }
 0x2f1   :  { %v13718_v14 = vcombine.high %v880_v27, %v884_v43  ;;  %v744_v19 = vld [vmem:[%s22020_s1 + $0x1290] sm:$0xff]  ;;  %9372 = vmatpush2.bf16.msra.mxu1 %v13725_v22  ;;  %9260 = vmatprep.subr.bf16.mxu0 %v13590_v5  ;;  %v13717_v32 = vcombine.low %v880_v27, %v884_v43  ;;  %v8427_v40 = vadd.f32 %v8426_v26, %v18317_v36  ;;  %v8539_v22 = vpop.f32.mrf.mxu1  ;;  %v22658_v5 = vld [vmem:[#allocation61_spill] sm:$0xff] }
 0x2f2   :  { %v748_v10 = vld [vmem:[%s22020_s1 + $0x12b0] sm:$0xff]  ;;  %9103 = vmatmul.mubr.bf16.gmra.mxu0 %v22657_v13 }
 0x2f3   :  { %v22656_v9 = vld [vmem:[#allocation59_spill] sm:$0xff]  ;;  %v13582_v55 = vcombine.high %v744_v19, %v748_v10  ;;  %9373 = vmatprep.subr.bf16.mxu1 %v13718_v14  ;;  %9261 = vmatpush2.bf16.msra.mxu0 %v13589_v11  ;;  %v13581_v42 = vcombine.low %v744_v19, %v748_v10  ;;  %v8428_v14 = vpop.f32.mrf.mxu0  ;;  %v18637_v2 = vadd.f32 %v8539_v22, %v8427_v40  ;;  %v8541_v13 = vpop.f32.mrf.mxu1 }
 0x2f4   :  { %9215 = vmatprep.mubr.bf16.mxu1 %v22656_v9  ;;  %v872_v60 = vld [vmem:[%s22020_s1 + $0x1690] sm:$0xff]  ;;  %v8423_v9 = vadd.f32 %v8422_v49, %v18313_v39  ;;  %v8429_v49 = vadd.f32 %v8428_v14, %v18334_v3 }
 0x2f5   :  { %v876_v4 = vld [vmem:[%s22020_s1 + $0x16b0] sm:$0xff]  ;;  %9216 = vmatmul.mubr.bf16.gmra.mxu1 %v22658_v5  ;;  %9262 = vmatprep.subr.bf16.mxu0 %v13582_v55  ;;  %v8430_v10 = vpop.f32.mrf.mxu0 }
 0x2f6   :  { %v13710_v52 = vcombine.high %v872_v60, %v876_v4  ;;  %v736_v7 = vld [vmem:[%s22020_s1 + $0x1250] sm:$0xff]  ;;  %v18633_v43 = vadd.f32 %v8535_v18, %v8423_v9  ;;  %9374 = vmatpush2.bf16.msra.mxu1 %v13717_v32  ;;  %v13709_v61 = vcombine.low %v872_v60, %v876_v4  ;;  %v22659_v18 = vld [vmem:[#allocation62_spill] sm:$0xff]  ;;  %v18654_v4 = vadd.f32 %v8541_v13, %v8429_v49  ;;  %v8543_v32 = vpop.f32.mrf.mxu1 }
 0x2f7   :  { %v740_v59 = vld [vmem:[%s22020_s1 + $0x1270] sm:$0xff]  ;;  %9112 = vmatprep.mubr.bf16.mxu0 %v22659_v18  ;;  %v8431_v11 = vadd.f32 %v8430_v10, %v18337_v33  ;;  %9263 = vmatpush2.bf16.msra.mxu0 %v13581_v42  ;;  %v8432_v26 = vpop.f32.mrf.mxu0 }
 0x2f8   :  { %v864_v27 = vld [vmem:[%s22020_s1 + $0x1650] sm:$0xff]  ;;  %v13574_v53 = vcombine.high %v736_v7, %v740_v59  ;;  %9375 = vmatprep.subr.bf16.mxu1 %v13710_v52  ;;  %v13573_v55 = vcombine.low %v736_v7, %v740_v59  ;;  %v8545_v18 = vpop.f32.mrf.mxu1  ;;  %v22661_v59 = vld [vmem:[#allocation64_spill] sm:$0xff] }
 0x2f9   :  { %v868_v39 = vld [vmem:[%s22020_s1 + $0x1670] sm:$0xff]  ;;  %v18657_v14 = vadd.f32 %v8543_v32, %v8431_v11  ;;  %v8436_v7 = vpop.f32.mrf.mxu0 }
 0x2fa   :  { %v13702_v9 = vcombine.high %v864_v27, %v868_v39  ;;  %v728_v36 = vld [vmem:[%s22020_s1 + $0x1210] sm:$0xff]  ;;  %9376 = vmatpush2.bf16.msra.mxu1 %v13709_v61  ;;  %9264 = vmatprep.subr.bf16.mxu0 %v13574_v53  ;;  %v13701_v40 = vcombine.low %v864_v27, %v868_v39  ;;  %v8437_v42 = vadd.f32 %v8436_v7, %v18357_v63  ;;  %v8549_v61 = vpop.f32.mrf.mxu1  ;;  %v22662_v53 = vld [vmem:[#allocation65_spill] sm:$0xff] }
 0x2fb   :  { %v732_v19 = vld [vmem:[%s22020_s1 + $0x1230] sm:$0xff]  ;;  %9113 = vmatmul.mubr.bf16.gmra.mxu0 %v22661_v59 }
 0x2fc   :  { %v22660_v60 = vld [vmem:[#allocation63_spill] sm:$0xff]  ;;  %v13566_v22 = vcombine.high %v728_v36, %v732_v19  ;;  %9377 = vmatprep.subr.bf16.mxu1 %v13702_v9  ;;  %9265 = vmatpush2.bf16.msra.mxu0 %v13573_v55  ;;  %v13565_v49 = vcombine.low %v728_v36, %v732_v19  ;;  %v8438_v9 = vpop.f32.mrf.mxu0  ;;  %v18677_v32 = vadd.f32 %v8549_v61, %v8437_v42  ;;  %v8551_v59 = vpop.f32.mrf.mxu1 }
 0x2fd   :  { %9225 = vmatprep.mubr.bf16.mxu1 %v22660_v60  ;;  %v856_v3 = vld [vmem:[%s22020_s1 + $0x1610] sm:$0xff]  ;;  %v8433_v60 = vadd.f32 %v8432_v26, %v18353_v6  ;;  %v8439_v26 = vadd.f32 %v8438_v9, %v18374_v44 }
 0x2fe   :  { %v860_v52 = vld [vmem:[%s22020_s1 + $0x1630] sm:$0xff]  ;;  %9226 = vmatmul.mubr.bf16.gmra.mxu1 %v22662_v53  ;;  %9266 = vmatprep.subr.bf16.mxu0 %v13566_v22  ;;  %v8440_v19 = vpop.f32.mrf.mxu0 }
 0x2ff   :  { %v13694_v5 = vcombine.high %v856_v3, %v860_v52  ;;  %v976_v13 = vld [vmem:[%s22020_s1 + $0x19d0] sm:$0xff]  ;;  %v18673_v39 = vadd.f32 %v8545_v18, %v8433_v60  ;;  %9378 = vmatpush2.bf16.msra.mxu1 %v13701_v40  ;;  %v13693_v10 = vcombine.low %v856_v3, %v860_v52  ;;  %v22663_v18 = vld [vmem:[#allocation66_spill] sm:$0xff]  ;;  %v18694_v52 = vadd.f32 %v8551_v59, %v8439_v26  ;;  %v8553_v40 = vpop.f32.mrf.mxu1 }
 0x300   :  { %v980_v33 = vld [vmem:[%s22020_s1 + $0x19f0] sm:$0xff]  ;;  %9268 = vmatprep.mubr.bf16.mxu0 %v22663_v18  ;;  %v8441_v55 = vadd.f32 %v8440_v19, %v18377_v46  ;;  %9267 = vmatpush2.bf16.msra.mxu0 %v13565_v49  ;;  %v8442_v7 = vpop.f32.mrf.mxu0 }
 0x301   :  { %v1104_v27 = vld [vmem:[%s22020_s1 + $0x1dd0] sm:$0xff]  ;;  %v13814_v11 = vcombine.high %v976_v13, %v980_v33  ;;  %9379 = vmatprep.subr.bf16.mxu1 %v13694_v5  ;;  %v13813_v22 = vcombine.low %v976_v13, %v980_v33  ;;  %v8555_v18 = vpop.f32.mrf.mxu1  ;;  %v22665_v33 = vld [vmem:[#allocation68_spill] sm:$0xff] }
 0x302   :  { %v1108_v6 = vld [vmem:[%s22020_s1 + $0x1df0] sm:$0xff]  ;;  %v18697_v9 = vadd.f32 %v8553_v40, %v8441_v55  ;;  %v8592_v13 = vpop.f32.mrf.mxu0 }
 0x303   :  { %v13942_v60 = vcombine.high %v1104_v27, %v1108_v6  ;;  %v968_v63 = vld [vmem:[%s22020_s1 + $0x1990] sm:$0xff]  ;;  %9380 = vmatpush2.bf16.msra.mxu1 %v13693_v10  ;;  %9462 = vmatprep.subr.bf16.mxu0 %v13814_v11  ;;  %v13941_v42 = vcombine.low %v1104_v27, %v1108_v6  ;;  %v8593_v49 = vadd.f32 %v8592_v13, %v18397_v35  ;;  %v8705_v10 = vpop.f32.mrf.mxu1  ;;  %v22666_v11 = vld [vmem:[#allocation69_spill] sm:$0xff] }
 0x304   :  { %v972_v36 = vld [vmem:[%s22020_s1 + $0x19b0] sm:$0xff]  ;;  %9269 = vmatmul.mubr.bf16.vlgmr.msra.gmra.mxu0 %v22665_v33 }
 0x305   :  { %v22664_v3 = vld [vmem:[#allocation67_spill] sm:$0xff]  ;;  %v13806_v61 = vcombine.high %v968_v63, %v972_v36  ;;  %9575 = vmatprep.subr.bf16.mxu1 %v13942_v60  ;;  %9463 = vmatpush1.bf16.msra.mxu0 %v13813_v22  ;;  %v13805_v26 = vcombine.low %v968_v63, %v972_v36  ;;  %v8594_v60 = vpop.f32.mrf.mxu0  ;;  %v8706_v40 = vadd.f32 %v8705_v10, %v8593_v49  ;;  %v8707_v33 = vpop.f32.mrf.mxu1 }
 0x306   :  { %9381 = vmatprep.mubr.bf16.mxu1 %v22664_v3  ;;  %v1096_v44 = vld [vmem:[%s22020_s1 + $0x1d90] sm:$0xff]  ;;  %v8443_v3 = vadd.f32 %v8442_v7, %v18393_v37  ;;  %v8595_v7 = vadd.f32 %v8594_v60, %v18414_v51  ;;  %9278 = vmatprep.mubr.bf16.mxu0 %v22667_v31 }
 0x307   :  { %v1100_v5 = vld [vmem:[%s22020_s1 + $0x1db0] sm:$0xff]  ;;  %9382 = vmatmul.mubr.bf16.vlgmr.msra.gmra.mxu1 %v22666_v11  ;;  %9464 = vmatprep.subr.bf16.mxu0 %v13806_v61  ;;  %v8596_v36 = vpop.f32.mrf.mxu0  ;;  %v8709_v22 = vpop.f32.mrf.mxu1 }
 0x308   :  { %v13934_v53 = vcombine.high %v1096_v44, %v1100_v5  ;;  %v960_v59 = vld [vmem:[%s22020_s1 + $0x1950] sm:$0xff]  ;;  %v18713_v6 = vadd.f32 %v8555_v18, %v8443_v3  ;;  %9576 = vmatpush1.bf16.msra.mxu1 %v13941_v42  ;;  %v13933_v19 = vcombine.low %v1096_v44, %v1100_v5  ;;  %v8708_v44 = vadd.f32 %v8707_v33, %v8595_v7 }
 0x309   :  { %v964_v46 = vld [vmem:[%s22020_s1 + $0x1970] sm:$0xff]  ;;  %v8597_v5 = vadd.f32 %v8596_v36, %v18417_v17  ;;  %9465 = vmatpush1.bf16.msra.mxu0 %v13805_v26  ;;  %v8598_v61 = vpop.f32.mrf.mxu0  ;;  %v8711_v31 = vpop.f32.mrf.mxu1 }
 0x30a   :  { %v1088_v27 = vld [vmem:[%s22020_s1 + $0x1d50] sm:$0xff]  ;;  %v13798_v55 = vcombine.high %v960_v59, %v964_v46  ;;  %9577 = vmatprep.subr.bf16.mxu1 %v13934_v53  ;;  %v13797_v42 = vcombine.low %v960_v59, %v964_v46 }
 0x30b   :  { %v1092_v37 = vld [vmem:[%s22020_s1 + $0x1d70] sm:$0xff]  ;;  %v8710_v60 = vadd.f32 %v8709_v22, %v8597_v5  ;;  %v8715_v7 = vpop.f32.mrf.mxu1 }
 0x30c   :  { %v13926_v18 = vcombine.high %v1088_v27, %v1092_v37  ;;  %v952_v35 = vld [vmem:[%s22020_s1 + $0x1910] sm:$0xff]  ;;  %9578 = vmatpush1.bf16.msra.mxu1 %v13933_v19  ;;  %9466 = vmatprep.subr.bf16.mxu0 %v13798_v55  ;;  %v13925_v13 = vcombine.low %v1088_v27, %v1092_v37  ;;  %v8602_v27 = vpop.f32.mrf.mxu0  ;;  %v22669_v37 = vld [vmem:[#allocation72_spill] sm:$0xff] }
 0x30d   :  { %v956_v63 = vld [vmem:[%s22020_s1 + $0x1930] sm:$0xff]  ;;  %9279 = vmatmul.mubr.bf16.gmra.mxu0 %v22669_v37  ;;  %v8603_v55 = vadd.f32 %v8602_v27, %v18437_v29 }
 0x30e   :  { %v22668_v3 = vld [vmem:[#allocation71_spill] sm:$0xff]  ;;  %v13790_v49 = vcombine.high %v952_v35, %v956_v63  ;;  %9579 = vmatprep.subr.bf16.mxu1 %v13926_v18  ;;  %v13789_v26 = vcombine.low %v952_v35, %v956_v63  ;;  %9467 = vmatpush1.bf16.msra.mxu0 %v13797_v42  ;;  %v8604_v18 = vpop.f32.mrf.mxu0  ;;  %v8717_v35 = vpop.f32.mrf.mxu1 }
 0x30f   :  { %9391 = vmatprep.mubr.bf16.mxu1 %v22668_v3  ;;  %v1080_v51 = vld [vmem:[%s22020_s1 + $0x1d10] sm:$0xff]  ;;  %v8599_v3 = vadd.f32 %v8598_v61, %v18433_v47  ;;  %v18749_v47 = vpack.c.bf16 %v8710_v60, %v8706_v40  ;;  %v8716_v37 = vadd.f32 %v8715_v7, %v8603_v55  ;;  %v8605_v40 = vadd.f32 %v8604_v18, %v18454_v57 }
 0x310   :  { %v1084_v53 = vld [vmem:[%s22020_s1 + $0x1d30] sm:$0xff]  ;;  %9392 = vmatmul.mubr.bf16.gmra.mxu1 %v22532_v20  ;;  %9468 = vmatprep.subr.bf16.mxu0 %v13790_v49  ;;  %v8606_v63 = vpop.f32.mrf.mxu0 }
 0x311   :  { %v18736_v10 = vld [vmem:[%s22020_s1 + $0x18d0] sm:$0xff]  ;;  %v13918_v33 = vcombine.high %v1080_v51, %v1084_v53  ;;  %22670 = vst [vmem:[#allocation69_spill] sm:$0xff] %v18749_v47  ;;  %v8712_v19 = vadd.f32 %v8711_v31, %v8599_v3  ;;  %9580 = vmatpush1.bf16.msra.mxu1 %v13925_v13  ;;  %v13917_v36 = vcombine.low %v1080_v51, %v1084_v53 }
 0x312   :  { %v948_v17 = vld [vmem:[%s22020_s1 + $0x18f0] sm:$0xff]  ;;  %9288 = vmatprep.mubr.bf16.mxu0 %v22534_v41  ;;  %9401 = vmatprep.mubr.bf16.mxu1 %v22535_v24  ;;  %v8718_v51 = vadd.f32 %v8717_v35, %v8605_v40  ;;  %v8607_v53 = vadd.f32 %v8606_v63, %v18457_v45  ;;  %v8608_v13 = vpop.f32.mrf.mxu0 }
 0x313   :  { %v1072_v59 = vld [vmem:[%s22020_s1 + $0x1cd0] sm:$0xff]  ;;  %v13782_v5 = vcombine.high %v18736_v10, %v948_v17  ;;  %v18754_v61 = vpack.c.bf16 %v8712_v19, %v8708_v44  ;;  %9581 = vmatprep.subr.bf16.mxu1 %v13918_v33  ;;  %v8719_v44 = vpop.f32.mrf.mxu1  ;;  %9469 = vmatpush1.bf16.msra.mxu0 %v13789_v26  ;;  %v13781_v42 = vcombine.low %v18736_v10, %v948_v17  ;;  %v22672_v26 = vld [vmem:[#allocation76_spill] sm:$0xff] }
 0x314   :  { %v1076_v46 = vld [vmem:[%s22020_s1 + $0x1cf0] sm:$0xff]  ;;  %v8720_v27 = vadd.f32 %v8719_v44, %v8607_v53  ;;  %v8609_v19 = vadd.f32 %v8608_v13, %v18473_v23 }
 0x315   :  { %v13910_v22 = vcombine.high %v1072_v59, %v1076_v46  ;;  %22671 = vst [vmem:[#allocation144_spill] sm:$0xff] %v18754_v61  ;;  %v936_v31 = vld [vmem:[%s22020_s1 + $0x1890] sm:$0xff]  ;;  %9582 = vmatpush1.bf16.msra.mxu1 %v13917_v36  ;;  %9470 = vmatprep.subr.bf16.mxu0 %v13782_v5  ;;  %v13909_v49 = vcombine.low %v1072_v59, %v1076_v46  ;;  %v8721_v55 = vpop.f32.mrf.mxu1  ;;  %v8612_v46 = vpop.f32.mrf.mxu0 }
 0x316   :  { %v940_v29 = vld [vmem:[%s22020_s1 + $0x18b0] sm:$0xff]  ;;  %9289 = vmatmul.mubr.bf16.gmra.mxu0 %v22672_v26  ;;  %v18789_v23 = vpack.c.bf16 %v8720_v27, %v8716_v37  ;;  %v8722_v18 = vadd.f32 %v8721_v55, %v8609_v19  ;;  %v8613_v36 = vadd.f32 %v8612_v46, %v18477_v1 }
 0x317   :  { %v1064_v3 = vld [vmem:[%s22020_s1 + $0x1c90] sm:$0xff]  ;;  %v13774_v60 = vcombine.high %v936_v31, %v940_v29  ;;  %9583 = vmatprep.subr.bf16.mxu1 %v13910_v22  ;;  %v13773_v7 = vcombine.low %v936_v31, %v940_v29  ;;  %v8725_v5 = vpop.f32.mrf.mxu1  ;;  %v22674_v22 = vld [vmem:[#allocation77_spill] sm:$0xff]  ;;  %9471 = vmatpush1.bf16.msra.mxu0 %v13781_v42  ;;  %v8614_v40 = vpop.f32.mrf.mxu0  ;;  %v22676_v29 = vld [vmem:[#allocation78_spill] sm:$0xff] }
 0x318   :  { %v1068_v57 = vld [vmem:[%s22020_s1 + $0x1cb0] sm:$0xff]  ;;  %22673 = vst [vmem:[#allocation145_spill] sm:$0xff] %v18789_v23  ;;  %9402 = vmatmul.mubr.bf16.gmra.mxu1 %v22674_v22  ;;  %v18794_v44 = vpack.c.bf16 %v8722_v18, %v8718_v51  ;;  %v8726_v13 = vadd.f32 %v8725_v5, %v8613_v36  ;;  %v8615_v37 = vadd.f32 %v8614_v40, %v18494_v56 }
 0x319   :  { %v18776_v33 = vld [vmem:[%s22020_s1 + $0x1850] sm:$0xff]  ;;  %v13902_v45 = vcombine.high %v1064_v3, %v1068_v57  ;;  %9584 = vmatpush1.bf16.msra.mxu1 %v13909_v49  ;;  %9472 = vmatprep.subr.bf16.mxu0 %v13774_v60  ;;  %v13901_v35 = vcombine.low %v1064_v3, %v1068_v57  ;;  %v8727_v31 = vpop.f32.mrf.mxu1  ;;  %v8616_v57 = vpop.f32.mrf.mxu0 }
 0x31a   :  { %v932_v10 = vld [vmem:[%s22020_s1 + $0x1870] sm:$0xff]  ;;  %22675 = vst [vmem:[#allocation146_spill] sm:$0xff] %v18794_v44  ;;  %9298 = vmatprep.mubr.bf16.mxu0 %v22676_v29  ;;  %v8728_v49 = vadd.f32 %v8727_v31, %v8615_v37  ;;  %v8617_v60 = vadd.f32 %v8616_v57, %v18497_v38  ;;  %v22680_v31 = vld [vmem:[#allocation81_spill] sm:$0xff] }
 0x31b   :  { %v1056_v17 = vld [vmem:[%s22020_s1 + $0x1c50] sm:$0xff]  ;;  %v13766_v63 = vcombine.high %v18776_v33, %v932_v10  ;;  %9585 = vmatprep.subr.bf16.mxu1 %v13902_v45  ;;  %v8729_v27 = vpop.f32.mrf.mxu1  ;;  %9473 = vmatpush1.bf16.msra.mxu0 %v13773_v7  ;;  %v13765_v19 = vcombine.low %v18776_v33, %v932_v10  ;;  %v8618_v55 = vpop.f32.mrf.mxu0  ;;  %v22678_v7 = vld [vmem:[#allocation80_spill] sm:$0xff] }
 0x31c   :  { %v1060_v59 = vld [vmem:[%s22020_s1 + $0x1c70] sm:$0xff]  ;;  %v8730_v36 = vadd.f32 %v8729_v27, %v8617_v60  ;;  %v8619_v5 = vadd.f32 %v8618_v55, %v18513_v0 }
 0x31d   :  { %v13894_v53 = vcombine.high %v1056_v17, %v1060_v59  ;;  %v920_v1 = vld [vmem:[%s22020_s1 + $0x1810] sm:$0xff]  ;;  %9586 = vmatpush1.bf16.msra.mxu1 %v13901_v35  ;;  %9474 = vmatprep.subr.bf16.mxu0 %v13766_v63  ;;  %v13893_v45 = vcombine.low %v1056_v17, %v1060_v59  ;;  %v8731_v40 = vpop.f32.mrf.mxu1  ;;  %v8622_v59 = vpop.f32.mrf.mxu0 }
 0x31e   :  { %v924_v3 = vld [vmem:[%s22020_s1 + $0x1830] sm:$0xff]  ;;  %9299 = vmatmul.mubr.bf16.gmra.mxu0 %v22678_v7  ;;  %v18829_v0 = vpack.c.bf16 %v8730_v36, %v8726_v13  ;;  %v8732_v63 = vadd.f32 %v8731_v40, %v8619_v5 }
 0x31f   :  { %v22677_v42 = vld [vmem:[#allocation79_spill] sm:$0xff]  ;;  %v13758_v46 = vcombine.high %v920_v1, %v924_v3  ;;  %9587 = vmatprep.subr.bf16.mxu1 %v13894_v53  ;;  %v13757_v35 = vcombine.low %v920_v1, %v924_v3  ;;  %v8623_v53 = vadd.f32 %v8622_v59, %v18517_v15  ;;  %v8735_v37 = vpop.f32.mrf.mxu1  ;;  %9475 = vmatpush1.bf16.msra.mxu0 %v13765_v19  ;;  %v8624_v57 = vpop.f32.mrf.mxu0  ;;  %v22682_v3 = vld [vmem:[#allocation82_spill] sm:$0xff] }
 0x320   :  { %9411 = vmatprep.mubr.bf16.mxu1 %v22677_v42  ;;  %v1048_v51 = vld [vmem:[%s22020_s1 + $0x1c10] sm:$0xff]  ;;  %22679 = vst [vmem:[#allocation147_spill] sm:$0xff] %v18829_v0  ;;  %v18834_v23 = vpack.c.bf16 %v8732_v63, %v8728_v49  ;;  %v8625_v13 = vadd.f32 %v8624_v57, %v18534_v48  ;;  %9308 = vmatprep.mubr.bf16.mxu0 %v22682_v3 }
 0x321   :  { %v1052_v56 = vld [vmem:[%s22020_s1 + $0x1c30] sm:$0xff]  ;;  %9412 = vmatmul.mubr.bf16.gmra.mxu1 %v22680_v31  ;;  %9476 = vmatprep.subr.bf16.mxu0 %v13758_v46  ;;  %v8736_v44 = vadd.f32 %v8735_v37, %v8623_v53  ;;  %v8737_v1 = vpop.f32.mrf.mxu1 }
 0x322   :  { %v18816_v18 = vld [vmem:[%s22020_s1 + $0x1bd0] sm:$0xff]  ;;  %v13886_v38 = vcombine.high %v1048_v51, %v1052_v56  ;;  %9588 = vmatpush1.bf16.msra.mxu1 %v13893_v45  ;;  %v13885_v60 = vcombine.low %v1048_v51, %v1052_v56  ;;  %22681 = vst [vmem:[#allocation148_spill] sm:$0xff] %v18834_v23  ;;  %v8626_v56 = vpop.f32.mrf.mxu0  ;;  %v8738_v45 = vadd.f32 %v8737_v1, %v8625_v13  ;;  %v22686_v1 = vld [vmem:[#allocation85_spill] sm:$0xff] }
 0x323   :  { %v1044_v33 = vld [vmem:[%s22020_s1 + $0x1bf0] sm:$0xff]  ;;  %v8627_v46 = vadd.f32 %v8626_v56, %v18537_v16  ;;  %v8739_v36 = vpop.f32.mrf.mxu1  ;;  %9477 = vmatpush1.bf16.msra.mxu0 %v13757_v35  ;;  %v22684_v35 = vld [vmem:[#allocation84_spill] sm:$0xff] }
 0x324   :  { %v1168_v10 = vld [vmem:[%s22020_s1 + $0x1fd0] sm:$0xff]  ;;  %v13878_v27 = vcombine.high %v18816_v18, %v1044_v33  ;;  %9589 = vmatprep.subr.bf16.mxu1 %v13886_v38  ;;  %v13877_v5 = vcombine.low %v18816_v18, %v1044_v33  ;;  %v8628_v40 = vpop.f32.mrf.mxu0 }
 0x325   :  { %v1172_v17 = vld [vmem:[%s22020_s1 + $0x1ff0] sm:$0xff]  ;;  %v8740_v53 = vadd.f32 %v8739_v36, %v8627_v46  ;;  %v8629_v37 = vadd.f32 %v8628_v40, %v18553_v50  ;;  %v8741_v57 = vpop.f32.mrf.mxu1 }
 0x326   :  { %v14006_v55 = vcombine.high %v1168_v10, %v1172_v17  ;;  %v1032_v15 = vld [vmem:[%s22020_s1 + $0x1b90] sm:$0xff]  ;;  %9590 = vmatpush1.bf16.msra.mxu1 %v13885_v60  ;;  %9478 = vmatprep.subr.bf16.mxu0 %v13878_v27  ;;  %v14005_v38 = vcombine.low %v1168_v10, %v1172_v17  ;;  %v8632_v17 = vpop.f32.mrf.mxu0 }
 0x327   :  { %v1036_v51 = vld [vmem:[%s22020_s1 + $0x1bb0] sm:$0xff]  ;;  %9309 = vmatmul.mubr.bf16.gmra.mxu0 %v22684_v35  ;;  %v18869_v50 = vpack.c.bf16 %v8740_v53, %v8736_v44  ;;  %v8742_v27 = vadd.f32 %v8741_v57, %v8629_v37  ;;  %v8745_v13 = vpop.f32.mrf.mxu1 }
 0x328   :  { %v22683_v19 = vld [vmem:[#allocation83_spill] sm:$0xff]  ;;  %v13870_v59 = vcombine.high %v1032_v15, %v1036_v51  ;;  %9591 = vmatprep.subr.bf16.mxu1 %v14006_v55  ;;  %v13869_v60 = vcombine.low %v1032_v15, %v1036_v51  ;;  %v8633_v55 = vadd.f32 %v8632_v17, %v18557_v62  ;;  %9479 = vmatpush2.bf16.msra.mxu0 %v13877_v5  ;;  %v8634_v56 = vpop.f32.mrf.mxu0  ;;  %v22688_v51 = vld [vmem:[#allocation86_spill] sm:$0xff] }
 0x329   :  { %9421 = vmatprep.mubr.bf16.mxu1 %v22683_v19  ;;  %v1160_v49 = vld [vmem:[%s22020_s1 + $0x1f90] sm:$0xff]  ;;  %22685 = vst [vmem:[#allocation149_spill] sm:$0xff] %v18869_v50  ;;  %v18874_v0 = vpack.c.bf16 %v8742_v27, %v8738_v45  ;;  %v8635_v44 = vadd.f32 %v8634_v56, %v18574_v58  ;;  %v8747_v15 = vpop.f32.mrf.mxu1  ;;  %9318 = vmatprep.mubr.bf16.mxu0 %v22688_v51 }
 0x32a   :  { %v1164_v48 = vld [vmem:[%s22020_s1 + $0x1fb0] sm:$0xff]  ;;  %9422 = vmatmul.mubr.bf16.gmra.mxu1 %v22686_v1  ;;  %9480 = vmatprep.subr.bf16.mxu0 %v13870_v59  ;;  %v8746_v23 = vadd.f32 %v8745_v13, %v8633_v55 }
 0x32b   :  { %v18856_v63 = vld [vmem:[%s22020_s1 + $0x1b50] sm:$0xff]  ;;  %v13998_v16 = vcombine.high %v1160_v49, %v1164_v48  ;;  %9592 = vmatpush2.bf16.msra.mxu1 %v14005_v38  ;;  %v13997_v46 = vcombine.low %v1160_v49, %v1164_v48  ;;  %22687 = vst [vmem:[#allocation150_spill] sm:$0xff] %v18874_v0  ;;  %v8636_v48 = vpop.f32.mrf.mxu0  ;;  %v8748_v38 = vadd.f32 %v8747_v15, %v8635_v44  ;;  %v8749_v53 = vpop.f32.mrf.mxu1  ;;  %v22692_v15 = vld [vmem:[#allocation89_spill] sm:$0xff] }
 0x32c   :  { %v1028_v18 = vld [vmem:[%s22020_s1 + $0x1b70] sm:$0xff]  ;;  %v8637_v59 = vadd.f32 %v8636_v48, %v18577_v28  ;;  %9481 = vmatpush2.bf16.msra.mxu0 %v13869_v60  ;;  %v22690_v60 = vld [vmem:[#allocation88_spill] sm:$0xff] }
 0x32d   :  { %v1152_v33 = vld [vmem:[%s22020_s1 + $0x1f50] sm:$0xff]  ;;  %v13862_v36 = vcombine.high %v18856_v63, %v1028_v18  ;;  %9593 = vmatprep.subr.bf16.mxu1 %v13998_v16  ;;  %v13861_v37 = vcombine.low %v18856_v63, %v1028_v18  ;;  %v8638_v57 = vpop.f32.mrf.mxu0  ;;  %v8751_v56 = vpop.f32.mrf.mxu1 }
 0x32e   :  { %v1156_v10 = vld [vmem:[%s22020_s1 + $0x1f70] sm:$0xff]  ;;  %v8750_v55 = vadd.f32 %v8749_v53, %v8637_v59  ;;  %v8639_v13 = vadd.f32 %v8638_v57, %v18593_v8 }
 0x32f   :  { %v13990_v40 = vcombine.high %v1152_v33, %v1156_v10  ;;  %v1016_v62 = vld [vmem:[%s22020_s1 + $0x1b10] sm:$0xff]  ;;  %9594 = vmatpush2.bf16.msra.mxu1 %v13997_v46  ;;  %9482 = vmatprep.subr.bf16.mxu0 %v13862_v36  ;;  %v13989_v16 = vcombine.low %v1152_v33, %v1156_v10  ;;  %v8642_v10 = vpop.f32.mrf.mxu0  ;;  %v8755_v44 = vpop.f32.mrf.mxu1 }
 0x330   :  { %v1020_v49 = vld [vmem:[%s22020_s1 + $0x1b30] sm:$0xff]  ;;  %9319 = vmatmul.mubr.bf16.gmra.mxu0 %v22690_v60  ;;  %v18909_v8 = vpack.c.bf16 %v8750_v55, %v8746_v23  ;;  %v8752_v36 = vadd.f32 %v8751_v56, %v8639_v13 }
 0x331   :  { %v22689_v5 = vld [vmem:[#allocation87_spill] sm:$0xff]  ;;  %v13854_v17 = vcombine.high %v1016_v62, %v1020_v49  ;;  %9595 = vmatprep.subr.bf16.mxu1 %v13990_v40  ;;  %v13853_v46 = vcombine.low %v1016_v62, %v1020_v49  ;;  %v8643_v40 = vadd.f32 %v8642_v10, %v18597_v12  ;;  %9483 = vmatpush2.bf16.msra.mxu0 %v13861_v37  ;;  %v8644_v48 = vpop.f32.mrf.mxu0  ;;  %v8757_v62 = vpop.f32.mrf.mxu1  ;;  %v22694_v49 = vld [vmem:[#allocation90_spill] sm:$0xff] }
 0x332   :  { %9431 = vmatprep.mubr.bf16.mxu1 %v22689_v5  ;;  %v1144_v45 = vld [vmem:[%s22020_s1 + $0x1f10] sm:$0xff]  ;;  %22691 = vst [vmem:[#allocation151_spill] sm:$0xff] %v18909_v8  ;;  %v18914_v50 = vpack.c.bf16 %v8752_v36, %v8748_v38  ;;  %v8645_v23 = vadd.f32 %v8644_v48, %v18614_v54  ;;  %9328 = vmatprep.mubr.bf16.mxu0 %v22694_v49 }
 0x333   :  { %v1148_v58 = vld [vmem:[%s22020_s1 + $0x1f30] sm:$0xff]  ;;  %9432 = vmatmul.mubr.bf16.gmra.mxu1 %v22692_v15  ;;  %9484 = vmatprep.subr.bf16.mxu0 %v13854_v17  ;;  %v8756_v0 = vadd.f32 %v8755_v44, %v8643_v40  ;;  %v8759_v55 = vpop.f32.mrf.mxu1 }
 0x334   :  { %v18896_v27 = vld [vmem:[%s22020_s1 + $0x1ad0] sm:$0xff]  ;;  %v13982_v28 = vcombine.high %v1144_v45, %v1148_v58  ;;  %9596 = vmatpush2.bf16.msra.mxu1 %v13989_v16  ;;  %v13981_v59 = vcombine.low %v1144_v45, %v1148_v58  ;;  %22693 = vst [vmem:[#allocation152_spill] sm:$0xff] %v18914_v50  ;;  %v8646_v58 = vpop.f32.mrf.mxu0  ;;  %v8758_v16 = vadd.f32 %v8757_v62, %v8645_v23  ;;  %v22698_v62 = vld [vmem:[#allocation93_spill] sm:$0xff] }
 0x335   :  { %v1012_v63 = vld [vmem:[%s22020_s1 + $0x1af0] sm:$0xff]  ;;  %v8647_v17 = vadd.f32 %v8646_v58, %v18617_v34  ;;  %9485 = vmatpush2.bf16.msra.mxu0 %v13853_v46  ;;  %v8761_v48 = vpop.f32.mrf.mxu1  ;;  %v22696_v46 = vld [vmem:[#allocation92_spill] sm:$0xff] }
 0x336   :  { %v1136_v18 = vld [vmem:[%s22020_s1 + $0x1ed0] sm:$0xff]  ;;  %v13846_v53 = vcombine.high %v18896_v27, %v1012_v63  ;;  %9597 = vmatprep.subr.bf16.mxu1 %v13982_v28  ;;  %v13845_v13 = vcombine.low %v18896_v27, %v1012_v63  ;;  %v8648_v56 = vpop.f32.mrf.mxu0 }
 0x337   :  { %v1140_v33 = vld [vmem:[%s22020_s1 + $0x1ef0] sm:$0xff]  ;;  %v8760_v40 = vadd.f32 %v8759_v55, %v8647_v17  ;;  %v8649_v44 = vadd.f32 %v8648_v56, %v18633_v43  ;;  %v8765_v23 = vpop.f32.mrf.mxu1 }
 0x338   :  { %v13974_v57 = vcombine.high %v1136_v18, %v1140_v33  ;;  %v1000_v12 = vld [vmem:[%s22020_s1 + $0x1a90] sm:$0xff]  ;;  %9598 = vmatpush2.bf16.msra.mxu1 %v13981_v59  ;;  %9486 = vmatprep.subr.bf16.mxu0 %v13846_v53  ;;  %v13973_v28 = vcombine.low %v1136_v18, %v1140_v33  ;;  %v8652_v33 = vpop.f32.mrf.mxu0 }
 0x339   :  { %v1004_v45 = vld [vmem:[%s22020_s1 + $0x1ab0] sm:$0xff]  ;;  %9329 = vmatmul.mubr.bf16.gmra.mxu0 %v22696_v46  ;;  %v18949_v43 = vpack.c.bf16 %v8760_v40, %v8756_v0  ;;  %v8762_v53 = vadd.f32 %v8761_v48, %v8649_v44 }
 0x33a   :  { %v22695_v37 = vld [vmem:[#allocation91_spill] sm:$0xff]  ;;  %v13838_v10 = vcombine.high %v1000_v12, %v1004_v45  ;;  %9599 = vmatprep.subr.bf16.mxu1 %v13974_v57  ;;  %v13837_v59 = vcombine.low %v1000_v12, %v1004_v45  ;;  %v8653_v57 = vadd.f32 %v8652_v33, %v18637_v2  ;;  %9487 = vmatpush2.bf16.msra.mxu0 %v13845_v13  ;;  %v8654_v58 = vpop.f32.mrf.mxu0  ;;  %v8767_v12 = vpop.f32.mrf.mxu1  ;;  %v22700_v45 = vld [vmem:[#allocation94_spill] sm:$0xff] }
 0x33b   :  { %9441 = vmatprep.mubr.bf16.mxu1 %v22695_v37  ;;  %v1128_v38 = vld [vmem:[%s22020_s1 + $0x1e90] sm:$0xff]  ;;  %22697 = vst [vmem:[#allocation153_spill] sm:$0xff] %v18949_v43  ;;  %v18954_v8 = vpack.c.bf16 %v8762_v53, %v8758_v16  ;;  %v8655_v0 = vadd.f32 %v8654_v58, %v18654_v4  ;;  %9338 = vmatprep.mubr.bf16.mxu0 %v22700_v45  ;;  %v18976_v53 = vld [vmem:[%s22020_s1 + $0x1d8] sm:$0xff] }
 0x33c   :  { %v1132_v54 = vld [vmem:[%s22020_s1 + $0x1eb0] sm:$0xff]  ;;  %9442 = vmatmul.mubr.bf16.gmra.mxu1 %v22698_v62  ;;  %9488 = vmatprep.subr.bf16.mxu0 %v13838_v10  ;;  %v8766_v50 = vadd.f32 %v8765_v23, %v8653_v57  ;;  %v8769_v40 = vpop.f32.mrf.mxu1 }
 0x33d   :  { %v18936_v36 = vld [vmem:[%s22020_s1 + $0x1a50] sm:$0xff]  ;;  %v13966_v34 = vcombine.high %v1128_v38, %v1132_v54  ;;  %9600 = vmatpush2.bf16.msra.mxu1 %v13973_v28  ;;  %v13965_v17 = vcombine.low %v1128_v38, %v1132_v54  ;;  %22699 = vst [vmem:[#allocation154_spill] sm:$0xff] %v18954_v8  ;;  %v8656_v54 = vpop.f32.mrf.mxu0  ;;  %v8768_v28 = vadd.f32 %v8767_v12, %v8655_v0  ;;  %v22704_v12 = vld [vmem:[#allocation98_spill] sm:$0xff] }
 0x33e   :  { %v996_v27 = vld [vmem:[%s22020_s1 + $0x1a70] sm:$0xff]  ;;  %v8657_v10 = vadd.f32 %v8656_v54, %v18657_v14  ;;  %9489 = vmatpush2.bf16.msra.mxu0 %v13837_v59  ;;  %v8771_v58 = vpop.f32.mrf.mxu1  ;;  %v22702_v59 = vld [vmem:[#allocation97_spill] sm:$0xff]  ;;  %v22705_v54 = vld [vmem:[#allocation96_spill] sm:$0xff] }
 0x33f   :  { %v1120_v63 = vld [vmem:[%s22020_s1 + $0x1e50] sm:$0xff]  ;;  %v13830_v55 = vcombine.high %v18936_v36, %v996_v27  ;;  %9601 = vmatprep.subr.bf16.mxu1 %v13966_v34  ;;  %v13829_v44 = vcombine.low %v18936_v36, %v996_v27  ;;  %v8658_v48 = vpop.f32.mrf.mxu0  ;;  %v213_v36 = vld [vmem:[%s22020_s1 + $0x1f8] sm:$0xff] }
 0x340   :  { %v1124_v18 = vld [vmem:[%s22020_s1 + $0x1e70] sm:$0xff]  ;;  %v8770_v57 = vadd.f32 %v8769_v40, %v8657_v10  ;;  %v8659_v23 = vadd.f32 %v8658_v48, %v18673_v39  ;;  %v337_v27 = vld [vmem:[%s22020_s1 + $0x5d8] sm:$0xff]  ;;  %v8775_v0 = vpop.f32.mrf.mxu1  ;;  %v1194_v10 = vsub.s32 4, %v22705_v54  ;;  %v13048_v43 = vcombine.high %v18976_v53, %v213_v36 }
 0x341   :  { %v13958_v56 = vcombine.high %v1120_v63, %v1124_v18  ;;  %v984_v2 = vld [vmem:[%s22020_s1 + $0x1a10] sm:$0xff]  ;;  %9602 = vmatpush2.bf16.msra.mxu1 %v13965_v17  ;;  %9490 = vmatprep.subr.bf16.mxu0 %v13830_v55  ;;  %v13957_v34 = vcombine.low %v1120_v63, %v1124_v18  ;;  %v341_v63 = vld [vmem:[%s22020_s1 + $0x5f8] sm:$0xff]  ;;  %v8662_v18 = vpop.f32.mrf.mxu0 }
 0x342   :  { %v988_v38 = vld [vmem:[%s22020_s1 + $0x1a30] sm:$0xff]  ;;  %9339 = vmatmul.mubr.bf16.gmra.mxu0 %v22702_v59  ;;  %v18989_v39 = vpack.c.bf16 %v8770_v57, %v8766_v50  ;;  %v8772_v55 = vadd.f32 %v8771_v58, %v8659_v23  ;;  %v13176_v8 = vcombine.high %v337_v27, %v341_v63 }
 0x343   :  { %v22701_v13 = vld [vmem:[#allocation95_spill] sm:$0xff]  ;;  %v13822_v33 = vcombine.high %v984_v2, %v988_v38  ;;  %9603 = vmatprep.subr.bf16.mxu1 %v13958_v56  ;;  %v13821_v17 = vcombine.low %v984_v2, %v988_v38  ;;  %v8663_v56 = vadd.f32 %v8662_v18, %v18677_v32  ;;  %9491 = vmatpush2.bf16.msra.mxu0 %v13829_v44  ;;  %v8664_v40 = vpop.f32.mrf.mxu0  ;;  %v8777_v38 = vpop.f32.mrf.mxu1  ;;  %v1198_v44 = vsub.s32 5, %v22705_v54 }
 0x344   :  { %9451 = vmatprep.mubr.bf16.mxu1 %v22701_v13  ;;  %v1112_v16 = vld [vmem:[%s22020_s1 + $0x1e10] sm:$0xff]  ;;  %22703 = vst [vmem:[#allocation155_spill] sm:$0xff] %v18989_v39  ;;  %v18995_v47 = vpack.c.bf16 %v8772_v55, %v8768_v28  ;;  %v8665_v2 = vadd.f32 %v8664_v40, %v18694_v52  ;;  %v22708_v28 = vld [vmem:[#allocation100_spill] sm:$0xff]  ;;  %v13047_v55 = vcombine.low %v18976_v53, %v213_v36 }
 0x345   :  { %v1116_v4 = vld [vmem:[%s22020_s1 + $0x1e30] sm:$0xff]  ;;  %9452 = vmatmul.mubr.bf16.gmra.mxu1 %v22704_v12  ;;  %9492 = vmatprep.subr.bf16.mxu0 %v13822_v33  ;;  %v8776_v50 = vadd.f32 %v8775_v0, %v8663_v56  ;;  %v329_v52 = vld [vmem:[%s22020_s1 + $0x598] sm:$0xff]  ;;  %v8779_v58 = vpop.f32.mrf.mxu1  ;;  %v13175_v0 = vcombine.low %v337_v27, %v341_v63  ;;  %v22709_v63 = vld [vmem:[#allocation101_spill] sm:$0xff] }
 0x346   :  { %v13950_v14 = vcombine.high %v1112_v16, %v1116_v4  ;;  %9604 = vmatpush2.bf16.msra.mxu1 %v13957_v34  ;;  %v13949_v48 = vcombine.low %v1112_v16, %v1116_v4  ;;  %22706 = vst [vmem:[#allocation156_spill] sm:$0xff] %v18995_v47  ;;  %v22707_v32 = vld [vmem:[#allocation99_spill] sm:$0xff]  ;;  %v201_v34 = vld [vmem:[%s22020_s1 + $0x198] sm:$0xff]  ;;  %v8666_v4 = vpop.f32.mrf.mxu0  ;;  %9607 = vmatprep.mubr.bf16.mxu1 %v22708_v28 }
 0x347   :  { %9494 = vmatprep.mubr.bf16.mxu0 %v22707_v32  ;;  %v205_v16 = vld [vmem:[%s22020_s1 + $0x1b8] sm:$0xff]  ;;  %v8778_v57 = vadd.f32 %v8777_v38, %v8665_v2  ;;  %v8667_v23 = vadd.f32 %v8666_v4, %v18697_v9  ;;  %9493 = vmatpush2.bf16.msra.mxu0 %v13821_v17  ;;  %v8781_v38 = vpop.f32.mrf.mxu1 }
 0x348   :  { %9605 = vmatprep.subr.bf16.mxu1 %v13950_v14  ;;  %v333_v33 = vld [vmem:[%s22020_s1 + $0x5b8] sm:$0xff]  ;;  %v14717_v14 = vld [vmem:[%s22021_s2] sm:$0xff]  ;;  %v8668_v56 = vpop.f32.mrf.mxu0  ;;  %9688 = vmatprep.subr.bf16.mxu0 %v13048_v43  ;;  %v13040_v40 = vcombine.high %v201_v34, %v205_v16 }
 0x349   :  { %v19017_v18 = vrot.slane %v14717_v14, %v1194_v10  ;;  %v193_v2 = vld [vmem:[%s22020_s1 + $0x158] sm:$0xff]  ;;  %v8780_v9 = vadd.f32 %v8779_v58, %v8667_v23  ;;  %v8669_v17 = vadd.f32 %v8668_v56, %v18713_v6  ;;  %v19024_v4 = vrot.slane %v14717_v14, %v1198_v44  ;;  %v8931_v23 = vpop.f32.mrf.mxu1  ;;  %v22711_v58 = vld [vmem:[#allocation102_spill] sm:$0xff] }
 0x34a   :  { %9606 = vmatpush2.bf16.msra.mxu1 %v13949_v48  ;;  %v13168_v10 = vcombine.high %v329_v52, %v333_v33  ;;  %v197_v53 = vld [vmem:[%s22020_s1 + $0x178] sm:$0xff]  ;;  %v8818_v27 = vpop.f32.mrf.mxu0  ;;  %9495 = vmatmul.mubr.bf16.vlgmr.msra.gmra.mxu0 %v22709_v63  ;;  %v13039_v6 = vcombine.low %v201_v34, %v205_v16  ;;  %v13167_v56 = vcombine.low %v329_v52, %v333_v33  ;;  %v22713_v16 = vld [vmem:[#allocation103_spill] sm:$0xff] }
 0x34b   :  { %9801 = vmatprep.subr.bf16.mxu1 %v13176_v8  ;;  %v321_v43 = vld [vmem:[%s22020_s1 + $0x558] sm:$0xff]  ;;  %v19036_v8 = vpack.c.bf16 %v8780_v9, %v8776_v50  ;;  %v8782_v48 = vadd.f32 %v8781_v38, %v8669_v17  ;;  %v8819_v44 = vadd.f32 %v8818_v27, %v19017_v18  ;;  %9689 = vmatpush1.bf16.msra.mxu0 %v13047_v55  ;;  %v8933_v34 = vpop.f32.mrf.mxu1 }
 0x34c   :  { %v325_v36 = vld [vmem:[%s22020_s1 + $0x578] sm:$0xff]  ;;  %v8820_v14 = vpop.f32.mrf.mxu0  ;;  %9690 = vmatprep.subr.bf16.mxu0 %v13040_v40  ;;  %v13032_v39 = vcombine.high %v193_v2, %v197_v53  ;;  %9504 = vmatprep.mubr.bf16.mxu0 %v22713_v16 }
 0x34d   :  { %22710 = vst [vmem:[#allocation157_spill] sm:$0xff] %v19036_v8  ;;  %9608 = vmatmul.mubr.bf16.vlgmr.msra.gmra.mxu1 %v22711_v58  ;;  %v13160_v47 = vcombine.high %v321_v43, %v325_v36  ;;  %v19040_v61 = vpack.c.bf16 %v8782_v48, %v8778_v57  ;;  %v19042_v28 = vadd.f32 %v8931_v23, %v8819_v44  ;;  %v185_v55 = vld [vmem:[%s22020_s1 + $0x118] sm:$0xff]  ;;  %v8935_v38 = vpop.f32.mrf.mxu1 }
 0x34e   :  { %9802 = vmatpush1.bf16.msra.mxu1 %v13175_v0  ;;  %v8821_v50 = vadd.f32 %v8820_v14, %v19024_v4  ;;  %v189_v52 = vld [vmem:[%s22020_s1 + $0x138] sm:$0xff]  ;;  %v8822_v33 = vpop.f32.mrf.mxu0  ;;  %v13159_v48 = vcombine.low %v321_v43, %v325_v36 }
 0x34f   :  { %22712 = vst [vmem:[#allocation158_spill] sm:$0xff] %v19040_v61  ;;  %9803 = vmatprep.subr.bf16.mxu1 %v13168_v10  ;;  %v22714_v0 = vld [vmem:[#allocation104_spill] sm:$0xff]  ;;  %v8823_v17 = vadd.f32 %v8822_v33, %v19017_v18  ;;  %9691 = vmatpush1.bf16.msra.mxu0 %v13039_v6  ;;  %v13031_v10 = vcombine.low %v193_v2, %v197_v53  ;;  %v8937_v8 = vpop.f32.mrf.mxu1  ;;  %v22715_v6 = vld [vmem:[#allocation105_spill] sm:$0xff] }
 0x350   :  { %9617 = vmatprep.mubr.bf16.mxu1 %v22714_v0  ;;  %v313_v57 = vld [vmem:[%s22020_s1 + $0x518] sm:$0xff]  ;;  %v19059_v9 = vadd.f32 %v8933_v34, %v8821_v50  ;;  %v8824_v27 = vpop.f32.mrf.mxu0  ;;  %9692 = vmatprep.subr.bf16.mxu0 %v13032_v39  ;;  %v13024_v44 = vcombine.high %v185_v55, %v189_v52  ;;  %v22716_v34 = vld [vmem:[#allocation106_spill] sm:$0xff]  ;;  %v13023_v33 = vcombine.low %v185_v55, %v189_v52 }
 0x351   :  { %v317_v40 = vld [vmem:[%s22020_s1 + $0x538] sm:$0xff]  ;;  %v19062_v23 = vadd.f32 %v8935_v38, %v8823_v17  ;;  %v8825_v14 = vadd.f32 %v8824_v27, %v19024_v4 }
 0x352   :  { %9804 = vmatpush1.bf16.msra.mxu1 %v13167_v56  ;;  %v13152_v61 = vcombine.high %v313_v57, %v317_v40  ;;  %v177_v50 = vld [vmem:[%s22020_s1 + $0xd8] sm:$0xff]  ;;  %v8828_v53 = vpop.f32.mrf.mxu0  ;;  %9505 = vmatmul.mubr.bf16.gmra.mxu0 %v22715_v6  ;;  %v8941_v56 = vpop.f32.mrf.mxu1  ;;  %v13151_v38 = vcombine.low %v313_v57, %v317_v40 }
 0x353   :  { %9805 = vmatprep.subr.bf16.mxu1 %v13160_v47  ;;  %v181_v2 = vld [vmem:[%s22020_s1 + $0xf8] sm:$0xff]  ;;  %v19078_v43 = vadd.f32 %v8937_v8, %v8825_v14  ;;  %v8829_v36 = vadd.f32 %v8828_v53, %v19017_v18  ;;  %9693 = vmatpush1.bf16.msra.mxu0 %v13031_v10  ;;  %v22717_v8 = vld [vmem:[#allocation107_spill] sm:$0xff] }
 0x354   :  { %v305_v39 = vld [vmem:[%s22020_s1 + $0x4d8] sm:$0xff]  ;;  %v8830_v17 = vpop.f32.mrf.mxu0  ;;  %9694 = vmatprep.subr.bf16.mxu0 %v13024_v44  ;;  %v13016_v27 = vcombine.high %v177_v50, %v181_v2  ;;  %v8943_v16 = vpop.f32.mrf.mxu1  ;;  %9514 = vmatprep.mubr.bf16.mxu0 %v22717_v8 }
 0x355   :  { %v309_v47 = vld [vmem:[%s22020_s1 + $0x4f8] sm:$0xff]  ;;  %9618 = vmatmul.mubr.bf16.gmra.mxu1 %v22716_v34  ;;  %v19082_v6 = vadd.f32 %v8941_v56, %v8829_v36  ;;  %v8831_v0 = vadd.f32 %v8830_v17, %v19024_v4  ;;  %v13015_v36 = vcombine.low %v177_v50, %v181_v2  ;;  %v22719_v2 = vld [vmem:[#allocation109_spill] sm:$0xff] }
 0x356   :  { %9806 = vmatpush1.bf16.msra.mxu1 %v13159_v48  ;;  %v13144_v14 = vcombine.high %v305_v39, %v309_v47  ;;  %v169_v53 = vld [vmem:[%s22020_s1 + $0x98] sm:$0xff]  ;;  %v8832_v52 = vpop.f32.mrf.mxu0  ;;  %v8945_v44 = vpop.f32.mrf.mxu1  ;;  %v13143_v17 = vcombine.low %v305_v39, %v309_v47 }
 0x357   :  { %9807 = vmatprep.subr.bf16.mxu1 %v13152_v61  ;;  %v173_v55 = vld [vmem:[%s22020_s1 + $0xb8] sm:$0xff]  ;;  %v19099_v10 = vadd.f32 %v8943_v16, %v8831_v0  ;;  %v8833_v48 = vadd.f32 %v8832_v52, %v19017_v18  ;;  %9695 = vmatpush1.bf16.msra.mxu0 %v13023_v33 }
 0x358   :  { %v22718_v57 = vld [vmem:[#allocation108_spill] sm:$0xff]  ;;  %v8834_v56 = vpop.f32.mrf.mxu0  ;;  %9696 = vmatprep.subr.bf16.mxu0 %v13016_v27  ;;  %v8947_v58 = vpop.f32.mrf.mxu1  ;;  %v13007_v52 = vcombine.low %v169_v53, %v173_v55 }
 0x359   :  { %9627 = vmatprep.mubr.bf16.mxu1 %v22718_v57  ;;  %v297_v40 = vld [vmem:[%s22020_s1 + $0x498] sm:$0xff]  ;;  %v13008_v57 = vcombine.high %v169_v53, %v173_v55  ;;  %v19102_v8 = vadd.f32 %v8945_v44, %v8833_v48  ;;  %v8835_v34 = vadd.f32 %v8834_v56, %v19024_v4 }
 0x35a   :  { %v301_v61 = vld [vmem:[%s22020_s1 + $0x4b8] sm:$0xff]  ;;  %9808 = vmatpush1.bf16.msra.mxu1 %v13151_v38  ;;  %v8838_v50 = vpop.f32.mrf.mxu0  ;;  %9515 = vmatmul.mubr.bf16.gmra.mxu0 %v22719_v2  ;;  %v8951_v27 = vpop.f32.mrf.mxu1 }
 0x35b   :  { %9809 = vmatprep.subr.bf16.mxu1 %v13144_v14  ;;  %v13136_v63 = vcombine.high %v297_v40, %v301_v61  ;;  %v161_v16 = vld [vmem:[%s22020_s1 + $0x58] sm:$0xff]  ;;  %v19118_v33 = vadd.f32 %v8947_v58, %v8835_v34  ;;  %v8839_v38 = vadd.f32 %v8838_v50, %v19017_v18  ;;  %v22720_v14 = vld [vmem:[#allocation110_spill] sm:$0xff]  ;;  %9697 = vmatpush1.bf16.msra.mxu0 %v13015_v36  ;;  %v22721_v58 = vld [vmem:[#allocation111_spill] sm:$0xff] }
 0x35c   :  { %v165_v0 = vld [vmem:[%s22020_s1 + $0x78] sm:$0xff]  ;;  %v8840_v48 = vpop.f32.mrf.mxu0  ;;  %9698 = vmatprep.subr.bf16.mxu0 %v13008_v57  ;;  %v13135_v44 = vcombine.low %v297_v40, %v301_v61  ;;  %v8953_v54 = vpop.f32.mrf.mxu1  ;;  %9524 = vmatprep.mubr.bf16.mxu0 %v22721_v58 }
 0x35d   :  { %v289_v39 = vld [vmem:[%s22020_s1 + $0x458] sm:$0xff]  ;;  %9628 = vmatmul.mubr.bf16.gmra.mxu1 %v22720_v14  ;;  %v13000_v56 = vcombine.high %v161_v16, %v165_v0  ;;  %v19122_v2 = vadd.f32 %v8951_v27, %v8839_v38  ;;  %v8841_v32 = vadd.f32 %v8840_v48, %v19024_v4  ;;  %v12999_v38 = vcombine.low %v161_v16, %v165_v0  ;;  %v22723_v0 = vld [vmem:[#allocation113_spill] sm:$0xff] }
 0x35e   :  { %v293_v47 = vld [vmem:[%s22020_s1 + $0x478] sm:$0xff]  ;;  %9810 = vmatpush1.bf16.msra.mxu1 %v13143_v17  ;;  %v8842_v55 = vpop.f32.mrf.mxu0  ;;  %v8955_v17 = vpop.f32.mrf.mxu1 }
 0x35f   :  { %9811 = vmatprep.subr.bf16.mxu1 %v13136_v63  ;;  %v13128_v34 = vcombine.high %v289_v39, %v293_v47  ;;  %v153_v50 = vld [vmem:[%s22020_s1 + $0x18] sm:$0xff]  ;;  %v19139_v61 = vadd.f32 %v8953_v54, %v8841_v32  ;;  %v8843_v36 = vadd.f32 %v8842_v55, %v19017_v18  ;;  %9699 = vmatpush1.bf16.msra.mxu0 %v13007_v52 }
 0x360   :  { %v157_v53 = vld [vmem:[%s22020_s1 + $0x38] sm:$0xff]  ;;  %v8844_v27 = vpop.f32.mrf.mxu0  ;;  %9700 = vmatprep.subr.bf16.mxu0 %v13000_v56  ;;  %v13127_v48 = vcombine.low %v289_v39, %v293_v47  ;;  %v8957_v12 = vpop.f32.mrf.mxu1 }
 0x361   :  { %v22722_v57 = vld [vmem:[#allocation112_spill] sm:$0xff]  ;;  %v19142_v58 = vadd.f32 %v8955_v17, %v8843_v36  ;;  %v8845_v14 = vadd.f32 %v8844_v27, %v19024_v4  ;;  %v12991_v55 = vcombine.low %v153_v50, %v157_v53 }
 0x362   :  { %9637 = vmatprep.mubr.bf16.mxu1 %v22722_v57  ;;  %v281_v40 = vld [vmem:[%s22020_s1 + $0x418] sm:$0xff]  ;;  %9812 = vmatpush1.bf16.msra.mxu1 %v13135_v44  ;;  %v12992_v57 = vcombine.high %v153_v50, %v157_v53  ;;  %v8848_v16 = vpop.f32.mrf.mxu0  ;;  %v8961_v56 = vpop.f32.mrf.mxu1 }
 0x363   :  { %v285_v63 = vld [vmem:[%s22020_s1 + $0x438] sm:$0xff]  ;;  %9813 = vmatprep.subr.bf16.mxu1 %v13128_v34  ;;  %9525 = vmatmul.mubr.bf16.gmra.mxu0 %v22723_v0  ;;  %v19158_v52 = vadd.f32 %v8957_v12, %v8845_v14  ;;  %v8849_v44 = vadd.f32 %v8848_v16, %v19017_v18  ;;  %v22724_v34 = vld [vmem:[#allocation114_spill] sm:$0xff]  ;;  %v22725_v12 = vld [vmem:[#allocation115_spill] sm:$0xff] }
 0x364   :  { %v13120_v59 = vcombine.high %v281_v40, %v285_v63  ;;  %v273_v54 = vld [vmem:[%s22020_s1 + $0x3d8] sm:$0xff]  ;;  %9701 = vmatpush1.bf16.msra.mxu0 %v12999_v38  ;;  %v8850_v36 = vpop.f32.mrf.mxu0  ;;  %v13119_v17 = vcombine.low %v281_v40, %v285_v63  ;;  %v8963_v45 = vpop.f32.mrf.mxu1  ;;  %9534 = vmatprep.mubr.bf16.mxu0 %v22725_v12 }
 0x365   :  { %v277_v32 = vld [vmem:[%s22020_s1 + $0x3f8] sm:$0xff]  ;;  %9638 = vmatmul.mubr.bf16.gmra.mxu1 %v22724_v34  ;;  %9702 = vmatprep.subr.bf16.mxu0 %v12992_v57  ;;  %v19162_v0 = vadd.f32 %v8961_v56, %v8849_v44  ;;  %v8851_v13 = vadd.f32 %v8850_v36, %v19024_v4 }
 0x366   :  { %v401_v39 = vld [vmem:[%s22020_s1 + $0x7d8] sm:$0xff]  ;;  %9814 = vmatpush1.bf16.msra.mxu1 %v13127_v48  ;;  %v13112_v27 = vcombine.high %v273_v54, %v277_v32  ;;  %v8852_v53 = vpop.f32.mrf.mxu0  ;;  %v8965_v48 = vpop.f32.mrf.mxu1  ;;  %v13111_v44 = vcombine.low %v273_v54, %v277_v32  ;;  %v22727_v32 = vld [vmem:[#allocation117_spill] sm:$0xff] }
 0x367   :  { %v405_v47 = vld [vmem:[%s22020_s1 + $0x7f8] sm:$0xff]  ;;  %9815 = vmatprep.subr.bf16.mxu1 %v13120_v59  ;;  %v19179_v63 = vadd.f32 %v8963_v45, %v8851_v13  ;;  %v8853_v38 = vadd.f32 %v8852_v53, %v19017_v18 }
 0x368   :  { %v13240_v14 = vcombine.high %v401_v39, %v405_v47  ;;  %v265_v16 = vld [vmem:[%s22020_s1 + $0x398] sm:$0xff]  ;;  %9703 = vmatpush1.bf16.msra.mxu0 %v12991_v55  ;;  %v8854_v56 = vpop.f32.mrf.mxu0  ;;  %v13239_v36 = vcombine.low %v401_v39, %v405_v47  ;;  %v8967_v62 = vpop.f32.mrf.mxu1 }
 0x369   :  { %v269_v50 = vld [vmem:[%s22020_s1 + $0x3b8] sm:$0xff]  ;;  %9704 = vmatprep.subr.bf16.mxu0 %v13112_v27  ;;  %v19182_v12 = vadd.f32 %v8965_v48, %v8853_v38  ;;  %v8855_v34 = vadd.f32 %v8854_v56, %v19024_v4 }
 0x36a   :  { %v22726_v57 = vld [vmem:[#allocation116_spill] sm:$0xff]  ;;  %9816 = vmatpush1.bf16.msra.mxu1 %v13119_v17  ;;  %v8858_v54 = vpop.f32.mrf.mxu0  ;;  %v8971_v27 = vpop.f32.mrf.mxu1  ;;  %v13103_v53 = vcombine.low %v265_v16, %v269_v50 }
 0x36b   :  { %9647 = vmatprep.mubr.bf16.mxu1 %v22726_v57  ;;  %v393_v40 = vld [vmem:[%s22020_s1 + $0x798] sm:$0xff]  ;;  %v13104_v57 = vcombine.high %v265_v16, %v269_v50  ;;  %9817 = vmatprep.subr.bf16.mxu1 %v13240_v14  ;;  %v19198_v55 = vadd.f32 %v8967_v62, %v8855_v34  ;;  %v8859_v17 = vadd.f32 %v8858_v54, %v19017_v18  ;;  %v22728_v14 = vld [vmem:[#allocation118_spill] sm:$0xff] }
 0x36c   :  { %v397_v59 = vld [vmem:[%s22020_s1 + $0x7b8] sm:$0xff]  ;;  %9535 = vmatmul.mubr.bf16.gmra.mxu0 %v22727_v32  ;;  %v8860_v38 = vpop.f32.mrf.mxu0  ;;  %v8973_v49 = vpop.f32.mrf.mxu1 }
 0x36d   :  { %v13232_v46 = vcombine.high %v393_v40, %v397_v59  ;;  %v257_v45 = vld [vmem:[%s22020_s1 + $0x358] sm:$0xff]  ;;  %9648 = vmatmul.mubr.bf16.gmra.mxu1 %v22728_v14  ;;  %9705 = vmatpush2.bf16.msra.mxu0 %v13111_v44  ;;  %v13231_v48 = vcombine.low %v393_v40, %v397_v59  ;;  %v19202_v32 = vadd.f32 %v8971_v27, %v8859_v17 }
 0x36e   :  { %v261_v13 = vld [vmem:[%s22020_s1 + $0x378] sm:$0xff]  ;;  %9818 = vmatpush2.bf16.msra.mxu1 %v13239_v36  ;;  %9706 = vmatprep.subr.bf16.mxu0 %v13104_v57  ;;  %v8861_v37 = vadd.f32 %v8860_v38, %v19024_v4  ;;  %v8862_v50 = vpop.f32.mrf.mxu0  ;;  %v22730_v57 = vld [vmem:[#allocation121_spill] sm:$0xff]  ;;  %v8975_v36 = vpop.f32.mrf.mxu1 }
 0x36f   :  { %v385_v39 = vld [vmem:[%s22020_s1 + $0x758] sm:$0xff]  ;;  %v13096_v56 = vcombine.high %v257_v45, %v261_v13  ;;  %9819 = vmatprep.subr.bf16.mxu1 %v13232_v46  ;;  %9657 = vmatprep.mubr.bf16.mxu1 %v22730_v57  ;;  %v8863_v44 = vadd.f32 %v8862_v50, %v19017_v18  ;;  %v13095_v17 = vcombine.low %v257_v45, %v261_v13 }
 0x370   :  { %v389_v47 = vld [vmem:[%s22020_s1 + $0x778] sm:$0xff]  ;;  %v19219_v59 = vadd.f32 %v8973_v49, %v8861_v37  ;;  %v8864_v27 = vpop.f32.mrf.mxu0  ;;  %v8977_v15 = vpop.f32.mrf.mxu1 }
 0x371   :  { %v22729_v62 = vld [vmem:[#allocation120_spill] sm:$0xff]  ;;  %v13224_v34 = vcombine.high %v385_v39, %v389_v47  ;;  %9707 = vmatpush2.bf16.msra.mxu0 %v13103_v53  ;;  %v13223_v38 = vcombine.low %v385_v39, %v389_v47  ;;  %v8865_v14 = vadd.f32 %v8864_v27, %v19024_v4 }
 0x372   :  { %9544 = vmatprep.mubr.bf16.mxu0 %v22729_v62  ;;  %v249_v54 = vld [vmem:[%s22020_s1 + $0x318] sm:$0xff]  ;;  %9820 = vmatpush2.bf16.msra.mxu1 %v13231_v48  ;;  %v19222_v62 = vadd.f32 %v8975_v36, %v8863_v44  ;;  %v8868_v45 = vpop.f32.mrf.mxu0 }
 0x373   :  { %v253_v16 = vld [vmem:[%s22020_s1 + $0x338] sm:$0xff]  ;;  %9708 = vmatprep.subr.bf16.mxu0 %v13096_v56  ;;  %9821 = vmatprep.subr.bf16.mxu1 %v13224_v34  ;;  %v19238_v53 = vadd.f32 %v8977_v15, %v8865_v14  ;;  %v8869_v48 = vadd.f32 %v8868_v45, %v19017_v18  ;;  %v8981_v56 = vpop.f32.mrf.mxu1  ;;  %v22732_v34 = vld [vmem:[#allocation126_spill] sm:$0xff] }
 0x374   :  { %v377_v40 = vld [vmem:[%s22020_s1 + $0x718] sm:$0xff]  ;;  %v13088_v57 = vcombine.high %v249_v54, %v253_v16  ;;  %v13087_v50 = vcombine.low %v249_v54, %v253_v16  ;;  %v8870_v44 = vpop.f32.mrf.mxu0 }
 0x375   :  { %v381_v46 = vld [vmem:[%s22020_s1 + $0x738] sm:$0xff]  ;;  %9658 = vmatmul.mubr.bf16.gmra.mxu1 %v22732_v34  ;;  %9709 = vmatpush2.bf16.msra.mxu0 %v13095_v17  ;;  %v8871_v5 = vadd.f32 %v8870_v44, %v19024_v4  ;;  %v8983_v51 = vpop.f32.mrf.mxu1 }
 0x376   :  { %v13216_v60 = vcombine.high %v377_v40, %v381_v46  ;;  %v241_v49 = vld [vmem:[%s22020_s1 + $0x2d8] sm:$0xff]  ;;  %9822 = vmatpush2.bf16.msra.mxu1 %v13223_v38  ;;  %9710 = vmatprep.subr.bf16.mxu0 %v13088_v57  ;;  %v13215_v36 = vcombine.low %v377_v40, %v381_v46  ;;  %v8872_v16 = vpop.f32.mrf.mxu0  ;;  %v22734_v57 = vld [vmem:[#allocation129_spill] sm:$0xff] }
 0x377   :  { %v245_v37 = vld [vmem:[%s22020_s1 + $0x2f8] sm:$0xff]  ;;  %9667 = vmatprep.mubr.bf16.mxu1 %v22734_v57  ;;  %v19259_v46 = vadd.f32 %v8983_v51, %v8871_v5  ;;  %v8873_v17 = vadd.f32 %v8872_v16, %v19017_v18  ;;  %v8985_v38 = vpop.f32.mrf.mxu1 }
 0x378   :  { %v22731_v13 = vld [vmem:[#allocation124_spill] sm:$0xff]  ;;  %v13080_v27 = vcombine.high %v241_v49, %v245_v37  ;;  %9823 = vmatprep.subr.bf16.mxu1 %v13216_v60 }
 0x379   :  { %9545 = vmatmul.mubr.bf16.gmra.mxu0 %v22731_v13  ;;  %v369_v39 = vld [vmem:[%s22020_s1 + $0x6d8] sm:$0xff]  ;;  %v19242_v13 = vadd.f32 %v8981_v56, %v8869_v48  ;;  %v13079_v48 = vcombine.low %v241_v49, %v245_v37  ;;  %v8874_v56 = vpop.f32.mrf.mxu0  ;;  %v8987_v1 = vpop.f32.mrf.mxu1 }
 0x37a   :  { %v373_v47 = vld [vmem:[%s22020_s1 + $0x6f8] sm:$0xff]  ;;  %9711 = vmatpush2.bf16.msra.mxu0 %v13087_v50  ;;  %9824 = vmatpush2.bf16.msra.mxu1 %v13215_v36  ;;  %v8875_v34 = vadd.f32 %v8874_v56, %v19024_v4 }
 0x37b   :  { %v22733_v15 = vld [vmem:[#allocation128_spill] sm:$0xff]  ;;  %v13208_v14 = vcombine.high %v369_v39, %v373_v47  ;;  %9712 = vmatprep.subr.bf16.mxu0 %v13080_v27  ;;  %v13207_v44 = vcombine.low %v369_v39, %v373_v47  ;;  %v8878_v49 = vpop.f32.mrf.mxu0  ;;  %v8991_v27 = vpop.f32.mrf.mxu1 }
 0x37c   :  { %9554 = vmatprep.mubr.bf16.mxu0 %v22733_v15  ;;  %v233_v45 = vld [vmem:[%s22020_s1 + $0x298] sm:$0xff]  ;;  %v19262_v15 = vadd.f32 %v8985_v38, %v8873_v17  ;;  %v19278_v50 = vadd.f32 %v8987_v1, %v8875_v34  ;;  %v8879_v36 = vadd.f32 %v8878_v49, %v19017_v18 }
 0x37d   :  { %v237_v54 = vld [vmem:[%s22020_s1 + $0x2b8] sm:$0xff]  ;;  %9825 = vmatprep.subr.bf16.mxu1 %v13208_v14  ;;  %v22736_v14 = vld [vmem:[#allocation134_spill] sm:$0xff]  ;;  %v8880_v17 = vpop.f32.mrf.mxu0  ;;  %v8993_v3 = vpop.f32.mrf.mxu1 }
 0x37e   :  { %v361_v40 = vld [vmem:[%s22020_s1 + $0x698] sm:$0xff]  ;;  %v13072_v57 = vcombine.high %v233_v45, %v237_v54  ;;  %9668 = vmatmul.mubr.bf16.gmra.mxu1 %v22736_v14  ;;  %9713 = vmatpush2.bf16.msra.mxu0 %v13079_v48  ;;  %v13071_v16 = vcombine.low %v233_v45, %v237_v54  ;;  %v8881_v19 = vadd.f32 %v8880_v17, %v19024_v4 }
 0x37f   :  { %v365_v60 = vld [vmem:[%s22020_s1 + $0x6b8] sm:$0xff]  ;;  %9826 = vmatpush2.bf16.msra.mxu1 %v13207_v44  ;;  %v8882_v54 = vpop.f32.mrf.mxu0  ;;  %v8995_v44 = vpop.f32.mrf.mxu1 }
 0x380   :  { %v13200_v35 = vcombine.high %v361_v40, %v365_v60  ;;  %v225_v51 = vld [vmem:[%s22020_s1 + $0x258] sm:$0xff]  ;;  %9714 = vmatprep.subr.bf16.mxu0 %v13072_v57  ;;  %v13199_v38 = vcombine.low %v361_v40, %v365_v60  ;;  %v22738_v57 = vld [vmem:[#allocation137_spill] sm:$0xff]  ;;  %v19299_v60 = vadd.f32 %v8993_v3, %v8881_v19  ;;  %v8883_v48 = vadd.f32 %v8882_v54, %v19017_v18 }
 0x381   :  { %v229_v5 = vld [vmem:[%s22020_s1 + $0x278] sm:$0xff]  ;;  %9677 = vmatprep.mubr.bf16.mxu1 %v22738_v57  ;;  %v8997_v31 = vpop.f32.mrf.mxu1 }
 0x382   :  { %v22735_v37 = vld [vmem:[#allocation132_spill] sm:$0xff]  ;;  %v13064_v56 = vcombine.high %v225_v51, %v229_v5  ;;  %9827 = vmatprep.subr.bf16.mxu1 %v13200_v35  ;;  %9715 = vmatpush2.bf16.msra.mxu0 %v13071_v16 }
 0x383   :  { %9555 = vmatmul.mubr.bf16.gmra.mxu0 %v22735_v37  ;;  %v353_v39 = vld [vmem:[%s22020_s1 + $0x658] sm:$0xff]  ;;  %v19282_v37 = vadd.f32 %v8991_v27, %v8879_v36  ;;  %v13063_v36 = vcombine.low %v225_v51, %v229_v5  ;;  %9828 = vmatpush2.bf16.msra.mxu1 %v13199_v38  ;;  %v8884_v27 = vpop.f32.mrf.mxu0  ;;  %v22739_v5 = vld [vmem:[#allocation138_spill] sm:$0xff] }
 0x384   :  { %v357_v47 = vld [vmem:[%s22020_s1 + $0x678] sm:$0xff]  ;;  %9716 = vmatprep.subr.bf16.mxu0 %v13064_v56  ;;  %v8885_v14 = vadd.f32 %v8884_v27, %v19024_v4  ;;  %v9001_v56 = vpop.f32.mrf.mxu1 }
 0x385   :  { %v22737_v1 = vld [vmem:[#allocation136_spill] sm:$0xff]  ;;  %v13192_v34 = vcombine.high %v353_v39, %v357_v47  ;;  %v13191_v17 = vcombine.low %v353_v39, %v357_v47  ;;  %v8888_v51 = vpop.f32.mrf.mxu0 }
 0x386   :  { %9564 = vmatprep.mubr.bf16.mxu0 %v22737_v1  ;;  %v217_v49 = vld [vmem:[%s22020_s1 + $0x218] sm:$0xff]  ;;  %v19302_v1 = vadd.f32 %v8995_v44, %v8883_v48  ;;  %v19318_v16 = vadd.f32 %v8997_v31, %v8885_v14  ;;  %v8889_v38 = vadd.f32 %v8888_v51, %v19017_v18  ;;  %9717 = vmatpush2.bf16.msra.mxu0 %v13063_v36  ;;  %v9003_v29 = vpop.f32.mrf.mxu1  ;;  %v22741_v31 = vld [vmem:[#allocation5_spill] sm:$0xff] }
 0x387   :  { %v221_v45 = vld [vmem:[%s22020_s1 + $0x238] sm:$0xff]  ;;  %9829 = vmatprep.subr.bf16.mxu1 %v13192_v34  ;;  %v22740_v34 = vld [vmem:[#allocation139_spill] sm:$0xff]  ;;  %v8890_v48 = vpop.f32.mrf.mxu0 }
 0x388   :  { %v345_v40 = vld [vmem:[%s22020_s1 + $0x618] sm:$0xff]  ;;  %v13056_v57 = vcombine.high %v217_v49, %v221_v45  ;;  %9678 = vmatmul.mubr.bf16.gmra.mxu1 %v22740_v34  ;;  %v13055_v54 = vcombine.low %v217_v49, %v221_v45  ;;  %v8891_v42 = vadd.f32 %v8890_v48, %v19024_v4 }
 0x389   :  { %v349_v35 = vld [vmem:[%s22020_s1 + $0x638] sm:$0xff]  ;;  %9830 = vmatpush2.bf16.msra.mxu1 %v13191_v17  ;;  %v8892_v45 = vpop.f32.mrf.mxu0  ;;  %v9005_v17 = vpop.f32.mrf.mxu1 }
 0x38a   :  { %v13184_v7 = vcombine.high %v345_v40, %v349_v35  ;;  %v465_v3 = vld [vmem:[%s22020_s1 + $0x9d8] sm:$0xff]  ;;  %9718 = vmatprep.subr.bf16.mxu0 %v13056_v57  ;;  %v13183_v44 = vcombine.low %v345_v40, %v349_v35  ;;  %v22742_v57 = vld [vmem:[#allocation6_spill] sm:$0xff]  ;;  %v19339_v35 = vadd.f32 %v9003_v29, %v8891_v42  ;;  %v8893_v36 = vadd.f32 %v8892_v45, %v19017_v18 }
 0x38b   :  { %v469_v19 = vld [vmem:[%s22020_s1 + $0x9f8] sm:$0xff]  ;;  %9565 = vmatmul.mubr.bf16.gmra.mxu0 %v22739_v5  ;;  %v19322_v5 = vadd.f32 %v9001_v56, %v8889_v38  ;;  %9833 = vmatprep.mubr.bf16.mxu1 %v22742_v57  ;;  %v8894_v56 = vpop.f32.mrf.mxu0  ;;  %v9007_v22 = vpop.f32.mrf.mxu1 }
 0x38c   :  { %v593_v39 = vld [vmem:[%s22020_s1 + $0xdd8] sm:$0xff]  ;;  %v13304_v27 = vcombine.high %v465_v3, %v469_v19  ;;  %9831 = vmatprep.subr.bf16.mxu1 %v13184_v7  ;;  %9720 = vmatprep.mubr.bf16.mxu0 %v22741_v31  ;;  %v13303_v38 = vcombine.low %v465_v3, %v469_v19  ;;  %v19342_v57 = vadd.f32 %v9005_v17, %v8893_v36 }
 0x38d   :  { %v597_v47 = vld [vmem:[%s22020_s1 + $0xdf8] sm:$0xff]  ;;  %9719 = vmatpush2.bf16.msra.mxu0 %v13055_v54  ;;  %9832 = vmatpush2.bf16.msra.mxu1 %v13183_v44  ;;  %v8895_v34 = vadd.f32 %v8894_v56, %v19024_v4  ;;  %v9044_v18 = vpop.f32.mrf.mxu0 }
 0x38e   :  { %v13432_v14 = vcombine.high %v593_v39, %v597_v47  ;;  %v457_v51 = vld [vmem:[%s22020_s1 + $0x998] sm:$0xff]  ;;  %9914 = vmatprep.subr.bf16.mxu0 %v13304_v27  ;;  %v13431_v48 = vcombine.low %v593_v39, %v597_v47  ;;  %v9045_v39 = vadd.f32 %v9044_v18, %v19042_v28  ;;  %v9157_v47 = vpop.f32.mrf.mxu1 }
 0x38f   :  { %v461_v49 = vld [vmem:[%s22020_s1 + $0x9b8] sm:$0xff]  ;;  %v19358_v19 = vadd.f32 %v9007_v22, %v8895_v34  ;;  %v9046_v44 = vpop.f32.mrf.mxu0 }
 0x390   :  { %v585_v40 = vld [vmem:[%s22020_s1 + $0xd98] sm:$0xff]  ;;  %v13296_v31 = vcombine.high %v457_v51, %v461_v49  ;;  %10027 = vmatprep.subr.bf16.mxu1 %v13432_v14  ;;  %9834 = vmatmul.mubr.bf16.vlgmr.msra.gmra.mxu1 %v15032_v25  ;;  %v13295_v54 = vcombine.low %v457_v51, %v461_v49  ;;  %v19362_v14 = vadd.f32 %v9157_v47, %v9045_v39  ;;  %v9159_v36 = vpop.f32.mrf.mxu1  ;;  %v22743_v51 = vld [vmem:[#allocation7_spill] sm:$0xff] }
 0x391   :  { %v589_v7 = vld [vmem:[%s22020_s1 + $0xdb8] sm:$0xff]  ;;  %10028 = vmatpush1.bf16.msra.mxu1 %v13431_v48  ;;  %v9047_v45 = vadd.f32 %v9046_v44, %v19059_v9  ;;  %v9048_v34 = vpop.f32.mrf.mxu0  ;;  %9843 = vmatprep.mubr.bf16.mxu1 %v22743_v51 }
 0x392   :  { %v13424_v26 = vcombine.high %v585_v40, %v589_v7  ;;  %v449_v29 = vld [vmem:[%s22020_s1 + $0x958] sm:$0xff]  ;;  %v9049_v49 = vadd.f32 %v9048_v34, %v19062_v23 }
 0x393   :  { %v453_v42 = vld [vmem:[%s22020_s1 + $0x978] sm:$0xff]  ;;  %9721 = vmatmul.mubr.bf16.vlgmr.msra.gmra.mxu0 %v15019_v21  ;;  %v13423_v21 = vcombine.low %v585_v40, %v589_v7  ;;  %v9161_v40 = vpop.f32.mrf.mxu1  ;;  %v9050_v17 = vpop.f32.mrf.mxu0 }
 0x394   :  { %v577_v3 = vld [vmem:[%s22020_s1 + $0xd58] sm:$0xff]  ;;  %9915 = vmatpush1.bf16.msra.mxu0 %v13303_v38  ;;  %v13288_v27 = vcombine.high %v449_v29, %v453_v42  ;;  %10029 = vmatprep.subr.bf16.mxu1 %v13424_v26  ;;  %v19379_v26 = vadd.f32 %v9159_v36, %v9047_v45  ;;  %v13287_v7 = vcombine.low %v449_v29, %v453_v42 }
 0x395   :  { %v581_v4 = vld [vmem:[%s22020_s1 + $0xd78] sm:$0xff]  ;;  %9916 = vmatprep.subr.bf16.mxu0 %v13296_v31  ;;  %9730 = vmatprep.mubr.bf16.mxu0 %v15040_v30  ;;  %v19382_v48 = vadd.f32 %v9161_v40, %v9049_v49  ;;  %v9051_v31 = vadd.f32 %v9050_v17, %v19078_v43  ;;  %v9163_v18 = vpop.f32.mrf.mxu1  ;;  %v9054_v29 = vpop.f32.mrf.mxu0  ;;  %v22746_v40 = vld [vmem:[#allocation10_spill] sm:$0xff] }
 0x396   :  { %v13416_v22 = vcombine.high %v577_v3, %v581_v4  ;;  %v441_v25 = vld [vmem:[%s22020_s1 + $0x918] sm:$0xff]  ;;  %10030 = vmatpush1.bf16.msra.mxu1 %v13423_v21  ;;  %v13415_v38 = vcombine.low %v577_v3, %v581_v4  ;;  %v22745_v21 = vld [vmem:[#allocation9_spill] sm:$0xff] }
 0x397   :  { %v445_v28 = vld [vmem:[%s22020_s1 + $0x938] sm:$0xff]  ;;  %v19398_v4 = vadd.f32 %v9163_v18, %v9051_v31  ;;  %v9167_v44 = vpop.f32.mrf.mxu1  ;;  %v9056_v45 = vpop.f32.mrf.mxu0 }
 0x398   :  { %v569_v9 = vld [vmem:[%s22020_s1 + $0xd18] sm:$0xff]  ;;  %9917 = vmatpush1.bf16.msra.mxu0 %v13295_v54  ;;  %v13280_v56 = vcombine.high %v441_v25, %v445_v28  ;;  %10031 = vmatprep.subr.bf16.mxu1 %v13416_v22  ;;  %v9055_v54 = vadd.f32 %v9054_v29, %v19082_v6  ;;  %v9057_v51 = vadd.f32 %v9056_v45, %v19099_v10 }
 0x399   :  { %v573_v30 = vld [vmem:[%s22020_s1 + $0xd38] sm:$0xff]  ;;  %9918 = vmatprep.subr.bf16.mxu0 %v13288_v27  ;;  %9844 = vmatmul.mubr.bf16.gmra.mxu1 %v22745_v21  ;;  %v13279_v27 = vcombine.low %v441_v25, %v445_v28  ;;  %v9169_v49 = vpop.f32.mrf.mxu1  ;;  %v9058_v28 = vpop.f32.mrf.mxu0 }
 0x39a   :  { %v13408_v39 = vcombine.high %v569_v9, %v573_v30  ;;  %v433_v47 = vld [vmem:[%s22020_s1 + $0x8d8] sm:$0xff]  ;;  %10032 = vmatpush1.bf16.msra.mxu1 %v13415_v38  ;;  %v13407_v36 = vcombine.low %v569_v9, %v573_v30  ;;  %v19402_v34 = vadd.f32 %v9167_v44, %v9055_v54  ;;  %v22747_v9 = vld [vmem:[#allocation11_spill] sm:$0xff]  ;;  %v9059_v38 = vadd.f32 %v9058_v28, %v19102_v8 }
 0x39b   :  { %v437_v23 = vld [vmem:[%s22020_s1 + $0x8f8] sm:$0xff]  ;;  %9853 = vmatprep.mubr.bf16.mxu1 %v22747_v9  ;;  %v9060_v18 = vpop.f32.mrf.mxu0 }
 0x39c   :  { %v22744_v42 = vld [vmem:[#allocation8_spill] sm:$0xff]  ;;  %9919 = vmatpush1.bf16.msra.mxu0 %v13287_v7  ;;  %v13272_v22 = vcombine.high %v433_v47, %v437_v23  ;;  %10033 = vmatprep.subr.bf16.mxu1 %v13408_v39  ;;  %v19419_v7 = vadd.f32 %v9169_v49, %v9057_v51  ;;  %v13271_v31 = vcombine.low %v433_v47, %v437_v23 }
 0x39d   :  { %9731 = vmatmul.mubr.bf16.gmra.mxu0 %v22744_v42  ;;  %v561_v3 = vld [vmem:[%s22020_s1 + $0xcd8] sm:$0xff]  ;;  %9920 = vmatprep.subr.bf16.mxu0 %v13280_v56  ;;  %v9171_v56 = vpop.f32.mrf.mxu1  ;;  %v9061_v54 = vadd.f32 %v9060_v18, %v19118_v33  ;;  %v9064_v47 = vpop.f32.mrf.mxu0 }
 0x39e   :  { %v565_v43 = vld [vmem:[%s22020_s1 + $0xcf8] sm:$0xff]  ;;  %9740 = vmatprep.mubr.bf16.mxu0 %v22746_v40  ;;  %10034 = vmatpush1.bf16.msra.mxu1 %v13407_v36  ;;  %v19422_v42 = vadd.f32 %v9171_v56, %v9059_v38  ;;  %v22750_v56 = vld [vmem:[#allocation14_spill] sm:$0xff] }
 0x39f   :  { %v13400_v17 = vcombine.high %v561_v3, %v565_v43  ;;  %v425_v6 = vld [vmem:[%s22020_s1 + $0x898] sm:$0xff]  ;;  %v13399_v39 = vcombine.low %v561_v3, %v565_v43  ;;  %v9173_v44 = vpop.f32.mrf.mxu1  ;;  %v9066_v49 = vpop.f32.mrf.mxu0 }
 0x3a0   :  { %v429_v25 = vld [vmem:[%s22020_s1 + $0x8b8] sm:$0xff]  ;;  %9921 = vmatpush1.bf16.msra.mxu0 %v13279_v27  ;;  %v19438_v43 = vadd.f32 %v9173_v44, %v9061_v54  ;;  %v9065_v27 = vadd.f32 %v9064_v47, %v19122_v2  ;;  %v9067_v9 = vadd.f32 %v9066_v49, %v19139_v61 }
 0x3a1   :  { %v553_v10 = vld [vmem:[%s22020_s1 + $0xc98] sm:$0xff]  ;;  %9922 = vmatprep.subr.bf16.mxu0 %v13272_v22  ;;  %v13264_v29 = vcombine.high %v425_v6, %v429_v25  ;;  %10035 = vmatprep.subr.bf16.mxu1 %v13400_v17  ;;  %v9177_v36 = vpop.f32.mrf.mxu1  ;;  %v22749_v22 = vld [vmem:[#allocation13_spill] sm:$0xff]  ;;  %v13263_v51 = vcombine.low %v425_v6, %v429_v25  ;;  %v9068_v25 = vpop.f32.mrf.mxu0 }
 0x3a2   :  { %v557_v30 = vld [vmem:[%s22020_s1 + $0xcb8] sm:$0xff]  ;;  %9854 = vmatmul.mubr.bf16.gmra.mxu1 %v22749_v22  ;;  %v19442_v28 = vadd.f32 %v9177_v36, %v9065_v27 }
 0x3a3   :  { %v13392_v21 = vcombine.high %v553_v10, %v557_v30  ;;  %v417_v45 = vld [vmem:[%s22020_s1 + $0x858] sm:$0xff]  ;;  %10036 = vmatpush1.bf16.msra.mxu1 %v13399_v39  ;;  %v13391_v40 = vcombine.low %v553_v10, %v557_v30  ;;  %v9179_v38 = vpop.f32.mrf.mxu1  ;;  %v22751_v10 = vld [vmem:[#allocation15_spill] sm:$0xff]  ;;  %v9069_v39 = vadd.f32 %v9068_v25, %v19142_v58  ;;  %v9070_v44 = vpop.f32.mrf.mxu0 }
 0x3a4   :  { %v421_v8 = vld [vmem:[%s22020_s1 + $0x878] sm:$0xff]  ;;  %9923 = vmatpush1.bf16.msra.mxu0 %v13271_v31  ;;  %9863 = vmatprep.mubr.bf16.mxu1 %v22751_v10  ;;  %v19459_v31 = vadd.f32 %v9179_v38, %v9067_v9  ;;  %v9071_v27 = vadd.f32 %v9070_v44, %v19158_v52 }
 0x3a5   :  { %v22748_v23 = vld [vmem:[#allocation12_spill] sm:$0xff]  ;;  %9924 = vmatprep.subr.bf16.mxu0 %v13264_v29  ;;  %v13256_v17 = vcombine.high %v417_v45, %v421_v8  ;;  %10037 = vmatprep.subr.bf16.mxu1 %v13392_v21  ;;  %v9181_v29 = vpop.f32.mrf.mxu1  ;;  %v13255_v54 = vcombine.low %v417_v45, %v421_v8  ;;  %v9074_v45 = vpop.f32.mrf.mxu0 }
 0x3a6   :  { %9741 = vmatmul.mubr.bf16.gmra.mxu0 %v22748_v23  ;;  %v545_v3 = vld [vmem:[%s22020_s1 + $0xc58] sm:$0xff]  ;;  %v19462_v23 = vadd.f32 %v9181_v29, %v9069_v39  ;;  %v22754_v29 = vld [vmem:[#allocation18_spill] sm:$0xff] }
 0x3a7   :  { %v549_v33 = vld [vmem:[%s22020_s1 + $0xc78] sm:$0xff]  ;;  %9750 = vmatprep.mubr.bf16.mxu0 %v22750_v56  ;;  %10038 = vmatpush1.bf16.msra.mxu1 %v13391_v40  ;;  %v9183_v36 = vpop.f32.mrf.mxu1  ;;  %v9076_v38 = vpop.f32.mrf.mxu0 }
 0x3a8   :  { %v13384_v18 = vcombine.high %v545_v3, %v549_v33  ;;  %v409_v2 = vld [vmem:[%s22020_s1 + $0x818] sm:$0xff]  ;;  %9925 = vmatpush1.bf16.msra.mxu0 %v13263_v51  ;;  %v13383_v21 = vcombine.low %v545_v3, %v549_v33  ;;  %v19478_v33 = vadd.f32 %v9183_v36, %v9071_v27  ;;  %v9075_v51 = vadd.f32 %v9074_v45, %v19162_v0 }
 0x3a9   :  { %v413_v6 = vld [vmem:[%s22020_s1 + $0x838] sm:$0xff]  ;;  %9926 = vmatprep.subr.bf16.mxu0 %v13256_v17  ;;  %v9187_v40 = vpop.f32.mrf.mxu1  ;;  %v22753_v17 = vld [vmem:[#allocation17_spill] sm:$0xff]  ;;  %v9077_v10 = vadd.f32 %v9076_v38, %v19179_v63 }
 0x3aa   :  { %v537_v61 = vld [vmem:[%s22020_s1 + $0xc18] sm:$0xff]  ;;  %v13248_v47 = vcombine.high %v409_v2, %v413_v6  ;;  %10039 = vmatprep.subr.bf16.mxu1 %v13384_v18  ;;  %9864 = vmatmul.mubr.bf16.gmra.mxu1 %v22753_v17  ;;  %v13247_v9 = vcombine.low %v409_v2, %v413_v6  ;;  %v19482_v25 = vadd.f32 %v9187_v40, %v9075_v51  ;;  %v9078_v6 = vpop.f32.mrf.mxu0 }
 0x3ab   :  { %v541_v30 = vld [vmem:[%s22020_s1 + $0xc38] sm:$0xff]  ;;  %10040 = vmatpush1.bf16.msra.mxu1 %v13383_v21  ;;  %v9189_v39 = vpop.f32.mrf.mxu1  ;;  %v9079_v21 = vadd.f32 %v9078_v6, %v19182_v12 }
 0x3ac   :  { %v13376_v22 = vcombine.high %v537_v61, %v541_v30  ;;  %v529_v49 = vld [vmem:[%s22020_s1 + $0xbd8] sm:$0xff]  ;;  %9927 = vmatpush1.bf16.msra.mxu0 %v13255_v54  ;;  %v13375_v56 = vcombine.low %v537_v61, %v541_v30  ;;  %v22755_v61 = vld [vmem:[#allocation19_spill] sm:$0xff]  ;;  %v19499_v54 = vadd.f32 %v9189_v39, %v9077_v10  ;;  %v9080_v36 = vpop.f32.mrf.mxu0 }
 0x3ad   :  { %v533_v58 = vld [vmem:[%s22020_s1 + $0xbf8] sm:$0xff]  ;;  %9928 = vmatprep.subr.bf16.mxu0 %v13248_v47  ;;  %9873 = vmatprep.mubr.bf16.mxu1 %v22755_v61  ;;  %v9191_v47 = vpop.f32.mrf.mxu1  ;;  %v9081_v51 = vadd.f32 %v9080_v36, %v19198_v55 }
 0x3ae   :  { %v22752_v8 = vld [vmem:[#allocation16_spill] sm:$0xff]  ;;  %v13368_v18 = vcombine.high %v529_v49, %v533_v58  ;;  %10041 = vmatprep.subr.bf16.mxu1 %v13376_v22  ;;  %v13367_v27 = vcombine.low %v529_v49, %v533_v58  ;;  %v9084_v49 = vpop.f32.mrf.mxu0 }
 0x3af   :  { %9751 = vmatmul.mubr.bf16.gmra.mxu0 %v22752_v8  ;;  %v657_v3 = vld [vmem:[%s22020_s1 + $0xfd8] sm:$0xff]  ;;  %10042 = vmatpush1.bf16.msra.mxu1 %v13375_v56  ;;  %v19502_v8 = vadd.f32 %v9191_v47, %v9079_v21  ;;  %v9193_v40 = vpop.f32.mrf.mxu1  ;;  %v22758_v47 = vld [vmem:[#allocation22_spill] sm:$0xff] }
 0x3b0   :  { %v661_v52 = vld [vmem:[%s22020_s1 + $0xff8] sm:$0xff]  ;;  %9760 = vmatprep.mubr.bf16.mxu0 %v22754_v29  ;;  %9929 = vmatpush1.bf16.msra.mxu0 %v13247_v9  ;;  %v9085_v9 = vadd.f32 %v9084_v49, %v19202_v32  ;;  %v9086_v39 = vpop.f32.mrf.mxu0 }
 0x3b1   :  { %v13496_v44 = vcombine.high %v657_v3, %v661_v52  ;;  %v521_v0 = vld [vmem:[%s22020_s1 + $0xb98] sm:$0xff]  ;;  %9930 = vmatprep.subr.bf16.mxu0 %v13368_v18  ;;  %v13495_v22 = vcombine.low %v657_v3, %v661_v52  ;;  %v19518_v52 = vadd.f32 %v9193_v40, %v9081_v51  ;;  %v9197_v56 = vpop.f32.mrf.mxu1  ;;  %v22757_v18 = vld [vmem:[#allocation21_spill] sm:$0xff]  ;;  %v9087_v61 = vadd.f32 %v9086_v39, %v19219_v59 }
 0x3b2   :  { %v525_v2 = vld [vmem:[%s22020_s1 + $0xbb8] sm:$0xff]  ;;  %9874 = vmatmul.mubr.bf16.gmra.mxu1 %v22757_v18  ;;  %v19522_v6 = vadd.f32 %v9197_v56, %v9085_v9 }
 0x3b3   :  { %v649_v63 = vld [vmem:[%s22020_s1 + $0xf98] sm:$0xff]  ;;  %v13360_v45 = vcombine.high %v521_v0, %v525_v2  ;;  %10043 = vmatprep.subr.bf16.mxu1 %v13496_v44  ;;  %v13359_v10 = vcombine.low %v521_v0, %v525_v2  ;;  %v9199_v21 = vpop.f32.mrf.mxu1  ;;  %v9088_v2 = vpop.f32.mrf.mxu0 }
 0x3b4   :  { %v653_v30 = vld [vmem:[%s22020_s1 + $0xfb8] sm:$0xff]  ;;  %9931 = vmatpush2.bf16.msra.mxu0 %v13367_v27  ;;  %10044 = vmatpush2.bf16.msra.mxu1 %v13495_v22  ;;  %v19539_v27 = vadd.f32 %v9199_v21, %v9087_v61  ;;  %v9089_v22 = vadd.f32 %v9088_v2, %v19222_v62 }
 0x3b5   :  { %v13488_v17 = vcombine.high %v649_v63, %v653_v30  ;;  %v513_v38 = vld [vmem:[%s22020_s1 + $0xb58] sm:$0xff]  ;;  %9932 = vmatprep.subr.bf16.mxu0 %v13360_v45  ;;  %v13487_v29 = vcombine.low %v649_v63, %v653_v30  ;;  %v22759_v63 = vld [vmem:[#allocation23_spill] sm:$0xff]  ;;  %v9201_v45 = vpop.f32.mrf.mxu1  ;;  %v9090_v40 = vpop.f32.mrf.mxu0 }
 0x3b6   :  { %v517_v12 = vld [vmem:[%s22020_s1 + $0xb78] sm:$0xff]  ;;  %9883 = vmatprep.mubr.bf16.mxu1 %v22759_v63  ;;  %v9091_v9 = vadd.f32 %v9090_v40, %v19238_v53 }
 0x3b7   :  { %v22756_v58 = vld [vmem:[#allocation20_spill] sm:$0xff]  ;;  %v13352_v44 = vcombine.high %v513_v38, %v517_v12  ;;  %10045 = vmatprep.subr.bf16.mxu1 %v13488_v17  ;;  %v13351_v51 = vcombine.low %v513_v38, %v517_v12  ;;  %v9203_v56 = vpop.f32.mrf.mxu1  ;;  %v9094_v38 = vpop.f32.mrf.mxu0 }
 0x3b8   :  { %9761 = vmatmul.mubr.bf16.gmra.mxu0 %v22756_v58  ;;  %v641_v3 = vld [vmem:[%s22020_s1 + $0xf58] sm:$0xff]  ;;  %10046 = vmatpush2.bf16.msra.mxu1 %v13487_v29  ;;  %v19542_v58 = vadd.f32 %v9201_v45, %v9089_v22  ;;  %v22762_v45 = vld [vmem:[#allocation26_spill] sm:$0xff] }
 0x3b9   :  { %v645_v55 = vld [vmem:[%s22020_s1 + $0xf78] sm:$0xff]  ;;  %9770 = vmatprep.mubr.bf16.mxu0 %v22758_v47  ;;  %9933 = vmatpush2.bf16.msra.mxu0 %v13359_v10  ;;  %v9095_v10 = vadd.f32 %v9094_v38, %v19242_v13  ;;  %v9207_v29 = vpop.f32.mrf.mxu1  ;;  %v9096_v21 = vpop.f32.mrf.mxu0 }
 0x3ba   :  { %v13480_v36 = vcombine.high %v641_v3, %v645_v55  ;;  %v505_v32 = vld [vmem:[%s22020_s1 + $0xb18] sm:$0xff]  ;;  %9934 = vmatprep.subr.bf16.mxu0 %v13352_v44  ;;  %v13479_v17 = vcombine.low %v641_v3, %v645_v55  ;;  %v19558_v55 = vadd.f32 %v9203_v56, %v9091_v9  ;;  %v22761_v44 = vld [vmem:[#allocation25_spill] sm:$0xff]  ;;  %v9097_v63 = vadd.f32 %v9096_v21, %v19259_v46 }
 0x3bb   :  { %v509_v0 = vld [vmem:[%s22020_s1 + $0xb38] sm:$0xff]  ;;  %9884 = vmatmul.mubr.bf16.gmra.mxu1 %v22761_v44  ;;  %v19562_v2 = vadd.f32 %v9207_v29, %v9095_v10  ;;  %v9209_v22 = vpop.f32.mrf.mxu1 }
 0x3bc   :  { %v633_v59 = vld [vmem:[%s22020_s1 + $0xf18] sm:$0xff]  ;;  %v13344_v49 = vcombine.high %v505_v32, %v509_v0  ;;  %10047 = vmatprep.subr.bf16.mxu1 %v13480_v36  ;;  %v13343_v61 = vcombine.low %v505_v32, %v509_v0  ;;  %v9098_v0 = vpop.f32.mrf.mxu0 }
 0x3bd   :  { %v637_v30 = vld [vmem:[%s22020_s1 + $0xf38] sm:$0xff]  ;;  %9935 = vmatpush2.bf16.msra.mxu0 %v13351_v51  ;;  %10048 = vmatpush2.bf16.msra.mxu1 %v13479_v17  ;;  %v19579_v51 = vadd.f32 %v9209_v22, %v9097_v63  ;;  %v9099_v17 = vadd.f32 %v9098_v0, %v19262_v15 }
 0x3be   :  { %v13472_v18 = vcombine.high %v633_v59, %v637_v30  ;;  %v497_v39 = vld [vmem:[%s22020_s1 + $0xad8] sm:$0xff]  ;;  %9936 = vmatprep.subr.bf16.mxu0 %v13344_v49  ;;  %v13471_v47 = vcombine.low %v633_v59, %v637_v30  ;;  %v22763_v59 = vld [vmem:[#allocation27_spill] sm:$0xff]  ;;  %v9211_v49 = vpop.f32.mrf.mxu1  ;;  %v9100_v56 = vpop.f32.mrf.mxu0 }
 0x3bf   :  { %v501_v62 = vld [vmem:[%s22020_s1 + $0xaf8] sm:$0xff]  ;;  %9893 = vmatprep.mubr.bf16.mxu1 %v22763_v59  ;;  %v9101_v10 = vadd.f32 %v9100_v56, %v19278_v50 }
 0x3c0   :  { %v22760_v12 = vld [vmem:[#allocation24_spill] sm:$0xff]  ;;  %v13336_v36 = vcombine.high %v497_v39, %v501_v62  ;;  %10049 = vmatprep.subr.bf16.mxu1 %v13472_v18  ;;  %v13335_v9 = vcombine.low %v497_v39, %v501_v62  ;;  %v9213_v29 = vpop.f32.mrf.mxu1  ;;  %v9104_v39 = vpop.f32.mrf.mxu0 }
 0x3c1   :  { %9771 = vmatmul.mubr.bf16.gmra.mxu0 %v22760_v12  ;;  %v625_v3 = vld [vmem:[%s22020_s1 + $0xed8] sm:$0xff]  ;;  %10050 = vmatpush2.bf16.msra.mxu1 %v13471_v47  ;;  %v19582_v12 = vadd.f32 %v9211_v49, %v9099_v17  ;;  %v22766_v49 = vld [vmem:[#allocation30_spill] sm:$0xff] }
 0x3c2   :  { %v629_v53 = vld [vmem:[%s22020_s1 + $0xef8] sm:$0xff]  ;;  %9780 = vmatprep.mubr.bf16.mxu0 %v22762_v45  ;;  %9937 = vmatpush2.bf16.msra.mxu0 %v13343_v61  ;;  %v9105_v61 = vadd.f32 %v9104_v39, %v19282_v37  ;;  %v9217_v47 = vpop.f32.mrf.mxu1  ;;  %v9106_v22 = vpop.f32.mrf.mxu0 }
 0x3c3   :  { %v13464_v40 = vcombine.high %v625_v3, %v629_v53  ;;  %v489_v13 = vld [vmem:[%s22020_s1 + $0xa98] sm:$0xff]  ;;  %9938 = vmatprep.subr.bf16.mxu0 %v13336_v36  ;;  %v13463_v18 = vcombine.low %v625_v3, %v629_v53  ;;  %v19598_v53 = vadd.f32 %v9213_v29, %v9101_v10  ;;  %v22765_v36 = vld [vmem:[#allocation29_spill] sm:$0xff]  ;;  %v9107_v59 = vadd.f32 %v9106_v22, %v19299_v60 }
 0x3c4   :  { %v493_v32 = vld [vmem:[%s22020_s1 + $0xab8] sm:$0xff]  ;;  %9894 = vmatmul.mubr.bf16.gmra.mxu1 %v22765_v36  ;;  %v19602_v0 = vadd.f32 %v9217_v47, %v9105_v61  ;;  %v9219_v17 = vpop.f32.mrf.mxu1 }
 0x3c5   :  { %v617_v46 = vld [vmem:[%s22020_s1 + $0xe98] sm:$0xff]  ;;  %v13328_v38 = vcombine.high %v489_v13, %v493_v32  ;;  %10051 = vmatprep.subr.bf16.mxu1 %v13464_v40  ;;  %v13327_v63 = vcombine.low %v489_v13, %v493_v32  ;;  %v9108_v32 = vpop.f32.mrf.mxu0 }
 0x3c6   :  { %v621_v30 = vld [vmem:[%s22020_s1 + $0xeb8] sm:$0xff]  ;;  %9939 = vmatpush2.bf16.msra.mxu0 %v13335_v9  ;;  %10052 = vmatpush2.bf16.msra.mxu1 %v13463_v18  ;;  %v19619_v9 = vadd.f32 %v9219_v17, %v9107_v59  ;;  %v9109_v18 = vadd.f32 %v9108_v32, %v19302_v1 }
 0x3c7   :  { %v13456_v44 = vcombine.high %v617_v46, %v621_v30  ;;  %v481_v21 = vld [vmem:[%s22020_s1 + $0xa58] sm:$0xff]  ;;  %9940 = vmatprep.subr.bf16.mxu0 %v13328_v38  ;;  %v13455_v45 = vcombine.low %v617_v46, %v621_v30  ;;  %v22767_v46 = vld [vmem:[#allocation31_spill] sm:$0xff]  ;;  %v9221_v38 = vpop.f32.mrf.mxu1  ;;  %v9110_v29 = vpop.f32.mrf.mxu0 }
 0x3c8   :  { %v485_v15 = vld [vmem:[%s22020_s1 + $0xa78] sm:$0xff]  ;;  %9903 = vmatprep.mubr.bf16.mxu1 %v22767_v46  ;;  %v9111_v61 = vadd.f32 %v9110_v29, %v19318_v16 }
 0x3c9   :  { %v22764_v62 = vld [vmem:[#allocation28_spill] sm:$0xff]  ;;  %v13320_v40 = vcombine.high %v481_v21, %v485_v15  ;;  %10053 = vmatprep.subr.bf16.mxu1 %v13456_v44  ;;  %v13319_v10 = vcombine.low %v481_v21, %v485_v15  ;;  %v9223_v47 = vpop.f32.mrf.mxu1  ;;  %v9114_v21 = vpop.f32.mrf.mxu0 }
 0x3ca   :  { %9781 = vmatmul.mubr.bf16.gmra.mxu0 %v22764_v62  ;;  %v609_v3 = vld [vmem:[%s22020_s1 + $0xe58] sm:$0xff]  ;;  %10054 = vmatpush2.bf16.msra.mxu1 %v13455_v45  ;;  %v19622_v62 = vadd.f32 %v9221_v38, %v9109_v18  ;;  %v22770_v38 = vld [vmem:[#allocation34_spill] sm:$0xff] }
 0x3cb   :  { %v613_v50 = vld [vmem:[%s22020_s1 + $0xe78] sm:$0xff]  ;;  %9790 = vmatprep.mubr.bf16.mxu0 %v22766_v49  ;;  %9941 = vmatpush2.bf16.msra.mxu0 %v13327_v63  ;;  %v9115_v63 = vadd.f32 %v9114_v21, %v19322_v5  ;;  %v9227_v45 = vpop.f32.mrf.mxu1  ;;  %v9116_v17 = vpop.f32.mrf.mxu0 }
 0x3cc   :  { %v13448_v56 = vcombine.high %v609_v3, %v613_v50  ;;  %v473_v37 = vld [vmem:[%s22020_s1 + $0xa18] sm:$0xff]  ;;  %9942 = vmatprep.subr.bf16.mxu0 %v13320_v40  ;;  %v13447_v44 = vcombine.low %v609_v3, %v613_v50  ;;  %v19638_v50 = vadd.f32 %v9223_v47, %v9111_v61  ;;  %v22769_v40 = vld [vmem:[#allocation33_spill] sm:$0xff]  ;;  %v9117_v46 = vadd.f32 %v9116_v17, %v19339_v35 }
 0x3cd   :  { %v477_v13 = vld [vmem:[%s22020_s1 + $0xa38] sm:$0xff]  ;;  %9904 = vmatmul.mubr.bf16.gmra.mxu1 %v22769_v40  ;;  %v19642_v32 = vadd.f32 %v9227_v45, %v9115_v63  ;;  %v9229_v18 = vpop.f32.mrf.mxu1 }
 0x3ce   :  { %v601_v60 = vld [vmem:[%s22020_s1 + $0xe18] sm:$0xff]  ;;  %v13312_v39 = vcombine.high %v473_v37, %v477_v13  ;;  %10055 = vmatprep.subr.bf16.mxu1 %v13448_v56  ;;  %v13311_v59 = vcombine.low %v473_v37, %v477_v13  ;;  %v9118_v13 = vpop.f32.mrf.mxu0 }
 0x3cf   :  { %v605_v30 = vld [vmem:[%s22020_s1 + $0xe38] sm:$0xff]  ;;  %9943 = vmatpush2.bf16.msra.mxu0 %v13319_v10  ;;  %10056 = vmatpush2.bf16.msra.mxu1 %v13447_v44  ;;  %v19659_v10 = vadd.f32 %v9229_v18, %v9117_v46  ;;  %v9119_v44 = vadd.f32 %v9118_v13, %v19342_v57 }
 0x3d0   :  { %v13440_v36 = vcombine.high %v601_v60, %v605_v30  ;;  %v721_v22 = vld [vmem:[%s22020_s1 + $0x11d8] sm:$0xff]  ;;  %9944 = vmatprep.subr.bf16.mxu0 %v13312_v39  ;;  %v13439_v49 = vcombine.low %v601_v60, %v605_v30  ;;  %v22771_v60 = vld [vmem:[#allocation35_spill] sm:$0xff]  ;;  %v9231_v39 = vpop.f32.mrf.mxu1  ;;  %v9120_v47 = vpop.f32.mrf.mxu0 }
 0x3d1   :  { %v725_v1 = vld [vmem:[%s22020_s1 + $0x11f8] sm:$0xff]  ;;  %10059 = vmatprep.mubr.bf16.mxu1 %v22771_v60  ;;  %v9121_v63 = vadd.f32 %v9120_v47, %v19358_v19 }
 0x3d2   :  { %v22768_v15 = vld [vmem:[#allocation32_spill] sm:$0xff]  ;;  %v13560_v56 = vcombine.high %v721_v22, %v725_v1  ;;  %10057 = vmatprep.subr.bf16.mxu1 %v13440_v36  ;;  %v13559_v61 = vcombine.low %v721_v22, %v725_v1  ;;  %v9233_v45 = vpop.f32.mrf.mxu1  ;;  %v9270_v22 = vpop.f32.mrf.mxu0 }
 0x3d3   :  { %9791 = vmatmul.mubr.bf16.gmra.mxu0 %v22768_v15  ;;  %v849_v3 = vld [vmem:[%s22020_s1 + $0x15d8] sm:$0xff]  ;;  %10058 = vmatpush2.bf16.msra.mxu1 %v13439_v49  ;;  %v19662_v15 = vadd.f32 %v9231_v39, %v9119_v44  ;;  %v22774_v39 = vld [vmem:[#allocation38_spill] sm:$0xff] }
 0x3d4   :  { %v853_v16 = vld [vmem:[%s22020_s1 + $0x15f8] sm:$0xff]  ;;  %9946 = vmatprep.mubr.bf16.mxu0 %v22770_v38  ;;  %9945 = vmatpush2.bf16.msra.mxu0 %v13311_v59  ;;  %v9271_v59 = vadd.f32 %v9270_v22, %v19362_v14  ;;  %v9383_v49 = vpop.f32.mrf.mxu1  ;;  %v9272_v18 = vpop.f32.mrf.mxu0 }
 0x3d5   :  { %v13688_v29 = vcombine.high %v849_v3, %v853_v16  ;;  %v713_v5 = vld [vmem:[%s22020_s1 + $0x1198] sm:$0xff]  ;;  %10140 = vmatprep.subr.bf16.mxu0 %v13560_v56  ;;  %v13687_v36 = vcombine.low %v849_v3, %v853_v16  ;;  %v19678_v16 = vadd.f32 %v9233_v45, %v9121_v63  ;;  %v22773_v56 = vld [vmem:[#allocation37_spill] sm:$0xff]  ;;  %v9273_v60 = vadd.f32 %v9272_v18, %v19379_v26 }
 0x3d6   :  { %v717_v37 = vld [vmem:[%s22020_s1 + $0x11b8] sm:$0xff]  ;;  %10060 = vmatmul.mubr.bf16.vlgmr.msra.gmra.mxu1 %v22773_v56  ;;  %v19682_v13 = vadd.f32 %v9383_v49, %v9271_v59  ;;  %v9385_v44 = vpop.f32.mrf.mxu1 }
 0x3d7   :  { %v841_v35 = vld [vmem:[%s22020_s1 + $0x1598] sm:$0xff]  ;;  %v13552_v21 = vcombine.high %v713_v5, %v717_v37  ;;  %10253 = vmatprep.subr.bf16.mxu1 %v13688_v29  ;;  %v13551_v46 = vcombine.low %v713_v5, %v717_v37  ;;  %v9274_v37 = vpop.f32.mrf.mxu0 }
 0x3d8   :  { %v845_v30 = vld [vmem:[%s22020_s1 + $0x15b8] sm:$0xff]  ;;  %10254 = vmatpush1.bf16.msra.mxu1 %v13687_v36  ;;  %v9275_v36 = vadd.f32 %v9274_v37, %v19382_v48 }
 0x3d9   :  { %v13680_v40 = vcombine.high %v841_v35, %v845_v30  ;;  %v705_v17 = vld [vmem:[%s22020_s1 + $0x1158] sm:$0xff]  ;;  %v13679_v38 = vcombine.low %v841_v35, %v845_v30  ;;  %v22775_v35 = vld [vmem:[#allocation39_spill] sm:$0xff]  ;;  %v9276_v45 = vpop.f32.mrf.mxu0 }
 0x3da   :  { %v709_v57 = vld [vmem:[%s22020_s1 + $0x1178] sm:$0xff]  ;;  %10069 = vmatprep.mubr.bf16.mxu1 %v22775_v35  ;;  %v9277_v59 = vadd.f32 %v9276_v45, %v19398_v4 }
 0x3db   :  { %v22772_v1 = vld [vmem:[#allocation36_spill] sm:$0xff]  ;;  %v13544_v29 = vcombine.high %v705_v17, %v709_v57  ;;  %10255 = vmatprep.subr.bf16.mxu1 %v13680_v40  ;;  %v13543_v63 = vcombine.low %v705_v17, %v709_v57  ;;  %v9280_v17 = vpop.f32.mrf.mxu0 }
 0x3dc   :  { %9947 = vmatmul.mubr.bf16.vlgmr.msra.gmra.mxu0 %v22772_v1  ;;  %v833_v3 = vld [vmem:[%s22020_s1 + $0x1558] sm:$0xff]  ;;  %10256 = vmatpush1.bf16.msra.mxu1 %v13679_v38 }
 0x3dd   :  { %v837_v19 = vld [vmem:[%s22020_s1 + $0x1578] sm:$0xff]  ;;  %10141 = vmatpush1.bf16.msra.mxu0 %v13559_v61  ;;  %9956 = vmatprep.mubr.bf16.mxu0 %v22774_v39  ;;  %v19699_v61 = vadd.f32 %v9385_v44, %v9273_v60  ;;  %v9282_v44 = vpop.f32.mrf.mxu0 }
 0x3de   :  { %10142 = vmatprep.subr.bf16.mxu0 %v13552_v21  ;;  %v13672_v47 = vcombine.high %v833_v3, %v837_v19  ;;  %v697_v14 = vld [vmem:[%s22020_s1 + $0x1118] sm:$0xff]  ;;  %v9387_v21 = vpop.f32.mrf.mxu1  ;;  %v13671_v40 = vcombine.low %v833_v3, %v837_v19  ;;  %v9283_v35 = vadd.f32 %v9282_v44, %v19419_v7 }
 0x3df   :  { %v701_v5 = vld [vmem:[%s22020_s1 + $0x1138] sm:$0xff]  ;;  %v19702_v1 = vadd.f32 %v9387_v21, %v9275_v36  ;;  %v22778_v21 = vld [vmem:[#allocation42_spill] sm:$0xff] }
 0x3e0   :  { %v825_v26 = vld [vmem:[%s22020_s1 + $0x1518] sm:$0xff]  ;;  %v13536_v22 = vcombine.high %v697_v14, %v701_v5  ;;  %v9389_v49 = vpop.f32.mrf.mxu1  ;;  %10257 = vmatprep.subr.bf16.mxu1 %v13672_v47  ;;  %v13535_v60 = vcombine.low %v697_v14, %v701_v5  ;;  %v9284_v5 = vpop.f32.mrf.mxu0 }
 0x3e1   :  { %v829_v30 = vld [vmem:[%s22020_s1 + $0x1538] sm:$0xff]  ;;  %10143 = vmatpush1.bf16.msra.mxu0 %v13551_v46  ;;  %v19718_v19 = vadd.f32 %v9389_v49, %v9277_v59  ;;  %v9281_v46 = vadd.f32 %v9280_v17, %v19402_v34  ;;  %10258 = vmatpush1.bf16.msra.mxu1 %v13671_v40  ;;  %v9285_v40 = vadd.f32 %v9284_v5, %v19422_v42 }
 0x3e2   :  { %10144 = vmatprep.subr.bf16.mxu0 %v13544_v29  ;;  %v13664_v56 = vcombine.high %v825_v26, %v829_v30  ;;  %v689_v18 = vld [vmem:[%s22020_s1 + $0x10d8] sm:$0xff]  ;;  %v9393_v38 = vpop.f32.mrf.mxu1  ;;  %v22777_v29 = vld [vmem:[#allocation41_spill] sm:$0xff]  ;;  %v13663_v39 = vcombine.low %v825_v26, %v829_v30  ;;  %v22779_v26 = vld [vmem:[#allocation43_spill] sm:$0xff]  ;;  %v9286_v49 = vpop.f32.mrf.mxu0 }
 0x3e3   :  { %v693_v48 = vld [vmem:[%s22020_s1 + $0x10f8] sm:$0xff]  ;;  %10070 = vmatmul.mubr.bf16.gmra.mxu1 %v22777_v29  ;;  %v19722_v37 = vadd.f32 %v9393_v38, %v9281_v46  ;;  %v9287_v46 = vadd.f32 %v9286_v49, %v19438_v43 }
 0x3e4   :  { %v22776_v57 = vld [vmem:[#allocation40_spill] sm:$0xff]  ;;  %v13528_v47 = vcombine.high %v689_v18, %v693_v48  ;;  %v9395_v36 = vpop.f32.mrf.mxu1  ;;  %10259 = vmatprep.subr.bf16.mxu1 %v13664_v56  ;;  %10079 = vmatprep.mubr.bf16.mxu1 %v22779_v26  ;;  %v13527_v59 = vcombine.low %v689_v18, %v693_v48  ;;  %v9290_v18 = vpop.f32.mrf.mxu0 }
 0x3e5   :  { %9957 = vmatmul.mubr.bf16.gmra.mxu0 %v22776_v57  ;;  %v817_v3 = vld [vmem:[%s22020_s1 + $0x14d8] sm:$0xff]  ;;  %10260 = vmatpush1.bf16.msra.mxu1 %v13663_v39 }
 0x3e6   :  { %v821_v4 = vld [vmem:[%s22020_s1 + $0x14f8] sm:$0xff]  ;;  %10145 = vmatpush1.bf16.msra.mxu0 %v13543_v63  ;;  %9966 = vmatprep.mubr.bf16.mxu0 %v22778_v21  ;;  %v19739_v63 = vadd.f32 %v9395_v36, %v9283_v35  ;;  %v9292_v36 = vpop.f32.mrf.mxu0 }
 0x3e7   :  { %10146 = vmatprep.subr.bf16.mxu0 %v13536_v22  ;;  %v13656_v45 = vcombine.high %v817_v3, %v821_v4  ;;  %v681_v34 = vld [vmem:[%s22020_s1 + $0x1098] sm:$0xff]  ;;  %v9397_v22 = vpop.f32.mrf.mxu1  ;;  %v13655_v56 = vcombine.low %v817_v3, %v821_v4  ;;  %v9293_v26 = vadd.f32 %v9292_v36, %v19459_v31 }
 0x3e8   :  { %v685_v14 = vld [vmem:[%s22020_s1 + $0x10b8] sm:$0xff]  ;;  %v19742_v57 = vadd.f32 %v9397_v22, %v9285_v40  ;;  %v22782_v22 = vld [vmem:[#allocation46_spill] sm:$0xff] }
 0x3e9   :  { %v809_v7 = vld [vmem:[%s22020_s1 + $0x1498] sm:$0xff]  ;;  %v13520_v17 = vcombine.high %v681_v34, %v685_v14  ;;  %v9399_v38 = vpop.f32.mrf.mxu1  ;;  %10261 = vmatprep.subr.bf16.mxu1 %v13656_v45  ;;  %v13519_v35 = vcombine.low %v681_v34, %v685_v14  ;;  %v9294_v14 = vpop.f32.mrf.mxu0 }
 0x3ea   :  { %v813_v30 = vld [vmem:[%s22020_s1 + $0x14b8] sm:$0xff]  ;;  %10147 = vmatpush1.bf16.msra.mxu0 %v13535_v60  ;;  %v19758_v4 = vadd.f32 %v9399_v38, %v9287_v46  ;;  %v9291_v60 = vadd.f32 %v9290_v18, %v19442_v28  ;;  %10262 = vmatpush1.bf16.msra.mxu1 %v13655_v56  ;;  %v9295_v56 = vadd.f32 %v9294_v14, %v19462_v23 }
 0x3eb   :  { %10148 = vmatprep.subr.bf16.mxu0 %v13528_v47  ;;  %v13648_v29 = vcombine.high %v809_v7, %v813_v30  ;;  %v673_v44 = vld [vmem:[%s22020_s1 + $0x1058] sm:$0xff]  ;;  %v9403_v39 = vpop.f32.mrf.mxu1  ;;  %v22781_v47 = vld [vmem:[#allocation45_spill] sm:$0xff]  ;;  %v13647_v21 = vcombine.low %v809_v7, %v813_v30  ;;  %v22783_v7 = vld [vmem:[#allocation47_spill] sm:$0xff]  ;;  %v9296_v38 = vpop.f32.mrf.mxu0 }
 0x3ec   :  { %v677_v42 = vld [vmem:[%s22020_s1 + $0x1078] sm:$0xff]  ;;  %10080 = vmatmul.mubr.bf16.gmra.mxu1 %v22781_v47  ;;  %v19762_v5 = vadd.f32 %v9403_v39, %v9291_v60  ;;  %v9297_v60 = vadd.f32 %v9296_v38, %v19478_v33 }
 0x3ed   :  { %v22780_v48 = vld [vmem:[#allocation44_spill] sm:$0xff]  ;;  %v13512_v45 = vcombine.high %v673_v44, %v677_v42  ;;  %v9405_v40 = vpop.f32.mrf.mxu1  ;;  %10263 = vmatprep.subr.bf16.mxu1 %v13648_v29  ;;  %10089 = vmatprep.mubr.bf16.mxu1 %v22783_v7  ;;  %v13511_v46 = vcombine.low %v673_v44, %v677_v42  ;;  %v9300_v44 = vpop.f32.mrf.mxu0 }
 0x3ee   :  { %9967 = vmatmul.mubr.bf16.gmra.mxu0 %v22780_v48  ;;  %v801_v3 = vld [vmem:[%s22020_s1 + $0x1458] sm:$0xff]  ;;  %10264 = vmatpush1.bf16.msra.mxu1 %v13647_v21 }
 0x3ef   :  { %v805_v43 = vld [vmem:[%s22020_s1 + $0x1478] sm:$0xff]  ;;  %10149 = vmatpush1.bf16.msra.mxu0 %v13527_v59  ;;  %9976 = vmatprep.mubr.bf16.mxu0 %v22782_v22  ;;  %v19779_v59 = vadd.f32 %v9405_v40, %v9293_v26  ;;  %v9302_v40 = vpop.f32.mrf.mxu0 }
 0x3f0   :  { %10150 = vmatprep.subr.bf16.mxu0 %v13520_v17  ;;  %v13640_v49 = vcombine.high %v801_v3, %v805_v43  ;;  %v665_v28 = vld [vmem:[%s22020_s1 + $0x1018] sm:$0xff]  ;;  %v9407_v17 = vpop.f32.mrf.mxu1  ;;  %v13639_v29 = vcombine.low %v801_v3, %v805_v43  ;;  %v9303_v7 = vadd.f32 %v9302_v40, %v19499_v54 }
 0x3f1   :  { %v669_v34 = vld [vmem:[%s22020_s1 + $0x1038] sm:$0xff]  ;;  %v19782_v48 = vadd.f32 %v9407_v17, %v9295_v56  ;;  %v22786_v17 = vld [vmem:[#allocation50_spill] sm:$0xff] }
 0x3f2   :  { %v793_v31 = vld [vmem:[%s22020_s1 + $0x1418] sm:$0xff]  ;;  %v13504_v18 = vcombine.high %v665_v28, %v669_v34  ;;  %v9409_v39 = vpop.f32.mrf.mxu1  ;;  %10265 = vmatprep.subr.bf16.mxu1 %v13640_v49  ;;  %v13503_v26 = vcombine.low %v665_v28, %v669_v34  ;;  %v9304_v34 = vpop.f32.mrf.mxu0 }
 0x3f3   :  { %v797_v30 = vld [vmem:[%s22020_s1 + $0x1438] sm:$0xff]  ;;  %10151 = vmatpush1.bf16.msra.mxu0 %v13519_v35  ;;  %v19798_v43 = vadd.f32 %v9409_v39, %v9297_v60  ;;  %v9301_v35 = vadd.f32 %v9300_v44, %v19482_v25  ;;  %10266 = vmatpush1.bf16.msra.mxu1 %v13639_v29  ;;  %v9305_v29 = vadd.f32 %v9304_v34, %v19502_v8 }
 0x3f4   :  { %10152 = vmatprep.subr.bf16.mxu0 %v13512_v45  ;;  %v13632_v47 = vcombine.high %v793_v31, %v797_v30  ;;  %v785_v36 = vld [vmem:[%s22020_s1 + $0x13d8] sm:$0xff]  ;;  %v9413_v21 = vpop.f32.mrf.mxu1  ;;  %v22785_v45 = vld [vmem:[#allocation49_spill] sm:$0xff]  ;;  %v13631_v22 = vcombine.low %v793_v31, %v797_v30  ;;  %v22787_v31 = vld [vmem:[#allocation51_spill] sm:$0xff]  ;;  %v9306_v39 = vpop.f32.mrf.mxu0 }
 0x3f5   :  { %v789_v23 = vld [vmem:[%s22020_s1 + $0x13f8] sm:$0xff]  ;;  %10090 = vmatmul.mubr.bf16.gmra.mxu1 %v22785_v45  ;;  %v19802_v14 = vadd.f32 %v9413_v21, %v9301_v35  ;;  %v9307_v35 = vadd.f32 %v9306_v39, %v19518_v52 }
 0x3f6   :  { %v22784_v42 = vld [vmem:[#allocation48_spill] sm:$0xff]  ;;  %v13624_v49 = vcombine.high %v785_v36, %v789_v23  ;;  %v9415_v56 = vpop.f32.mrf.mxu1  ;;  %10267 = vmatprep.subr.bf16.mxu1 %v13632_v47  ;;  %10099 = vmatprep.mubr.bf16.mxu1 %v22787_v31  ;;  %v13623_v60 = vcombine.low %v785_v36, %v789_v23  ;;  %v9310_v36 = vpop.f32.mrf.mxu0 }
 0x3f7   :  { %9977 = vmatmul.mubr.bf16.gmra.mxu0 %v22784_v42  ;;  %v913_v3 = vld [vmem:[%s22020_s1 + $0x17d8] sm:$0xff]  ;;  %10268 = vmatpush1.bf16.msra.mxu1 %v13631_v22 }
 0x3f8   :  { %v917_v33 = vld [vmem:[%s22020_s1 + $0x17f8] sm:$0xff]  ;;  %10153 = vmatpush1.bf16.msra.mxu0 %v13511_v46  ;;  %9986 = vmatprep.mubr.bf16.mxu0 %v22786_v17  ;;  %v19819_v46 = vadd.f32 %v9415_v56, %v9303_v7  ;;  %v9312_v56 = vpop.f32.mrf.mxu0 }
 0x3f9   :  { %10154 = vmatprep.subr.bf16.mxu0 %v13504_v18  ;;  %v13752_v38 = vcombine.high %v913_v3, %v917_v33  ;;  %v777_v25 = vld [vmem:[%s22020_s1 + $0x1398] sm:$0xff]  ;;  %v9417_v18 = vpop.f32.mrf.mxu1  ;;  %v13751_v47 = vcombine.low %v913_v3, %v917_v33  ;;  %v9313_v31 = vadd.f32 %v9312_v56, %v19539_v27 }
 0x3fa   :  { %v781_v28 = vld [vmem:[%s22020_s1 + $0x13b8] sm:$0xff]  ;;  %v19822_v42 = vadd.f32 %v9417_v18, %v9305_v29  ;;  %v22790_v18 = vld [vmem:[#allocation54_spill] sm:$0xff] }
 0x3fb   :  { %v905_v54 = vld [vmem:[%s22020_s1 + $0x1798] sm:$0xff]  ;;  %v13616_v44 = vcombine.high %v777_v25, %v781_v28  ;;  %v9419_v21 = vpop.f32.mrf.mxu1  ;;  %10269 = vmatprep.subr.bf16.mxu1 %v13752_v38  ;;  %v13615_v7 = vcombine.low %v777_v25, %v781_v28  ;;  %v9314_v28 = vpop.f32.mrf.mxu0 }
 0x3fc   :  { %v909_v30 = vld [vmem:[%s22020_s1 + $0x17b8] sm:$0xff]  ;;  %10155 = vmatpush1.bf16.msra.mxu0 %v13503_v26  ;;  %v19838_v33 = vadd.f32 %v9419_v21, %v9307_v35  ;;  %v9311_v26 = vadd.f32 %v9310_v36, %v19522_v6  ;;  %10270 = vmatpush2.bf16.msra.mxu1 %v13751_v47  ;;  %v9315_v47 = vadd.f32 %v9314_v28, %v19542_v58 }
 0x3fd   :  { %10156 = vmatprep.subr.bf16.mxu0 %v13624_v49  ;;  %v13744_v45 = vcombine.high %v905_v54, %v909_v30  ;;  %v769_v40 = vld [vmem:[%s22020_s1 + $0x1358] sm:$0xff]  ;;  %v9423_v22 = vpop.f32.mrf.mxu1  ;;  %v22789_v49 = vld [vmem:[#allocation53_spill] sm:$0xff]  ;;  %v13743_v17 = vcombine.low %v905_v54, %v909_v30  ;;  %v22791_v54 = vld [vmem:[#allocation55_spill] sm:$0xff]  ;;  %v9316_v21 = vpop.f32.mrf.mxu0 }
 0x3fe   :  { %v773_v8 = vld [vmem:[%s22020_s1 + $0x1378] sm:$0xff]  ;;  %10100 = vmatmul.mubr.bf16.gmra.mxu1 %v22789_v49  ;;  %v19842_v34 = vadd.f32 %v9423_v22, %v9311_v26  ;;  %v9317_v26 = vadd.f32 %v9316_v21, %v19558_v55 }
 0x3ff   :  { %v22788_v23 = vld [vmem:[#allocation52_spill] sm:$0xff]  ;;  %v13608_v38 = vcombine.high %v769_v40, %v773_v8  ;;  %v9425_v29 = vpop.f32.mrf.mxu1  ;;  %10271 = vmatprep.subr.bf16.mxu1 %v13744_v45  ;;  %10109 = vmatprep.mubr.bf16.mxu1 %v22791_v54  ;;  %v13607_v35 = vcombine.low %v769_v40, %v773_v8  ;;  %v9320_v40 = vpop.f32.mrf.mxu0 }
 0x400   :  { %9987 = vmatmul.mubr.bf16.gmra.mxu0 %v22788_v23  ;;  %v897_v3 = vld [vmem:[%s22020_s1 + $0x1758] sm:$0xff]  ;;  %10272 = vmatpush2.bf16.msra.mxu1 %v13743_v17 }
 0x401   :  { %v901_v52 = vld [vmem:[%s22020_s1 + $0x1778] sm:$0xff]  ;;  %10157 = vmatpush2.bf16.msra.mxu0 %v13623_v60  ;;  %9996 = vmatprep.mubr.bf16.mxu0 %v22790_v18  ;;  %v19859_v60 = vadd.f32 %v9425_v29, %v9313_v31  ;;  %v9322_v29 = vpop.f32.mrf.mxu0 }
 0x402   :  { %10158 = vmatprep.subr.bf16.mxu0 %v13616_v44  ;;  %v13736_v39 = vcombine.high %v897_v3, %v901_v52  ;;  %v761_v6 = vld [vmem:[%s22020_s1 + $0x1318] sm:$0xff]  ;;  %v9427_v44 = vpop.f32.mrf.mxu1  ;;  %v13735_v45 = vcombine.low %v897_v3, %v901_v52  ;;  %v9323_v54 = vadd.f32 %v9322_v29, %v19579_v51 }
 0x403   :  { %v765_v25 = vld [vmem:[%s22020_s1 + $0x1338] sm:$0xff]  ;;  %v19862_v23 = vadd.f32 %v9427_v44, %v9315_v47  ;;  %v22794_v44 = vld [vmem:[#allocation58_spill] sm:$0xff] }
 0x404   :  { %v889_v27 = vld [vmem:[%s22020_s1 + $0x1718] sm:$0xff]  ;;  %v13600_v36 = vcombine.high %v761_v6, %v765_v25  ;;  %v9429_v22 = vpop.f32.mrf.mxu1  ;;  %10273 = vmatprep.subr.bf16.mxu1 %v13736_v39  ;;  %v13599_v31 = vcombine.low %v761_v6, %v765_v25  ;;  %v9324_v25 = vpop.f32.mrf.mxu0 }
 0x405   :  { %v893_v30 = vld [vmem:[%s22020_s1 + $0x1738] sm:$0xff]  ;;  %10159 = vmatpush2.bf16.msra.mxu0 %v13615_v7  ;;  %v19878_v52 = vadd.f32 %v9429_v22, %v9317_v26  ;;  %v9321_v7 = vadd.f32 %v9320_v40, %v19562_v2  ;;  %10274 = vmatpush2.bf16.msra.mxu1 %v13735_v45  ;;  %v9325_v45 = vadd.f32 %v9324_v25, %v19582_v12 }
 0x406   :  { %10160 = vmatprep.subr.bf16.mxu0 %v13608_v38  ;;  %v13728_v49 = vcombine.high %v889_v27, %v893_v30  ;;  %v753_v56 = vld [vmem:[%s22020_s1 + $0x12d8] sm:$0xff]  ;;  %v9433_v17 = vpop.f32.mrf.mxu1  ;;  %v22793_v38 = vld [vmem:[#allocation57_spill] sm:$0xff]  ;;  %v13727_v18 = vcombine.low %v889_v27, %v893_v30  ;;  %v22795_v27 = vld [vmem:[#allocation59_spill] sm:$0xff]  ;;  %v9326_v22 = vpop.f32.mrf.mxu0 }
 0x407   :  { %v757_v58 = vld [vmem:[%s22020_s1 + $0x12f8] sm:$0xff]  ;;  %10110 = vmatmul.mubr.bf16.gmra.mxu1 %v22793_v38  ;;  %v19882_v28 = vadd.f32 %v9433_v17, %v9321_v7  ;;  %v9327_v7 = vadd.f32 %v9326_v22, %v19598_v53 }
 0x408   :  { %v22792_v8 = vld [vmem:[#allocation56_spill] sm:$0xff]  ;;  %v13592_v39 = vcombine.high %v753_v56, %v757_v58  ;;  %v9435_v47 = vpop.f32.mrf.mxu1  ;;  %10275 = vmatprep.subr.bf16.mxu1 %v13728_v49  ;;  %10119 = vmatprep.mubr.bf16.mxu1 %v22795_v27  ;;  %v13591_v26 = vcombine.low %v753_v56, %v757_v58  ;;  %v9330_v56 = vpop.f32.mrf.mxu0 }
 0x409   :  { %9997 = vmatmul.mubr.bf16.gmra.mxu0 %v22792_v8  ;;  %v881_v3 = vld [vmem:[%s22020_s1 + $0x16d8] sm:$0xff]  ;;  %10276 = vmatpush2.bf16.msra.mxu1 %v13727_v18 }
 0x40a   :  { %v885_v55 = vld [vmem:[%s22020_s1 + $0x16f8] sm:$0xff]  ;;  %10161 = vmatpush2.bf16.msra.mxu0 %v13607_v35  ;;  %10006 = vmatprep.mubr.bf16.mxu0 %v22794_v44  ;;  %v19899_v35 = vadd.f32 %v9435_v47, %v9323_v54  ;;  %v9332_v47 = vpop.f32.mrf.mxu0 }
 0x40b   :  { %10162 = vmatprep.subr.bf16.mxu0 %v13600_v36  ;;  %v13720_v21 = vcombine.high %v881_v3, %v885_v55  ;;  %v745_v2 = vld [vmem:[%s22020_s1 + $0x1298] sm:$0xff]  ;;  %v9437_v36 = vpop.f32.mrf.mxu1  ;;  %v13719_v49 = vcombine.low %v881_v3, %v885_v55  ;;  %v9333_v27 = vadd.f32 %v9332_v47, %v19619_v9 }
 0x40c   :  { %v749_v6 = vld [vmem:[%s22020_s1 + $0x12b8] sm:$0xff]  ;;  %v19902_v8 = vadd.f32 %v9437_v36, %v9325_v45  ;;  %v22798_v36 = vld [vmem:[#allocation62_spill] sm:$0xff] }
 0x40d   :  { %v873_v51 = vld [vmem:[%s22020_s1 + $0x1698] sm:$0xff]  ;;  %v13584_v40 = vcombine.high %v745_v2, %v749_v6  ;;  %v9439_v17 = vpop.f32.mrf.mxu1  ;;  %10277 = vmatprep.subr.bf16.mxu1 %v13720_v21  ;;  %v13583_v54 = vcombine.low %v745_v2, %v749_v6  ;;  %v9334_v6 = vpop.f32.mrf.mxu0 }
 0x40e   :  { %v877_v30 = vld [vmem:[%s22020_s1 + $0x16b8] sm:$0xff]  ;;  %10163 = vmatpush2.bf16.msra.mxu0 %v13599_v31  ;;  %v19918_v55 = vadd.f32 %v9439_v17, %v9327_v7  ;;  %v9331_v31 = vadd.f32 %v9330_v56, %v19602_v0  ;;  %10278 = vmatpush2.bf16.msra.mxu1 %v13719_v49  ;;  %v9335_v49 = vadd.f32 %v9334_v6, %v19622_v62 }
 0x40f   :  { %10164 = vmatprep.subr.bf16.mxu0 %v13592_v39  ;;  %v13712_v38 = vcombine.high %v873_v51, %v877_v30  ;;  %v737_v29 = vld [vmem:[%s22020_s1 + $0x1258] sm:$0xff]  ;;  %v9443_v18 = vpop.f32.mrf.mxu1  ;;  %v22797_v39 = vld [vmem:[#allocation61_spill] sm:$0xff]  ;;  %v13711_v44 = vcombine.low %v873_v51, %v877_v30  ;;  %v22799_v51 = vld [vmem:[#allocation63_spill] sm:$0xff]  ;;  %v9336_v17 = vpop.f32.mrf.mxu0 }
 0x410   :  { %v741_v12 = vld [vmem:[%s22020_s1 + $0x1278] sm:$0xff]  ;;  %10120 = vmatmul.mubr.bf16.gmra.mxu1 %v22797_v39  ;;  %v19922_v25 = vadd.f32 %v9443_v18, %v9331_v31  ;;  %v9337_v31 = vadd.f32 %v9336_v17, %v19638_v50 }
 0x411   :  { %v22796_v58 = vld [vmem:[#allocation60_spill] sm:$0xff]  ;;  %v13576_v21 = vcombine.high %v737_v29, %v741_v12  ;;  %v9445_v45 = vpop.f32.mrf.mxu1  ;;  %10279 = vmatprep.subr.bf16.mxu1 %v13712_v38  ;;  %10129 = vmatprep.mubr.bf16.mxu1 %v22799_v51  ;;  %v13575_v7 = vcombine.low %v737_v29, %v741_v12  ;;  %v9340_v29 = vpop.f32.mrf.mxu0 }
 0x412   :  { %10007 = vmatmul.mubr.bf16.gmra.mxu0 %v22796_v58  ;;  %v865_v3 = vld [vmem:[%s22020_s1 + $0x1658] sm:$0xff]  ;;  %10280 = vmatpush2.bf16.msra.mxu1 %v13711_v44 }
 0x413   :  { %v869_v53 = vld [vmem:[%s22020_s1 + $0x1678] sm:$0xff]  ;;  %10165 = vmatpush2.bf16.msra.mxu0 %v13591_v26  ;;  %10016 = vmatprep.mubr.bf16.mxu0 %v22798_v36  ;;  %v19939_v26 = vadd.f32 %v9445_v45, %v9333_v27  ;;  %v9342_v45 = vpop.f32.mrf.mxu0 }
 0x414   :  { %10166 = vmatprep.subr.bf16.mxu0 %v13584_v40  ;;  %v13704_v22 = vcombine.high %v865_v3, %v869_v53  ;;  %v729_v0 = vld [vmem:[%s22020_s1 + $0x1218] sm:$0xff]  ;;  %v9447_v40 = vpop.f32.mrf.mxu1  ;;  %v13703_v38 = vcombine.low %v865_v3, %v869_v53  ;;  %v9343_v51 = vadd.f32 %v9342_v45, %v19659_v10 }
 0x415   :  { %v733_v2 = vld [vmem:[%s22020_s1 + $0x1238] sm:$0xff]  ;;  %v19942_v58 = vadd.f32 %v9447_v40, %v9335_v49  ;;  %v22802_v40 = vld [vmem:[#allocation66_spill] sm:$0xff] }
 0x416   :  { %v857_v9 = vld [vmem:[%s22020_s1 + $0x1618] sm:$0xff]  ;;  %v13568_v56 = vcombine.high %v729_v0, %v733_v2  ;;  %v9449_v18 = vpop.f32.mrf.mxu1  ;;  %10281 = vmatprep.subr.bf16.mxu1 %v13704_v22  ;;  %v13567_v27 = vcombine.low %v729_v0, %v733_v2  ;;  %v9344_v2 = vpop.f32.mrf.mxu0 }
 0x417   :  { %v861_v30 = vld [vmem:[%s22020_s1 + $0x1638] sm:$0xff]  ;;  %10167 = vmatpush2.bf16.msra.mxu0 %v13583_v54  ;;  %v19958_v53 = vadd.f32 %v9449_v18, %v9337_v31  ;;  %v9341_v54 = vadd.f32 %v9340_v29, %v19642_v32  ;;  %10282 = vmatpush2.bf16.msra.mxu1 %v13703_v38  ;;  %v9345_v38 = vadd.f32 %v9344_v2, %v19662_v15 }
 0x418   :  { %10168 = vmatprep.subr.bf16.mxu0 %v13576_v21  ;;  %v13696_v39 = vcombine.high %v857_v9, %v861_v30  ;;  %v977_v47 = vld [vmem:[%s22020_s1 + $0x19d8] sm:$0xff]  ;;  %v9453_v44 = vpop.f32.mrf.mxu1  ;;  %v22801_v21 = vld [vmem:[#allocation65_spill] sm:$0xff]  ;;  %v13695_v36 = vcombine.low %v857_v9, %v861_v30  ;;  %v22803_v9 = vld [vmem:[#allocation67_spill] sm:$0xff]  ;;  %v9346_v18 = vpop.f32.mrf.mxu0 }
 0x419   :  { %v981_v62 = vld [vmem:[%s22020_s1 + $0x19f8] sm:$0xff]  ;;  %10130 = vmatmul.mubr.bf16.gmra.mxu1 %v22801_v21  ;;  %v19962_v6 = vadd.f32 %v9453_v44, %v9341_v54  ;;  %v9347_v54 = vadd.f32 %v9346_v18, %v19678_v16 }
 0x41a   :  { %v22800_v12 = vld [vmem:[#allocation64_spill] sm:$0xff]  ;;  %v13816_v22 = vcombine.high %v977_v47, %v981_v62  ;;  %v9455_v49 = vpop.f32.mrf.mxu1  ;;  %10283 = vmatprep.subr.bf16.mxu1 %v13696_v39  ;;  %10285 = vmatprep.mubr.bf16.mxu1 %v22803_v9  ;;  %v13815_v31 = vcombine.low %v977_v47, %v981_v62  ;;  %v9496_v47 = vpop.f32.mrf.mxu0 }
 0x41b   :  { %10017 = vmatmul.mubr.bf16.gmra.mxu0 %v22800_v12  ;;  %v1105_v3 = vld [vmem:[%s22020_s1 + $0x1dd8] sm:$0xff]  ;;  %10284 = vmatpush2.bf16.msra.mxu1 %v13695_v36 }
 0x41c   :  { %v1109_v50 = vld [vmem:[%s22020_s1 + $0x1df8] sm:$0xff]  ;;  %10169 = vmatpush2.bf16.msra.mxu0 %v13575_v7  ;;  %10172 = vmatprep.mubr.bf16.mxu0 %v22802_v40  ;;  %v19979_v7 = vadd.f32 %v9455_v49, %v9343_v51  ;;  %v9498_v51 = vpop.f32.mrf.mxu0 }
 0x41d   :  { %10170 = vmatprep.subr.bf16.mxu0 %v13568_v56  ;;  %v13944_v17 = vcombine.high %v1105_v3, %v1109_v50  ;;  %v969_v32 = vld [vmem:[%s22020_s1 + $0x1998] sm:$0xff]  ;;  %v9457_v56 = vpop.f32.mrf.mxu1  ;;  %v13943_v39 = vcombine.low %v1105_v3, %v1109_v50  ;;  %v9499_v2 = vadd.f32 %v9498_v51, %v19699_v61 }
 0x41e   :  { %v973_v0 = vld [vmem:[%s22020_s1 + $0x19b8] sm:$0xff]  ;;  %v19982_v12 = vadd.f32 %v9457_v56, %v9345_v38  ;;  %v22805_v38 = vld [vmem:[#allocation70_spill] sm:$0xff] }
 0x41f   :  { %v1097_v10 = vld [vmem:[%s22020_s1 + $0x1d98] sm:$0xff]  ;;  %v13808_v29 = vcombine.high %v969_v32, %v973_v0  ;;  %v9459_v44 = vpop.f32.mrf.mxu1  ;;  %10479 = vmatprep.subr.bf16.mxu1 %v13944_v17 }
 0x420   :  { %v1101_v30 = vld [vmem:[%s22020_s1 + $0x1db8] sm:$0xff]  ;;  %10171 = vmatpush2.bf16.msra.mxu0 %v13567_v27  ;;  %v19998_v50 = vadd.f32 %v9459_v44, %v9347_v54  ;;  %v9497_v27 = vadd.f32 %v9496_v47, %v19682_v13 }
 0x421   :  { %10366 = vmatprep.subr.bf16.mxu0 %v13816_v22  ;;  %v13936_v21 = vcombine.high %v1097_v10, %v1101_v30  ;;  %v961_v45 = vld [vmem:[%s22020_s1 + $0x1958] sm:$0xff]  ;;  %v9609_v36 = vpop.f32.mrf.mxu1  ;;  %10286 = vmatmul.mubr.bf16.vlgmr.msra.gmra.mxu1 %v22666_v11  ;;  %v13807_v22 = vcombine.low %v969_v32, %v973_v0  ;;  %v13935_v49 = vcombine.low %v1097_v10, %v1101_v30  ;;  %v9500_v32 = vpop.f32.mrf.mxu0  ;;  %v22806_v0 = vld [vmem:[#allocation71_spill] sm:$0xff] }
 0x422   :  { %v965_v15 = vld [vmem:[%s22020_s1 + $0x1978] sm:$0xff]  ;;  %10480 = vmatpush1.bf16.msra.mxu1 %v13943_v39  ;;  %v9610_v17 = vadd.f32 %v9609_v36, %v9497_v27  ;;  %10295 = vmatprep.mubr.bf16.mxu1 %v22806_v0 }
 0x423   :  { %v22804_v62 = vld [vmem:[#allocation68_spill] sm:$0xff]  ;;  %v13800_v40 = vcombine.high %v961_v45, %v965_v15  ;;  %v9611_v9 = vpop.f32.mrf.mxu1  ;;  %10481 = vmatprep.subr.bf16.mxu1 %v13936_v21  ;;  %v13799_v39 = vcombine.low %v961_v45, %v965_v15 }
 0x424   :  { %10173 = vmatmul.mubr.bf16.vlgmr.msra.gmra.mxu0 %v22804_v62  ;;  %v1089_v3 = vld [vmem:[%s22020_s1 + $0x1d58] sm:$0xff]  ;;  %v9612_v30 = vadd.f32 %v9611_v9, %v9499_v2 }
 0x425   :  { %v1093_v16 = vld [vmem:[%s22020_s1 + $0x1d78] sm:$0xff]  ;;  %10367 = vmatpush1.bf16.msra.mxu0 %v13815_v31  ;;  %10182 = vmatprep.mubr.bf16.mxu0 %v22805_v38  ;;  %v9501_v31 = vadd.f32 %v9500_v32, %v19702_v1  ;;  %v9613_v18 = vpop.f32.mrf.mxu1 }
 0x426   :  { %10368 = vmatprep.subr.bf16.mxu0 %v13808_v29  ;;  %v13928_v56 = vcombine.high %v1089_v3, %v1093_v16  ;;  %v953_v13 = vld [vmem:[%s22020_s1 + $0x1918] sm:$0xff]  ;;  %10482 = vmatpush1.bf16.msra.mxu1 %v13935_v49  ;;  %v9502_v29 = vpop.f32.mrf.mxu0  ;;  %v13927_v54 = vcombine.low %v1089_v3, %v1093_v16 }
 0x427   :  { %v957_v11 = vld [vmem:[%s22020_s1 + $0x1938] sm:$0xff]  ;;  %v9614_v47 = vadd.f32 %v9613_v18, %v9501_v31  ;;  %v9503_v62 = vadd.f32 %v9502_v29, %v19718_v19  ;;  %v9615_v27 = vpop.f32.mrf.mxu1 }
 0x428   :  { %v1081_v61 = vld [vmem:[%s22020_s1 + $0x1d18] sm:$0xff]  ;;  %v13792_v44 = vcombine.high %v953_v13, %v957_v11  ;;  %10483 = vmatprep.subr.bf16.mxu1 %v13928_v56  ;;  %v9506_v3 = vpop.f32.mrf.mxu0 }
 0x429   :  { %v1085_v10 = vld [vmem:[%s22020_s1 + $0x1d38] sm:$0xff]  ;;  %10369 = vmatpush1.bf16.msra.mxu0 %v13807_v22  ;;  %v13791_v22 = vcombine.low %v953_v13, %v957_v11  ;;  %v20034_v19 = vpack.c.bf16 %v9614_v47, %v9610_v17  ;;  %v9616_v51 = vadd.f32 %v9615_v27, %v9503_v62  ;;  %v9507_v49 = vadd.f32 %v9506_v3, %v19722_v37 }
 0x42a   :  { %10370 = vmatprep.subr.bf16.mxu0 %v13800_v40  ;;  %v20021_v21 = vld [vmem:[%s22020_s1 + $0x18d8] sm:$0xff]  ;;  %v13920_v36 = vcombine.high %v1081_v61, %v1085_v10  ;;  %v9619_v40 = vpop.f32.mrf.mxu1  ;;  %10296 = vmatmul.mubr.bf16.gmra.mxu1 %v22532_v20  ;;  %v9508_v2 = vpop.f32.mrf.mxu0  ;;  %v13919_v9 = vcombine.low %v1081_v61, %v1085_v10 }
 0x42b   :  { %v949_v1 = vld [vmem:[%s22020_s1 + $0x18f8] sm:$0xff]  ;;  %22808 = vst [vmem:[#allocation5_spill] sm:$0xff] %v20034_v19  ;;  %10484 = vmatpush1.bf16.msra.mxu1 %v13927_v54  ;;  %v20039_v32 = vpack.c.bf16 %v9616_v51, %v9612_v30  ;;  %v9620_v0 = vadd.f32 %v9619_v40, %v9507_v49  ;;  %v9509_v17 = vadd.f32 %v9508_v2, %v19739_v63 }
 0x42c   :  { %v1073_v45 = vld [vmem:[%s22020_s1 + $0x1cd8] sm:$0xff]  ;;  %v13784_v38 = vcombine.high %v20021_v21, %v949_v1  ;;  %v9621_v13 = vpop.f32.mrf.mxu1  ;;  %10485 = vmatprep.subr.bf16.mxu1 %v13920_v36  ;;  %v9510_v11 = vpop.f32.mrf.mxu0  ;;  %10305 = vmatprep.mubr.bf16.mxu1 %v22535_v24  ;;  %v13783_v31 = vcombine.low %v20021_v21, %v949_v1 }
 0x42d   :  { %v1077_v15 = vld [vmem:[%s22020_s1 + $0x1cf8] sm:$0xff]  ;;  %10371 = vmatpush1.bf16.msra.mxu0 %v13799_v39  ;;  %22809 = vst [vmem:[#allocation6_spill] sm:$0xff] %v20039_v32  ;;  %v9511_v10 = vadd.f32 %v9510_v11, %v19742_v57 }
 0x42e   :  { %v22807_v16 = vld [vmem:[#allocation72_spill] sm:$0xff]  ;;  %10372 = vmatprep.subr.bf16.mxu0 %v13792_v44  ;;  %v13912_v56 = vcombine.high %v1073_v45, %v1077_v15  ;;  %v9623_v30 = vpop.f32.mrf.mxu1  ;;  %v9512_v18 = vpop.f32.mrf.mxu0  ;;  %v13911_v39 = vcombine.low %v1073_v45, %v1077_v15 }
 0x42f   :  { %10183 = vmatmul.mubr.bf16.gmra.mxu0 %v22807_v16  ;;  %v937_v20 = vld [vmem:[%s22020_s1 + $0x1898] sm:$0xff]  ;;  %10486 = vmatpush1.bf16.msra.mxu1 %v13919_v9  ;;  %v9624_v54 = vadd.f32 %v9623_v30, %v9511_v10  ;;  %v9513_v44 = vadd.f32 %v9512_v18, %v19758_v4 }
 0x430   :  { %10192 = vmatprep.mubr.bf16.mxu0 %v22534_v41  ;;  %v941_v37 = vld [vmem:[%s22020_s1 + $0x18b8] sm:$0xff]  ;;  %v9622_v41 = vadd.f32 %v9621_v13, %v9509_v17  ;;  %v9625_v47 = vpop.f32.mrf.mxu1  ;;  %10487 = vmatprep.subr.bf16.mxu1 %v13912_v56  ;;  %v9516_v36 = vpop.f32.mrf.mxu0  ;;  %v22814_v17 = vld [vmem:[#allocation78_spill] sm:$0xff] }
 0x431   :  { %v1065_v61 = vld [vmem:[%s22020_s1 + $0x1c98] sm:$0xff]  ;;  %10373 = vmatpush1.bf16.msra.mxu0 %v13791_v22  ;;  %v13776_v24 = vcombine.high %v937_v20, %v941_v37  ;;  %v13775_v45 = vcombine.low %v937_v20, %v941_v37  ;;  %v20074_v4 = vpack.c.bf16 %v9624_v54, %v9620_v0  ;;  %v9626_v15 = vadd.f32 %v9625_v47, %v9513_v44  ;;  %v22812_v22 = vld [vmem:[#allocation77_spill] sm:$0xff]  ;;  %v22815_v37 = vld [vmem:[#allocation79_spill] sm:$0xff] }
 0x432   :  { %v1069_v63 = vld [vmem:[%s22020_s1 + $0x1cb8] sm:$0xff]  ;;  %10374 = vmatprep.subr.bf16.mxu0 %v13784_v38  ;;  %v9517_v3 = vadd.f32 %v9516_v36, %v19762_v5  ;;  %v9629_v16 = vpop.f32.mrf.mxu1  ;;  %10306 = vmatmul.mubr.bf16.gmra.mxu1 %v22812_v22  ;;  %v9518_v51 = vpop.f32.mrf.mxu0 }
 0x433   :  { %v20061_v29 = vld [vmem:[%s22020_s1 + $0x1858] sm:$0xff]  ;;  %v13904_v57 = vcombine.high %v1065_v61, %v1069_v63  ;;  %22811 = vst [vmem:[#allocation7_spill] sm:$0xff] %v20074_v4  ;;  %10488 = vmatpush1.bf16.msra.mxu1 %v13911_v39  ;;  %v13903_v49 = vcombine.low %v1065_v61, %v1069_v63  ;;  %v20079_v9 = vpack.c.bf16 %v9626_v15, %v9622_v41  ;;  %v22818_v15 = vld [vmem:[#allocation81_spill] sm:$0xff] }
 0x434   :  { %v933_v21 = vld [vmem:[%s22020_s1 + $0x1878] sm:$0xff]  ;;  %v9630_v38 = vadd.f32 %v9629_v16, %v9517_v3  ;;  %v9519_v56 = vadd.f32 %v9518_v51, %v19779_v59  ;;  %v9631_v0 = vpop.f32.mrf.mxu1  ;;  %v9520_v20 = vpop.f32.mrf.mxu0  ;;  %10315 = vmatprep.mubr.bf16.mxu1 %v22815_v37 }
 0x435   :  { %v1057_v62 = vld [vmem:[%s22020_s1 + $0x1c58] sm:$0xff]  ;;  %10375 = vmatpush1.bf16.msra.mxu0 %v13783_v31  ;;  %v13768_v40 = vcombine.high %v20061_v29, %v933_v21  ;;  %22813 = vst [vmem:[#allocation8_spill] sm:$0xff] %v20079_v9  ;;  %10489 = vmatprep.subr.bf16.mxu1 %v13904_v57  ;;  %v9521_v63 = vadd.f32 %v9520_v20, %v19782_v48 }
 0x436   :  { %v1061_v27 = vld [vmem:[%s22020_s1 + $0x1c78] sm:$0xff]  ;;  %10376 = vmatprep.subr.bf16.mxu0 %v13776_v24  ;;  %v9632_v61 = vadd.f32 %v9631_v0, %v9519_v56  ;;  %v9633_v41 = vpop.f32.mrf.mxu1  ;;  %v13767_v10 = vcombine.low %v20061_v29, %v933_v21  ;;  %v9522_v30 = vpop.f32.mrf.mxu0  ;;  %v22820_v56 = vld [vmem:[#allocation82_spill] sm:$0xff] }
 0x437   :  { %v22810_v1 = vld [vmem:[#allocation76_spill] sm:$0xff]  ;;  %v13896_v2 = vcombine.high %v1057_v62, %v1061_v27  ;;  %10490 = vmatpush1.bf16.msra.mxu1 %v13903_v49  ;;  %v13895_v31 = vcombine.low %v1057_v62, %v1061_v27  ;;  %v9634_v24 = vadd.f32 %v9633_v41, %v9521_v63  ;;  %v9523_v54 = vadd.f32 %v9522_v30, %v19798_v43 }
 0x438   :  { %10193 = vmatmul.mubr.bf16.gmra.mxu0 %v22810_v1  ;;  %v921_v5 = vld [vmem:[%s22020_s1 + $0x1818] sm:$0xff]  ;;  %v9635_v44 = vpop.f32.mrf.mxu1  ;;  %v9526_v21 = vpop.f32.mrf.mxu0 }
 0x439   :  { %10202 = vmatprep.mubr.bf16.mxu0 %v22814_v17  ;;  %v925_v13 = vld [vmem:[%s22020_s1 + $0x1838] sm:$0xff]  ;;  %10377 = vmatpush1.bf16.msra.mxu0 %v13775_v45  ;;  %v20114_v43 = vpack.c.bf16 %v9634_v24, %v9630_v38  ;;  %v9636_v36 = vadd.f32 %v9635_v44, %v9523_v54  ;;  %v9527_v1 = vadd.f32 %v9526_v21, %v19802_v14 }
 0x43a   :  { %v1049_v11 = vld [vmem:[%s22020_s1 + $0x1c18] sm:$0xff]  ;;  %10378 = vmatprep.subr.bf16.mxu0 %v13768_v40  ;;  %v13760_v18 = vcombine.high %v921_v5, %v925_v13  ;;  %10491 = vmatprep.subr.bf16.mxu1 %v13896_v2  ;;  %v13759_v27 = vcombine.low %v921_v5, %v925_v13  ;;  %v9639_v45 = vpop.f32.mrf.mxu1  ;;  %v9528_v3 = vpop.f32.mrf.mxu0  ;;  %v22821_v5 = vld [vmem:[#allocation83_spill] sm:$0xff] }
 0x43b   :  { %v1053_v59 = vld [vmem:[%s22020_s1 + $0x1c38] sm:$0xff]  ;;  %22817 = vst [vmem:[#allocation9_spill] sm:$0xff] %v20114_v43  ;;  %10316 = vmatmul.mubr.bf16.gmra.mxu1 %v22818_v15  ;;  %v20119_v49 = vpack.c.bf16 %v9636_v36, %v9632_v61  ;;  %v9640_v40 = vadd.f32 %v9639_v45, %v9527_v1  ;;  %v9529_v2 = vadd.f32 %v9528_v3, %v19819_v46 }
 0x43c   :  { %v20101_v39 = vld [vmem:[%s22020_s1 + $0x1bd8] sm:$0xff]  ;;  %v13888_v48 = vcombine.high %v1049_v11, %v1053_v59  ;;  %10492 = vmatpush1.bf16.msra.mxu1 %v13895_v31  ;;  %v13887_v16 = vcombine.low %v1049_v11, %v1053_v59  ;;  %v9641_v38 = vpop.f32.mrf.mxu1  ;;  %v9530_v17 = vpop.f32.mrf.mxu0  ;;  %10325 = vmatprep.mubr.bf16.mxu1 %v22821_v5 }
 0x43d   :  { %v1045_v29 = vld [vmem:[%s22020_s1 + $0x1bf8] sm:$0xff]  ;;  %10379 = vmatpush1.bf16.msra.mxu0 %v13767_v10  ;;  %22819 = vst [vmem:[#allocation10_spill] sm:$0xff] %v20119_v49  ;;  %v9642_v20 = vadd.f32 %v9641_v38, %v9529_v2  ;;  %v9531_v37 = vadd.f32 %v9530_v17, %v19822_v42  ;;  %v22827_v38 = vld [vmem:[#allocation87_spill] sm:$0xff] }
 0x43e   :  { %v1169_v47 = vld [vmem:[%s22020_s1 + $0x1fd8] sm:$0xff]  ;;  %10380 = vmatprep.subr.bf16.mxu0 %v13760_v18  ;;  %v13880_v22 = vcombine.high %v20101_v39, %v1045_v29  ;;  %10493 = vmatprep.subr.bf16.mxu1 %v13888_v48  ;;  %v9643_v11 = vpop.f32.mrf.mxu1  ;;  %v13879_v59 = vcombine.low %v20101_v39, %v1045_v29  ;;  %v9532_v61 = vpop.f32.mrf.mxu0 }
 0x43f   :  { %v1173_v57 = vld [vmem:[%s22020_s1 + $0x1ff8] sm:$0xff]  ;;  %v9644_v30 = vadd.f32 %v9643_v11, %v9531_v37  ;;  %v9533_v31 = vadd.f32 %v9532_v61, %v19838_v33 }
 0x440   :  { %v22816_v62 = vld [vmem:[#allocation80_spill] sm:$0xff]  ;;  %v14008_v51 = vcombine.high %v1169_v47, %v1173_v57  ;;  %10494 = vmatpush1.bf16.msra.mxu1 %v13887_v16  ;;  %v14007_v63 = vcombine.low %v1169_v47, %v1173_v57  ;;  %v9645_v18 = vpop.f32.mrf.mxu1  ;;  %v9536_v44 = vpop.f32.mrf.mxu0 }
 0x441   :  { %10203 = vmatmul.mubr.bf16.gmra.mxu0 %v22816_v62  ;;  %v1033_v14 = vld [vmem:[%s22020_s1 + $0x1b98] sm:$0xff]  ;;  %v20154_v33 = vpack.c.bf16 %v9644_v30, %v9640_v40  ;;  %v9646_v47 = vadd.f32 %v9645_v18, %v9533_v31  ;;  %v9537_v57 = vadd.f32 %v9536_v44, %v19842_v34  ;;  %v22824_v62 = vld [vmem:[#allocation85_spill] sm:$0xff] }
 0x442   :  { %10212 = vmatprep.mubr.bf16.mxu0 %v22820_v56  ;;  %v1037_v0 = vld [vmem:[%s22020_s1 + $0x1bb8] sm:$0xff]  ;;  %10381 = vmatpush1.bf16.msra.mxu0 %v13759_v27  ;;  %v9649_v21 = vpop.f32.mrf.mxu1  ;;  %v9538_v27 = vpop.f32.mrf.mxu0 }
 0x443   :  { %v1161_v13 = vld [vmem:[%s22020_s1 + $0x1f98] sm:$0xff]  ;;  %10382 = vmatprep.subr.bf16.mxu0 %v13880_v22  ;;  %v13872_v41 = vcombine.high %v1033_v14, %v1037_v0  ;;  %10495 = vmatprep.subr.bf16.mxu1 %v14008_v51  ;;  %v13871_v29 = vcombine.low %v1033_v14, %v1037_v0  ;;  %22823 = vst [vmem:[#allocation11_spill] sm:$0xff] %v20154_v33  ;;  %v22826_v51 = vld [vmem:[#allocation86_spill] sm:$0xff] }
 0x444   :  { %v1165_v46 = vld [vmem:[%s22020_s1 + $0x1fb8] sm:$0xff]  ;;  %10326 = vmatmul.mubr.bf16.gmra.mxu1 %v22824_v62  ;;  %v20159_v15 = vpack.c.bf16 %v9646_v47, %v9642_v20  ;;  %v9650_v3 = vadd.f32 %v9649_v21, %v9537_v57  ;;  %v9539_v16 = vadd.f32 %v9538_v27, %v19859_v60  ;;  %v9651_v22 = vpop.f32.mrf.mxu1  ;;  %v9540_v2 = vpop.f32.mrf.mxu0 }
 0x445   :  { %v20141_v10 = vld [vmem:[%s22020_s1 + $0x1b58] sm:$0xff]  ;;  %v14000_v42 = vcombine.high %v1161_v13, %v1165_v46  ;;  %10496 = vmatpush2.bf16.msra.mxu1 %v14007_v63  ;;  %v13999_v36 = vcombine.low %v1161_v13, %v1165_v46  ;;  %10335 = vmatprep.mubr.bf16.mxu1 %v22827_v38  ;;  %v9541_v0 = vadd.f32 %v9540_v2, %v19862_v23 }
 0x446   :  { %v1029_v39 = vld [vmem:[%s22020_s1 + $0x1b78] sm:$0xff]  ;;  %10383 = vmatpush2.bf16.msra.mxu0 %v13879_v59  ;;  %22825 = vst [vmem:[#allocation12_spill] sm:$0xff] %v20159_v15  ;;  %v9652_v14 = vadd.f32 %v9651_v22, %v9539_v16  ;;  %v9653_v17 = vpop.f32.mrf.mxu1  ;;  %v9542_v13 = vpop.f32.mrf.mxu0 }
 0x447   :  { %v1153_v24 = vld [vmem:[%s22020_s1 + $0x1f58] sm:$0xff]  ;;  %10384 = vmatprep.subr.bf16.mxu0 %v13872_v41  ;;  %v13864_v1 = vcombine.high %v20141_v10, %v1029_v39  ;;  %10497 = vmatprep.subr.bf16.mxu1 %v14000_v42  ;;  %v13863_v5 = vcombine.low %v20141_v10, %v1029_v39  ;;  %v9654_v11 = vadd.f32 %v9653_v17, %v9541_v0 }
 0x448   :  { %v1157_v54 = vld [vmem:[%s22020_s1 + $0x1f78] sm:$0xff]  ;;  %v9543_v59 = vadd.f32 %v9542_v13, %v19878_v52  ;;  %v9655_v61 = vpop.f32.mrf.mxu1  ;;  %v9546_v30 = vpop.f32.mrf.mxu0 }
 0x449   :  { %v22822_v48 = vld [vmem:[#allocation84_spill] sm:$0xff]  ;;  %v13992_v45 = vcombine.high %v1153_v24, %v1157_v54  ;;  %10498 = vmatpush2.bf16.msra.mxu1 %v13999_v36  ;;  %v13991_v46 = vcombine.low %v1153_v24, %v1157_v54  ;;  %v20194_v52 = vpack.c.bf16 %v9654_v11, %v9650_v3  ;;  %v9547_v39 = vadd.f32 %v9546_v30, %v19882_v28  ;;  %v22830_v54 = vld [vmem:[#allocation89_spill] sm:$0xff]  ;;  %v22832_v36 = vld [vmem:[#allocation90_spill] sm:$0xff] }
 0x44a   :  { %10213 = vmatmul.mubr.bf16.gmra.mxu0 %v22822_v48  ;;  %v1017_v34 = vld [vmem:[%s22020_s1 + $0x1b18] sm:$0xff]  ;;  %v9656_v42 = vadd.f32 %v9655_v61, %v9543_v59  ;;  %v9659_v24 = vpop.f32.mrf.mxu1  ;;  %v9548_v44 = vpop.f32.mrf.mxu0  ;;  %v22833_v3 = vld [vmem:[#allocation91_spill] sm:$0xff] }
 0x44b   :  { %10222 = vmatprep.mubr.bf16.mxu0 %v22826_v51  ;;  %v1021_v40 = vld [vmem:[%s22020_s1 + $0x1b38] sm:$0xff]  ;;  %10385 = vmatpush2.bf16.msra.mxu0 %v13871_v29  ;;  %22829 = vst [vmem:[#allocation13_spill] sm:$0xff] %v20194_v52  ;;  %v9660_v21 = vadd.f32 %v9659_v24, %v9547_v39  ;;  %v9549_v62 = vadd.f32 %v9548_v44, %v19899_v35 }
 0x44c   :  { %v1145_v56 = vld [vmem:[%s22020_s1 + $0x1f18] sm:$0xff]  ;;  %10386 = vmatprep.subr.bf16.mxu0 %v13864_v1  ;;  %v13856_v20 = vcombine.high %v1017_v34, %v1021_v40  ;;  %10499 = vmatprep.subr.bf16.mxu1 %v13992_v45  ;;  %v13855_v18 = vcombine.low %v1017_v34, %v1021_v40  ;;  %v20199_v57 = vpack.c.bf16 %v9656_v42, %v9652_v14  ;;  %v9661_v27 = vpop.f32.mrf.mxu1  ;;  %v9550_v45 = vpop.f32.mrf.mxu0 }
 0x44d   :  { %v1149_v60 = vld [vmem:[%s22020_s1 + $0x1f38] sm:$0xff]  ;;  %10336 = vmatmul.mubr.bf16.gmra.mxu1 %v22830_v54  ;;  %v9662_v22 = vadd.f32 %v9661_v27, %v9549_v62  ;;  %v9551_v51 = vadd.f32 %v9550_v45, %v19902_v8  ;;  %v22838_v54 = vld [vmem:[#allocation94_spill] sm:$0xff] }
 0x44e   :  { %v20181_v37 = vld [vmem:[%s22020_s1 + $0x1ad8] sm:$0xff]  ;;  %v13984_v23 = vcombine.high %v1145_v56, %v1149_v60  ;;  %10500 = vmatpush2.bf16.msra.mxu1 %v13991_v46  ;;  %v13983_v48 = vcombine.low %v1145_v56, %v1149_v60  ;;  %22831 = vst [vmem:[#allocation14_spill] sm:$0xff] %v20199_v57  ;;  %10345 = vmatprep.mubr.bf16.mxu1 %v22833_v3  ;;  %v9663_v34 = vpop.f32.mrf.mxu1  ;;  %v9552_v2 = vpop.f32.mrf.mxu0 }
 0x44f   :  { %v1013_v63 = vld [vmem:[%s22020_s1 + $0x1af8] sm:$0xff]  ;;  %10387 = vmatpush2.bf16.msra.mxu0 %v13863_v5  ;;  %v9664_v14 = vadd.f32 %v9663_v34, %v9551_v51  ;;  %v9553_v0 = vadd.f32 %v9552_v2, %v19918_v55  ;;  %v22840_v34 = vld [vmem:[#allocation97_spill] sm:$0xff] }
 0x450   :  { %v1137_v41 = vld [vmem:[%s22020_s1 + $0x1ed8] sm:$0xff]  ;;  %10388 = vmatprep.subr.bf16.mxu0 %v13856_v20  ;;  %v13848_v29 = vcombine.high %v20181_v37, %v1013_v63  ;;  %10501 = vmatprep.subr.bf16.mxu1 %v13984_v23  ;;  %v13847_v40 = vcombine.low %v20181_v37, %v1013_v63  ;;  %v9665_v17 = vpop.f32.mrf.mxu1  ;;  %v9556_v20 = vpop.f32.mrf.mxu0  ;;  %v22836_v63 = vld [vmem:[#allocation93_spill] sm:$0xff] }
 0x451   :  { %v1141_v10 = vld [vmem:[%s22020_s1 + $0x1ef8] sm:$0xff]  ;;  %v20232_v55 = vpack.c.bf16 %v9664_v14, %v9660_v21  ;;  %v9666_v59 = vadd.f32 %v9665_v17, %v9553_v0  ;;  %v9557_v61 = vadd.f32 %v9556_v20, %v19922_v25  ;;  %v22845_v20 = vld [vmem:[#allocation99_spill] sm:$0xff] }
 0x452   :  { %v22828_v31 = vld [vmem:[#allocation88_spill] sm:$0xff]  ;;  %v13976_v47 = vcombine.high %v1137_v41, %v1141_v10  ;;  %10502 = vmatpush2.bf16.msra.mxu1 %v13983_v48  ;;  %v13975_v38 = vcombine.low %v1137_v41, %v1141_v10  ;;  %v9669_v23 = vpop.f32.mrf.mxu1  ;;  %v9558_v41 = vpop.f32.mrf.mxu0 }
 0x453   :  { %10223 = vmatmul.mubr.bf16.gmra.mxu0 %v22828_v31  ;;  %v1001_v28 = vld [vmem:[%s22020_s1 + $0x1a98] sm:$0xff]  ;;  %22835 = vst [vmem:[#allocation15_spill] sm:$0xff] %v20232_v55  ;;  %v9670_v42 = vadd.f32 %v9669_v23, %v9557_v61  ;;  %v9559_v39 = vadd.f32 %v9558_v41, %v19939_v26 }
 0x454   :  { %10232 = vmatprep.mubr.bf16.mxu0 %v22832_v36  ;;  %v1005_v1 = vld [vmem:[%s22020_s1 + $0x1ab8] sm:$0xff]  ;;  %10389 = vmatpush2.bf16.msra.mxu0 %v13855_v18  ;;  %v20236_v18 = vpack.c.bf16 %v9666_v59, %v9662_v22  ;;  %v9671_v24 = vpop.f32.mrf.mxu1  ;;  %v9560_v48 = vpop.f32.mrf.mxu0 }
 0x455   :  { %v1129_v16 = vld [vmem:[%s22020_s1 + $0x1e98] sm:$0xff]  ;;  %10390 = vmatprep.subr.bf16.mxu0 %v13848_v29  ;;  %v13840_v56 = vcombine.high %v1001_v28, %v1005_v1  ;;  %10503 = vmatprep.subr.bf16.mxu1 %v13976_v47  ;;  %v13839_v11 = vcombine.low %v1001_v28, %v1005_v1  ;;  %v22839_v29 = vld [vmem:[#allocation95_spill] sm:$0xff]  ;;  %v9672_v21 = vadd.f32 %v9671_v24, %v9559_v39 }
 0x456   :  { %v1133_v35 = vld [vmem:[%s22020_s1 + $0x1eb8] sm:$0xff]  ;;  %10346 = vmatmul.mubr.bf16.gmra.mxu1 %v22836_v63  ;;  %22837 = vst [vmem:[#allocation16_spill] sm:$0xff] %v20236_v18  ;;  %v9561_v62 = vadd.f32 %v9560_v48, %v19942_v58  ;;  %v9673_v27 = vpop.f32.mrf.mxu1  ;;  %v9562_v28 = vpop.f32.mrf.mxu0 }
 0x457   :  { %v993_v60 = vld [vmem:[%s22020_s1 + $0x1a58] sm:$0xff]  ;;  %v13968_v5 = vcombine.high %v1129_v16, %v1133_v35  ;;  %10504 = vmatpush2.bf16.msra.mxu1 %v13975_v38  ;;  %v13967_v10 = vcombine.low %v1129_v16, %v1133_v35  ;;  %10355 = vmatprep.mubr.bf16.mxu1 %v22839_v29  ;;  %v9563_v16 = vadd.f32 %v9562_v28, %v19958_v53  ;;  %v22847_v29 = vld [vmem:[#allocation101_spill] sm:$0xff] }
 0x458   :  { %v997_v8 = vld [vmem:[%s22020_s1 + $0x1a78] sm:$0xff]  ;;  %10391 = vmatpush2.bf16.msra.mxu0 %v13847_v40  ;;  %v9674_v3 = vadd.f32 %v9673_v27, %v9561_v62  ;;  %v9675_v35 = vpop.f32.mrf.mxu1  ;;  %v9566_v51 = vpop.f32.mrf.mxu0  ;;  %v22849_v27 = vld [vmem:[#allocation102_spill] sm:$0xff] }
 0x459   :  { %v1121_v13 = vld [vmem:[%s22020_s1 + $0x1e58] sm:$0xff]  ;;  %10392 = vmatprep.subr.bf16.mxu0 %v13840_v56  ;;  %v13832_v30 = vcombine.high %v993_v60, %v997_v8  ;;  %10505 = vmatprep.subr.bf16.mxu1 %v13968_v5  ;;  %v13831_v36 = vcombine.low %v993_v60, %v997_v8  ;;  %v9676_v58 = vadd.f32 %v9675_v35, %v9563_v16  ;;  %v22842_v60 = vld [vmem:[#allocation98_spill] sm:$0xff] }
 0x45a   :  { %v1125_v46 = vld [vmem:[%s22020_s1 + $0x1e78] sm:$0xff]  ;;  %v20256_v2 = vpack.c.bf16 %v9674_v3, %v9670_v42  ;;  %v9567_v38 = vadd.f32 %v9566_v51, %v19962_v6  ;;  %v9679_v56 = vpop.f32.mrf.mxu1  ;;  %v9568_v53 = vpop.f32.mrf.mxu0  ;;  %v14463_v42 = vld [vmem:[%s22022_s3 + $0x228] ss:$12 sps:$4 sm:$0xff]  }
 0x45b   :  { %v22834_v37 = vld [vmem:[#allocation92_spill] sm:$0xff]  ;;  %v13960_v31 = vcombine.high %v1121_v13, %v1125_v46  ;;  %10506 = vmatpush2.bf16.msra.mxu1 %v13967_v10  ;;  %v13959_v1 = vcombine.low %v1121_v13, %v1125_v46  ;;  %v20264_v8 = vpack.c.bf16 %v9676_v58, %v9672_v21  ;;  %v9569_v46 = vadd.f32 %v9568_v53, %v19979_v7  ;;  %v14718_v7 = vld [vmem:[%s22021_s2] sm:$0xff] }
 0x45c   :  { %10233 = vmatmul.mubr.bf16.gmra.mxu0 %v22834_v37  ;;  %v985_v25 = vld [vmem:[%s22020_s1 + $0x1a18] sm:$0xff]  ;;  %22841 = vst [vmem:[#allocation17_spill] sm:$0xff] %v20256_v2  ;;  %v9680_v13 = vadd.f32 %v9679_v56, %v9567_v38  ;;  %v9681_v6 = vpop.f32.mrf.mxu1  ;;  %v9570_v59 = vpop.f32.mrf.mxu0 }
 0x45d   :  { %10242 = vmatprep.mubr.bf16.mxu0 %v22838_v54  ;;  %v989_v44 = vld [vmem:[%s22020_s1 + $0x1a38] sm:$0xff]  ;;  %10393 = vmatpush2.bf16.msra.mxu0 %v13839_v11  ;;  %22844 = vst [vmem:[#allocation18_spill] sm:$0xff] %v20264_v8  ;;  %v9682_v23 = vadd.f32 %v9681_v6, %v9569_v46  ;;  %v9571_v63 = vadd.f32 %v9570_v59, %v19982_v12  ;;  %v14468_v12 = vld [vmem:[%s22022_s3 + $0x94] ss:$12 sps:$4 sm:$0xff]   ;;  %v14483_v6 = vld [vmem:[%s22022_s3 + $0x1e4] ss:$12 sps:$4 sm:$0xff]  }
 0x45e   :  { %v1113_v47 = vld [vmem:[%s22020_s1 + $0x1e18] sm:$0xff]  ;;  %10394 = vmatprep.subr.bf16.mxu0 %v13832_v30  ;;  %v13824_v45 = vcombine.high %v985_v25, %v989_v44  ;;  %10507 = vmatprep.subr.bf16.mxu1 %v13960_v31  ;;  %v13823_v40 = vcombine.low %v985_v25, %v989_v44  ;;  %v9683_v41 = vpop.f32.mrf.mxu1  ;;  %v14460_v30 = vld [vmem:[%s22022_s3 + $0xa8] ss:$12 sps:$4 sm:$0xff]   ;;  %v9572_v31 = vpop.f32.mrf.mxu0 }
 0x45f   :  { %v1117_v26 = vld [vmem:[%s22020_s1 + $0x1e38] sm:$0xff]  ;;  %10356 = vmatmul.mubr.bf16.gmra.mxu1 %v22842_v60  ;;  %v9684_v39 = vadd.f32 %v9683_v41, %v9571_v63  ;;  %v9573_v24 = vadd.f32 %v9572_v31, %v19998_v50  ;;  %v14471_v44 = vld [vmem:[%s22022_s3 + $0x214] ss:$12 sps:$4 sm:$0xff]  }
 0x460   :  { %v13952_v22 = vcombine.high %v1113_v47, %v1117_v26  ;;  %v22843_v14 = vld [vmem:[#allocation96_spill] sm:$0xff]  ;;  %10508 = vmatpush2.bf16.msra.mxu1 %v13959_v1  ;;  %v13951_v17 = vcombine.low %v1113_v47, %v1117_v26  ;;  %v9685_v54 = vpop.f32.mrf.mxu1  ;;  %v9722_v48 = vpop.f32.mrf.mxu0  ;;  %v14478_v63 = vld [vmem:[%s22022_s3 + $0x60] ss:$12 sps:$4 sm:$0xff]  }
 0x461   :  { %10395 = vmatpush2.bf16.msra.mxu0 %v13831_v36  ;;  %v1202_v0 = vsub.s32 6, %v22843_v14  ;;  %v14462_v5 = vld [vmem:[%s22022_s3 + $0xac] ss:$12 sps:$4 sm:$0xff]   ;;  %v1206_v11 = vsub.s32 7, %v22843_v14  ;;  %v20295_v47 = vpack.c.bf16 %v9684_v39, %v9680_v13  ;;  %v9686_v26 = vadd.f32 %v9685_v54, %v9573_v24  ;;  %v14466_v50 = vld [vmem:[%s22022_s3 + $0x90] ss:$12 sps:$4 sm:$0xff]  }
 0x462   :  { %10396 = vmatprep.subr.bf16.mxu0 %v13824_v45  ;;  %10509 = vmatprep.subr.bf16.mxu1 %v13952_v22  ;;  %v14465_v37 = vld [vmem:[%s22022_s3 + $0x22c] ss:$12 sps:$4 sm:$0xff]   ;;  %v9835_v62 = vpop.f32.mrf.mxu1  ;;  %v9724_v36 = vpop.f32.mrf.mxu0  ;;  %v14469_v28 = vld [vmem:[%s22022_s3 + $0x210] ss:$12 sps:$4 sm:$0xff]  }
 0x463   :  { %v22846_v61 = vld [vmem:[#allocation100_spill] sm:$0xff]  ;;  %v20277_v10 = vrot.slane %v14718_v7, %v1202_v0  ;;  %v20289_v25 = vrot.slane %v14718_v7, %v1206_v11  ;;  %22848 = vst [vmem:[#allocation19_spill] sm:$0xff] %v20295_v47  ;;  %v20308_v45 = vpack.c.bf16 %v9686_v26, %v9682_v23  ;;  %v22851_v22 = vld [vmem:[#allocation103_spill] sm:$0xff]  ;;  %v22854_v23 = vld [vmem:[#allocation106_spill] sm:$0xff] }
 0x464   :  { %10243 = vmatmul.mubr.bf16.gmra.mxu0 %v22840_v34  ;;  %10511 = vmatprep.mubr.bf16.mxu1 %v22846_v61  ;;  %v14474_v1 = vld [vmem:[%s22022_s3 + $0x7c] ss:$12 sps:$4 sm:$0xff]   ;;  %v9837_v35 = vpop.f32.mrf.mxu1  ;;  %v9726_v34 = vpop.f32.mrf.mxu0  ;;  %v14472_v60 = vld [vmem:[%s22022_s3 + $0x78] ss:$12 sps:$4 sm:$0xff]   ;;  %v14481_v7 = vld [vmem:[%s22022_s3 + $0x1e0] ss:$12 sps:$4 sm:$0xff]  }
 0x465   :  { %10398 = vmatprep.mubr.bf16.mxu0 %v22845_v20  ;;  %10397 = vmatpush2.bf16.msra.mxu0 %v13823_v40  ;;  %v9723_v21 = vadd.f32 %v9722_v48, %v20277_v10  ;;  %22850 = vst [vmem:[#allocation20_spill] sm:$0xff] %v20308_v45  ;;  %v9725_v16 = vadd.f32 %v9724_v36, %v20289_v25  ;;  %v14477_v51 = vld [vmem:[%s22022_s3 + $0x1fc] ss:$12 sps:$4 sm:$0xff]   ;;  %v14475_v53 = vld [vmem:[%s22022_s3 + $0x1f8] ss:$12 sps:$4 sm:$0xff]   ;;  %v22855_v39 = vld [vmem:[#allocation107_spill] sm:$0xff] }
 0x466   :  { %10510 = vmatpush2.bf16.msra.mxu1 %v13951_v17  ;;  %11953 = vmatprep.subr.bf16.mxu0 %v14462_v5  ;;  %v22852_v40 = vld [vmem:[#allocation104_spill] sm:$0xff]  ;;  %v9727_v38 = vadd.f32 %v9726_v34, %v20277_v10  ;;  %v9839_v56 = vpop.f32.mrf.mxu1  ;;  %v9728_v0 = vpop.f32.mrf.mxu0  ;;  %v14480_v17 = vld [vmem:[%s22022_s3 + $0x64] ss:$12 sps:$4 sm:$0xff]  }
 0x467   :  { %12066 = vmatprep.subr.bf16.mxu1 %v14465_v37  ;;  %v20310_v3 = vadd.f32 %v9835_v62, %v9723_v21  ;;  %v20318_v58 = vadd.f32 %v9837_v35, %v9725_v16  ;;  %v9729_v13 = vadd.f32 %v9728_v0, %v20289_v25  ;;  %v22853_v37 = vld [vmem:[#allocation105_spill] sm:$0xff]  ;;  %v14489_v24 = vld [vmem:[%s22022_s3 + $0x1cc] ss:$12 sps:$4 sm:$0xff]   ;;  %v14484_v21 = vld [vmem:[%s22022_s3 + $0x48] ss:$12 sps:$4 sm:$0xff]  }
 0x468   :  { %v20330_v5 = vadd.f32 %v9839_v56, %v9727_v38  ;;  %v9841_v46 = vpop.f32.mrf.mxu1  ;;  %v9732_v20 = vpop.f32.mrf.mxu0  ;;  %v14495_v16 = vld [vmem:[%s22022_s3 + $0x1b4] ss:$12 sps:$4 sm:$0xff]   ;;  %v22858_v38 = vld [vmem:[#allocation110_spill] sm:$0xff]  ;;  %v14490_v56 = vld [vmem:[%s22022_s3 + $0x30] ss:$12 sps:$4 sm:$0xff]  }
 0x469   :  { %10512 = vmatmul.mubr.bf16.vlgmr.msra.gmra.mxu1 %v22849_v27  ;;  %v20337_v11 = vadd.f32 %v9841_v46, %v9729_v13  ;;  %v9733_v59 = vadd.f32 %v9732_v20, %v20277_v10  ;;  %v14487_v27 = vld [vmem:[%s22022_s3 + $0x1c8] ss:$12 sps:$4 sm:$0xff]   ;;  %v14493_v0 = vld [vmem:[%s22022_s3 + $0x1b0] ss:$12 sps:$4 sm:$0xff]  }
 0x46a   :  { %12067 = vmatpush1.bf16.msra.mxu1 %v14463_v42  ;;  %10521 = vmatprep.mubr.bf16.mxu1 %v22852_v40  ;;  %v9845_v61 = vpop.f32.mrf.mxu1  ;;  %v9734_v41 = vpop.f32.mrf.mxu0  ;;  %v14501_v20 = vld [vmem:[%s22022_s3 + $0x19c] ss:$12 sps:$4 sm:$0xff]  }
 0x46b   :  { %12068 = vmatprep.subr.bf16.mxu1 %v14471_v44  ;;  %v20350_v31 = vadd.f32 %v9845_v61, %v9733_v59  ;;  %v9735_v42 = vadd.f32 %v9734_v41, %v20289_v25  ;;  %v22856_v44 = vld [vmem:[#allocation108_spill] sm:$0xff] }
 0x46c   :  { %10399 = vmatmul.mubr.bf16.vlgmr.msra.gmra.mxu0 %v22847_v29  ;;  %v9736_v54 = vpop.f32.mrf.mxu0  ;;  %v22860_v59 = vld [vmem:[#allocation112_spill] sm:$0xff] }
 0x46d   :  { %11954 = vmatpush1.bf16.msra.mxu0 %v14460_v30  ;;  %10408 = vmatprep.mubr.bf16.mxu0 %v22851_v22  ;;  %v14486_v30 = vld [vmem:[%s22022_s3 + $0x4c] ss:$12 sps:$4 sm:$0xff]   ;;  %v9737_v29 = vadd.f32 %v9736_v54, %v20277_v10  ;;  %v22857_v22 = vld [vmem:[#allocation109_spill] sm:$0xff] }
 0x46e   :  { %11955 = vmatprep.subr.bf16.mxu0 %v14468_v12  ;;  %12069 = vmatpush1.bf16.msra.mxu1 %v14469_v28  ;;  %v9847_v12 = vpop.f32.mrf.mxu1  ;;  %v9738_v62 = vpop.f32.mrf.mxu0  ;;  %v14496_v41 = vld [vmem:[%s22022_s3 + $0x18] ss:$12 sps:$4 sm:$0xff]  }
 0x46f   :  { %12070 = vmatprep.subr.bf16.mxu1 %v14477_v51  ;;  %v20358_v48 = vadd.f32 %v9847_v12, %v9735_v42  ;;  %v9739_v28 = vadd.f32 %v9738_v62, %v20289_v25  ;;  %v14504_v42 = vld [vmem:[%s22022_s3 + $0x4] ss:$12 sps:$4 sm:$0xff]  }
 0x470   :  { %v9849_v26 = vpop.f32.mrf.mxu1  ;;  %v9742_v35 = vpop.f32.mrf.mxu0  ;;  %v14507_v54 = vld [vmem:[%s22022_s3 + $0x184] ss:$12 sps:$4 sm:$0xff]  }
 0x471   :  { %11956 = vmatpush1.bf16.msra.mxu0 %v14466_v50  ;;  %10522 = vmatmul.mubr.bf16.gmra.mxu1 %v22854_v23  ;;  %v14492_v50 = vld [vmem:[%s22022_s3 + $0x34] ss:$12 sps:$4 sm:$0xff]   ;;  %v20370_v36 = vadd.f32 %v9849_v26, %v9737_v29  ;;  %v9743_v34 = vadd.f32 %v9742_v35, %v20277_v10 }
 0x472   :  { %11957 = vmatprep.subr.bf16.mxu0 %v14474_v1  ;;  %12071 = vmatpush1.bf16.msra.mxu1 %v14475_v53  ;;  %v9851_v1 = vpop.f32.mrf.mxu1  ;;  %v14498_v53 = vld [vmem:[%s22022_s3 + $0x1c] ss:$12 sps:$4 sm:$0xff]   ;;  %v22861_v29 = vld [vmem:[#allocation113_spill] sm:$0xff] }
 0x473   :  { %12072 = vmatprep.subr.bf16.mxu1 %v14483_v6  ;;  %10531 = vmatprep.mubr.bf16.mxu1 %v22856_v44  ;;  %v20377_v51 = vadd.f32 %v9851_v1, %v9739_v28  ;;  %v22859_v6 = vld [vmem:[#allocation111_spill] sm:$0xff]  ;;  %v14505_v1 = vld [vmem:[%s22022_s3 + $0x180] ss:$12 sps:$4 sm:$0xff]  }
 0x474   :  { %10409 = vmatmul.mubr.bf16.gmra.mxu0 %v22853_v37  ;;  %v9855_v40 = vpop.f32.mrf.mxu1 }
 0x475   :  { %11958 = vmatpush1.bf16.msra.mxu0 %v14472_v60  ;;  %10418 = vmatprep.mubr.bf16.mxu0 %v22855_v39  ;;  %v9744_v60 = vpop.f32.mrf.mxu0 }
 0x476   :  { %11959 = vmatprep.subr.bf16.mxu0 %v14480_v17  ;;  %12073 = vmatpush1.bf16.msra.mxu1 %v14481_v7  ;;  %v20390_v17 = vadd.f32 %v9855_v40, %v9743_v34  ;;  %v9745_v13 = vadd.f32 %v9744_v60, %v20289_v25  ;;  %v9857_v46 = vpop.f32.mrf.mxu1  ;;  %v22863_v40 = vld [vmem:[#allocation115_spill] sm:$0xff]  ;;  %v22864_v60 = vld [vmem:[#allocation116_spill] sm:$0xff] }
 0x477   :  { %12074 = vmatprep.subr.bf16.mxu1 %v14489_v24  ;;  %v9746_v37 = vpop.f32.mrf.mxu0 }
 0x478   :  { %v20398_v61 = vadd.f32 %v9857_v46, %v9745_v13  ;;  %v9747_v23 = vadd.f32 %v9746_v37, %v20277_v10  ;;  %v14508_v46 = vld [vmem:[%s22022_s3 + $0x168] ss:$12 sps:$4 sm:$0xff]  }
 0x479   :  { %11960 = vmatpush1.bf16.msra.mxu0 %v14478_v63  ;;  %10532 = vmatmul.mubr.bf16.gmra.mxu1 %v22858_v38  ;;  %v9859_v63 = vpop.f32.mrf.mxu1  ;;  %v9748_v7 = vpop.f32.mrf.mxu0  ;;  %v14513_v38 = vld [vmem:[%s22022_s3 + $0x2ec] ss:$12 sps:$4 sm:$0xff]   ;;  %v14516_v37 = vld [vmem:[%s22022_s3 + $0x154] ss:$12 sps:$4 sm:$0xff]  }
 0x47a   :  { %11961 = vmatprep.subr.bf16.mxu0 %v14486_v30  ;;  %12075 = vmatpush1.bf16.msra.mxu1 %v14487_v27  ;;  %v14499_v30 = vld [vmem:[%s22022_s3 + $0x198] ss:$12 sps:$4 sm:$0xff]   ;;  %v20410_v12 = vadd.f32 %v9859_v63, %v9747_v23  ;;  %v9749_v39 = vadd.f32 %v9748_v7, %v20289_v25  ;;  %v22862_v27 = vld [vmem:[#allocation114_spill] sm:$0xff] }
 0x47b   :  { %12076 = vmatprep.subr.bf16.mxu1 %v14495_v16  ;;  %10541 = vmatprep.mubr.bf16.mxu1 %v22860_v59  ;;  %v9861_v24 = vpop.f32.mrf.mxu1  ;;  %v9752_v44 = vpop.f32.mrf.mxu0  ;;  %v14510_v16 = vld [vmem:[%s22022_s3 + $0x16c] ss:$12 sps:$4 sm:$0xff]  }
 0x47c   :  { %10419 = vmatmul.mubr.bf16.gmra.mxu0 %v22857_v22  ;;  %v20417_v26 = vadd.f32 %v9861_v24, %v9749_v39 }
 0x47d   :  { %11962 = vmatpush1.bf16.msra.mxu0 %v14484_v21  ;;  %10428 = vmatprep.mubr.bf16.mxu0 %v22859_v6  ;;  %v9753_v21 = vadd.f32 %v9752_v44, %v20277_v10  ;;  %v9865_v62 = vpop.f32.mrf.mxu1  ;;  %v9754_v28 = vpop.f32.mrf.mxu0  ;;  %v14514_v44 = vld [vmem:[%s22022_s3 + $0x150] ss:$12 sps:$4 sm:$0xff]  }
 0x47e   :  { %11963 = vmatprep.subr.bf16.mxu0 %v14492_v50  ;;  %12077 = vmatpush1.bf16.msra.mxu1 %v14493_v0  ;;  %v14502_v50 = vld [vmem:[%s22022_s3] ss:$12 sps:$4 sm:$0xff]   ;;  %v9755_v22 = vadd.f32 %v9754_v28, %v20289_v25 }
 0x47f   :  { %12078 = vmatprep.subr.bf16.mxu1 %v14501_v20  ;;  %v20430_v35 = vadd.f32 %v9865_v62, %v9753_v21  ;;  %v9867_v34 = vpop.f32.mrf.mxu1  ;;  %v14511_v20 = vld [vmem:[%s22022_s3 + $0x2e8] ss:$12 sps:$4 sm:$0xff]   ;;  %v14517_v21 = vld [vmem:[%s22022_s3 + $0x2d0] ss:$12 sps:$4 sm:$0xff]  }
 0x480   :  { %v20438_v0 = vadd.f32 %v9867_v34, %v9755_v22  ;;  %v14522_v62 = vld [vmem:[%s22022_s3 + $0x13c] ss:$12 sps:$4 sm:$0xff]   ;;  %v22868_v34 = vld [vmem:[#allocation121_spill] sm:$0xff] }
 0x481   :  { %11964 = vmatpush1.bf16.msra.mxu0 %v14490_v56  ;;  %10542 = vmatmul.mubr.bf16.gmra.mxu1 %v22862_v27  ;;  %v9756_v56 = vpop.f32.mrf.mxu0  ;;  %v9869_v13 = vpop.f32.mrf.mxu1 }
 0x482   :  { %11965 = vmatprep.subr.bf16.mxu0 %v14498_v53  ;;  %12079 = vmatpush1.bf16.msra.mxu1 %v14499_v30  ;;  %v9757_v53 = vadd.f32 %v9756_v56, %v20277_v10  ;;  %v22865_v30 = vld [vmem:[#allocation117_spill] sm:$0xff] }
 0x483   :  { %12080 = vmatprep.subr.bf16.mxu1 %v14507_v54  ;;  %10551 = vmatprep.mubr.bf16.mxu1 %v22864_v60  ;;  %v9758_v6 = vpop.f32.mrf.mxu0  ;;  %v9871_v63 = vpop.f32.mrf.mxu1  ;;  %v22866_v54 = vld [vmem:[#allocation118_spill] sm:$0xff]  ;;  %v14520_v60 = vld [vmem:[%s22022_s3 + $0x138] ss:$12 sps:$4 sm:$0xff]  }
 0x484   :  { %10429 = vmatmul.mubr.bf16.gmra.mxu0 %v22861_v29  ;;  %v20450_v59 = vadd.f32 %v9869_v13, %v9757_v53  ;;  %v9759_v23 = vadd.f32 %v9758_v6, %v20289_v25  ;;  %v14523_v13 = vld [vmem:[%s22022_s3 + $0x2b8] ss:$12 sps:$4 sm:$0xff]  }
 0x485   :  { %11966 = vmatpush1.bf16.msra.mxu0 %v14496_v41  ;;  %10438 = vmatprep.mubr.bf16.mxu0 %v22863_v40  ;;  %v14519_v41 = vld [vmem:[%s22022_s3 + $0x2d4] ss:$12 sps:$4 sm:$0xff]   ;;  %v9762_v7 = vpop.f32.mrf.mxu0  ;;  %v9875_v24 = vpop.f32.mrf.mxu1 }
 0x486   :  { %11967 = vmatprep.subr.bf16.mxu0 %v14504_v42  ;;  %12081 = vmatpush1.bf16.msra.mxu1 %v14505_v1  ;;  %v20457_v42 = vadd.f32 %v9871_v63, %v9759_v23  ;;  %v9763_v39 = vadd.f32 %v9762_v7, %v20277_v10  ;;  %v22867_v1 = vld [vmem:[#allocation120_spill] sm:$0xff]  ;;  %v14531_v23 = vld [vmem:[%s22022_s3 + $0x2a4] ss:$12 sps:$4 sm:$0xff]  }
 0x487   :  { %12082 = vmatprep.subr.bf16.mxu1 %v14513_v38  ;;  %v9764_v29 = vpop.f32.mrf.mxu0  ;;  %v9877_v28 = vpop.f32.mrf.mxu1 }
 0x488   :  { %v20470_v27 = vadd.f32 %v9875_v24, %v9763_v39  ;;  %v22870_v24 = vld [vmem:[#allocation126_spill] sm:$0xff] }
 0x489   :  { %11968 = vmatpush1.bf16.msra.mxu0 %v14502_v50  ;;  %10552 = vmatmul.mubr.bf16.gmra.mxu1 %v22866_v54  ;;  %v9765_v50 = vadd.f32 %v9764_v29, %v20289_v25  ;;  %v9766_v22 = vpop.f32.mrf.mxu0  ;;  %v9879_v56 = vpop.f32.mrf.mxu1  ;;  %v14526_v54 = vld [vmem:[%s22022_s3 + $0x120] ss:$12 sps:$4 sm:$0xff]  }
 0x48a   :  { %11969 = vmatprep.subr.bf16.mxu0 %v14510_v16  ;;  %12083 = vmatpush2.bf16.msra.mxu1 %v14511_v20  ;;  %v14525_v16 = vld [vmem:[%s22022_s3 + $0x2bc] ss:$12 sps:$4 sm:$0xff]   ;;  %v9767_v38 = vadd.f32 %v9766_v22, %v20277_v10  ;;  %v14529_v29 = vld [vmem:[%s22022_s3 + $0x2a0] ss:$12 sps:$4 sm:$0xff]  }
 0x48b   :  { %12084 = vmatprep.subr.bf16.mxu1 %v14519_v41  ;;  %10561 = vmatprep.mubr.bf16.mxu1 %v22868_v34  ;;  %v20478_v40 = vadd.f32 %v9877_v28, %v9765_v50  ;;  %v9768_v53 = vpop.f32.mrf.mxu0  ;;  %v22869_v41 = vld [vmem:[#allocation124_spill] sm:$0xff]  ;;  %v22872_v34 = vld [vmem:[#allocation129_spill] sm:$0xff] }
 0x48c   :  { %10439 = vmatmul.mubr.bf16.gmra.mxu0 %v22865_v30  ;;  %v20490_v6 = vadd.f32 %v9879_v56, %v9767_v38  ;;  %v9769_v20 = vadd.f32 %v9768_v53, %v20289_v25  ;;  %v14532_v53 = vld [vmem:[%s22022_s3 + $0x108] ss:$12 sps:$4 sm:$0xff]  }
 0x48d   :  { %11970 = vmatpush2.bf16.msra.mxu0 %v14508_v46  ;;  %10448 = vmatprep.mubr.bf16.mxu0 %v22867_v1  ;;  %v14528_v46 = vld [vmem:[%s22022_s3 + $0x124] ss:$12 sps:$4 sm:$0xff]   ;;  %v9772_v63 = vpop.f32.mrf.mxu0  ;;  %v22871_v1 = vld [vmem:[#allocation128_spill] sm:$0xff] }
 0x48e   :  { %11971 = vmatprep.subr.bf16.mxu0 %v14516_v37  ;;  %12085 = vmatpush2.bf16.msra.mxu1 %v14517_v21  ;;  %v9881_v37 = vpop.f32.mrf.mxu1  ;;  %v9773_v30 = vadd.f32 %v9772_v63, %v20277_v10  ;;  %v14534_v21 = vld [vmem:[%s22022_s3 + $0x10c] ss:$12 sps:$4 sm:$0xff]  }
 0x48f   :  { %12086 = vmatprep.subr.bf16.mxu1 %v14525_v16  ;;  %v20497_v7 = vadd.f32 %v9881_v37, %v9769_v20  ;;  %v14537_v16 = vld [vmem:[%s22022_s3 + $0x28c] ss:$12 sps:$4 sm:$0xff]   ;;  %v14540_v20 = vld [vmem:[%s22022_s3 + $0xf4] ss:$12 sps:$4 sm:$0xff]  }
 0x490   :  { %v9885_v39 = vpop.f32.mrf.mxu1 }
 0x491   :  { %11972 = vmatpush2.bf16.msra.mxu0 %v14514_v44  ;;  %10562 = vmatmul.mubr.bf16.gmra.mxu1 %v22870_v24  ;;  %v9774_v44 = vpop.f32.mrf.mxu0 }
 0x492   :  { %11973 = vmatprep.subr.bf16.mxu0 %v14522_v62  ;;  %12087 = vmatpush2.bf16.msra.mxu1 %v14523_v13  ;;  %v20510_v62 = vadd.f32 %v9885_v39, %v9773_v30  ;;  %v9775_v50 = vadd.f32 %v9774_v44, %v20289_v25  ;;  %v9887_v28 = vpop.f32.mrf.mxu1  ;;  %v22873_v39 = vld [vmem:[#allocation132_spill] sm:$0xff] }
 0x493   :  { %12088 = vmatprep.subr.bf16.mxu1 %v14531_v23  ;;  %v9776_v22 = vpop.f32.mrf.mxu0  ;;  %10571 = vmatprep.mubr.bf16.mxu1 %v22872_v34 }
 0x494   :  { %10449 = vmatmul.mubr.bf16.gmra.mxu0 %v22869_v41  ;;  %v20518_v38 = vadd.f32 %v9887_v28, %v9775_v50  ;;  %v9777_v56 = vadd.f32 %v9776_v22, %v20277_v10  ;;  %v14543_v41 = vld [vmem:[%s22022_s3 + $0x274] ss:$12 sps:$4 sm:$0xff]   ;;  %v14541_v28 = vld [vmem:[%s22022_s3 + $0x270] ss:$12 sps:$4 sm:$0xff]  }
 0x495   :  { %11974 = vmatpush2.bf16.msra.mxu0 %v14520_v60  ;;  %10458 = vmatprep.mubr.bf16.mxu0 %v22871_v1  ;;  %v9889_v60 = vpop.f32.mrf.mxu1  ;;  %v9778_v13 = vpop.f32.mrf.mxu0  ;;  %v14546_v1 = vld [vmem:[%s22022_s3 + $0xdc] ss:$12 sps:$4 sm:$0xff]  }
 0x496   :  { %11975 = vmatprep.subr.bf16.mxu0 %v14528_v46  ;;  %12089 = vmatpush2.bf16.msra.mxu1 %v14529_v29  ;;  %v14535_v46 = vld [vmem:[%s22022_s3 + $0x288] ss:$12 sps:$4 sm:$0xff]   ;;  %v20530_v37 = vadd.f32 %v9889_v60, %v9777_v56  ;;  %v9779_v23 = vadd.f32 %v9778_v13, %v20289_v25  ;;  %v22875_v56 = vld [vmem:[#allocation136_spill] sm:$0xff]  ;;  %v22876_v13 = vld [vmem:[#allocation137_spill] sm:$0xff] }
 0x497   :  { %v9891_v63 = vpop.f32.mrf.mxu1  ;;  %12090 = vmatprep.subr.bf16.mxu1 %v14537_v16  ;;  %v9782_v30 = vpop.f32.mrf.mxu0  ;;  %v22874_v29 = vld [vmem:[#allocation134_spill] sm:$0xff] }
 0x498   :  { %v20537_v24 = vadd.f32 %v9891_v63, %v9779_v23  ;;  %v14549_v60 = vld [vmem:[%s22022_s3 + $0x25c] ss:$12 sps:$4 sm:$0xff]   ;;  %v14544_v63 = vld [vmem:[%s22022_s3 + $0xd8] ss:$12 sps:$4 sm:$0xff]  }
 0x499   :  { %11976 = vmatpush2.bf16.msra.mxu0 %v14526_v54  ;;  %v9783_v54 = vadd.f32 %v9782_v30, %v20277_v10  ;;  %v9895_v44 = vpop.f32.mrf.mxu1  ;;  %10572 = vmatmul.mubr.bf16.gmra.mxu1 %v22874_v29  ;;  %v9784_v50 = vpop.f32.mrf.mxu0  ;;  %v14547_v30 = vld [vmem:[%s22022_s3 + $0x258] ss:$12 sps:$4 sm:$0xff]  }
 0x49a   :  { %11977 = vmatprep.subr.bf16.mxu0 %v14534_v21  ;;  %v14538_v21 = vld [vmem:[%s22022_s3 + $0xf0] ss:$12 sps:$4 sm:$0xff]   ;;  %12091 = vmatpush2.bf16.msra.mxu1 %v14535_v46  ;;  %v9785_v22 = vadd.f32 %v9784_v50, %v20289_v25  ;;  %v22877_v50 = vld [vmem:[#allocation138_spill] sm:$0xff] }
 0x49b   :  { %v20550_v16 = vadd.f32 %v9895_v44, %v9783_v54  ;;  %v9897_v34 = vpop.f32.mrf.mxu1  ;;  %12092 = vmatprep.subr.bf16.mxu1 %v14543_v41  ;;  %10581 = vmatprep.mubr.bf16.mxu1 %v22876_v13  ;;  %v14552_v29 = vld [vmem:[%s22022_s3 + $0xc4] ss:$12 sps:$4 sm:$0xff]  }
 0x49c   :  { %10459 = vmatmul.mubr.bf16.gmra.mxu0 %v22873_v39  ;;  %v20558_v46 = vadd.f32 %v9897_v34, %v9785_v22 }
 0x49d   :  { %11978 = vmatpush2.bf16.msra.mxu0 %v14532_v53  ;;  %10468 = vmatprep.mubr.bf16.mxu0 %v22875_v56  ;;  %v9786_v53 = vpop.f32.mrf.mxu0  ;;  %v9899_v23 = vpop.f32.mrf.mxu1  ;;  %v22878_v56 = vld [vmem:[#allocation139_spill] sm:$0xff] }
 0x49e   :  { %11979 = vmatprep.subr.bf16.mxu0 %v14540_v20  ;;  %v9787_v20 = vadd.f32 %v9786_v53, %v20277_v10  ;;  %12093 = vmatpush2.bf16.msra.mxu1 %v14541_v28  ;;  %v14555_v28 = vld [vmem:[%s22022_s3 + $0x244] ss:$12 sps:$4 sm:$0xff]   ;;  %v22879_v53 = vld [vmem:[#allocation122_spill] sm:$0xff] }
 0x49f   :  { %v9788_v41 = vpop.f32.mrf.mxu0  ;;  %v9901_v44 = vpop.f32.mrf.mxu1  ;;  %12094 = vmatprep.subr.bf16.mxu1 %v14549_v60  ;;  %v14550_v60 = vld [vmem:[%s22022_s3 + $0xc0] ss:$12 sps:$4 sm:$0xff]  }
 0x4a0   :  { %v20567_v39 = vadd.f32 %v9899_v23, %v9787_v20  ;;  %v9789_v54 = vadd.f32 %v9788_v41, %v20289_v25  ;;  %v14553_v20 = vld [vmem:[%s22022_s3 + $0x240] ss:$12 sps:$4 sm:$0xff]  }
 0x4a1   :  { %11980 = vmatpush2.bf16.msra.mxu0 %v14538_v21  ;;  %v9792_v21 = vpop.f32.mrf.mxu0  ;;  %v9905_v34 = vpop.f32.mrf.mxu1  ;;  %10582 = vmatmul.mubr.bf16.gmra.mxu1 %v22878_v56  ;;  %v14558_v23 = vld [vmem:[%s22022_s3 + $0x3ac] ss:$12 sps:$4 sm:$0xff]  }
 0x4a2   :  { %11981 = vmatprep.subr.bf16.mxu0 %v14546_v1  ;;  %v20577_v1 = vadd.f32 %v9901_v44, %v9789_v54  ;;  %v9793_v22 = vadd.f32 %v9792_v21, %v20277_v10  ;;  %12095 = vmatpush2.bf16.msra.mxu1 %v14547_v30  ;;  %v22880_v54 = vld [vmem:[#allocation144_spill] sm:$0xff] }
 0x4a3   :  { %v9794_v13 = vpop.f32.mrf.mxu0  ;;  %12098 = vmatprep.mubr.bf16.mxu1 %v22880_v54  ;;  %v9907_v44 = vpop.f32.mrf.mxu1  ;;  %v14606_v30 = vld [vmem:[%s22022_s3 + $0x52c] ss:$12 sps:$4 sm:$0xff]   ;;  %12096 = vmatprep.subr.bf16.mxu1 %v14555_v28  ;;  %v14561_v28 = vld [vmem:[%s22022_s3 + $0x394] ss:$12 sps:$4 sm:$0xff]  }
 0x4a4   :  { %10469 = vmatmul.mubr.bf16.gmra.mxu0 %v22877_v50  ;;  %v20591_v41 = vadd.f32 %v9905_v34, %v9793_v22  ;;  %v14556_v34 = vld [vmem:[%s22022_s3 + $0x3a8] ss:$12 sps:$4 sm:$0xff]  }
 0x4a5   :  { %11982 = vmatpush2.bf16.msra.mxu0 %v14544_v63  ;;  %11985 = vmatprep.mubr.bf16.mxu0 %v22879_v53  ;;  %v9795_v63 = vadd.f32 %v9794_v13, %v20289_v25  ;;  %v9796_v21 = vpop.f32.mrf.mxu0  ;;  %v9909_v14 = vpop.f32.mrf.mxu1 }
 0x4a6   :  { %11983 = vmatprep.subr.bf16.mxu0 %v14552_v29  ;;  %v9797_v56 = vadd.f32 %v9796_v21, %v20277_v10  ;;  %12097 = vmatpush2.bf16.msra.mxu1 %v14553_v20  ;;  %v14604_v10 = vld [vmem:[%s22022_s3 + $0x528] ss:$12 sps:$4 sm:$0xff]   ;;  %v22883_v21 = vld [vmem:[#allocation125_spill] sm:$0xff] }
 0x4a7   :  { %v20598_v50 = vadd.f32 %v9907_v44, %v9795_v63  ;;  %v9798_v22 = vpop.f32.mrf.mxu0  ;;  %v9911_v54 = vpop.f32.mrf.mxu1  ;;  %12292 = vmatprep.subr.bf16.mxu1 %v14606_v30  ;;  %v22881_v20 = vld [vmem:[#allocation119_spill] sm:$0xff]  ;;  %v22882_v44 = vld [vmem:[#allocation69_spill] sm:$0xff] }
 0x4a8   :  { %v20604_v29 = vadd.f32 %v9909_v14, %v9797_v56  ;;  %v9799_v13 = vadd.f32 %v9798_v22, %v20289_v25  ;;  %v14609_v14 = vld [vmem:[%s22022_s3 + $0x514] ss:$12 sps:$4 sm:$0xff]   ;;  %v22884_v56 = vld [vmem:[#allocation146_spill] sm:$0xff]  ;;  %v14559_v22 = vld [vmem:[%s22022_s3 + $0x390] ss:$12 sps:$4 sm:$0xff]  }
 0x4a9   :  { %11984 = vmatpush2.bf16.msra.mxu0 %v14550_v60  ;;  %v9948_v60 = vpop.f32.mrf.mxu0  ;;  %v10061_v63 = vpop.f32.mrf.mxu1  ;;  %12099 = vmatmul.mubr.bf16.vlgmr.msra.gmra.mxu1 %v22882_v44 }
 0x4aa   :  { %12179 = vmatprep.subr.bf16.mxu0 %v14558_v23  ;;  %v20617_v23 = vadd.f32 %v9911_v54, %v9799_v13  ;;  %v9949_v25 = vadd.f32 %v9948_v60, %v20310_v3  ;;  %12108 = vmatprep.mubr.bf16.mxu1 %v22884_v56  ;;  %v14564_v3 = vld [vmem:[%s22022_s3 + $0x37c] ss:$12 sps:$4 sm:$0xff]  }
 0x4ab   :  { %v9950_v30 = vpop.f32.mrf.mxu0  ;;  %v10063_v13 = vpop.f32.mrf.mxu1  ;;  %12293 = vmatpush1.bf16.msra.mxu1 %v14604_v10  ;;  %v14562_v10 = vld [vmem:[%s22022_s3 + $0x378] ss:$12 sps:$4 sm:$0xff]  }
 0x4ac   :  { %11986 = vmatmul.mubr.bf16.vlgmr.msra.gmra.mxu0 %v22881_v20  ;;  %v20626_v20 = vadd.f32 %v10061_v63, %v9949_v25  ;;  %v9951_v54 = vadd.f32 %v9950_v30, %v20318_v58  ;;  %12294 = vmatprep.subr.bf16.mxu1 %v14609_v14  ;;  %v14612_v25 = vld [vmem:[%s22022_s3 + $0x4fc] ss:$12 sps:$4 sm:$0xff]  }
 0x4ad   :  { %11995 = vmatprep.mubr.bf16.mxu0 %v22883_v21  ;;  %12180 = vmatpush1.bf16.msra.mxu0 %v14556_v34  ;;  %v14607_v34 = vld [vmem:[%s22022_s3 + $0x510] ss:$12 sps:$4 sm:$0xff]   ;;  %v9952_v60 = vpop.f32.mrf.mxu0 }
 0x4ae   :  { %12181 = vmatprep.subr.bf16.mxu0 %v14561_v28  ;;  %v20638_v63 = vadd.f32 %v10063_v13, %v9951_v54  ;;  %v9953_v58 = vadd.f32 %v9952_v60, %v20330_v5  ;;  %v10065_v28 = vpop.f32.mrf.mxu1  ;;  %v14567_v54 = vld [vmem:[%s22022_s3 + $0x364] ss:$12 sps:$4 sm:$0xff]  }
 0x4af   :  { %v9954_v30 = vpop.f32.mrf.mxu0  ;;  %12295 = vmatpush1.bf16.msra.mxu1 %v14607_v34  ;;  %v14610_v5 = vld [vmem:[%s22022_s3 + $0x4f8] ss:$12 sps:$4 sm:$0xff]   ;;  %v22885_v13 = vld [vmem:[#allocation123_spill] sm:$0xff]  ;;  %v22887_v34 = vld [vmem:[#allocation130_spill] sm:$0xff] }
 0x4b0   :  { %v20644_v56 = vadd.f32 %v10065_v28, %v9953_v58  ;;  %v9955_v44 = vadd.f32 %v9954_v30, %v20337_v11  ;;  %v10067_v14 = vpop.f32.mrf.mxu1  ;;  %12296 = vmatprep.subr.bf16.mxu1 %v14612_v25  ;;  %v14615_v60 = vld [vmem:[%s22022_s3 + $0x4e4] ss:$12 sps:$4 sm:$0xff]   ;;  %v22888_v30 = vld [vmem:[#allocation148_spill] sm:$0xff]  ;;  %v14565_v25 = vld [vmem:[%s22022_s3 + $0x360] ss:$12 sps:$4 sm:$0xff]  }
 0x4b1   :  { %12182 = vmatpush1.bf16.msra.mxu0 %v14559_v22  ;;  %v9958_v22 = vpop.f32.mrf.mxu0  ;;  %v22886_v28 = vld [vmem:[#allocation145_spill] sm:$0xff] }
 0x4b2   :  { %12183 = vmatprep.subr.bf16.mxu0 %v14564_v3  ;;  %v20657_v11 = vadd.f32 %v10067_v14, %v9955_v44  ;;  %v9959_v3 = vadd.f32 %v9958_v22, %v20350_v31  ;;  %v10071_v58 = vpop.f32.mrf.mxu1  ;;  %12109 = vmatmul.mubr.bf16.gmra.mxu1 %v22886_v28  ;;  %v14570_v31 = vld [vmem:[%s22022_s3 + $0x34c] ss:$12 sps:$4 sm:$0xff]  }
 0x4b3   :  { %12118 = vmatprep.mubr.bf16.mxu1 %v22888_v30  ;;  %v9960_v21 = vpop.f32.mrf.mxu0  ;;  %12297 = vmatpush1.bf16.msra.mxu1 %v14610_v5  ;;  %v14568_v5 = vld [vmem:[%s22022_s3 + $0x348] ss:$12 sps:$4 sm:$0xff]  }
 0x4b4   :  { %11996 = vmatmul.mubr.bf16.gmra.mxu0 %v22885_v13  ;;  %v20666_v13 = vadd.f32 %v10071_v58, %v9959_v3  ;;  %v9961_v44 = vadd.f32 %v9960_v21, %v20358_v48  ;;  %v10073_v14 = vpop.f32.mrf.mxu1  ;;  %12298 = vmatprep.subr.bf16.mxu1 %v14615_v60  ;;  %v14618_v3 = vld [vmem:[%s22022_s3 + $0x4cc] ss:$12 sps:$4 sm:$0xff]  }
 0x4b5   :  { %12005 = vmatprep.mubr.bf16.mxu0 %v22887_v34  ;;  %12184 = vmatpush1.bf16.msra.mxu0 %v14562_v10  ;;  %v14613_v10 = vld [vmem:[%s22022_s3 + $0x4e0] ss:$12 sps:$4 sm:$0xff]   ;;  %v9962_v22 = vpop.f32.mrf.mxu0 }
 0x4b6   :  { %12185 = vmatprep.subr.bf16.mxu0 %v14567_v54  ;;  %v20678_v58 = vadd.f32 %v10073_v14, %v9961_v44  ;;  %v9963_v48 = vadd.f32 %v9962_v22, %v20370_v36  ;;  %v10075_v21 = vpop.f32.mrf.mxu1  ;;  %v14573_v44 = vld [vmem:[%s22022_s3 + $0x334] ss:$12 sps:$4 sm:$0xff]  }
 0x4b7   :  { %v9964_v54 = vpop.f32.mrf.mxu0  ;;  %12299 = vmatpush1.bf16.msra.mxu1 %v14613_v10  ;;  %v14616_v36 = vld [vmem:[%s22022_s3 + $0x4c8] ss:$12 sps:$4 sm:$0xff]   ;;  %v22891_v10 = vld [vmem:[#allocation133_spill] sm:$0xff] }
 0x4b8   :  { %v20684_v30 = vadd.f32 %v10075_v21, %v9963_v48  ;;  %v9965_v28 = vadd.f32 %v9964_v54, %v20377_v51  ;;  %v10077_v60 = vpop.f32.mrf.mxu1  ;;  %v22889_v14 = vld [vmem:[#allocation127_spill] sm:$0xff]  ;;  %12300 = vmatprep.subr.bf16.mxu1 %v14618_v3  ;;  %v22892_v54 = vld [vmem:[#allocation150_spill] sm:$0xff] }
 0x4b9   :  { %12186 = vmatpush1.bf16.msra.mxu0 %v14565_v25  ;;  %v9968_v25 = vpop.f32.mrf.mxu0  ;;  %v14623_v22 = vld [vmem:[%s22022_s3 + $0x4b4] ss:$12 sps:$4 sm:$0xff]   ;;  %v14571_v3 = vld [vmem:[%s22022_s3 + $0x330] ss:$12 sps:$4 sm:$0xff]  }
 0x4ba   :  { %12187 = vmatprep.subr.bf16.mxu0 %v14570_v31  ;;  %v20697_v51 = vadd.f32 %v10077_v60, %v9965_v28  ;;  %v9969_v31 = vadd.f32 %v9968_v25, %v20390_v17  ;;  %v10081_v48 = vpop.f32.mrf.mxu1  ;;  %v22890_v21 = vld [vmem:[#allocation147_spill] sm:$0xff]  ;;  %v14576_v17 = vld [vmem:[%s22022_s3 + $0x31c] ss:$12 sps:$4 sm:$0xff]  }
 0x4bb   :  { %12119 = vmatmul.mubr.bf16.gmra.mxu1 %v22890_v21  ;;  %v9970_v34 = vpop.f32.mrf.mxu0 }
 0x4bc   :  { %12006 = vmatmul.mubr.bf16.gmra.mxu0 %v22889_v14  ;;  %12128 = vmatprep.mubr.bf16.mxu1 %v22892_v54  ;;  %v20706_v14 = vadd.f32 %v10081_v48, %v9969_v31  ;;  %v9971_v28 = vadd.f32 %v9970_v34, %v20398_v61  ;;  %v10083_v60 = vpop.f32.mrf.mxu1  ;;  %v14628_v31 = vld [vmem:[%s22022_s3 + $0x49c] ss:$12 sps:$4 sm:$0xff]  }
 0x4bd   :  { %12015 = vmatprep.mubr.bf16.mxu0 %v22891_v10  ;;  %12188 = vmatpush1.bf16.msra.mxu0 %v14568_v5  ;;  %v14621_v5 = vld [vmem:[%s22022_s3 + $0x4b0] ss:$12 sps:$4 sm:$0xff]   ;;  %v9972_v25 = vpop.f32.mrf.mxu0 }
 0x4be   :  { %12189 = vmatprep.subr.bf16.mxu0 %v14573_v44  ;;  %12301 = vmatpush1.bf16.msra.mxu1 %v14616_v36  ;;  %v20718_v48 = vadd.f32 %v10083_v60, %v9971_v28  ;;  %v9973_v61 = vadd.f32 %v9972_v25, %v20410_v12  ;;  %v10085_v34 = vpop.f32.mrf.mxu1  ;;  %v14574_v36 = vld [vmem:[%s22022_s3 + $0x318] ss:$12 sps:$4 sm:$0xff]   ;;  %v22893_v60 = vld [vmem:[#allocation131_spill] sm:$0xff] }
 0x4bf   :  { %12302 = vmatprep.subr.bf16.mxu1 %v14623_v22  ;;  %v9974_v44 = vpop.f32.mrf.mxu0  ;;  %v14579_v28 = vld [vmem:[%s22022_s3 + $0x304] ss:$12 sps:$4 sm:$0xff]  }
 0x4c0   :  { %v20724_v54 = vadd.f32 %v10085_v34, %v9973_v61  ;;  %v9975_v21 = vadd.f32 %v9974_v44, %v20417_v26  ;;  %v10087_v22 = vpop.f32.mrf.mxu1  ;;  %v14626_v12 = vld [vmem:[%s22022_s3 + $0x498] ss:$12 sps:$4 sm:$0xff]  }
 0x4c1   :  { %12190 = vmatpush1.bf16.msra.mxu0 %v14571_v3  ;;  %v9978_v3 = vpop.f32.mrf.mxu0  ;;  %v14633_v25 = vld [vmem:[%s22022_s3 + $0x484] ss:$12 sps:$4 sm:$0xff]   ;;  %v22896_v44 = vld [vmem:[#allocation152_spill] sm:$0xff] }
 0x4c2   :  { %12191 = vmatprep.subr.bf16.mxu0 %v14576_v17  ;;  %12303 = vmatpush1.bf16.msra.mxu1 %v14621_v5  ;;  %v20737_v26 = vadd.f32 %v10087_v22, %v9975_v21  ;;  %v9979_v17 = vadd.f32 %v9978_v3, %v20430_v35  ;;  %v10091_v61 = vpop.f32.mrf.mxu1  ;;  %v22894_v34 = vld [vmem:[#allocation149_spill] sm:$0xff]  ;;  %v14582_v35 = vld [vmem:[%s22022_s3 + $0x46c] ss:$12 sps:$4 sm:$0xff]  }
 0x4c3   :  { %12304 = vmatprep.subr.bf16.mxu1 %v14628_v31  ;;  %12129 = vmatmul.mubr.bf16.gmra.mxu1 %v22894_v34  ;;  %v22895_v5 = vld [vmem:[#allocation73_spill] sm:$0xff]  ;;  %v9980_v10 = vpop.f32.mrf.mxu0 }
 0x4c4   :  { %12016 = vmatmul.mubr.bf16.gmra.mxu0 %v22893_v60  ;;  %12138 = vmatprep.mubr.bf16.mxu1 %v22896_v44  ;;  %v14577_v31 = vld [vmem:[%s22022_s3 + $0x300] ss:$12 sps:$4 sm:$0xff]   ;;  %v20746_v60 = vadd.f32 %v10091_v61, %v9979_v17  ;;  %v9981_v21 = vadd.f32 %v9980_v10, %v20438_v0  ;;  %v10093_v22 = vpop.f32.mrf.mxu1 }
 0x4c5   :  { %12025 = vmatprep.mubr.bf16.mxu0 %v22895_v5  ;;  %12192 = vmatpush1.bf16.msra.mxu0 %v14574_v36  ;;  %v14631_v36 = vld [vmem:[%s22022_s3 + $0x480] ss:$12 sps:$4 sm:$0xff]   ;;  %v9982_v3 = vpop.f32.mrf.mxu0 }
 0x4c6   :  { %12193 = vmatprep.subr.bf16.mxu0 %v14579_v28  ;;  %12305 = vmatpush1.bf16.msra.mxu1 %v14626_v12  ;;  %v14638_v17 = vld [vmem:[%s22022_s3 + $0x5ec] ss:$12 sps:$4 sm:$0xff]   ;;  %v20758_v61 = vadd.f32 %v10093_v22, %v9981_v21  ;;  %v9983_v0 = vadd.f32 %v9982_v3, %v20450_v59  ;;  %v10095_v10 = vpop.f32.mrf.mxu1  ;;  %v14580_v12 = vld [vmem:[%s22022_s3 + $0x468] ss:$12 sps:$4 sm:$0xff]  }
 0x4c7   :  { %12306 = vmatprep.subr.bf16.mxu1 %v14633_v25  ;;  %v9984_v28 = vpop.f32.mrf.mxu0  ;;  %v14585_v21 = vld [vmem:[%s22022_s3 + $0x454] ss:$12 sps:$4 sm:$0xff]  }
 0x4c8   :  { %v20764_v44 = vadd.f32 %v10095_v10, %v9983_v0  ;;  %v9985_v34 = vadd.f32 %v9984_v28, %v20457_v42  ;;  %v10097_v25 = vpop.f32.mrf.mxu1  ;;  %v14636_v59 = vld [vmem:[%s22022_s3 + $0x5e8] ss:$12 sps:$4 sm:$0xff]  }
 0x4c9   :  { %12194 = vmatpush1.bf16.msra.mxu0 %v14577_v31  ;;  %v9988_v31 = vpop.f32.mrf.mxu0  ;;  %v22897_v22 = vld [vmem:[#allocation135_spill] sm:$0xff]  ;;  %v22900_v28 = vld [vmem:[#allocation154_spill] sm:$0xff] }
 0x4ca   :  { %12195 = vmatprep.subr.bf16.mxu0 %v14582_v35  ;;  %12307 = vmatpush1.bf16.msra.mxu1 %v14631_v36  ;;  %v14643_v3 = vld [vmem:[%s22022_s3 + $0x5d4] ss:$12 sps:$4 sm:$0xff]   ;;  %v20777_v42 = vadd.f32 %v10097_v25, %v9985_v34  ;;  %v9989_v35 = vadd.f32 %v9988_v31, %v20470_v27  ;;  %v10101_v0 = vpop.f32.mrf.mxu1  ;;  %v14588_v27 = vld [vmem:[%s22022_s3 + $0x43c] ss:$12 sps:$4 sm:$0xff]  }
 0x4cb   :  { %12308 = vmatprep.subr.bf16.mxu1 %v14638_v17  ;;  %v22898_v10 = vld [vmem:[#allocation151_spill] sm:$0xff]  ;;  %v9990_v5 = vpop.f32.mrf.mxu0 }
 0x4cc   :  { %12026 = vmatmul.mubr.bf16.gmra.mxu0 %v22897_v22  ;;  %12139 = vmatmul.mubr.bf16.gmra.mxu1 %v22898_v10  ;;  %v22899_v36 = vld [vmem:[#allocation75_spill] sm:$0xff]  ;;  %v20786_v22 = vadd.f32 %v10101_v0, %v9989_v35  ;;  %v9991_v34 = vadd.f32 %v9990_v5, %v20478_v40  ;;  %v10103_v25 = vpop.f32.mrf.mxu1  ;;  %v14648_v35 = vld [vmem:[%s22022_s3 + $0x5bc] ss:$12 sps:$4 sm:$0xff]  }
 0x4cd   :  { %12035 = vmatprep.mubr.bf16.mxu0 %v22899_v36  ;;  %12148 = vmatprep.mubr.bf16.mxu1 %v22900_v28  ;;  %v14583_v17 = vld [vmem:[%s22022_s3 + $0x450] ss:$12 sps:$4 sm:$0xff]   ;;  %v9992_v31 = vpop.f32.mrf.mxu0 }
 0x4ce   :  { %12196 = vmatpush2.bf16.msra.mxu0 %v14580_v12  ;;  %12309 = vmatpush2.bf16.msra.mxu1 %v14636_v59  ;;  %v14641_v12 = vld [vmem:[%s22022_s3 + $0x5d0] ss:$12 sps:$4 sm:$0xff]   ;;  %v20798_v0 = vadd.f32 %v10103_v25, %v9991_v34  ;;  %v9993_v40 = vadd.f32 %v9992_v31, %v20490_v6  ;;  %v10105_v5 = vpop.f32.mrf.mxu1  ;;  %v14586_v59 = vld [vmem:[%s22022_s3 + $0x438] ss:$12 sps:$4 sm:$0xff]   ;;  %v22902_v25 = vld [vmem:[#allocation74_spill] sm:$0xff] }
 0x4cf   :  { %12197 = vmatprep.subr.bf16.mxu0 %v14585_v21  ;;  %12310 = vmatprep.subr.bf16.mxu1 %v14643_v3  ;;  %v9994_v21 = vpop.f32.mrf.mxu0  ;;  %v14591_v34 = vld [vmem:[%s22022_s3 + $0x424] ss:$12 sps:$4 sm:$0xff]  }
 0x4d0   :  { %v20804_v28 = vadd.f32 %v10105_v5, %v9993_v40  ;;  %v20807_v10 = vadd.f32 %v9994_v21, %v20497_v7  ;;  %v20809_v3 = vpop.f32.mrf.mxu1  ;;  %v14646_v6 = vld [vmem:[%s22022_s3 + $0x5b8] ss:$12 sps:$4 sm:$0xff]  }
 0x4d1   :  { %v14653_v7 = vld [vmem:[%s22022_s3 + $0x5a4] ss:$12 sps:$4 sm:$0xff]  }
 0x4d2   :  { %12198 = vmatpush2.bf16.msra.mxu0 %v14583_v17  ;;  %22901 = vst [vmem:[#allocation21_spill] sm:$0xff] %v20804_v28  ;;  %12311 = vmatpush2.bf16.msra.mxu1 %v14641_v12  ;;  %v9998_v17 = vpop.f32.mrf.mxu0  ;;  %v22903_v40 = vld [vmem:[#allocation153_spill] sm:$0xff]  ;;  %v22905_v12 = vld [vmem:[#allocation156_spill] sm:$0xff] }
 0x4d3   :  { %12199 = vmatprep.subr.bf16.mxu0 %v14588_v27  ;;  %12312 = vmatprep.subr.bf16.mxu1 %v14648_v35  ;;  %v9999_v31 = vadd.f32 %v9998_v17, %v20510_v62  ;;  %v10111_v27 = vpop.f32.mrf.mxu1  ;;  %v22904_v5 = vld [vmem:[#allocation141_spill] sm:$0xff]  ;;  %v14594_v62 = vld [vmem:[%s22022_s3 + $0x40c] ss:$12 sps:$4 sm:$0xff]  }
 0x4d4   :  { %12036 = vmatmul.mubr.bf16.gmra.mxu0 %v22902_v25  ;;  %12149 = vmatmul.mubr.bf16.gmra.mxu1 %v22903_v40  ;;  %v10000_v21 = vpop.f32.mrf.mxu0  ;;  %v14589_v25 = vld [vmem:[%s22022_s3 + $0x420] ss:$12 sps:$4 sm:$0xff]  }
 0x4d5   :  { %12045 = vmatprep.mubr.bf16.mxu0 %v22904_v5  ;;  %12158 = vmatprep.mubr.bf16.mxu1 %v22905_v12  ;;  %v20828_v35 = vadd.f32 %v10111_v27, %v9999_v31  ;;  %v10001_v36 = vadd.f32 %v10000_v21, %v20518_v38  ;;  %v10113_v28 = vpop.f32.mrf.mxu1  ;;  %v14658_v31 = vld [vmem:[%s22022_s3 + $0x58c] ss:$12 sps:$4 sm:$0xff]  }
 0x4d6   :  { %12200 = vmatpush2.bf16.msra.mxu0 %v14586_v59  ;;  %12313 = vmatpush2.bf16.msra.mxu1 %v14646_v6  ;;  %v14651_v59 = vld [vmem:[%s22022_s3 + $0x5a0] ss:$12 sps:$4 sm:$0xff]   ;;  %v10002_v17 = vpop.f32.mrf.mxu0  ;;  %v14592_v6 = vld [vmem:[%s22022_s3 + $0x408] ss:$12 sps:$4 sm:$0xff]  }
 0x4d7   :  { %12201 = vmatprep.subr.bf16.mxu0 %v14591_v34  ;;  %12314 = vmatprep.subr.bf16.mxu1 %v14653_v7  ;;  %v20840_v27 = vadd.f32 %v10113_v28, %v10001_v36  ;;  %v10003_v38 = vadd.f32 %v10002_v17, %v20530_v37  ;;  %v10115_v34 = vpop.f32.mrf.mxu1  ;;  %v14597_v36 = vld [vmem:[%s22022_s3 + $0x3f4] ss:$12 sps:$4 sm:$0xff]  }
 0x4d8   :  { %v10004_v21 = vpop.f32.mrf.mxu0  ;;  %v14656_v37 = vld [vmem:[%s22022_s3 + $0x588] ss:$12 sps:$4 sm:$0xff]  }
 0x4d9   :  { %v20846_v12 = vadd.f32 %v10115_v34, %v10003_v38  ;;  %v20849_v40 = vadd.f32 %v10004_v21, %v20537_v24  ;;  %v20851_v7 = vpop.f32.mrf.mxu1  ;;  %v14661_v24 = vld [vmem:[%s22022_s3 + $0x574] ss:$12 sps:$4 sm:$0xff]  }
 0x4da   :  { %12202 = vmatpush2.bf16.msra.mxu0 %v14589_v25  ;;  %22907 = vst [vmem:[#allocation23_spill] sm:$0xff] %v20851_v7  ;;  %12315 = vmatpush2.bf16.msra.mxu1 %v14651_v59  ;;  %v10008_v28 = vpop.f32.mrf.mxu0  ;;  %v22908_v25 = vld [vmem:[#allocation140_spill] sm:$0xff]  ;;  %v22909_v38 = vld [vmem:[#allocation155_spill] sm:$0xff]  ;;  %v22911_v59 = vld [vmem:[#allocation158_spill] sm:$0xff] }
 0x4db   :  { %22906 = vst [vmem:[#allocation22_spill] sm:$0xff] %v20846_v12  ;;  %12203 = vmatprep.subr.bf16.mxu0 %v14594_v62  ;;  %12316 = vmatprep.subr.bf16.mxu1 %v14658_v31  ;;  %v10009_v17 = vadd.f32 %v10008_v28, %v20550_v16  ;;  %v10121_v62 = vpop.f32.mrf.mxu1  ;;  %v22910_v34 = vld [vmem:[#allocation143_spill] sm:$0xff]  ;;  %v14600_v16 = vld [vmem:[%s22022_s3 + $0x3dc] ss:$12 sps:$4 sm:$0xff]  }
 0x4dc   :  { %12046 = vmatmul.mubr.bf16.gmra.mxu0 %v22908_v25  ;;  %12159 = vmatmul.mubr.bf16.gmra.mxu1 %v22909_v38  ;;  %v10010_v21 = vpop.f32.mrf.mxu0  ;;  %v14595_v25 = vld [vmem:[%s22022_s3 + $0x3f0] ss:$12 sps:$4 sm:$0xff]  }
 0x4dd   :  { %12055 = vmatprep.mubr.bf16.mxu0 %v22910_v34  ;;  %12168 = vmatprep.mubr.bf16.mxu1 %v22911_v59  ;;  %v20870_v31 = vadd.f32 %v10121_v62, %v10009_v17  ;;  %v10011_v5 = vadd.f32 %v10010_v21, %v20558_v46  ;;  %v10123_v12 = vpop.f32.mrf.mxu1  ;;  %v14664_v17 = vld [vmem:[%s22022_s3 + $0x55c] ss:$12 sps:$4 sm:$0xff]  }
 0x4de   :  { %12204 = vmatpush2.bf16.msra.mxu0 %v14592_v6  ;;  %12317 = vmatpush2.bf16.msra.mxu1 %v14656_v37  ;;  %v14659_v6 = vld [vmem:[%s22022_s3 + $0x570] ss:$12 sps:$4 sm:$0xff]   ;;  %v10012_v28 = vpop.f32.mrf.mxu0  ;;  %v14598_v37 = vld [vmem:[%s22022_s3 + $0x3d8] ss:$12 sps:$4 sm:$0xff]  }
 0x4df   :  { %12205 = vmatprep.subr.bf16.mxu0 %v14597_v36  ;;  %12318 = vmatprep.subr.bf16.mxu1 %v14661_v24  ;;  %v20882_v62 = vadd.f32 %v10123_v12, %v10011_v5  ;;  %v10013_v46 = vadd.f32 %v10012_v28, %v20567_v39  ;;  %v10125_v36 = vpop.f32.mrf.mxu1  ;;  %v14603_v5 = vld [vmem:[%s22022_s3 + $0x3c4] ss:$12 sps:$4 sm:$0xff]  }
 0x4e0   :  { %v10014_v21 = vpop.f32.mrf.mxu0  ;;  %v14662_v39 = vld [vmem:[%s22022_s3 + $0x558] ss:$12 sps:$4 sm:$0xff]  }
 0x4e1   :  { %v20888_v59 = vadd.f32 %v10125_v36, %v10013_v46  ;;  %v20891_v38 = vadd.f32 %v10014_v21, %v20577_v1  ;;  %v20893_v24 = vpop.f32.mrf.mxu1  ;;  %v14667_v1 = vld [vmem:[%s22022_s3 + $0x544] ss:$12 sps:$4 sm:$0xff]   ;;  %v14601_v36 = vld [vmem:[%s22022_s3 + $0x3c0] ss:$12 sps:$4 sm:$0xff]  }
 0x4e2   :  { %12206 = vmatpush2.bf16.msra.mxu0 %v14595_v25  ;;  %22914 = vst [vmem:[#allocation26_spill] sm:$0xff] %v20893_v24  ;;  %12319 = vmatpush2.bf16.msra.mxu1 %v14659_v6  ;;  %v10018_v12 = vpop.f32.mrf.mxu0  ;;  %v22915_v25 = vld [vmem:[#allocation142_spill] sm:$0xff]  ;;  %v22916_v46 = vld [vmem:[#allocation157_spill] sm:$0xff] }
 0x4e3   :  { %22912 = vst [vmem:[#allocation24_spill] sm:$0xff] %v20888_v59  ;;  %22913 = vst [vmem:[#allocation25_spill] sm:$0xff] %v20891_v38  ;;  %12207 = vmatprep.subr.bf16.mxu0 %v14600_v16  ;;  %12320 = vmatprep.subr.bf16.mxu1 %v14664_v17  ;;  %v10019_v28 = vadd.f32 %v10018_v12, %v20591_v41  ;;  %v10131_v16 = vpop.f32.mrf.mxu1  ;;  %v14619_v41 = vld [vmem:[%s22022_s3 + $0x170] ss:$12 sps:$4 sm:$0xff]  }
 0x4e4   :  { %12056 = vmatmul.mubr.bf16.gmra.mxu0 %v22915_v25  ;;  %12169 = vmatmul.mubr.bf16.gmra.mxu1 %v22916_v46  ;;  %v10020_v6 = vpop.f32.mrf.mxu0 }
 0x4e5   :  { %12211 = vmatprep.mubr.bf16.mxu0 %v20039_v32  ;;  %v20911_v21 = vadd.f32 %v10131_v16, %v10019_v28  ;;  %v10021_v17 = vadd.f32 %v10020_v6, %v20598_v50  ;;  %v10133_v25 = vpop.f32.mrf.mxu1  ;;  %v14668_v28 = vld [vmem:[%s22022_s3 + $0x2f0] ss:$12 sps:$4 sm:$0xff]  }
 0x4e6   :  { %12208 = vmatpush2.bf16.msra.mxu0 %v14598_v37  ;;  %12321 = vmatpush2.bf16.msra.mxu1 %v14662_v39  ;;  %v14665_v37 = vld [vmem:[%s22022_s3 + $0x540] ss:$12 sps:$4 sm:$0xff]   ;;  %v10022_v12 = vpop.f32.mrf.mxu0  ;;  %v14620_v39 = vld [vmem:[%s22022_s3 + $0xb0] ss:$12 sps:$4 sm:$0xff]  }
 0x4e7   :  { %12209 = vmatprep.subr.bf16.mxu0 %v14603_v5  ;;  %12322 = vmatprep.subr.bf16.mxu1 %v14667_v1  ;;  %v20923_v16 = vadd.f32 %v10133_v25, %v10021_v17  ;;  %v10023_v50 = vadd.f32 %v10022_v12, %v20604_v29  ;;  %v10135_v5 = vpop.f32.mrf.mxu1  ;;  %v14624_v25 = vld [vmem:[%s22022_s3 + $0x158] ss:$12 sps:$4 sm:$0xff]  }
 0x4e8   :  { %v10024_v6 = vpop.f32.mrf.mxu0 }
 0x4e9   :  { %v20929_v46 = vadd.f32 %v10135_v5, %v10023_v50  ;;  %v20932_v32 = vadd.f32 %v10024_v6, %v20617_v23  ;;  %v20934_v1 = vpop.f32.mrf.mxu1  ;;  %v14625_v23 = vld [vmem:[%s22022_s3 + $0x98] ss:$12 sps:$4 sm:$0xff]  }
 0x4ea   :  { %12210 = vmatpush2.bf16.msra.mxu0 %v14601_v36  ;;  %22919 = vst [vmem:[#allocation29_spill] sm:$0xff] %v20934_v1  ;;  %12323 = vmatpush2.bf16.msra.mxu1 %v14665_v37  ;;  %v10174_v29 = vpop.f32.mrf.mxu0 }
 0x4eb   :  { %22917 = vst [vmem:[#allocation27_spill] sm:$0xff] %v20929_v46  ;;  %22918 = vst [vmem:[#allocation28_spill] sm:$0xff] %v20932_v32  ;;  %14201 = vmatprep.subr.bf16.mxu0 %v14619_v41  ;;  %14265 = vmatprep.subr.bf16.mxu1 %v14668_v28  ;;  %v10175_v36 = vadd.f32 %v10174_v29, %v20626_v20  ;;  %v10287_v17 = vpop.f32.mrf.mxu1  ;;  %v14629_v20 = vld [vmem:[%s22022_s3 + $0x140] ss:$12 sps:$4 sm:$0xff]  }
 0x4ec   :  { %v10176_v12 = vpop.f32.mrf.mxu0  ;;  %v14630_v29 = vld [vmem:[%s22022_s3 + $0x80] ss:$12 sps:$4 sm:$0xff]  }
 0x4ed   :  { %12212 = vmatmul.mubr.bf16.vlgmr.msra.gmra.mxu0 %v20034_v19  ;;  %v20945_v41 = vadd.f32 %v10287_v17, %v10175_v36  ;;  %v10177_v50 = vadd.f32 %v10176_v12, %v20638_v63  ;;  %v10289_v37 = vpop.f32.mrf.mxu1 }
 0x4ee   :  { %12221 = vmatprep.mubr.bf16.mxu0 %v20079_v9  ;;  %14202 = vmatpush3.bf16.msra.mxu0 %v14620_v39  ;;  %v20951_v28 = vpop.f32.mrf.mxu0 }
 0x4ef   :  { %14203 = vmatprep.subr.bf16.mxu0 %v14624_v25  ;;  %v20953_v5 = vadd.f32 %v10289_v37, %v10177_v50  ;;  %v20955_v6 = vpop.f32.mrf.mxu1  ;;  %v14634_v25 = vld [vmem:[%s22022_s3 + $0x128] ss:$12 sps:$4 sm:$0xff]  }
 0x4f0   :  { %v20957_v39 = vpop.f32.mrf.mxu0  ;;  %v14635_v50 = vld [vmem:[%s22022_s3 + $0x68] ss:$12 sps:$4 sm:$0xff]  }
 0x4f1   :  { %v20962_v63 = vpop.f32.mrf.mxu1 }
 0x4f2   :  { %14204 = vmatpush3.bf16.msra.mxu0 %v14625_v23  ;;  %v10184_v36 = vpop.f32.mrf.mxu0 }
 0x4f3   :  { %14205 = vmatprep.subr.bf16.mxu0 %v14629_v20  ;;  %v10185_v17 = vadd.f32 %v10184_v36, %v20666_v13  ;;  %v10297_v12 = vpop.f32.mrf.mxu1  ;;  %v14639_v13 = vld [vmem:[%s22022_s3 + $0x110] ss:$12 sps:$4 sm:$0xff]  }
 0x4f4   :  { %v10186_v23 = vpop.f32.mrf.mxu0 }
 0x4f5   :  { %12222 = vmatmul.mubr.bf16.gmra.mxu0 %v20074_v4  ;;  %v20973_v37 = vadd.f32 %v10297_v12, %v10185_v17  ;;  %v10187_v20 = vadd.f32 %v10186_v23, %v20678_v58  ;;  %v10299_v9 = vpop.f32.mrf.mxu1  ;;  %v14640_v17 = vld [vmem:[%s22022_s3 + $0x50] ss:$12 sps:$4 sm:$0xff]  }
 0x4f6   :  { %12231 = vmatprep.mubr.bf16.mxu0 %v20119_v49  ;;  %14206 = vmatpush3.bf16.msra.mxu0 %v14630_v29  ;;  %v20979_v36 = vpop.f32.mrf.mxu0 }
 0x4f7   :  { %14207 = vmatprep.subr.bf16.mxu0 %v14634_v25  ;;  %v20981_v4 = vadd.f32 %v10299_v9, %v10187_v20  ;;  %v20983_v49 = vpop.f32.mrf.mxu1  ;;  %v14644_v25 = vld [vmem:[%s22022_s3 + $0xf8] ss:$12 sps:$4 sm:$0xff]  }
 0x4f8   :  { %v20985_v29 = vpop.f32.mrf.mxu0  ;;  %v14645_v20 = vld [vmem:[%s22022_s3 + $0x38] ss:$12 sps:$4 sm:$0xff]  }
 0x4f9   :  { %v20990_v58 = vpop.f32.mrf.mxu1 }
 0x4fa   :  { %14208 = vmatpush3.bf16.msra.mxu0 %v14635_v50  ;;  %v10194_v12 = vpop.f32.mrf.mxu0 }
 0x4fb   :  { %14209 = vmatprep.subr.bf16.mxu0 %v14639_v13  ;;  %v10195_v9 = vadd.f32 %v10194_v12, %v20706_v14  ;;  %v10307_v23 = vpop.f32.mrf.mxu1  ;;  %v14649_v14 = vld [vmem:[%s22022_s3 + $0xe0] ss:$12 sps:$4 sm:$0xff]  }
 0x4fc   :  { %v10196_v50 = vpop.f32.mrf.mxu0 }
 0x4fd   :  { %12232 = vmatmul.mubr.bf16.gmra.mxu0 %v20114_v43  ;;  %v21001_v19 = vadd.f32 %v10307_v23, %v10195_v9  ;;  %v10197_v13 = vadd.f32 %v10196_v50, %v20718_v48  ;;  %v10309_v46 = vpop.f32.mrf.mxu1  ;;  %v14650_v9 = vld [vmem:[%s22022_s3 + $0x20] ss:$12 sps:$4 sm:$0xff]  }
 0x4fe   :  { %12241 = vmatprep.mubr.bf16.mxu0 %v20159_v15  ;;  %14210 = vmatpush3.bf16.msra.mxu0 %v14640_v17  ;;  %v21007_v12 = vpop.f32.mrf.mxu0 }
 0x4ff   :  { %14211 = vmatprep.subr.bf16.mxu0 %v14644_v25  ;;  %v21009_v43 = vadd.f32 %v10309_v46, %v10197_v13  ;;  %v21011_v15 = vpop.f32.mrf.mxu1  ;;  %v14654_v25 = vld [vmem:[%s22022_s3 + $0xc8] ss:$12 sps:$4 sm:$0xff]  }
 0x500   :  { %v21013_v17 = vpop.f32.mrf.mxu0  ;;  %v14655_v13 = vld [vmem:[%s22022_s3 + $0x8] ss:$12 sps:$4 sm:$0xff]  }
 0x501   :  { %v21018_v48 = vpop.f32.mrf.mxu1 }
 0x502   :  { %14212 = vmatpush3.bf16.msra.mxu0 %v14645_v20  ;;  %v10204_v23 = vpop.f32.mrf.mxu0 }
 0x503   :  { %14213 = vmatprep.subr.bf16.mxu0 %v14649_v14  ;;  %v10205_v46 = vadd.f32 %v10204_v23, %v20746_v60  ;;  %v10317_v50 = vpop.f32.mrf.mxu1  ;;  %v14674_v60 = vld [vmem:[%s22022_s3 + $0x470] ss:$12 sps:$4 sm:$0xff]  }
 0x504   :  { %v10206_v20 = vpop.f32.mrf.mxu0 }
 0x505   :  { %12242 = vmatmul.mubr.bf16.gmra.mxu0 %v20154_v33  ;;  %v21029_v1 = vadd.f32 %v10317_v50, %v10205_v46  ;;  %v10207_v14 = vadd.f32 %v10206_v20, %v20758_v61  ;;  %v10319_v32 = vpop.f32.mrf.mxu1 }
 0x506   :  { %12251 = vmatprep.mubr.bf16.mxu0 %v20199_v57  ;;  %14214 = vmatpush3.bf16.msra.mxu0 %v14650_v9  ;;  %v21035_v23 = vpop.f32.mrf.mxu0 }
 0x507   :  { %14215 = vmatprep.subr.bf16.mxu0 %v14654_v25  ;;  %v21037_v33 = vadd.f32 %v10319_v32, %v10207_v14  ;;  %v21039_v57 = vpop.f32.mrf.mxu1 }
 0x508   :  { %v21041_v9 = vpop.f32.mrf.mxu0 }
 0x509   :  { %v21043_v34 = vpop.f32.mrf.mxu1 }
 0x50a   :  { %14216 = vmatpush3.bf16.msra.mxu0 %v14655_v13  ;;  %v10214_v46 = vpop.f32.mrf.mxu0 }
 0x50b   :  { %14329 = vmatprep.subr.bf16.mxu0 %v14674_v60  ;;  %v10215_v61 = vadd.f32 %v10214_v46, %v20786_v22  ;;  %v10327_v25 = vpop.f32.mrf.mxu1 }
 0x50c   :  { %v10216_v50 = vpop.f32.mrf.mxu0 }
 0x50d   :  { %12252 = vmatmul.mubr.bf16.gmra.mxu0 %v20194_v52  ;;  %v21048_v20 = vadd.f32 %v10327_v25, %v10215_v61  ;;  %v10217_v32 = vadd.f32 %v10216_v50, %v20798_v0  ;;  %v10329_v14 = vpop.f32.mrf.mxu1 }
 0x50e   :  { %12261 = vmatprep.mubr.bf16.mxu0 %v20236_v18  ;;  %v21051_v59 = vpop.f32.mrf.mxu0 }
 0x50f   :  { %v21053_v13 = vadd.f32 %v10329_v14, %v10217_v32  ;;  %v21055_v24 = vpop.f32.mrf.mxu1 }
 0x510   :  { %v21057_v60 = vpop.f32.mrf.mxu0 }
 0x511   :  { %v21059_v22 = vpop.f32.mrf.mxu1 }
 0x513   :  { %v10224_v46 = vpop.f32.mrf.mxu0  ;;  %v10337_v18 = vpop.f32.mrf.mxu1 }
 0x514   :  { %v10225_v52 = vadd.f32 %v10224_v46, %v20828_v35 }
 0x515   :  { %12262 = vmatmul.mubr.bf16.gmra.mxu0 %v20232_v55  ;;  %v10226_v0 = vpop.f32.mrf.mxu0  ;;  %v10339_v50 = vpop.f32.mrf.mxu1 }
 0x516   :  { %12271 = vmatprep.mubr.bf16.mxu0 %v20264_v8  ;;  %v21064_v61 = vadd.f32 %v10337_v18, %v10225_v52  ;;  %v10227_v25 = vadd.f32 %v10226_v0, %v20840_v27 }
 0x517   :  { %v21067_v32 = vpop.f32.mrf.mxu0  ;;  %v21071_v38 = vpop.f32.mrf.mxu1 }
 0x518   :  { %v21069_v14 = vadd.f32 %v10339_v50, %v10227_v25 }
 0x519   :  { %v21073_v7 = vpop.f32.mrf.mxu0  ;;  %v21075_v35 = vpop.f32.mrf.mxu1 }
 0x51a   :  { %22920 = vst [vmem:[#allocation30_spill] sm:$0xff] %v21069_v14  ;;  %22921 = vst [vmem:[#allocation31_spill] sm:$0xff] %v21075_v35 }
 0x51b   :  { %v10347_v8 = vpop.f32.mrf.mxu1 }
 0x51c   :  { %v10234_v46 = vpop.f32.mrf.mxu0 }
 0x51d   :  { %v10235_v55 = vadd.f32 %v10234_v46, %v20870_v31  ;;  %12272 = vmatmul.mubr.bf16.gmra.mxu0 %v20256_v2  ;;  %v10349_v0 = vpop.f32.mrf.mxu1 }
 0x51e   :  { %12281 = vmatprep.mubr.bf16.mxu0 %v20308_v45  ;;  %v10236_v52 = vpop.f32.mrf.mxu0 }
 0x51f   :  { %v21080_v18 = vadd.f32 %v10347_v8, %v10235_v55  ;;  %v10237_v27 = vadd.f32 %v10236_v52, %v20882_v62  ;;  %v21087_v14 = vpop.f32.mrf.mxu1 }
 0x520   :  { %v21083_v25 = vpop.f32.mrf.mxu0 }
 0x521   :  { %v21085_v50 = vadd.f32 %v10349_v0, %v10237_v27  ;;  %v21091_v31 = vpop.f32.mrf.mxu1 }
 0x522   :  { %v21089_v35 = vpop.f32.mrf.mxu0  ;;  %22923 = vst [vmem:[#allocation33_spill] sm:$0xff] %v21091_v31 }
 0x523   :  { %22922 = vst [vmem:[#allocation32_spill] sm:$0xff] %v21085_v50  ;;  %v10357_v45 = vpop.f32.mrf.mxu1 }
 0x524   :  { %v10244_v46 = vpop.f32.mrf.mxu0 }
 0x525   :  { %v10245_v2 = vadd.f32 %v10244_v46, %v20911_v21  ;;  %12282 = vmatmul.mubr.bf16.gmra.mxu0 %v20295_v47  ;;  %v10359_v52 = vpop.f32.mrf.mxu1  ;;  %v14675_v21 = vld [vmem:[%s22022_s3 + $0x3b0] ss:$12 sps:$4 sm:$0xff]   ;;  %v10181_v46 = vadd.f32 %v20957_v39, %v20657_v11  ;;  %v14680_v11 = vld [vmem:[%s22022_s3 + $0x440] ss:$12 sps:$4 sm:$0xff]  }
 0x526   :  { %12437 = vmatprep.mubr.bf16.mxu0 %v22879_v53  ;;  %v10246_v55 = vpop.f32.mrf.mxu0  ;;  %v10179_v53 = vadd.f32 %v20951_v28, %v20644_v56  ;;  %v14677_v56 = vld [vmem:[%s22022_s3 + $0x398] ss:$12 sps:$4 sm:$0xff]  }
 0x527   :  { %v21096_v8 = vadd.f32 %v10357_v45, %v10245_v2  ;;  %v10247_v62 = vadd.f32 %v10246_v55, %v20923_v16  ;;  %v21103_v50 = vpop.f32.mrf.mxu1  ;;  %v14676_v45 = vld [vmem:[%s22022_s3 + $0x458] ss:$12 sps:$4 sm:$0xff]  }
 0x528   :  { %v21099_v27 = vpop.f32.mrf.mxu0  ;;  %22927 = vst [vmem:[#allocation37_spill] sm:$0xff] %v21103_v50  ;;  %v10292_v28 = vadd.f32 %v20955_v6, %v10179_v53  ;;  %v14681_v6 = vld [vmem:[%s22022_s3 + $0x380] ss:$12 sps:$4 sm:$0xff]  }
 0x529   :  { %22924 = vst [vmem:[#allocation34_spill] sm:$0xff] %v21096_v8  ;;  %22925 = vst [vmem:[#allocation35_spill] sm:$0xff] %v21099_v27  ;;  %v21101_v0 = vadd.f32 %v10359_v52, %v10247_v62  ;;  %v21112_v2 = vpop.f32.mrf.mxu1  ;;  %v22930_v62 = vld [vmem:[#allocation119_spill] sm:$0xff]  ;;  %v22931_v52 = vld [vmem:[#allocation125_spill] sm:$0xff] }
 0x52a   :  { %v21105_v31 = vpop.f32.mrf.mxu0  ;;  %22929 = vst [vmem:[#allocation39_spill] sm:$0xff] %v21112_v2  ;;  %v22932_v27 = vld [vmem:[#allocation123_spill] sm:$0xff] }
 0x52b   :  { %22926 = vst [vmem:[#allocation36_spill] sm:$0xff] %v21101_v0  ;;  %22928 = vst [vmem:[#allocation38_spill] sm:$0xff] %v21105_v31  ;;  %v10513_v55 = vpop.f32.mrf.mxu1 }
 0x52c   :  { %v10400_v16 = vpop.f32.mrf.mxu0 }
 0x52d   :  { %12438 = vmatmul.mubr.bf16.vlgmr.msra.gmra.mxu0 %v22930_v62  ;;  %v10401_v0 = vadd.f32 %v10400_v16, %v20945_v41  ;;  %v10515_v2 = vpop.f32.mrf.mxu1  ;;  %v10294_v62 = vadd.f32 %v20962_v63, %v10181_v46  ;;  %v10189_v41 = vadd.f32 %v20979_v36, %v20684_v30  ;;  %v10191_v63 = vadd.f32 %v20985_v29, %v20697_v51  ;;  %v22933_v30 = vld [vmem:[#allocation130_spill] sm:$0xff] }
 0x52e   :  { %12445 = vmatprep.mubr.bf16.mxu0 %v22931_v52  ;;  %v10402_v47 = vpop.f32.mrf.mxu0  ;;  %14330 = vmatpush3.bf16.msra.mxu0 %v14675_v21 }
 0x52f   :  { %14331 = vmatprep.subr.bf16.mxu0 %v14676_v45  ;;  %v10403_v52 = vadd.f32 %v10402_v47, %v20953_v5  ;;  %v10517_v8 = vpop.f32.mrf.mxu1  ;;  %v10514_v53 = vadd.f32 %v10513_v55, %v10401_v0  ;;  %v14682_v47 = vld [vmem:[%s22022_s3 + $0x428] ss:$12 sps:$4 sm:$0xff]   ;;  %v14670_v55 = vld [vmem:[%s22022_s3 + $0x2d8] ss:$12 sps:$4 sm:$0xff]  }
 0x530   :  { %v10404_v39 = vpop.f32.mrf.mxu0 }
 0x531   :  { %v10405_v21 = vadd.f32 %v10404_v39, %v10292_v28  ;;  %v10519_v31 = vpop.f32.mrf.mxu1  ;;  %v10516_v46 = vadd.f32 %v10515_v2, %v10403_v52  ;;  %v10199_v52 = vadd.f32 %v21007_v12, %v20724_v54  ;;  %v14688_v54 = vld [vmem:[%s22022_s3 + $0x3f8] ss:$12 sps:$4 sm:$0xff]  }
 0x532   :  { %v10406_v50 = vpop.f32.mrf.mxu0  ;;  %14332 = vmatpush3.bf16.msra.mxu0 %v14677_v56 }
 0x533   :  { %v10518_v45 = vadd.f32 %v10517_v8, %v10405_v21  ;;  %v10407_v16 = vadd.f32 %v10406_v50, %v10294_v62  ;;  %14333 = vmatprep.subr.bf16.mxu0 %v14680_v11  ;;  %v10523_v39 = vpop.f32.mrf.mxu1  ;;  %v14683_v50 = vld [vmem:[%s22022_s3 + $0x368] ss:$12 sps:$4 sm:$0xff]   ;;  %v10302_v8 = vadd.f32 %v20983_v49, %v10189_v41  ;;  %v10304_v49 = vadd.f32 %v20990_v58, %v10191_v63 }
 0x534   :  { %v10410_v5 = vpop.f32.mrf.mxu0 }
 0x535   :  { %v21141_v56 = vpack.c.bf16 %v10518_v45, %v10514_v53  ;;  %v10520_v28 = vadd.f32 %v10519_v31, %v10407_v16  ;;  %12446 = vmatmul.mubr.bf16.gmra.mxu0 %v22932_v27  ;;  %v10411_v51 = vadd.f32 %v10410_v5, %v20973_v37  ;;  %v10525_v29 = vpop.f32.mrf.mxu1  ;;  %v14669_v31 = vld [vmem:[%s22022_s3 + $0x230] ss:$12 sps:$4 sm:$0xff]   ;;  %v14672_v16 = vld [vmem:[%s22022_s3 + $0x2c0] ss:$12 sps:$4 sm:$0xff]  }
 0x536   :  { %12453 = vmatprep.mubr.bf16.mxu0 %v22933_v30  ;;  %v10412_v36 = vpop.f32.mrf.mxu0  ;;  %14334 = vmatpush3.bf16.msra.mxu0 %v14681_v6  ;;  %v14686_v27 = vld [vmem:[%s22022_s3 + $0x410] ss:$12 sps:$4 sm:$0xff]   ;;  %v22935_v30 = vld [vmem:[#allocation133_spill] sm:$0xff] }
 0x537   :  { %v21149_v0 = vpack.c.bf16 %v10520_v28, %v10516_v46  ;;  %14335 = vmatprep.subr.bf16.mxu0 %v14682_v47  ;;  %v10413_v11 = vadd.f32 %v10412_v36, %v20981_v4  ;;  %v10527_v62 = vpop.f32.mrf.mxu1  ;;  %v14687_v6 = vld [vmem:[%s22022_s3 + $0x350] ss:$12 sps:$4 sm:$0xff]   ;;  %v10524_v41 = vadd.f32 %v10523_v39, %v10411_v51  ;;  %v14671_v4 = vld [vmem:[%s22022_s3 + $0x218] ss:$12 sps:$4 sm:$0xff]   ;;  %v10201_v47 = vadd.f32 %v21013_v17, %v20737_v26 }
 0x538   :  { %v10414_v2 = vpop.f32.mrf.mxu0  ;;  %v22934_v39 = vld [vmem:[#allocation127_spill] sm:$0xff] }
 0x539   :  { %v10415_v37 = vadd.f32 %v10414_v2, %v10302_v8  ;;  %12324 = vmatprep.mubr.bf16.mxu1 %v21149_v0  ;;  %v10529_v45 = vpop.f32.mrf.mxu1  ;;  %v10526_v5 = vadd.f32 %v10525_v29, %v10413_v11  ;;  %v10312_v8 = vadd.f32 %v21011_v15, %v10199_v52  ;;  %v14673_v29 = vld [vmem:[%s22022_s3 + $0x200] ss:$12 sps:$4 sm:$0xff]   ;;  %v14678_v15 = vld [vmem:[%s22022_s3 + $0x2a8] ss:$12 sps:$4 sm:$0xff]   ;;  %v10314_v2 = vadd.f32 %v21018_v48, %v10201_v47 }
 0x53a   :  { %v10416_v21 = vpop.f32.mrf.mxu0  ;;  %12325 = vmatmul.mubr.bf16.vlgmr.msra.gmra.mxu1 %v21141_v56  ;;  %14336 = vmatpush3.bf16.msra.mxu0 %v14683_v50  ;;  %v14689_v50 = vld [vmem:[%s22022_s3 + $0x338] ss:$12 sps:$4 sm:$0xff]   ;;  %v10209_v11 = vadd.f32 %v21035_v23, %v20764_v44  ;;  %v14694_v44 = vld [vmem:[%s22022_s3 + $0x3c8] ss:$12 sps:$4 sm:$0xff]  }
 0x53b   :  { %v10528_v53 = vadd.f32 %v10527_v62, %v10415_v37  ;;  %v10417_v58 = vadd.f32 %v10416_v21, %v10304_v49  ;;  %14266 = vmatpush3.bf16.msra.mxu1 %v14669_v31  ;;  %14337 = vmatprep.subr.bf16.mxu0 %v14686_v27  ;;  %v10533_v28 = vpop.f32.mrf.mxu1  ;;  %v14692_v31 = vld [vmem:[%s22022_s3 + $0x3e0] ss:$12 sps:$4 sm:$0xff]  }
 0x53c   :  { %v10420_v12 = vpop.f32.mrf.mxu0  ;;  %14267 = vmatprep.subr.bf16.mxu1 %v14670_v55  ;;  %v14693_v62 = vld [vmem:[%s22022_s3 + $0x320] ss:$12 sps:$4 sm:$0xff]  }
 0x53d   :  { %v21181_v63 = vpack.c.bf16 %v10528_v53, %v10524_v41  ;;  %v10530_v46 = vadd.f32 %v10529_v45, %v10417_v58  ;;  %12454 = vmatmul.mubr.bf16.gmra.mxu0 %v22934_v39  ;;  %v10421_v26 = vadd.f32 %v10420_v12, %v21001_v19  ;;  %v10535_v17 = vpop.f32.mrf.mxu1  ;;  %v14684_v41 = vld [vmem:[%s22022_s3 + $0x290] ss:$12 sps:$4 sm:$0xff]   ;;  %v10211_v53 = vadd.f32 %v21041_v9, %v20777_v42 }
 0x53e   :  { %12461 = vmatprep.mubr.bf16.mxu0 %v22935_v30  ;;  %v10422_v36 = vpop.f32.mrf.mxu0  ;;  %14338 = vmatpush3.bf16.msra.mxu0 %v14687_v6  ;;  %v22936_v12 = vld [vmem:[#allocation131_spill] sm:$0xff] }
 0x53f   :  { %v21189_v51 = vpack.c.bf16 %v10530_v46, %v10526_v5  ;;  %14268 = vmatpush3.bf16.msra.mxu1 %v14671_v4  ;;  %14339 = vmatprep.subr.bf16.mxu0 %v14688_v54  ;;  %v10423_v19 = vadd.f32 %v10422_v36, %v21009_v43  ;;  %v10537_v49 = vpop.f32.mrf.mxu1  ;;  %v10534_v52 = vadd.f32 %v10533_v28, %v10421_v26  ;;  %v14679_v43 = vld [vmem:[%s22022_s3 + $0x1e8] ss:$12 sps:$4 sm:$0xff]   ;;  %v14685_v39 = vld [vmem:[%s22022_s3 + $0x1d0] ss:$12 sps:$4 sm:$0xff]   ;;  %v14690_v36 = vld [vmem:[%s22022_s3 + $0x278] ss:$12 sps:$4 sm:$0xff]  }
 0x540   :  { %v10424_v27 = vpop.f32.mrf.mxu0  ;;  %14269 = vmatprep.subr.bf16.mxu1 %v14672_v16  ;;  %v22937_v16 = vld [vmem:[#allocation73_spill] sm:$0xff]  ;;  %v14695_v5 = vld [vmem:[%s22022_s3 + $0x308] ss:$12 sps:$4 sm:$0xff]   ;;  %v10322_v46 = vadd.f32 %v21039_v57, %v10209_v11 }
 0x541   :  { %v10425_v55 = vadd.f32 %v10424_v27, %v10312_v8  ;;  %12334 = vmatprep.mubr.bf16.mxu1 %v21189_v51  ;;  %v10539_v6 = vpop.f32.mrf.mxu1  ;;  %v10536_v58 = vadd.f32 %v10535_v17, %v10423_v19 }
 0x542   :  { %v10426_v37 = vpop.f32.mrf.mxu0  ;;  %12335 = vmatmul.mubr.bf16.gmra.mxu1 %v21181_v63  ;;  %14340 = vmatpush3.bf16.msra.mxu0 %v14689_v50  ;;  %v10324_v50 = vadd.f32 %v21043_v34, %v10211_v53 }
 0x543   :  { %v10538_v21 = vadd.f32 %v10537_v49, %v10425_v55  ;;  %v10427_v48 = vadd.f32 %v10426_v37, %v10314_v2  ;;  %14270 = vmatpush3.bf16.msra.mxu1 %v14673_v29  ;;  %14341 = vmatprep.subr.bf16.mxu0 %v14692_v31  ;;  %v10543_v54 = vpop.f32.mrf.mxu1  ;;  %v22938_v29 = vld [vmem:[#allocation21_spill] sm:$0xff]  ;;  %v22939_v37 = vld [vmem:[#allocation135_spill] sm:$0xff] }
 0x544   :  { %v10430_v23 = vpop.f32.mrf.mxu0  ;;  %14271 = vmatprep.subr.bf16.mxu1 %v14678_v15  ;;  %v10219_v31 = vadd.f32 %v21051_v59, %v22938_v29 }
 0x545   :  { %v21221_v45 = vpack.c.bf16 %v10538_v21, %v10534_v52  ;;  %v10540_v4 = vadd.f32 %v10539_v6, %v10427_v48  ;;  %12462 = vmatmul.mubr.bf16.gmra.mxu0 %v22936_v12  ;;  %v10431_v42 = vadd.f32 %v10430_v23, %v21029_v1  ;;  %v10545_v9 = vpop.f32.mrf.mxu1  ;;  %v10108_v1 = vadd.f32 %v20809_v3, %v20807_v10  ;;  %v14696_v10 = vld [vmem:[%s22022_s3 + $0x260] ss:$12 sps:$4 sm:$0xff]   ;;  %v14698_v23 = vld [vmem:[%s22022_s3 + $0x248] ss:$12 sps:$4 sm:$0xff]  }
 0x546   :  { %12469 = vmatprep.mubr.bf16.mxu0 %v22937_v16  ;;  %v10432_v47 = vpop.f32.mrf.mxu0  ;;  %14342 = vmatpush3.bf16.msra.mxu0 %v14693_v62  ;;  %v22940_v62 = vld [vmem:[#allocation75_spill] sm:$0xff]  ;;  %v10332_v21 = vadd.f32 %v21055_v24, %v10219_v31  ;;  %v22942_v12 = vld [vmem:[#allocation22_spill] sm:$0xff] }
 0x547   :  { %v21229_v28 = vpack.c.bf16 %v10540_v4, %v10536_v58  ;;  %14272 = vmatpush3.bf16.msra.mxu1 %v14679_v43  ;;  %14343 = vmatprep.subr.bf16.mxu0 %v14694_v44  ;;  %v10433_v57 = vadd.f32 %v10432_v47, %v21037_v33  ;;  %v10547_v26 = vpop.f32.mrf.mxu1  ;;  %v10544_v27 = vadd.f32 %v10543_v54, %v10431_v42  ;;  %v14691_v33 = vld [vmem:[%s22022_s3 + $0x1b8] ss:$12 sps:$4 sm:$0xff]  }
 0x548   :  { %v10434_v30 = vpop.f32.mrf.mxu0  ;;  %14273 = vmatprep.subr.bf16.mxu1 %v14684_v41  ;;  %v10221_v3 = vadd.f32 %v21057_v60, %v10108_v1  ;;  %v14697_v60 = vld [vmem:[%s22022_s3 + $0x1a0] ss:$12 sps:$4 sm:$0xff]   ;;  %v10229_v16 = vadd.f32 %v21067_v32, %v22942_v12  ;;  %v22953_v12 = vld [vmem:[#allocation32_spill] sm:$0xff] }
 0x549   :  { %v10435_v8 = vadd.f32 %v10434_v30, %v10322_v46  ;;  %12344 = vmatprep.mubr.bf16.mxu1 %v21229_v28  ;;  %v10549_v34 = vpop.f32.mrf.mxu1  ;;  %v10546_v55 = vadd.f32 %v10545_v9, %v10433_v57  ;;  %v22944_v57 = vld [vmem:[#allocation141_spill] sm:$0xff] }
 0x54a   :  { %v10436_v17 = vpop.f32.mrf.mxu0  ;;  %12345 = vmatmul.mubr.bf16.gmra.mxu1 %v21221_v45  ;;  %14344 = vmatpush3.bf16.msra.mxu0 %v14695_v5  ;;  %v10334_v41 = vadd.f32 %v21059_v22, %v10221_v3 }
 0x54b   :  { %v10548_v15 = vadd.f32 %v10547_v26, %v10435_v8  ;;  %v10437_v2 = vadd.f32 %v10436_v17, %v10324_v50  ;;  %14274 = vmatpush3.bf16.msra.mxu1 %v14685_v39  ;;  %v10553_v11 = vpop.f32.mrf.mxu1  ;;  %v22943_v50 = vld [vmem:[#allocation74_spill] sm:$0xff]  ;;  %v10342_v26 = vadd.f32 %v21071_v38, %v10229_v16 }
 0x54c   :  { %v10440_v19 = vpop.f32.mrf.mxu0  ;;  %14275 = vmatprep.subr.bf16.mxu1 %v14690_v36 }
 0x54d   :  { %v21253_v49 = vpack.c.bf16 %v10548_v15, %v10544_v27  ;;  %v10550_v59 = vadd.f32 %v10549_v34, %v10437_v2  ;;  %12470 = vmatmul.mubr.bf16.gmra.mxu0 %v22939_v37  ;;  %v10441_v6 = vadd.f32 %v10440_v19, %v21048_v20  ;;  %v10555_v43 = vpop.f32.mrf.mxu1  ;;  %v22941_v20 = vld [vmem:[#allocation23_spill] sm:$0xff]  ;;  %v22946_v15 = vld [vmem:[#allocation30_spill] sm:$0xff]  ;;  %v22947_v19 = vld [vmem:[#allocation25_spill] sm:$0xff] }
 0x54e   :  { %12477 = vmatprep.mubr.bf16.mxu0 %v22940_v62  ;;  %v10442_v52 = vpop.f32.mrf.mxu0  ;;  %v10118_v4 = vadd.f32 %v22941_v20, %v20849_v40  ;;  %v14700_v40 = vld [vmem:[%s22022_s3 + $0x5f0] ss:$12 sps:$4 sm:$0xff]  }
 0x54f   :  { %v21258_v48 = vpack.c.bf16 %v10550_v59, %v10546_v55  ;;  %14276 = vmatpush3.bf16.msra.mxu1 %v14691_v33  ;;  %v10443_v24 = vadd.f32 %v10442_v52, %v21053_v13  ;;  %v10557_v58 = vpop.f32.mrf.mxu1  ;;  %v10554_v47 = vadd.f32 %v10553_v11, %v10441_v6  ;;  %v14699_v13 = vld [vmem:[%s22022_s3 + $0x188] ss:$12 sps:$4 sm:$0xff]   ;;  %v22949_v55 = vld [vmem:[#allocation24_spill] sm:$0xff] }
 0x550   :  { %v10444_v44 = vpop.f32.mrf.mxu0  ;;  %14277 = vmatprep.subr.bf16.mxu1 %v14696_v10  ;;  %v10231_v9 = vadd.f32 %v21073_v7, %v10118_v4  ;;  %v22945_v7 = vld [vmem:[#allocation31_spill] sm:$0xff]  ;;  %v22948_v10 = vld [vmem:[#allocation26_spill] sm:$0xff] }
 0x551   :  { %v10445_v53 = vadd.f32 %v10444_v44, %v10332_v21  ;;  %12354 = vmatprep.mubr.bf16.mxu1 %v21258_v48  ;;  %v10559_v42 = vpop.f32.mrf.mxu1  ;;  %v10556_v39 = vadd.f32 %v10555_v43, %v10443_v24  ;;  %v10128_v3 = vadd.f32 %v22948_v10, %v22947_v19  ;;  %v22962_v19 = vld [vmem:[#allocation34_spill] sm:$0xff] }
 0x552   :  { %v10446_v54 = vpop.f32.mrf.mxu0  ;;  %12355 = vmatmul.mubr.bf16.gmra.mxu1 %v21253_v49  ;;  %v10344_v27 = vadd.f32 %v22945_v7, %v10231_v9  ;;  %v22959_v7 = vld [vmem:[#allocation142_spill] sm:$0xff] }
 0x553   :  { %v10558_v5 = vadd.f32 %v10557_v58, %v10445_v53  ;;  %v10447_v46 = vadd.f32 %v10446_v54, %v10334_v41  ;;  %14278 = vmatpush3.bf16.msra.mxu1 %v14697_v60  ;;  %v10563_v36 = vpop.f32.mrf.mxu1  ;;  %v10241_v21 = vadd.f32 %v21089_v35, %v10128_v3  ;;  %v22951_v41 = vld [vmem:[#allocation143_spill] sm:$0xff]  ;;  %v22952_v54 = vld [vmem:[#allocation33_spill] sm:$0xff] }
 0x554   :  { %v10450_v22 = vpop.f32.mrf.mxu0  ;;  %14279 = vmatprep.subr.bf16.mxu1 %v14698_v23  ;;  %v22950_v23 = vld [vmem:[#allocation140_spill] sm:$0xff] }
 0x555   :  { %v21282_v30 = vpack.c.bf16 %v10558_v5, %v10554_v47  ;;  %v10560_v32 = vadd.f32 %v10559_v42, %v10447_v46  ;;  %12478 = vmatmul.mubr.bf16.gmra.mxu0 %v22943_v50  ;;  %v10451_v17 = vadd.f32 %v10450_v22, %v21064_v61  ;;  %v10565_v29 = vpop.f32.mrf.mxu1  ;;  %v10239_v61 = vadd.f32 %v21083_v25, %v22949_v55  ;;  %v22954_v46 = vld [vmem:[#allocation28_spill] sm:$0xff]  ;;  %v22955_v42 = vld [vmem:[#allocation29_spill] sm:$0xff]  ;;  %v22963_v55 = vld [vmem:[#allocation39_spill] sm:$0xff] }
 0x556   :  { %12485 = vmatprep.mubr.bf16.mxu0 %v22944_v57  ;;  %v10452_v8 = vpop.f32.mrf.mxu0  ;;  %v10354_v35 = vadd.f32 %v22952_v54, %v10241_v21  ;;  %v22958_v57 = vld [vmem:[#allocation38_spill] sm:$0xff] }
 0x557   :  { %v21287_v1 = vpack.c.bf16 %v10560_v32, %v10556_v39  ;;  %14280 = vmatpush3.bf16.msra.mxu1 %v14699_v13  ;;  %v10453_v2 = vadd.f32 %v10452_v8, %v22946_v15  ;;  %v10567_v33 = vpop.f32.mrf.mxu1  ;;  %v10564_v59 = vadd.f32 %v10563_v36, %v10451_v17  ;;  %v10352_v53 = vadd.f32 %v21087_v14, %v10239_v61  ;;  %v22956_v14 = vld [vmem:[#allocation27_spill] sm:$0xff] }
 0x558   :  { %v10454_v31 = vpop.f32.mrf.mxu0  ;;  %14393 = vmatprep.subr.bf16.mxu1 %v14700_v40  ;;  %v10138_v13 = vadd.f32 %v22955_v42, %v22954_v46  ;;  %v22957_v40 = vld [vmem:[#allocation35_spill] sm:$0xff]  ;;  %v22969_v46 = vld [vmem:[#allocation10_spill] sm:$0xff] }
 0x559   :  { %v10455_v34 = vadd.f32 %v10454_v31, %v10342_v26  ;;  %12364 = vmatprep.mubr.bf16.mxu1 %v21287_v1  ;;  %v10569_v62 = vpop.f32.mrf.mxu1  ;;  %v10566_v6 = vadd.f32 %v10565_v29, %v10453_v2  ;;  %v10249_v9 = vadd.f32 %v22957_v40, %v22956_v14  ;;  %v22961_v2 = vld [vmem:[#allocation37_spill] sm:$0xff] }
 0x55a   :  { %v10456_v38 = vpop.f32.mrf.mxu0  ;;  %12365 = vmatmul.mubr.bf16.gmra.mxu1 %v21282_v30  ;;  %v10251_v8 = vadd.f32 %v22958_v57, %v10138_v13  ;;  %v14701_v13 = vld [vmem:[%s22022_s3 + $0x530] ss:$12 sps:$4 sm:$0xff]   ;;  %v14702_v14 = vld [vmem:[%s22022_s3 + $0x5d8] ss:$12 sps:$4 sm:$0xff]  }
 0x55b   :  { %v10568_v11 = vadd.f32 %v10567_v33, %v10455_v34  ;;  %v10457_v37 = vadd.f32 %v10456_v38, %v10344_v27  ;;  %v10573_v44 = vpop.f32.mrf.mxu1  ;;  %v22960_v27 = vld [vmem:[#allocation6_spill] sm:$0xff]  ;;  %v10362_v34 = vadd.f32 %v22961_v2, %v10249_v9  ;;  %v22970_v9 = vld [vmem:[#allocation69_spill] sm:$0xff] }
 0x55c   :  { %v10460_v52 = vpop.f32.mrf.mxu0  ;;  %v10364_v61 = vadd.f32 %v22963_v55, %v10251_v8  ;;  %v22972_v57 = vld [vmem:[#allocation9_spill] sm:$0xff]  ;;  %v22973_v8 = vld [vmem:[#allocation12_spill] sm:$0xff]  ;;  %v22976_v55 = vld [vmem:[#allocation11_spill] sm:$0xff] }
 0x55d   :  { %v21299_v43 = vpack.c.bf16 %v10568_v11, %v10564_v59  ;;  %v10570_v60 = vadd.f32 %v10569_v62, %v10457_v37  ;;  %12486 = vmatmul.mubr.bf16.gmra.mxu0 %v22950_v23  ;;  %v10461_v58 = vadd.f32 %v10460_v52, %v21080_v18  ;;  %v10575_v20 = vpop.f32.mrf.mxu1  ;;  %v22964_v59 = vld [vmem:[#allocation36_spill] sm:$0xff]  ;;  %v22974_v2 = vld [vmem:[#allocation145_spill] sm:$0xff] }
 0x55e   :  { %12493 = vmatprep.mubr.bf16.mxu0 %v22951_v41  ;;  %v10462_v24 = vpop.f32.mrf.mxu0 }
 0x55f   :  { %v21304_v25 = vpack.c.bf16 %v10570_v60, %v10566_v6  ;;  %v10463_v16 = vadd.f32 %v10462_v24, %v22953_v12  ;;  %v10577_v5 = vpop.f32.mrf.mxu1  ;;  %v10574_v18 = vadd.f32 %v10573_v44, %v10461_v58  ;;  %v22965_v58 = vld [vmem:[#allocation5_spill] sm:$0xff] }
 0x560   :  { %v10464_v4 = vpop.f32.mrf.mxu0 }
 0x561   :  { %v10465_v47 = vadd.f32 %v10464_v4, %v10352_v53  ;;  %12374 = vmatprep.mubr.bf16.mxu1 %v21304_v25  ;;  %v10579_v36 = vpop.f32.mrf.mxu1  ;;  %v10576_v26 = vadd.f32 %v10575_v20, %v10463_v16  ;;  %v22966_v20 = vld [vmem:[#allocation8_spill] sm:$0xff] }
 0x562   :  { %v10466_v22 = vpop.f32.mrf.mxu0  ;;  %12375 = vmatmul.mubr.bf16.gmra.mxu1 %v21299_v43  ;;  %v22967_v16 = vld [vmem:[#allocation144_spill] sm:$0xff] }
 0x563   :  { %v10578_v39 = vadd.f32 %v10577_v5, %v10465_v47  ;;  %v10467_v32 = vadd.f32 %v10466_v22, %v10354_v35  ;;  %v10583_v31 = vpop.f32.mrf.mxu1  ;;  %v22968_v5 = vld [vmem:[#allocation7_spill] sm:$0xff] }
 0x564   :  { %v10470_v50 = vpop.f32.mrf.mxu0 }
 0x565   :  { %v21316_v17 = vpack.c.bf16 %v10578_v39, %v10574_v18  ;;  %v10580_v29 = vadd.f32 %v10579_v36, %v10467_v32  ;;  %12494 = vmatmul.mubr.bf16.gmra.mxu0 %v22959_v7  ;;  %v10471_v10 = vadd.f32 %v10470_v50, %v22962_v19  ;;  %v10585_v3 = vpop.f32.mrf.mxu1  ;;  %v22971_v18 = vld [vmem:[#allocation146_spill] sm:$0xff]  ;;  %v14703_v39 = vld [vmem:[%s22022_s3 + $0x518] ss:$12 sps:$4 sm:$0xff]  }
 0x566   :  { %12631 = vmatprep.mubr.bf16.mxu0 %v22960_v27  ;;  %v10472_v15 = vpop.f32.mrf.mxu0  ;;  %v14704_v50 = vld [vmem:[%s22022_s3 + $0x5c0] ss:$12 sps:$4 sm:$0xff]   ;;  %v14706_v27 = vld [vmem:[%s22022_s3 + $0x5a8] ss:$12 sps:$4 sm:$0xff]  }
 0x567   :  { %v21321_v33 = vpack.c.bf16 %v10580_v29, %v10576_v26  ;;  %v10473_v11 = vadd.f32 %v10472_v15, %v22964_v59  ;;  %v10587_v62 = vpop.f32.mrf.mxu1  ;;  %v10584_v21 = vadd.f32 %v10583_v31, %v10471_v10  ;;  %v14705_v29 = vld [vmem:[%s22022_s3 + $0x500] ss:$12 sps:$4 sm:$0xff]   ;;  %v14707_v19 = vld [vmem:[%s22022_s3 + $0x4e8] ss:$12 sps:$4 sm:$0xff]  }
 0x568   :  { %v10474_v38 = vpop.f32.mrf.mxu0 }
 0x569   :  { %v10475_v37 = vadd.f32 %v10474_v38, %v10362_v34  ;;  %12384 = vmatprep.mubr.bf16.mxu1 %v21321_v33  ;;  %v10589_v44 = vpop.f32.mrf.mxu1  ;;  %v10586_v41 = vadd.f32 %v10585_v3, %v10473_v11  ;;  %v22975_v34 = vld [vmem:[#allocation148_spill] sm:$0xff] }
 0x56a   :  { %v10476_v52 = vpop.f32.mrf.mxu0  ;;  %12385 = vmatmul.mubr.bf16.gmra.mxu1 %v21316_v17  ;;  %v14708_v38 = vld [vmem:[%s22022_s3 + $0x590] ss:$12 sps:$4 sm:$0xff]  }
 0x56b   :  { %v10588_v6 = vadd.f32 %v10587_v62, %v10475_v37  ;;  %v10477_v60 = vadd.f32 %v10476_v52, %v10364_v61  ;;  %v21366_v32 = vpop.f32.mrf.mxu1  ;;  %v22977_v61 = vld [vmem:[#allocation14_spill] sm:$0xff]  ;;  %v14709_v11 = vld [vmem:[%s22022_s3 + $0x4d0] ss:$12 sps:$4 sm:$0xff]   ;;  %v14710_v52 = vld [vmem:[%s22022_s3 + $0x578] ss:$12 sps:$4 sm:$0xff]  }
 0x56c   :  { %v21328_v23 = vpop.f32.mrf.mxu0 }
 0x56d   :  { %v21330_v24 = vpack.c.bf16 %v10588_v6, %v10584_v21  ;;  %v10590_v53 = vadd.f32 %v10589_v44, %v10477_v60  ;;  %12632 = vmatmul.mubr.bf16.vlgmr.msra.gmra.mxu0 %v22965_v58  ;;  %v21380_v31 = vpop.f32.mrf.mxu1  ;;  %v22978_v6 = vld [vmem:[#allocation147_spill] sm:$0xff]  ;;  %v22979_v60 = vld [vmem:[#allocation150_spill] sm:$0xff]  ;;  %v14711_v44 = vld [vmem:[%s22022_s3 + $0x4b8] ss:$12 sps:$4 sm:$0xff]  }
 0x56e   :  { %12639 = vmatprep.mubr.bf16.mxu0 %v22966_v20  ;;  %v21334_v4 = vpop.f32.mrf.mxu0  ;;  %v14712_v58 = vld [vmem:[%s22022_s3 + $0x560] ss:$12 sps:$4 sm:$0xff]  }
 0x56f   :  { %v21336_v54 = vpack.c.bf16 %v10590_v53, %v10586_v41  ;;  %v21394_v10 = vpop.f32.mrf.mxu1  ;;  %v22981_v20 = vld [vmem:[#allocation13_spill] sm:$0xff] }
 0x570   :  { %v21338_v35 = vpop.f32.mrf.mxu0 }
 0x571   :  { %12394 = vmatprep.mubr.bf16.mxu1 %v21336_v54  ;;  %v21408_v37 = vpop.f32.mrf.mxu1 }
 0x572   :  { %v21341_v12 = vpop.f32.mrf.mxu0  ;;  %12395 = vmatmul.mubr.bf16.gmra.mxu1 %v21330_v24 }
 0x573   :  { %12534 = vmatprep.mubr.bf16.mxu1 %v22967_v16  ;;  %v21422_v41 = vpop.f32.mrf.mxu1  ;;  %v22982_v16 = vld [vmem:[#allocation16_spill] sm:$0xff] }
 0x574   :  { %v21345_v47 = vpop.f32.mrf.mxu0 }
 0x575   :  { %12640 = vmatmul.mubr.bf16.gmra.mxu0 %v22968_v5 }
 0x576   :  { %12647 = vmatprep.mubr.bf16.mxu0 %v22969_v46  ;;  %v21349_v42 = vpop.f32.mrf.mxu0  ;;  %v14713_v46 = vld [vmem:[%s22022_s3 + $0x4a0] ss:$12 sps:$4 sm:$0xff]  }
 0x578   :  { %v21354_v22 = vpop.f32.mrf.mxu0 }
 0x57a   :  { %v21359_v40 = vpop.f32.mrf.mxu0  ;;  %12535 = vmatmul.mubr.bf16.vlgmr.msra.gmra.mxu1 %v22970_v9  ;;  %v14714_v9 = vld [vmem:[%s22022_s3 + $0x548] ss:$12 sps:$4 sm:$0xff]  }
 0x57b   :  { %12542 = vmatprep.mubr.bf16.mxu1 %v22971_v18  ;;  %14394 = vmatpush3.bf16.msra.mxu1 %v14701_v13  ;;  %v21436_v13 = vpop.f32.mrf.mxu1 }
 0x57c   :  { %v21368_v36 = vpop.f32.mrf.mxu0  ;;  %14395 = vmatprep.subr.bf16.mxu1 %v14702_v14 }
 0x57d   :  { %12648 = vmatmul.mubr.bf16.gmra.mxu0 %v22972_v57  ;;  %v14715_v57 = vld [vmem:[%s22022_s3 + $0x488] ss:$12 sps:$4 sm:$0xff]  }
 0x57e   :  { %12655 = vmatprep.mubr.bf16.mxu0 %v22973_v8  ;;  %v21375_v26 = vpop.f32.mrf.mxu0  ;;  %v21450_v8 = vpop.f32.mrf.mxu1 }
 0x57f   :  { %14396 = vmatpush3.bf16.msra.mxu1 %v14703_v39  ;;  %v22986_v39 = vld [vmem:[#allocation149_spill] sm:$0xff] }
 0x580   :  { %v21382_v7 = vpop.f32.mrf.mxu0  ;;  %14397 = vmatprep.subr.bf16.mxu1 %v14704_v50  ;;  %v22987_v50 = vld [vmem:[#allocation152_spill] sm:$0xff] }
 0x582   :  { %v21387_v15 = vpop.f32.mrf.mxu0  ;;  %12543 = vmatmul.mubr.bf16.gmra.mxu1 %v22974_v2  ;;  %v22990_v2 = vld [vmem:[#allocation18_spill] sm:$0xff] }
 0x583   :  { %12550 = vmatprep.mubr.bf16.mxu1 %v22975_v34  ;;  %14398 = vmatpush3.bf16.msra.mxu1 %v14705_v29 }
 0x584   :  { %v21396_v3 = vpop.f32.mrf.mxu0  ;;  %14399 = vmatprep.subr.bf16.mxu1 %v14706_v27  ;;  %v22989_v27 = vld [vmem:[#allocation15_spill] sm:$0xff] }
 0x585   :  { %12656 = vmatmul.mubr.bf16.gmra.mxu0 %v22976_v55 }
 0x586   :  { %12663 = vmatprep.mubr.bf16.mxu0 %v22977_v61  ;;  %v21403_v59 = vpop.f32.mrf.mxu0  ;;  %v22994_v61 = vld [vmem:[#allocation151_spill] sm:$0xff] }
 0x587   :  { %14400 = vmatpush3.bf16.msra.mxu1 %v14707_v19  ;;  %v21458_v19 = vpop.f32.mrf.mxu1 }
 0x588   :  { %v21410_v62 = vpop.f32.mrf.mxu0  ;;  %14401 = vmatprep.subr.bf16.mxu1 %v14708_v38 }
 0x58a   :  { %v21415_v21 = vpop.f32.mrf.mxu0  ;;  %12551 = vmatmul.mubr.bf16.gmra.mxu1 %v22978_v6 }
 0x58b   :  { %12558 = vmatprep.mubr.bf16.mxu1 %v22979_v60  ;;  %14402 = vmatpush3.bf16.msra.mxu1 %v14709_v11  ;;  %v22995_v11 = vld [vmem:[#allocation154_spill] sm:$0xff]  ;;  %v22997_v60 = vld [vmem:[#allocation17_spill] sm:$0xff] }
 0x58c   :  { %v21424_v53 = vpop.f32.mrf.mxu0  ;;  %14403 = vmatprep.subr.bf16.mxu1 %v14710_v52  ;;  %v21466_v52 = vpop.f32.mrf.mxu1 }
 0x58d   :  { %22980 = vst [vmem:[#allocation40_spill] sm:$0xff] %v21424_v53  ;;  %12664 = vmatmul.mubr.bf16.gmra.mxu0 %v22981_v20 }
 0x58e   :  { %12671 = vmatprep.mubr.bf16.mxu0 %v22982_v16  ;;  %v21431_v5 = vpop.f32.mrf.mxu0  ;;  %v21474_v20 = vpop.f32.mrf.mxu1 }
 0x58f   :  { %22983 = vst [vmem:[#allocation41_spill] sm:$0xff] %v21431_v5  ;;  %14404 = vmatpush3.bf16.msra.mxu1 %v14711_v44  ;;  %v22998_v44 = vld [vmem:[#allocation20_spill] sm:$0xff] }
 0x590   :  { %v21438_v14 = vpop.f32.mrf.mxu0  ;;  %14405 = vmatprep.subr.bf16.mxu1 %v14712_v58 }
 0x591   :  { %22984 = vst [vmem:[#allocation42_spill] sm:$0xff] %v21438_v14 }
 0x592   :  { %v21443_v18 = vpop.f32.mrf.mxu0  ;;  %12559 = vmatmul.mubr.bf16.gmra.mxu1 %v22986_v39  ;;  %v23003_v39 = vld [vmem:[#allocation156_spill] sm:$0xff] }
 0x593   :  { %22985 = vst [vmem:[#allocation43_spill] sm:$0xff] %v21443_v18  ;;  %12566 = vmatprep.mubr.bf16.mxu1 %v22987_v50  ;;  %14406 = vmatpush3.bf16.msra.mxu1 %v14713_v46  ;;  %v21482_v50 = vpop.f32.mrf.mxu1 }
 0x594   :  { %v21452_v29 = vpop.f32.mrf.mxu0  ;;  %14407 = vmatprep.subr.bf16.mxu1 %v14714_v9  ;;  %v23002_v9 = vld [vmem:[#allocation153_spill] sm:$0xff] }
 0x595   :  { %22988 = vst [vmem:[#allocation44_spill] sm:$0xff] %v21452_v29  ;;  %12672 = vmatmul.mubr.bf16.gmra.mxu0 %v22989_v27  ;;  %v23005_v27 = vld [vmem:[#allocation19_spill] sm:$0xff] }
 0x596   :  { %12679 = vmatprep.mubr.bf16.mxu0 %v22990_v2  ;;  %v21456_v34 = vpop.f32.mrf.mxu0 }
 0x597   :  { %22991 = vst [vmem:[#allocation45_spill] sm:$0xff] %v21456_v34  ;;  %14408 = vmatpush3.bf16.msra.mxu1 %v14715_v57 }
 0x598   :  { %v21460_v38 = vpop.f32.mrf.mxu0 }
 0x599   :  { %22992 = vst [vmem:[#allocation46_spill] sm:$0xff] %v21460_v38 }
 0x59a   :  { %v21462_v55 = vpop.f32.mrf.mxu0  ;;  %12567 = vmatmul.mubr.bf16.gmra.mxu1 %v22994_v61  ;;  %v21489_v61 = vpop.f32.mrf.mxu1 }
 0x59b   :  { %22993 = vst [vmem:[#allocation47_spill] sm:$0xff] %v21462_v55  ;;  %12574 = vmatprep.mubr.bf16.mxu1 %v22995_v11 }
 0x59c   :  { %v21468_v6 = vpop.f32.mrf.mxu0 }
 0x59d   :  { %22996 = vst [vmem:[#allocation48_spill] sm:$0xff] %v21468_v6  ;;  %12680 = vmatmul.mubr.bf16.gmra.mxu0 %v22997_v60 }
 0x59e   :  { %12687 = vmatprep.mubr.bf16.mxu0 %v22998_v44  ;;  %v21472_v58 = vpop.f32.mrf.mxu0  ;;  %v23009_v44 = vld [vmem:[#allocation155_spill] sm:$0xff] }
 0x59f   :  { %22999 = vst [vmem:[#allocation49_spill] sm:$0xff] %v21472_v58 }
 0x5a0   :  { %v21476_v16 = vpop.f32.mrf.mxu0 }
 0x5a1   :  { %23000 = vst [vmem:[#allocation50_spill] sm:$0xff] %v21476_v16 }
 0x5a2   :  { %v21478_v46 = vpop.f32.mrf.mxu0  ;;  %12575 = vmatmul.mubr.bf16.gmra.mxu1 %v23002_v9  ;;  %v21497_v9 = vpop.f32.mrf.mxu1 }
 0x5a3   :  { %23001 = vst [vmem:[#allocation51_spill] sm:$0xff] %v21478_v46  ;;  %12582 = vmatprep.mubr.bf16.mxu1 %v23003_v39  ;;  %v23010_v46 = vld [vmem:[#allocation158_spill] sm:$0xff] }
 0x5a4   :  { %v21484_v57 = vpop.f32.mrf.mxu0 }
 0x5a5   :  { %23004 = vst [vmem:[#allocation52_spill] sm:$0xff] %v21484_v57  ;;  %12688 = vmatmul.mubr.bf16.gmra.mxu0 %v23005_v27  ;;  %v21503_v57 = vpop.f32.mrf.mxu1 }
 0x5a6   :  { %v21487_v2 = vpop.f32.mrf.mxu0 }
 0x5a7   :  { %23006 = vst [vmem:[#allocation53_spill] sm:$0xff] %v21487_v2  ;;  %v23011_v2 = vld [vmem:[#allocation157_spill] sm:$0xff] }
 0x5a8   :  { %v21491_v11 = vpop.f32.mrf.mxu0 }
 0x5a9   :  { %23007 = vst [vmem:[#allocation54_spill] sm:$0xff] %v21491_v11 }
 0x5aa   :  { %v21493_v60 = vpop.f32.mrf.mxu0  ;;  %12583 = vmatmul.mubr.bf16.gmra.mxu1 %v23009_v44 }
 0x5ab   :  { %23008 = vst [vmem:[#allocation55_spill] sm:$0xff] %v21493_v60  ;;  %12590 = vmatprep.mubr.bf16.mxu1 %v23010_v46  ;;  %v21511_v60 = vpop.f32.mrf.mxu1 }
 0x5ad   :  { %v21499_v39 = vpop.f32.mrf.mxu0  ;;  %v21517_v11 = vpop.f32.mrf.mxu1 }
 0x5ae   :  { %23012 = vst [vmem:[#allocation56_spill] sm:$0xff] %v21517_v11 }
 0x5af   :  { %v21501_v16 = vpop.f32.mrf.mxu0 }
 0x5b1   :  { %v21505_v27 = vpop.f32.mrf.mxu0 }
 0x5b2   :  { %12591 = vmatmul.mubr.bf16.gmra.mxu1 %v23011_v2  ;;  %v21525_v2 = vpop.f32.mrf.mxu1 }
 0x5b3   :  { %v21508_v58 = vpop.f32.mrf.mxu0  ;;  %12728 = vmatprep.mubr.bf16.mxu1 %v21149_v0  ;;  %23013 = vst [vmem:[#allocation57_spill] sm:$0xff] %v21525_v2 }
 0x5b4   :  { %v21531_v34 = vpop.f32.mrf.mxu1 }
 0x5b5   :  { %v21513_v44 = vpop.f32.mrf.mxu0  ;;  %23014 = vst [vmem:[#allocation58_spill] sm:$0xff] %v21531_v34 }
 0x5b7   :  { %v21515_v46 = vpop.f32.mrf.mxu0 }
 0x5b9   :  { %v21519_v6 = vpop.f32.mrf.mxu0 }
 0x5ba   :  { %12729 = vmatmul.mubr.bf16.vlgmr.msra.gmra.mxu1 %v21141_v56  ;;  %v21539_v56 = vpop.f32.mrf.mxu1 }
 0x5bb   :  { %v21522_v55 = vpop.f32.mrf.mxu0  ;;  %12736 = vmatprep.mubr.bf16.mxu1 %v21189_v51  ;;  %23015 = vst [vmem:[#allocation59_spill] sm:$0xff] %v21539_v56 }
 0x5bc   :  { %v21545_v2 = vpop.f32.mrf.mxu1 }
 0x5bd   :  { %v21527_v38 = vpop.f32.mrf.mxu0  ;;  %23016 = vst [vmem:[#allocation60_spill] sm:$0xff] %v21545_v2 }
 0x5bf   :  { %v21529_v0 = vpop.f32.mrf.mxu0 }
 0x5c1   :  { %v21533_v29 = vpop.f32.mrf.mxu0 }
 0x5c2   :  { %12737 = vmatmul.mubr.bf16.gmra.mxu1 %v21181_v63  ;;  %v21553_v63 = vpop.f32.mrf.mxu1 }
 0x5c3   :  { %v21536_v18 = vpop.f32.mrf.mxu0  ;;  %12744 = vmatprep.mubr.bf16.mxu1 %v21229_v28  ;;  %23018 = vst [vmem:[#allocation62_spill] sm:$0xff] %v21553_v63 }
 0x5c4   :  { %v21559_v56 = vpop.f32.mrf.mxu1 }
 0x5c5   :  { %v21541_v14 = vpop.f32.mrf.mxu0  ;;  %23020 = vst [vmem:[#allocation64_spill] sm:$0xff] %v21559_v56 }
 0x5c7   :  { %v21543_v51 = vpop.f32.mrf.mxu0 }
 0x5c9   :  { %v21547_v5 = vpop.f32.mrf.mxu0 }
 0x5ca   :  { %12745 = vmatmul.mubr.bf16.gmra.mxu1 %v21221_v45  ;;  %v21567_v45 = vpop.f32.mrf.mxu1 }
 0x5cb   :  { %v21550_v34 = vpop.f32.mrf.mxu0  ;;  %12752 = vmatprep.mubr.bf16.mxu1 %v21258_v48  ;;  %23022 = vst [vmem:[#allocation66_spill] sm:$0xff] %v21567_v45 }
 0x5cc   :  { %23017 = vst [vmem:[#allocation61_spill] sm:$0xff] %v21550_v34  ;;  %v21573_v63 = vpop.f32.mrf.mxu1 }
 0x5cd   :  { %v21555_v11 = vpop.f32.mrf.mxu0  ;;  %23024 = vst [vmem:[#allocation68_spill] sm:$0xff] %v21573_v63 }
 0x5ce   :  { %23019 = vst [vmem:[#allocation63_spill] sm:$0xff] %v21555_v11 }
 0x5cf   :  { %v21557_v28 = vpop.f32.mrf.mxu0 }
 0x5d1   :  { %v21561_v53 = vpop.f32.mrf.mxu0 }
 0x5d2   :  { %12753 = vmatmul.mubr.bf16.gmra.mxu1 %v21253_v49  ;;  %v21581_v49 = vpop.f32.mrf.mxu1 }
 0x5d3   :  { %v21564_v2 = vpop.f32.mrf.mxu0  ;;  %12760 = vmatprep.mubr.bf16.mxu1 %v21287_v1  ;;  %23026 = vst [vmem:[#allocation71_spill] sm:$0xff] %v21581_v49 }
 0x5d4   :  { %23021 = vst [vmem:[#allocation65_spill] sm:$0xff] %v21564_v2  ;;  %v21587_v45 = vpop.f32.mrf.mxu1 }
 0x5d5   :  { %v21569_v34 = vpop.f32.mrf.mxu0 }
 0x5d6   :  { %23023 = vst [vmem:[#allocation67_spill] sm:$0xff] %v21569_v34 }
 0x5d7   :  { %v21571_v48 = vpop.f32.mrf.mxu0 }
 0x5d9   :  { %v21575_v11 = vpop.f32.mrf.mxu0 }
 0x5da   :  { %12761 = vmatmul.mubr.bf16.gmra.mxu1 %v21282_v30  ;;  %v21595_v30 = vpop.f32.mrf.mxu1 }
 0x5db   :  { %v21578_v56 = vpop.f32.mrf.mxu0  ;;  %12768 = vmatprep.mubr.bf16.mxu1 %v21304_v25 }
 0x5dc   :  { %23025 = vst [vmem:[#allocation70_spill] sm:$0xff] %v21578_v56  ;;  %v21601_v49 = vpop.f32.mrf.mxu1 }
 0x5dd   :  { %v21583_v2 = vpop.f32.mrf.mxu0  ;;  %23033 = vst [vmem:[#allocation81_spill] sm:$0xff] %v21601_v49 }
 0x5de   :  { %23027 = vst [vmem:[#allocation72_spill] sm:$0xff] %v21583_v2 }
 0x5df   :  { %v21585_v1 = vpop.f32.mrf.mxu0 }
 0x5e0   :  { %23028 = vst [vmem:[#allocation76_spill] sm:$0xff] %v21585_v1 }
 0x5e1   :  { %v21589_v34 = vpop.f32.mrf.mxu0 }
 0x5e2   :  { %23029 = vst [vmem:[#allocation77_spill] sm:$0xff] %v21589_v34  ;;  %12769 = vmatmul.mubr.bf16.gmra.mxu1 %v21299_v43  ;;  %v21612_v43 = vld [vmem:[%s22023_s4] sm:$0x7]  ;;  %s14741_s4 = smov [#allocation2]  }
 0x5e3   :  { %v21592_v63 = vpop.f32.mrf.mxu0  ;;  %12776 = vmatprep.mubr.bf16.mxu1 %v21321_v33  ;;  %23036 = vst [vmem:[#allocation84_spill] sm:$0xff] %v21612_v43  ;;  %v21614_v33 = vpop.f32.mrf.mxu1  ;;  %s12846_s18 = sshll.u32 %s14741_s4, 4  ;;  %s12847_s18 = int_to_ptr.vmem [resolvable:$true] %s12846_s18 }
 0x5e4   :  { %23030 = vst [vmem:[#allocation78_spill] sm:$0xff] %v21592_v63  ;;  %23037 = vst [vmem:[#allocation85_spill] sm:$0xff] %v21614_v33  ;;  %s14719_s19 = scalar_lea.vmem %s12847_s18, 6144  ;;  %p14724_p1 = scmp.lt.s32.totalorder %s12847_s18, %s12847_s18 }
 0x5e5   :  { %v21597_v56 = vpop.f32.mrf.mxu0  ;;  %p14720_p0 = scmp.ne.s32.totalorder %s12847_s18, %s14719_s19  ;;  %p14725_p2 = scmp.lt.s32.totalorder %s14719_s19, %s14719_s19 }
 0x5e6   :  { %23031 = vst [vmem:[#allocation79_spill] sm:$0xff] %v21597_v56 }
 0x5e7   :  { %v21599_v25 = vpop.f32.mrf.mxu0  ;;  %p14726_p3 = por %p14725_p2, %p14724_p1 }
 0x5e8   :  { %23032 = vst [vmem:[#allocation80_spill] sm:$0xff] %v21599_v25  ;;  %v23039_v25 = vld [vmem:[#allocation96_spill] sm:$0xff] }
 0x5e9   :  { %v21603_v2 = vpop.f32.mrf.mxu0  ;;  %v23040_v63 = vsub.s32 0, %v23039_v25  ;;  %p14727_p4 = pnand %p14726_p3, %p14720_p0 }
 0x5ea   :  { %23034 = vst [vmem:[#allocation82_spill] sm:$0xff] %v21603_v2  ;;  %12777 = vmatmul.mubr.bf16.gmra.mxu1 %v21316_v17  ;;  %v21625_v17 = vpop.f32.mrf.mxu1 }
 0x5eb   :  { %v21606_v1 = vpop.f32.mrf.mxu0  ;;  %12784 = vmatprep.mubr.bf16.mxu1 %v21336_v54  ;;  %v21621_v34 = vrot.slane %v21612_v43, %v23040_v63  ;;  %23042 = vst [vmem:[#allocation88_spill] sm:$0xff] %v21625_v17  ;;  %v23043_v54 = vsub.s32 1, %v23039_v25 }
 0x5ec   :  { %23035 = vst [vmem:[#allocation83_spill] sm:$0xff] %v21606_v1  ;;  %v21639_v63 = vpop.f32.mrf.mxu1 }
 0x5ed   :  { %v21616_v56 = vpop.f32.mrf.mxu0  ;;  %v21630_v1 = vrot.slane %v21612_v43, %v23043_v54  ;;  %23046 = vst [vmem:[#allocation91_spill] sm:$0xff] %v21639_v63  ;;  %v11992_v54 = vadd.f32 %v21338_v35, %v21621_v34 }
 0x5ee   :  { %23038 = vst [vmem:[#allocation86_spill] sm:$0xff] %v21616_v56  ;;  %v11988_v56 = vadd.f32 %v21328_v23, %v21621_v34 }
 0x5ef   :  { %v21623_v2 = vpop.f32.mrf.mxu0 }
 0x5f0   :  { %23041 = vst [vmem:[#allocation87_spill] sm:$0xff] %v21623_v2  ;;  %v11990_v2 = vadd.f32 %v21334_v4, %v21630_v1  ;;  %v12101_v25 = vadd.f32 %v21366_v32, %v11988_v56  ;;  %v11998_v32 = vadd.f32 %v21345_v47, %v21621_v34 }
 0x5f1   :  { %v21632_v49 = vpop.f32.mrf.mxu0 }
 0x5f2   :  { %23044 = vst [vmem:[#allocation89_spill] sm:$0xff] %v21632_v49  ;;  %12785 = vmatmul.mubr.bf16.gmra.mxu1 %v21330_v24  ;;  %v21650_v24 = vpop.f32.mrf.mxu1  ;;  %v12103_v23 = vadd.f32 %v21380_v31, %v11990_v2  ;;  %v12214_v43 = vadd.f32 %v21499_v39, %v12101_v25  ;;  %v12111_v47 = vadd.f32 %v21422_v41, %v11998_v32 }
 0x5f3   :  { %v21637_v33 = vpop.f32.mrf.mxu0  ;;  %23049 = vst [vmem:[#allocation94_spill] sm:$0xff] %v21650_v24 }
 0x5f4   :  { %23045 = vst [vmem:[#allocation90_spill] sm:$0xff] %v21637_v33  ;;  %v11994_v33 = vadd.f32 %v21341_v12, %v21630_v1  ;;  %v12216_v35 = vadd.f32 %v21501_v16, %v12103_v23  ;;  %v12000_v12 = vadd.f32 %v21349_v42, %v21630_v1  ;;  %v12002_v16 = vadd.f32 %v21354_v22, %v21621_v34 }
 0x5f5   :  { %v21643_v17 = vpop.f32.mrf.mxu0 }
 0x5f6   :  { %23047 = vst [vmem:[#allocation92_spill] sm:$0xff] %v21643_v17  ;;  %v12105_v17 = vadd.f32 %v21394_v10, %v11992_v54  ;;  %v12107_v31 = vadd.f32 %v21408_v37, %v11994_v33  ;;  %v12113_v42 = vadd.f32 %v21436_v13, %v12000_v12  ;;  %v12115_v22 = vadd.f32 %v21450_v8, %v12002_v16 }
 0x5f7   :  { %v21648_v49 = vpop.f32.mrf.mxu0 }
 0x5f8   :  { %23048 = vst [vmem:[#allocation93_spill] sm:$0xff] %v21648_v49  ;;  %v12218_v39 = vadd.f32 %v21505_v27, %v12105_v17  ;;  %v12004_v27 = vadd.f32 %v21359_v40, %v21630_v1  ;;  %v12224_v17 = vadd.f32 %v21513_v44, %v12111_v47  ;;  %v12010_v44 = vadd.f32 %v21375_v26, %v21630_v1 }
 0x5f9   :  { %v21656_v63 = vpop.f32.mrf.mxu0 }
 0x5fa   :  { %v12326_v4 = vpop.f32.mrf.mxu1  ;;  %v12117_v40 = vadd.f32 %v21458_v19, %v12004_v27  ;;  %v12123_v26 = vadd.f32 %v21474_v20, %v12010_v44 }
 0x5fb   :  { %v12327_v56 = vadd.f32 %v12326_v4, %v12214_v43  ;;  %v21662_v49 = vpop.f32.mrf.mxu0  ;;  %v12220_v43 = vadd.f32 %v21508_v58, %v12107_v31  ;;  %v12008_v58 = vadd.f32 %v21368_v36, %v21621_v34  ;;  %v12226_v4 = vadd.f32 %v21515_v46, %v12113_v42 }
 0x5fc   :  { %v12328_v24 = vpop.f32.mrf.mxu1  ;;  %v12012_v46 = vadd.f32 %v21382_v7, %v21621_v34 }
 0x5fd   :  { %12793 = vst [vmem:[#allocation2] sm:$0xff] %v12327_v56  ;;  %v12329_v2 = vadd.f32 %v12328_v24, %v12216_v35  ;;  %v21668_v25 = vpop.f32.mrf.mxu0  ;;  %v12228_v56 = vadd.f32 %v21519_v6, %v12115_v22  ;;  %v12121_v36 = vadd.f32 %v21466_v52, %v12008_v58  ;;  %v12014_v6 = vadd.f32 %v21387_v15, %v21630_v1 }
 0x5fe   :  { %v12330_v10 = vpop.f32.mrf.mxu1  ;;  %v12125_v7 = vadd.f32 %v21482_v50, %v12012_v46 }
 0x5ff   :  { %12794 = vst [vmem:[#allocation2 + $0x8] sm:$0xff] %v12329_v2  ;;  %v12331_v54 = vadd.f32 %v12330_v10, %v12218_v39  ;;  %v21674_v37 = vpop.f32.mrf.mxu0  ;;  %v12230_v39 = vadd.f32 %v21522_v55, %v12117_v40  ;;  %v12234_v47 = vadd.f32 %v21527_v38, %v12121_v36  ;;  %v12018_v55 = vadd.f32 %v21396_v3, %v21621_v34 }
 0x600   :  { %v12332_v33 = vpop.f32.mrf.mxu1  ;;  %v12127_v15 = vadd.f32 %v21489_v61, %v12014_v6  ;;  %v12020_v38 = vadd.f32 %v21403_v59, %v21630_v1  ;;  %v12238_v27 = vadd.f32 %v21533_v29, %v12125_v7  ;;  %v12024_v29 = vadd.f32 %v21415_v21, %v21630_v1  ;;  %v23051_v21 = vld [vmem:[#allocation56_spill] sm:$0xff] }
 0x601   :  { %12796 = vst [vmem:[#allocation2 + $0x18] sm:$0xff] %v12331_v54  ;;  %v12333_v24 = vadd.f32 %v12332_v33, %v12220_v43  ;;  %v21680_v41 = vpop.f32.mrf.mxu0  ;;  %v12236_v54 = vadd.f32 %v21529_v0, %v12123_v26  ;;  %v12131_v3 = vadd.f32 %v21497_v9, %v12018_v55  ;;  %v12022_v0 = vadd.f32 %v21410_v62, %v21621_v34 }
 0x602   :  { %v12336_v23 = vpop.f32.mrf.mxu1  ;;  %v12133_v59 = vadd.f32 %v21503_v57, %v12020_v38 }
 0x603   :  { %12797 = vst [vmem:[#allocation2 + $0x20] sm:$0xff] %v12333_v24  ;;  %v12337_v32 = vadd.f32 %v12336_v23, %v12224_v17  ;;  %v21686_v13 = vpop.f32.mrf.mxu0  ;;  %v12240_v23 = vadd.f32 %v21536_v18, %v12127_v15  ;;  %v12135_v62 = vadd.f32 %v21511_v60, %v12022_v0  ;;  %v23050_v18 = vld [vmem:[#allocation40_spill] sm:$0xff]  ;;  %v23060_v15 = vld [vmem:[#allocation63_spill] sm:$0xff] }
 0x604   :  { %v12338_v35 = vpop.f32.mrf.mxu1  ;;  %v12028_v40 = vadd.f32 %v23050_v18, %v21621_v34  ;;  %v12246_v44 = vadd.f32 %v21543_v51, %v12133_v59  ;;  %v23055_v51 = vld [vmem:[#allocation42_spill] sm:$0xff] }
 0x605   :  { %12799 = vst [vmem:[#allocation2 + $0x30] sm:$0xff] %v12337_v32  ;;  %v12339_v31 = vadd.f32 %v12338_v35, %v12226_v4  ;;  %v21692_v8 = vpop.f32.mrf.mxu0  ;;  %v12244_v4 = vadd.f32 %v21541_v14, %v12131_v3  ;;  %v23052_v14 = vld [vmem:[#allocation41_spill] sm:$0xff]  ;;  %v12248_v46 = vadd.f32 %v21547_v5, %v12135_v62  ;;  %v12032_v6 = vadd.f32 %v23055_v51, %v21621_v34  ;;  %v23059_v5 = vld [vmem:[#allocation43_spill] sm:$0xff] }
 0x606   :  { %v12340_v12 = vpop.f32.mrf.mxu1  ;;  %v12030_v36 = vadd.f32 %v23052_v14, %v21630_v1  ;;  %v23062_v3 = vld [vmem:[#allocation59_spill] sm:$0xff]  ;;  %v23066_v62 = vld [vmem:[#allocation45_spill] sm:$0xff] }
 0x607   :  { %12800 = vst [vmem:[#allocation2 + $0x38] sm:$0xff] %v12339_v31  ;;  %v12341_v2 = vadd.f32 %v12340_v12, %v12228_v56  ;;  %v21698_v19 = vpop.f32.mrf.mxu0  ;;  %v12137_v12 = vadd.f32 %v23051_v21, %v12024_v29  ;;  %v12145_v0 = vadd.f32 %v23062_v3, %v12032_v6  ;;  %v12040_v18 = vadd.f32 %v23066_v62, %v21630_v1  ;;  %v23068_v21 = vld [vmem:[#allocation62_spill] sm:$0xff] }
 0x608   :  { %v12342_v10 = vpop.f32.mrf.mxu1 }
 0x609   :  { %12802 = vst [vmem:[#allocation2 + $0x48] sm:$0xff] %v12341_v2  ;;  %v12343_v16 = vadd.f32 %v12342_v10, %v12230_v39  ;;  %v21704_v52 = vpop.f32.mrf.mxu0  ;;  %v23054_v10 = vld [vmem:[#allocation57_spill] sm:$0xff] }
 0x60a   :  { %v12346_v43 = vpop.f32.mrf.mxu1  ;;  %v12141_v26 = vadd.f32 %v23054_v10, %v12028_v40  ;;  %v12258_v40 = vadd.f32 %v21561_v53, %v12145_v0  ;;  %v23073_v53 = vld [vmem:[#allocation47_spill] sm:$0xff]  ;;  %v23079_v0 = vld [vmem:[#allocation68_spill] sm:$0xff] }
 0x60b   :  { %12803 = vst [vmem:[#allocation2 + $0x50] sm:$0xff] %v12343_v16  ;;  %v12347_v33 = vadd.f32 %v12346_v43, %v12234_v47  ;;  %v21710_v20 = vpop.f32.mrf.mxu0  ;;  %v23056_v47 = vld [vmem:[#allocation61_spill] sm:$0xff]  ;;  %v12044_v6 = vadd.f32 %v23073_v53, %v21630_v1 }
 0x60c   :  { %v12348_v42 = vpop.f32.mrf.mxu1  ;;  %v12250_v16 = vadd.f32 %v23056_v47, %v12137_v12  ;;  %v12254_v38 = vadd.f32 %v23060_v15, %v12141_v26  ;;  %v23072_v26 = vld [vmem:[#allocation64_spill] sm:$0xff]  ;;  %v23074_v47 = vld [vmem:[#allocation67_spill] sm:$0xff] }
 0x60d   :  { %12805 = vst [vmem:[#allocation2 + $0x60] sm:$0xff] %v12347_v33  ;;  %v12349_v17 = vadd.f32 %v12348_v42, %v12236_v54  ;;  %v21716_v50 = vpop.f32.mrf.mxu0  ;;  %v23058_v54 = vld [vmem:[#allocation58_spill] sm:$0xff]  ;;  %v12034_v42 = vadd.f32 %v23059_v5, %v21630_v1  ;;  %v12153_v51 = vadd.f32 %v23072_v26, %v12040_v18 }
 0x60e   :  { %v12350_v24 = vpop.f32.mrf.mxu1  ;;  %v12143_v33 = vadd.f32 %v23058_v54, %v12030_v36  ;;  %v23070_v36 = vld [vmem:[#allocation65_spill] sm:$0xff]  ;;  %v23082_v18 = vld [vmem:[#allocation50_spill] sm:$0xff] }
 0x60f   :  { %12806 = vst [vmem:[#allocation2 + $0x68] sm:$0xff] %v12349_v17  ;;  %v12351_v22 = vadd.f32 %v12350_v24, %v12238_v27  ;;  %v21722_v61 = vpop.f32.mrf.mxu0 }
 0x610   :  { %v12352_v58 = vpop.f32.mrf.mxu1 }
 0x611   :  { %12808 = vst [vmem:[#allocation2 + $0x78] sm:$0xff] %v12351_v22  ;;  %v12353_v32 = vadd.f32 %v12352_v58, %v12240_v23  ;;  %v21728_v9 = vpop.f32.mrf.mxu0  ;;  %v23063_v23 = vld [vmem:[#allocation44_spill] sm:$0xff]  ;;  %v12256_v58 = vadd.f32 %v21557_v28, %v12143_v33  ;;  %v23069_v28 = vld [vmem:[#allocation46_spill] sm:$0xff] }
 0x612   :  { %v12356_v35 = vpop.f32.mrf.mxu1  ;;  %v12038_v22 = vadd.f32 %v23063_v23, %v21621_v34  ;;  %v12042_v14 = vadd.f32 %v23069_v28, %v21621_v34  ;;  %v23076_v33 = vld [vmem:[#allocation66_spill] sm:$0xff]  ;;  %v12157_v23 = vadd.f32 %v23079_v0, %v12044_v6  ;;  %v23088_v6 = vld [vmem:[#allocation76_spill] sm:$0xff] }
 0x613   :  { %12809 = vst [vmem:[#allocation2 + $0x80] sm:$0xff] %v12353_v32  ;;  %v12357_v56 = vadd.f32 %v12356_v35, %v12244_v4  ;;  %v21734_v57 = vpop.f32.mrf.mxu0  ;;  %v23065_v32 = vld [vmem:[#allocation60_spill] sm:$0xff] }
 0x614   :  { %v12358_v31 = vpop.f32.mrf.mxu1  ;;  %v12147_v35 = vadd.f32 %v23065_v32, %v12034_v42  ;;  %v12151_v12 = vadd.f32 %v23068_v21, %v12038_v22  ;;  %v12155_v5 = vadd.f32 %v23076_v33, %v12042_v14  ;;  %v23077_v42 = vld [vmem:[#allocation48_spill] sm:$0xff]  ;;  %v23080_v22 = vld [vmem:[#allocation49_spill] sm:$0xff]  ;;  %v23085_v14 = vld [vmem:[#allocation51_spill] sm:$0xff] }
 0x615   :  { %12811 = vst [vmem:[#allocation2 + $0x90] sm:$0xff] %v12357_v56  ;;  %v12359_v39 = vadd.f32 %v12358_v31, %v12246_v44  ;;  %v21740_v60 = vpop.f32.mrf.mxu0  ;;  %v12048_v15 = vadd.f32 %v23077_v42, %v21621_v34 }
 0x616   :  { %23053 = vst [vmem:[#allocation95_spill] sm:$0xff] %v21740_v60  ;;  %v12360_v2 = vpop.f32.mrf.mxu1  ;;  %v23127_v60 = vld [vmem:[#allocation90_spill] sm:$0xff] }
 0x617   :  { %12812 = vst [vmem:[#allocation2 + $0x98] sm:$0xff] %v12359_v39  ;;  %v12361_v43 = vadd.f32 %v12360_v2, %v12248_v46  ;;  %v21746_v7 = vpop.f32.mrf.mxu0  ;;  %v12260_v46 = vadd.f32 %v23070_v36, %v12147_v35  ;;  %v23081_v35 = vld [vmem:[#allocation71_spill] sm:$0xff]  ;;  %v23086_v36 = vld [vmem:[#allocation72_spill] sm:$0xff] }
 0x618   :  { %23057 = vst [vmem:[#allocation97_spill] sm:$0xff] %v21746_v7  ;;  %v12362_v55 = vpop.f32.mrf.mxu1  ;;  %v12161_v62 = vadd.f32 %v23081_v35, %v12048_v15  ;;  %v23092_v15 = vld [vmem:[#allocation77_spill] sm:$0xff] }
 0x619   :  { %12814 = vst [vmem:[#allocation2 + $0xa8] sm:$0xff] %v12361_v43  ;;  %v12363_v27 = vadd.f32 %v12362_v55, %v12250_v16  ;;  %v21752_v17 = vpop.f32.mrf.mxu0  ;;  %v12264_v16 = vadd.f32 %v23074_v47, %v12151_v12 }
 0x61a   :  { %23061 = vst [vmem:[#allocation98_spill] sm:$0xff] %v21752_v17  ;;  %v12366_v24 = vpop.f32.mrf.mxu1  ;;  %v23122_v17 = vld [vmem:[#allocation87_spill] sm:$0xff] }
 0x61b   :  { %12815 = vst [vmem:[#allocation2 + $0xb0] sm:$0xff] %v12363_v27  ;;  %v12367_v59 = vadd.f32 %v12366_v24, %v12254_v38  ;;  %v21758_v29 = vpop.f32.mrf.mxu0  ;;  %v12266_v38 = vadd.f32 %v21571_v48, %v12153_v51  ;;  %v12052_v48 = vadd.f32 %v23082_v18, %v21621_v34  ;;  %v23087_v51 = vld [vmem:[#allocation52_spill] sm:$0xff] }
 0x61c   :  { %23064 = vst [vmem:[#allocation99_spill] sm:$0xff] %v21758_v29  ;;  %v12368_v4 = vpop.f32.mrf.mxu1  ;;  %v12058_v53 = vadd.f32 %v23087_v51, %v21621_v34 }
 0x61d   :  { %12817 = vst [vmem:[#allocation2 + $0xc0] sm:$0xff] %v12367_v59  ;;  %v12369_v44 = vadd.f32 %v12368_v4, %v12256_v58  ;;  %v21764_v56 = vpop.f32.mrf.mxu0  ;;  %v12050_v58 = vadd.f32 %v23080_v22, %v21630_v1  ;;  %v12268_v59 = vadd.f32 %v21575_v11, %v12155_v5  ;;  %v12054_v11 = vadd.f32 %v23085_v14, %v21630_v1  ;;  %v23091_v5 = vld [vmem:[#allocation53_spill] sm:$0xff]  ;;  %v23100_v14 = vld [vmem:[#allocation91_spill] sm:$0xff] }
 0x61e   :  { %23067 = vst [vmem:[#allocation100_spill] sm:$0xff] %v21764_v56  ;;  %v12370_v31 = vpop.f32.mrf.mxu1  ;;  %v12165_v26 = vadd.f32 %v21595_v30, %v12052_v48  ;;  %v12060_v42 = vadd.f32 %v23091_v5, %v21630_v1  ;;  %v23098_v48 = vld [vmem:[#allocation55_spill] sm:$0xff] }
 0x61f   :  { %12818 = vst [vmem:[#allocation2 + $0xc8] sm:$0xff] %v12369_v44  ;;  %v12371_v39 = vadd.f32 %v12370_v31, %v12258_v40  ;;  %v21770_v2 = vpop.f32.mrf.mxu0  ;;  %v23083_v40 = vld [vmem:[#allocation70_spill] sm:$0xff]  ;;  %v12163_v28 = vadd.f32 %v21587_v45, %v12050_v58 }
 0x620   :  { %23071 = vst [vmem:[#allocation101_spill] sm:$0xff] %v21770_v2  ;;  %v12372_v10 = vpop.f32.mrf.mxu1  ;;  %v12270_v44 = vadd.f32 %v23083_v40, %v12157_v23  ;;  %v23094_v23 = vld [vmem:[#allocation54_spill] sm:$0xff]  ;;  %v12064_v40 = vadd.f32 %v23098_v48, %v21630_v1  ;;  %v23118_v2 = vld [vmem:[#allocation96_spill] sm:$0xff] }
 0x621   :  { %12820 = vst [vmem:[#allocation2 + $0xd8] sm:$0xff] %v12371_v39  ;;  %v12373_v43 = vadd.f32 %v12372_v10, %v12260_v46  ;;  %v21776_v55 = vpop.f32.mrf.mxu0  ;;  %v12274_v46 = vadd.f32 %v23086_v36, %v12161_v62  ;;  %v12276_v47 = vadd.f32 %v23088_v6, %v12163_v28  ;;  %v12062_v22 = vadd.f32 %v23094_v23, %v21621_v34  ;;  %v23095_v58 = vld [vmem:[#allocation78_spill] sm:$0xff]  ;;  %v23097_v62 = vld [vmem:[#allocation88_spill] sm:$0xff] }
 0x622   :  { %23075 = vst [vmem:[#allocation102_spill] sm:$0xff] %v21776_v55  ;;  %v12376_v54 = vpop.f32.mrf.mxu1  ;;  %v12173_v18 = vadd.f32 %v23097_v62, %v12060_v42  ;;  %v23101_v34 = vld [vmem:[#allocation80_spill] sm:$0xff]  ;;  %v23119_v56 = vsub.s32 2, %v23118_v2 }
 0x623   :  { %12821 = vst [vmem:[#allocation2 + $0xe0] sm:$0xff] %v12373_v43  ;;  %v12377_v27 = vadd.f32 %v12376_v54, %v12264_v16  ;;  %v21782_v24 = vpop.f32.mrf.mxu0  ;;  %v23090_v54 = vld [vmem:[#allocation81_spill] sm:$0xff] }
 0x624   :  { %23078 = vst [vmem:[#allocation103_spill] sm:$0xff] %v21782_v24  ;;  %v12378_v3 = vpop.f32.mrf.mxu1  ;;  %v12167_v33 = vadd.f32 %v23090_v54, %v12054_v11  ;;  %v12175_v11 = vadd.f32 %v23100_v14, %v12062_v22  ;;  %v12286_v36 = vadd.f32 %v23101_v34, %v12173_v18 }
 0x625   :  { %12823 = vst [vmem:[#allocation2 + $0xf0] sm:$0xff] %v12377_v27  ;;  %v12379_v4 = vadd.f32 %v12378_v3, %v12266_v38  ;;  %v21792_v21 = vpop.f32.mrf.mxu0  ;;  %v12278_v38 = vadd.f32 %v23092_v15, %v12165_v26  ;;  %v23093_v3 = vld [vmem:[#allocation85_spill] sm:$0xff]  ;;  %v23103_v26 = vld [vmem:[#allocation94_spill] sm:$0xff] }
 0x626   :  { %v12380_v32 = vpop.f32.mrf.mxu1  ;;  %23084 = vst [vmem:[#allocation104_spill] sm:$0xff] %v21792_v21  ;;  %v12171_v0 = vadd.f32 %v23093_v3, %v12058_v53  ;;  %v12177_v51 = vadd.f32 %v23103_v26, %v12064_v40  ;;  %v23104_v53 = vld [vmem:[#allocation82_spill] sm:$0xff] }
 0x627   :  { %12824 = vst [vmem:[#allocation2 + $0xf8] sm:$0xff] %v12379_v4  ;;  %v12381_v31 = vadd.f32 %v12380_v32, %v12268_v59  ;;  %v21802_v43 = vpop.f32.mrf.mxu0  ;;  %v12280_v59 = vadd.f32 %v23095_v58, %v12167_v33  ;;  %v12288_v6 = vadd.f32 %v23104_v53, %v12175_v11 }
 0x628   :  { %v12382_v12 = vpop.f32.mrf.mxu1  ;;  %23089 = vst [vmem:[#allocation105_spill] sm:$0xff] %v21802_v43 }
 0x629   :  { %12826 = vst [vmem:[#allocation2 + $0x108] sm:$0xff] %v12381_v31  ;;  %v12383_v39 = vadd.f32 %v12382_v12, %v12270_v44  ;;  %v21812_v32 = vpop.f32.mrf.mxu0  ;;  %v23099_v44 = vld [vmem:[#allocation79_spill] sm:$0xff] }
 0x62a   :  { %v12386_v10 = vpop.f32.mrf.mxu1  ;;  %23096 = vst [vmem:[#allocation106_spill] sm:$0xff] %v21812_v32  ;;  %v12284_v31 = vadd.f32 %v23099_v44, %v12171_v0 }
 0x62b   :  { %12827 = vst [vmem:[#allocation2 + $0x110] sm:$0xff] %v12383_v39  ;;  %v12387_v16 = vadd.f32 %v12386_v10, %v12274_v46  ;;  %v21820_v39 = vpop.f32.mrf.mxu0 }
 0x62c   :  { %v12388_v45 = vpop.f32.mrf.mxu1  ;;  %23102 = vst [vmem:[#allocation107_spill] sm:$0xff] %v21820_v39 }
 0x62d   :  { %12829 = vst [vmem:[#allocation2 + $0x120] sm:$0xff] %v12387_v16  ;;  %v12389_v27 = vadd.f32 %v12388_v45, %v12276_v47  ;;  %v23105_v16 = vld [vmem:[#allocation83_spill] sm:$0xff]  ;;  %v21825_v33 = vpop.f32.mrf.mxu0 }
 0x62e   :  { %v12390_v30 = vpop.f32.mrf.mxu1  ;;  %v12290_v45 = vadd.f32 %v23105_v16, %v12177_v51 }
 0x62f   :  { %12830 = vst [vmem:[#allocation2 + $0x128] sm:$0xff] %v12389_v27  ;;  %v12391_v4 = vadd.f32 %v12390_v30, %v12278_v38  ;;  %v14346_v38 = vpop.f32.mrf.mxu0 }
 0x630   :  { %v12392_v35 = vpop.f32.mrf.mxu1 }
 0x631   :  { %12832 = vst [vmem:[#allocation2 + $0x138] sm:$0xff] %v12391_v4  ;;  %v12393_v12 = vadd.f32 %v12392_v35, %v12280_v59  ;;  %v21827_v3 = vpop.f32.mrf.mxu0 }
 0x632   :  { %v12396_v28 = vpop.f32.mrf.mxu1 }
 0x633   :  { %12833 = vst [vmem:[#allocation2 + $0x140] sm:$0xff] %v12393_v12  ;;  %v12397_v46 = vadd.f32 %v12396_v28, %v12284_v31  ;;  %v14349_v22 = vpop.f32.mrf.mxu0 }
 0x634   :  { %v12398_v10 = vpop.f32.mrf.mxu1 }
 0x635   :  { %12835 = vst [vmem:[#allocation2 + $0x150] sm:$0xff] %v12397_v46  ;;  %v12399_v1 = vadd.f32 %v12398_v10, %v12286_v36  ;;  %v21831_v4 = vpop.f32.mrf.mxu0 }
 0x636   :  { %v12400_v47 = vpop.f32.mrf.mxu1 }
 0x637   :  { %12836 = vst [vmem:[#allocation2 + $0x158] sm:$0xff] %v12399_v1  ;;  %v12401_v54 = vadd.f32 %v12400_v47, %v12288_v6  ;;  %v21835_v18 = vpop.f32.mrf.mxu0 }
 0x638   :  { %v12402_v5 = vpop.f32.mrf.mxu1 }
 0x639   :  { %12838 = vst [vmem:[#allocation2 + $0x168] sm:$0xff] %v12401_v54  ;;  %v12403_v42 = vadd.f32 %v12402_v5, %v12290_v45  ;;  %v21841_v44 = vpop.f32.mrf.mxu0 }
 0x63a   :  { %v14281_v15 = vpop.f32.mrf.mxu1 }
 0x63b   :  { %12839 = vst [vmem:[#allocation2 + $0x170] sm:$0xff] %v12403_v42  ;;  %v21847_v28 = vpop.f32.mrf.mxu0 }
 0x63c   :  { %v14282_v27 = vpop.f32.mrf.mxu1 }
 0x63d   :  { %v21853_v34 = vpop.f32.mrf.mxu0 }
 0x63e   :  { %v14284_v30 = vpop.f32.mrf.mxu1 }
 0x63f   :  { %v21859_v10 = vpop.f32.mrf.mxu0 }
 0x640   :  { %v14285_v0 = vpop.f32.mrf.mxu1 }
 0x641   :  { %v21865_v53 = vpop.f32.mrf.mxu0 }
 0x642   :  { %v14287_v23 = vpop.f32.mrf.mxu1 }
 0x643   :  { %v21871_v47 = vpop.f32.mrf.mxu0 }
 0x644   :  { %v14288_v58 = vpop.f32.mrf.mxu1 }
 0x645   :  { %v21877_v54 = vpop.f32.mrf.mxu0 }
 0x646   :  { %v21829_v59 = vpop.f32.mrf.mxu1 }
 0x647   :  { %v21883_v39 = vpop.f32.mrf.mxu0 }
 0x648   :  { %v14291_v35 = vpop.f32.mrf.mxu1 }
 0x649   :  { %v21889_v21 = vpop.f32.mrf.mxu0 }
 0x64a   :  { %v21833_v62 = vpop.f32.mrf.mxu1  ;;  %23115 = vst [vmem:[#allocation117_spill] sm:$0xff] %v21889_v21  ;;  %v14289_v21 = vadd.f32 %v14288_v58, %v14287_v23 }
 0x64c   :  { %v21837_v48 = vpop.f32.mrf.mxu1 }
 0x64e   :  { %v21839_v40 = vpop.f32.mrf.mxu1 }
 0x650   :  { %v21843_v31 = vpop.f32.mrf.mxu1 }
 0x652   :  { %v21845_v12 = vpop.f32.mrf.mxu1 }
 0x654   :  { %v21849_v14 = vpop.f32.mrf.mxu1 }
 0x656   :  { %v21851_v11 = vpop.f32.mrf.mxu1 }
 0x658   :  { %v21855_v36 = vpop.f32.mrf.mxu1 }
 0x65a   :  { %v21857_v46 = vpop.f32.mrf.mxu1 }
 0x65c   :  { %v21861_v26 = vpop.f32.mrf.mxu1 }
 0x65e   :  { %v21863_v51 = vpop.f32.mrf.mxu1 }
 0x65f   :  { %23106 = vst [vmem:[#allocation108_spill] sm:$0xff] %v21863_v51 }
 0x660   :  { %v21867_v6 = vpop.f32.mrf.mxu1 }
 0x661   :  { %23107 = vst [vmem:[#allocation109_spill] sm:$0xff] %v21867_v6 }
 0x662   :  { %v21869_v1 = vpop.f32.mrf.mxu1 }
 0x663   :  { %23108 = vst [vmem:[#allocation110_spill] sm:$0xff] %v21869_v1 }
 0x664   :  { %v21873_v16 = vpop.f32.mrf.mxu1 }
 0x665   :  { %23109 = vst [vmem:[#allocation111_spill] sm:$0xff] %v21873_v16  ;;  %v21902_v16 = vpop.f32.mrf.mxu0 }
 0x666   :  { %v21875_v45 = vpop.f32.mrf.mxu1  ;;  %23123 = vst [vmem:[#allocation121_spill] sm:$0xff] %v21902_v16  ;;  %v23131_v16 = vld [vmem:[#allocation93_spill] sm:$0xff] }
 0x667   :  { %23110 = vst [vmem:[#allocation112_spill] sm:$0xff] %v21875_v45  ;;  %v23120_v45 = vld [vmem:[#allocation84_spill] sm:$0xff]  ;;  %v21911_v6 = vpop.f32.mrf.mxu0 }
 0x668   :  { %v21879_v5 = vpop.f32.mrf.mxu1  ;;  %v21898_v29 = vrot.slane %v23120_v45, %v23119_v56  ;;  %23128 = vst [vmem:[#allocation128_spill] sm:$0xff] %v21911_v6  ;;  %v14286_v45 = vadd.f32 %v14285_v0, %v14284_v30 }
 0x669   :  { %23111 = vst [vmem:[#allocation113_spill] sm:$0xff] %v21879_v5  ;;  %v23121_v5 = vld [vmem:[#allocation86_spill] sm:$0xff] }
 0x66a   :  { %v21881_v42 = vpop.f32.mrf.mxu1 }
 0x66b   :  { %23112 = vst [vmem:[#allocation114_spill] sm:$0xff] %v21881_v42  ;;  %v14219_v42 = vadd.f32 %v23122_v17, %v23121_v5  ;;  %v23130_v5 = vld [vmem:[#allocation92_spill] sm:$0xff] }
 0x66c   :  { %v21885_v32 = vpop.f32.mrf.mxu1 }
 0x66d   :  { %23113 = vst [vmem:[#allocation115_spill] sm:$0xff] %v21885_v32  ;;  %v14283_v32 = vadd.f32 %v14282_v27, %v14281_v15  ;;  %v12440_v7 = vadd.f32 %v14219_v42, %v21898_v29  ;;  %v14347_v15 = vadd.f32 %v14346_v38, %v21825_v33  ;;  %v21919_v27 = vpop.f32.mrf.mxu0  ;;  %v14292_v38 = vadd.f32 %v14291_v35, %v21829_v59 }
 0x66e   :  { %v21887_v43 = vpop.f32.mrf.mxu1 }
 0x66f   :  { %23114 = vst [vmem:[#allocation116_spill] sm:$0xff] %v21887_v43  ;;  %v12537_v56 = vadd.f32 %v14283_v32, %v12440_v7  ;;  %v14228_v7 = vadd.f32 %v21662_v49, %v21656_v63  ;;  %v21925_v30 = vpop.f32.mrf.mxu0  ;;  %v14353_v49 = vadd.f32 %v21835_v18, %v21831_v4 }
 0x670   :  { %v21891_v24 = vpop.f32.mrf.mxu1 }
 0x671   :  { %23116 = vst [vmem:[#allocation118_spill] sm:$0xff] %v21891_v24  ;;  %v23126_v24 = vld [vmem:[#allocation89_spill] sm:$0xff] }
 0x672   :  { %v21893_v55 = vpop.f32.mrf.mxu1 }
 0x673   :  { %23117 = vst [vmem:[#allocation120_spill] sm:$0xff] %v21893_v55  ;;  %v14222_v55 = vadd.f32 %v23127_v60, %v23126_v24  ;;  %v12634_v60 = vadd.f32 %v14347_v15, %v12537_v56 }
 0x674   :  { %v21904_v1 = vpop.f32.mrf.mxu1 }
 0x675   :  { %23124 = vst [vmem:[#allocation124_spill] sm:$0xff] %v21904_v1  ;;  %v12443_v17 = vadd.f32 %v14222_v55, %v21898_v29  ;;  %v14225_v1 = vadd.f32 %v23131_v16, %v23130_v5  ;;  %v14350_v55 = vadd.f32 %v14349_v22, %v21827_v3  ;;  %v21933_v3 = vpop.f32.mrf.mxu0 }
 0x676   :  { %v21906_v43 = vpop.f32.mrf.mxu1 }
 0x677   :  { %23125 = vst [vmem:[#allocation126_spill] sm:$0xff] %v21906_v43  ;;  %v12540_v43 = vadd.f32 %v14286_v45, %v12443_v17  ;;  %v21942_v18 = vpop.f32.mrf.mxu0 }
 0x678   :  { %v21913_v2 = vpop.f32.mrf.mxu1 }
 0x679   :  { %23129 = vst [vmem:[#allocation129_spill] sm:$0xff] %v21913_v2  ;;  %v12448_v2 = vadd.f32 %v14225_v1, %v21898_v29  ;;  %v12637_v16 = vadd.f32 %v14350_v55, %v12540_v43  ;;  %v14231_v1 = vadd.f32 %v21674_v37, %v21668_v25  ;;  %v14234_v25 = vadd.f32 %v21686_v13, %v21680_v41 }
 0x67a   :  { %v14409_v51 = vpop.f32.mrf.mxu1  ;;  %v14356_v37 = vadd.f32 %v21847_v28, %v21841_v44  ;;  %v14237_v41 = vadd.f32 %v21698_v19, %v21692_v8  ;;  %v14359_v13 = vadd.f32 %v21859_v10, %v21853_v34  ;;  %v21951_v28 = vpop.f32.mrf.mxu0  ;;  %v14240_v8 = vadd.f32 %v21710_v20, %v21704_v52 }
 0x67b   :  { %v12545_v33 = vadd.f32 %v14289_v21, %v12448_v2  ;;  %v14295_v21 = vadd.f32 %v21837_v48, %v21833_v62  ;;  %v14298_v62 = vadd.f32 %v21843_v31, %v21839_v40  ;;  %v12459_v15 = vadd.f32 %v14234_v25, %v21898_v29 }
 0x67c   :  { %v14410_v42 = vpop.f32.mrf.mxu1  ;;  %v14301_v40 = vadd.f32 %v21849_v14, %v21845_v12  ;;  %v12464_v55 = vadd.f32 %v14237_v41, %v21898_v29  ;;  %v14362_v19 = vadd.f32 %v21871_v47, %v21865_v53  ;;  %v21960_v10 = vpop.f32.mrf.mxu0  ;;  %v14304_v12 = vadd.f32 %v21855_v36, %v21851_v11 }
 0x67d   :  { %v14411_v24 = vadd.f32 %v14410_v42, %v14409_v51  ;;  %v12451_v51 = vadd.f32 %v14228_v7, %v21898_v29  ;;  %v12642_v43 = vadd.f32 %v14353_v49, %v12545_v33  ;;  %v14243_v52 = vadd.f32 %v21722_v61, %v21716_v50  ;;  %v23132_v50 = vld [vmem:[#allocation117_spill] sm:$0xff] }
 0x67e   :  { %v14412_v6 = vpop.f32.mrf.mxu1  ;;  %v14365_v20 = vadd.f32 %v21883_v39, %v21877_v54  ;;  %v14379_v47 = vpop.f32.mrf.mxu0  ;;  %v23133_v61 = vld [vmem:[#allocation121_spill] sm:$0xff] }
 0x67f   :  { %v12731_v32 = vadd.f32 %v14411_v24, %v12634_v60  ;;  %v12548_v56 = vadd.f32 %v14292_v38, %v12451_v51  ;;  %v12556_v60 = vadd.f32 %v14298_v62, %v12459_v15  ;;  %v14307_v51 = vadd.f32 %v21861_v26, %v21857_v46  ;;  %v23140_v15 = vld [vmem:[#allocation111_spill] sm:$0xff] }
 0x680   :  { %v14413_v0 = vpop.f32.mrf.mxu1  ;;  %v12472_v49 = vadd.f32 %v14243_v52, %v21898_v29  ;;  %v14381_v54 = vpop.f32.mrf.mxu0  ;;  %v23146_v52 = vld [vmem:[#allocation101_spill] sm:$0xff] }
 0x681   :  { %12795 = vst [vmem:[#allocation2 + $0x10] sm:$0xff] %v12731_v32  ;;  %v14414_v23 = vadd.f32 %v14413_v0, %v14412_v6  ;;  %v12456_v6 = vadd.f32 %v14231_v1, %v21898_v29  ;;  %v12645_v48 = vadd.f32 %v14356_v37, %v12548_v56  ;;  %v12561_v0 = vadd.f32 %v14301_v40, %v12464_v55  ;;  %v23136_v37 = vld [vmem:[#allocation95_spill] sm:$0xff]  ;;  %v23141_v40 = vld [vmem:[#allocation98_spill] sm:$0xff] }
 0x682   :  { %v14415_v58 = vpop.f32.mrf.mxu1  ;;  %v12653_v14 = vadd.f32 %v14362_v19, %v12556_v60  ;;  %v14382_v62 = vpop.f32.mrf.mxu0 }
 0x683   :  { %v12734_v63 = vadd.f32 %v14414_v23, %v12637_v16  ;;  %v12553_v45 = vadd.f32 %v14295_v21, %v12456_v6  ;;  %v12467_v16 = vadd.f32 %v14240_v8, %v21898_v29  ;;  %v12658_v11 = vadd.f32 %v14365_v20, %v12561_v0 }
 0x684   :  { %v14416_v22 = vpop.f32.mrf.mxu1  ;;  %v12569_v21 = vadd.f32 %v14307_v51, %v12472_v49  ;;  %v14384_v55 = vpop.f32.mrf.mxu0  ;;  %v23147_v51 = vld [vmem:[#allocation114_spill] sm:$0xff] }
 0x685   :  { %12798 = vst [vmem:[#allocation2 + $0x28] sm:$0xff] %v12734_v63  ;;  %v14417_v59 = vadd.f32 %v14416_v22, %v14415_v58  ;;  %v12650_v31 = vadd.f32 %v14359_v13, %v12553_v45  ;;  %v12564_v58 = vadd.f32 %v14304_v12, %v12467_v16  ;;  %v14246_v63 = vadd.f32 %v21734_v57, %v21728_v9  ;;  %v23138_v9 = vld [vmem:[#allocation128_spill] sm:$0xff] }
 0x686   :  { %v14418_v35 = vpop.f32.mrf.mxu1  ;;  %v14368_v22 = vadd.f32 %v23133_v61, %v23132_v50  ;;  %v14371_v57 = vadd.f32 %v21919_v27, %v23138_v9  ;;  %v23145_v16 = vld [vmem:[#allocation100_spill] sm:$0xff]  ;;  %v23149_v61 = vld [vmem:[#allocation102_spill] sm:$0xff] }
 0x687   :  { %v12739_v4 = vadd.f32 %v14417_v59, %v12642_v43  ;;  %v23134_v43 = vld [vmem:[#allocation108_spill] sm:$0xff]  ;;  %v23135_v59 = vld [vmem:[#allocation109_spill] sm:$0xff]  ;;  %v12475_v25 = vadd.f32 %v14246_v63, %v21898_v29  ;;  %v14255_v20 = vadd.f32 %v23146_v52, %v23145_v16 }
 0x688   :  { %v14419_v2 = vpop.f32.mrf.mxu1  ;;  %v12661_v46 = vadd.f32 %v14368_v22, %v12564_v58  ;;  %v12666_v13 = vadd.f32 %v14371_v57, %v12569_v21  ;;  %v23150_v22 = vld [vmem:[#allocation103_spill] sm:$0xff]  ;;  %v14383_v57 = vadd.f32 %v14382_v62, %v14381_v54 }
 0x689   :  { %12801 = vst [vmem:[#allocation2 + $0x40] sm:$0xff] %v12739_v4  ;;  %v14420_v17 = vadd.f32 %v14419_v2, %v14418_v35  ;;  %v14310_v35 = vadd.f32 %v23135_v59, %v23134_v43  ;;  %v23137_v4 = vld [vmem:[#allocation97_spill] sm:$0xff]  ;;  %v12488_v50 = vadd.f32 %v14255_v20, %v21898_v29  ;;  %v23151_v59 = vld [vmem:[#allocation116_spill] sm:$0xff] }
 0x68a   :  { %v14421_v5 = vpop.f32.mrf.mxu1  ;;  %v14249_v2 = vadd.f32 %v23137_v4, %v23136_v37  ;;  %v23153_v4 = vld [vmem:[#allocation104_spill] sm:$0xff] }
 0x68b   :  { %v12742_v44 = vadd.f32 %v14420_v17, %v12645_v48  ;;  %v12572_v17 = vadd.f32 %v14310_v35, %v12475_v25  ;;  %v23152_v35 = vld [vmem:[#allocation118_spill] sm:$0xff] }
 0x68c   :  { %v14422_v42 = vpop.f32.mrf.mxu1  ;;  %v12480_v60 = vadd.f32 %v14249_v2, %v21898_v29  ;;  %v23154_v2 = vld [vmem:[#allocation105_spill] sm:$0xff] }
 0x68d   :  { %12804 = vst [vmem:[#allocation2 + $0x58] sm:$0xff] %v12742_v44  ;;  %v14423_v24 = vadd.f32 %v14422_v42, %v14421_v5  ;;  %v23139_v5 = vld [vmem:[#allocation110_spill] sm:$0xff]  ;;  %v14261_v9 = vadd.f32 %v23154_v2, %v23153_v4 }
 0x68e   :  { %v14424_v7 = vpop.f32.mrf.mxu1  ;;  %v14313_v41 = vadd.f32 %v23140_v15, %v23139_v5  ;;  %v23156_v5 = vld [vmem:[#allocation124_spill] sm:$0xff] }
 0x68f   :  { %v12747_v34 = vadd.f32 %v14423_v24, %v12650_v31  ;;  %v23142_v31 = vld [vmem:[#allocation99_spill] sm:$0xff] }
 0x690   :  { %v14425_v32 = vpop.f32.mrf.mxu1  ;;  %v14252_v24 = vadd.f32 %v23142_v31, %v23141_v40  ;;  %v12577_v19 = vadd.f32 %v14313_v41, %v12480_v60  ;;  %v23157_v60 = vld [vmem:[#allocation106_spill] sm:$0xff]  ;;  %v23158_v40 = vld [vmem:[#allocation107_spill] sm:$0xff] }
 0x691   :  { %12807 = vst [vmem:[#allocation2 + $0x70] sm:$0xff] %v12747_v34  ;;  %v14426_v33 = vadd.f32 %v14425_v32, %v14424_v7  ;;  %v14374_v7 = vadd.f32 %v21933_v3, %v21925_v30  ;;  %v23143_v34 = vld [vmem:[#allocation112_spill] sm:$0xff]  ;;  %v23144_v32 = vld [vmem:[#allocation113_spill] sm:$0xff]  ;;  %v14385_v3 = vpop.f32.mrf.mxu0  ;;  %v14264_v31 = vadd.f32 %v23158_v40, %v23157_v60 }
 0x692   :  { %v14427_v38 = vpop.f32.mrf.mxu1  ;;  %v14316_v0 = vadd.f32 %v23144_v32, %v23143_v34 }
 0x693   :  { %v12750_v53 = vadd.f32 %v14426_v33, %v12653_v14  ;;  %v12669_v12 = vadd.f32 %v14374_v7, %v12572_v17  ;;  %v23155_v17 = vld [vmem:[#allocation120_spill] sm:$0xff] }
 0x694   :  { %v14428_v23 = vpop.f32.mrf.mxu1  ;;  %v14325_v15 = vadd.f32 %v23156_v5, %v23155_v17 }
 0x695   :  { %12810 = vst [vmem:[#allocation2 + $0x88] sm:$0xff] %v12750_v53  ;;  %v14429_v36 = vadd.f32 %v14428_v23, %v14427_v38  ;;  %v12483_v38 = vadd.f32 %v14252_v24, %v21898_v29  ;;  %v14377_v53 = vadd.f32 %v21951_v28, %v21942_v18  ;;  %v14387_v18 = vpop.f32.mrf.mxu0  ;;  %v14386_v24 = vadd.f32 %v14385_v3, %v14384_v55 }
 0x696   :  { %v14430_v1 = vpop.f32.mrf.mxu1 }
 0x697   :  { %v12755_v39 = vadd.f32 %v14429_v36, %v12658_v11  ;;  %v12580_v58 = vadd.f32 %v14316_v0, %v12483_v38  ;;  %v23148_v11 = vld [vmem:[#allocation115_spill] sm:$0xff] }
 0x698   :  { %v14431_v56 = vpop.f32.mrf.mxu1  ;;  %v14319_v36 = vadd.f32 %v23148_v11, %v23147_v51 }
 0x699   :  { %12813 = vst [vmem:[#allocation2 + $0xa0] sm:$0xff] %v12755_v39  ;;  %v14432_v26 = vadd.f32 %v14431_v56, %v14430_v1  ;;  %v12674_v1 = vadd.f32 %v14377_v53, %v12577_v19  ;;  %v14258_v39 = vadd.f32 %v23150_v22, %v23149_v61  ;;  %v14380_v56 = vadd.f32 %v14379_v47, %v21960_v10  ;;  %v23160_v19 = vld [vmem:[#allocation129_spill] sm:$0xff] }
 0x69a   :  { %v14433_v6 = vpop.f32.mrf.mxu1  ;;  %v12585_v43 = vadd.f32 %v14319_v36, %v12488_v50 }
 0x69b   :  { %v12758_v45 = vadd.f32 %v14432_v26, %v12661_v46  ;;  %v14322_v46 = vadd.f32 %v23152_v35, %v23151_v59  ;;  %v12677_v26 = vadd.f32 %v14380_v56, %v12580_v58  ;;  %v12491_v37 = vadd.f32 %v14258_v39, %v21898_v29 }
 0x69c   :  { %v14434_v48 = vpop.f32.mrf.mxu1  ;;  %v12682_v41 = vadd.f32 %v14383_v57, %v12585_v43 }
 0x69d   :  { %12816 = vst [vmem:[#allocation2 + $0xb8] sm:$0xff] %v12758_v45  ;;  %v14435_v44 = vadd.f32 %v14434_v48, %v14433_v6  ;;  %v14388_v48 = vpop.f32.mrf.mxu0  ;;  %v12588_v47 = vadd.f32 %v14322_v46, %v12491_v37 }
 0x69e   :  { %v14436_v42 = vpop.f32.mrf.mxu1 }
 0x69f   :  { %v12763_v27 = vadd.f32 %v14435_v44, %v12666_v13  ;;  %v12685_v32 = vadd.f32 %v14386_v24, %v12588_v47 }
 0x6a0   :  { %v14437_v8 = vpop.f32.mrf.mxu1 }
 0x6a1   :  { %12819 = vst [vmem:[#allocation2 + $0xd0] sm:$0xff] %v12763_v27  ;;  %v14438_v14 = vadd.f32 %v14437_v8, %v14436_v42  ;;  %v12496_v42 = vadd.f32 %v14261_v9, %v21898_v29  ;;  %v14390_v27 = vpop.f32.mrf.mxu0  ;;  %v23159_v8 = vld [vmem:[#allocation126_spill] sm:$0xff] }
 0x6a2   :  { %v14439_v33 = vpop.f32.mrf.mxu1  ;;  %v14328_v34 = vadd.f32 %v23160_v19, %v23159_v8 }
 0x6a3   :  { %v12766_v30 = vadd.f32 %v14438_v14, %v12669_v12  ;;  %v12593_v62 = vadd.f32 %v14325_v15, %v12496_v42  ;;  %v12499_v14 = vadd.f32 %v14264_v31, %v21898_v29  ;;  %v14391_v16 = vpop.f32.mrf.mxu0 }
 0x6a4   :  { %v14440_v23 = vpop.f32.mrf.mxu1  ;;  %v14392_v3 = vadd.f32 %v14391_v16, %v14390_v27 }
 0x6a5   :  { %12822 = vst [vmem:[#allocation2 + $0xe8] sm:$0xff] %v12766_v30  ;;  %v14441_v49 = vadd.f32 %v14440_v23, %v14439_v33  ;;  %v14389_v33 = vadd.f32 %v14388_v48, %v14387_v18  ;;  %v12596_v20 = vadd.f32 %v14328_v34, %v12499_v14 }
 0x6a6   :  { %v14442_v63 = vpop.f32.mrf.mxu1 }
 0x6a7   :  { %v12771_v21 = vadd.f32 %v14441_v49, %v12674_v1  ;;  %v12690_v55 = vadd.f32 %v14389_v33, %v12593_v62  ;;  %v12693_v51 = vadd.f32 %v14392_v3, %v12596_v20 }
 0x6a8   :  { %v14443_v28 = vpop.f32.mrf.mxu1 }
 0x6a9   :  { %12825 = vst [vmem:[#allocation2 + $0x100] sm:$0xff] %v12771_v21  ;;  %v14444_v6 = vadd.f32 %v14443_v28, %v14442_v63 }
 0x6aa   :  { %v14445_v25 = vpop.f32.mrf.mxu1 }
 0x6ab   :  { %v12774_v45 = vadd.f32 %v14444_v6, %v12677_v26 }
 0x6ac   :  { %v14446_v10 = vpop.f32.mrf.mxu1 }
 0x6ad   :  { %12828 = vst [vmem:[#allocation2 + $0x118] sm:$0xff] %v12774_v45  ;;  %v14447_v13 = vadd.f32 %v14446_v10, %v14445_v25 }
 0x6ae   :  { %v14448_v44 = vpop.f32.mrf.mxu1 }
 0x6af   :  { %v12779_v7 = vadd.f32 %v14447_v13, %v12682_v41 }
 0x6b0   :  { %v14449_v54 = vpop.f32.mrf.mxu1 }
 0x6b1   :  { %12831 = vst [vmem:[#allocation2 + $0x130] sm:$0xff] %v12779_v7  ;;  %v14450_v0 = vadd.f32 %v14449_v54, %v14448_v44 }
 0x6b2   :  { %v14451_v12 = vpop.f32.mrf.mxu1 }
 0x6b3   :  { %v12782_v38 = vadd.f32 %v14450_v0, %v12685_v32 }
 0x6b4   :  { %v14452_v52 = vpop.f32.mrf.mxu1 }
 0x6b5   :  { %12834 = vst [vmem:[#allocation2 + $0x148] sm:$0xff] %v12782_v38  ;;  %v14453_v53 = vadd.f32 %v14452_v52, %v14451_v12 }
 0x6b6   :  { %v14454_v30 = vpop.f32.mrf.mxu1 }
 0x6b7   :  { %v12787_v23 = vadd.f32 %v14453_v53, %v12690_v55 }
 0x6b8   :  { %v14455_v58 = vpop.f32.mrf.mxu1 }
 0x6b9   :  { %12837 = vst [vmem:[#allocation2 + $0x160] sm:$0xff] %v12787_v23  ;;  %v14456_v11 = vadd.f32 %v14455_v58, %v14454_v30 }
 0x6bb   :  { %v12790_v36 = vadd.f32 %v14456_v11, %v12693_v51 }
 0x6bd   :  { %12840 = vst [vmem:[#allocation2 + $0x178] sm:$0xff] %v12790_v36 }
 0x6be   :  { %14730 = shalt.err (!%p14727_p4)
}
 0x6bf   :  { %s14742_s20 = smov 384   ;;  %s14743_s21 = smov 24  }
 0x6c0   :  { %12852 = dma.vmem_to_hbm [thread:$0]  %s12847_s18, 6144, %s22024_s5, [#allocation3], %s14742_s20, %s14742_s20, %s14743_s21  }
 0x6c1   :  { %14739 = dma.done.wait [#allocation3], 6144  }
 0x6c2   :  { %14740 = vsyncadd [#allocation3], 4294961152 }
 0x6c3   :  { %12856 = vsyncpa [#allocation3], 1 }

</bundles_post_ra>
